<compile_context>
chip_gen: v7x
topology: tpu7x:2x2x1
jax: 0.10.0
libtpu: 0.0.40
codegen_flags: <defaults>
</compile_context>

<pallas_src>
import functools

import numpy as np
import jax
import jax.numpy as jnp
from jax.experimental import pallas as pl
from jax.experimental.pallas import tpu as pltpu


def _round_up(x, m):
    return (x + m - 1) // m * m


# ---------------------------------------------------------------------------
# Fused VDSR conv-stack kernel.  One grid step == one batch element.
#
# In-kernel layout: channels on sublanes, flattened spatial (H*W) on lanes.
#   activation buffer: (F, PAD + H*W + PAD)  with a zero halo of PAD per side.
# A 3x3 tap (dh, dw) is the lane-offset slice starting at
#   PAD + (dh-1)*W + (dw-1);
# the vertical boundary is handled by the zero halo, the horizontal wrap by a
# precomputed per-column mask (only needed for the dw=-1 / dw=+1 taps).
# ---------------------------------------------------------------------------
def _make_fused_vdsr_kernel(H, W, C, F, n_main, pad):
    HW = H * W
    L = pad

    def kernel(x0_ref, mask_ref, w_in_ref, b_in_ref, w_main_ref, b_main_ref,
               w_out_ref, b_out_ref, o_ref, act_a, act_b, col_ref):
        cdt = act_a.dtype                        # MXU compute dtype (bf16)
        left_ok = mask_ref[0:1, :]               # (1, HW): 0 where reading w-1 wraps
        right_ok = mask_ref[1:2, :]              # (1, HW): 0 where reading w+1 wraps

        def shifted(src, dh, dw):
            # (Cin, HW) view of `src` shifted by (dh-1, dw-1) with zero padding.
            start = L + (dh - 1) * W + (dw - 1)
            v = src[:, start:start + HW]
            if dw == 0:
                v = v * left_ok
            elif dw == 2:
                v = v * right_ok
            return v

        # Zero the halo regions once per image (centres are always overwritten).
        zero_pad = jnp.zeros((F, L), cdt)
        act_a[:, 0:L] = zero_pad
        act_a[:, L + HW:L + HW + L] = zero_pad
        act_b[:, 0:L] = zero_pad
        act_b[:, L + HW:L + HW + L] = zero_pad

        # ---- input conv + ReLU (Cin = C is tiny: 9 accumulated K=C dots) ----
        x0 = x0_ref[0]                                           # (C, P) f32
        w_in = w_in_ref[...]                                     # (F, 9*C) bf16
        acc = jnp.zeros((F, HW), jnp.float32)
        for dh in range(3):
            for dw in range(3):
                tap = dh * 3 + dw
                v = shifted(x0, dh, dw).astype(cdt)              # (C, HW)
                acc = acc + jnp.dot(w_in[:, tap * C:(tap + 1) * C], v,
                                    preferred_element_type=jnp.float32)
        acc = jnp.maximum(acc + b_in_ref[...], 0.0)
        act_a[:, L:L + HW] = acc.astype(cdt)

        # ---- main layers: im2col + one (F, 9F) @ (9F, HW) MXU matmul each ----
        cur, nxt = act_a, act_b
        for li in range(n_main):
            for dh in range(3):
                for dw in range(3):
                    tap = dh * 3 + dw
                    col_ref[tap * F:(tap + 1) * F, :] = shifted(cur, dh, dw)
            acc = jnp.dot(w_main_ref[li], col_ref[...],
                          preferred_element_type=jnp.float32)    # (F, HW) f32
            acc = jnp.maximum(acc + b_main_ref[li], 0.0)
            nxt[:, L:L + HW] = acc.astype(cdt)
            cur, nxt = nxt, cur

        # ---- output conv + fused global residual (f32 epilogue) ----
        for dh in range(3):
            for dw in range(3):
                tap = dh * 3 + dw
                col_ref[tap * F:(tap + 1) * F, :] = shifted(cur, dh, dw)
        acc = jnp.dot(w_out_ref[...], col_ref[...],
                      preferred_element_type=jnp.float32)        # (C, HW) f32
        acc = acc + b_out_ref[...]
        acc = acc + x0_ref[0, :, L:L + HW]                       # global skip, f32
        o_ref[0] = acc.astype(o_ref.dtype)

    return kernel


def vdsr_conv_stack(x0_padded, masks, packed, *, H, W, pad, compute_dtype):
    """Run the whole VDSR conv stack in one pallas_call.

    x0_padded: (N, C, PAD + H*W + PAD) f32 upsampled input, zero-haloed flat.
    Returns (N, C, H*W) f32.
    """
    N, C, P = x0_padded.shape
    HW = H * W
    w_in, b_in, w_main, b_main, w_out, b_out = packed
    F = w_in.shape[0]
    n_main = w_main.shape[0]

    kernel = _make_fused_vdsr_kernel(H, W, C, F, n_main, pad)

    grid_spec = pltpu.PrefetchScalarGridSpec(
        num_scalar_prefetch=0,
        grid=(N,),
        in_specs=[
            pl.BlockSpec((1, C, P), lambda n: (n, 0, 0)),           # x0 (haloed)
            pl.BlockSpec((2, HW), lambda n: (0, 0)),                # column masks
            pl.BlockSpec((F, 9 * C), lambda n: (0, 0)),             # input weight
            pl.BlockSpec((F, 1), lambda n: (0, 0)),                 # input bias
            pl.BlockSpec((n_main, F, 9 * F), lambda n: (0, 0, 0)),  # main weights
            pl.BlockSpec((n_main, F, 1), lambda n: (0, 0, 0)),      # main biases
            pl.BlockSpec((C, 9 * F), lambda n: (0, 0)),             # output weight
            pl.BlockSpec((C, 1), lambda n: (0, 0)),                 # output bias
        ],
        out_specs=pl.BlockSpec((1, C, HW), lambda n: (n, 0, 0)),    # lane-dense
        scratch_shapes=[
            pltpu.VMEM((F, P), compute_dtype),         # activation ping
            pltpu.VMEM((F, P), compute_dtype),         # activation pong
            pltpu.VMEM((9 * F, HW), compute_dtype),    # im2col scratch
        ],
    )
    return pl.pallas_call(
        kernel,
        out_shape=jax.ShapeDtypeStruct((N, C, HW), jnp.float32),
        grid_spec=grid_spec,
        compiler_params=pltpu.CompilerParams(
            dimension_semantics=("parallel",)),        # batch axis -> both v7x TCs
    )(x0_padded, masks, w_in, b_in, w_main, b_main, w_out, b_out)


# ---------------------------------------------------------------------------
# Bicubic upsample as two dense interpolation-matrix matmuls (no gathers),
# PyTorch nn.Upsample(mode='bicubic', align_corners=False) semantics.
# ---------------------------------------------------------------------------
def _bicubic_matrix(out_size, in_size, scale):
    a = -0.75
    o = np.arange(out_size, dtype=np.float64)
    src = (o + 0.5) / scale - 0.5
    f = np.floor(src)
    t = src - f
    f = f.astype(np.int64)

    def cub(d):
        d = np.abs(d)
        return np.where(
            d <= 1.0,
            ((a + 2.0) * d - (a + 3.0)) * d * d + 1.0,
            np.where(d < 2.0,
                     ((a * d - 5.0 * a) * d + 8.0 * a) * d - 4.0 * a, 0.0))

    ws = np.stack([cub(t + 1.0), cub(t), cub(1.0 - t), cub(2.0 - t)], axis=-1)
    idx = np.clip(np.stack([f - 1, f, f + 1, f + 2], axis=-1), 0, in_size - 1)
    U = np.zeros((out_size, in_size), dtype=np.float64)
    np.add.at(U, (np.repeat(np.arange(out_size), 4), idx.reshape(-1)),
              ws.reshape(-1))
    return jnp.asarray(U, dtype=jnp.float32)


def bicubic_upsample(x_nchw, scale):
    """(N, C, H, W) -> (N, C, H*scale, W*scale)."""
    N, C, H, W = x_nchw.shape
    Uh = _bicubic_matrix(H * scale, H, float(scale))     # (Ho, H)
    Uw = _bicubic_matrix(W * scale, W, float(scale))     # (Wo, W)
    t = jnp.einsum('oh,nchw->ncow', Uh, x_nchw)
    return jnp.einsum('pw,ncow->ncop', Uw, t)


# ---------------------------------------------------------------------------
# Parameters
# ---------------------------------------------------------------------------
def init_vdsr_params(key, in_channel=3, num_layers=4, num_feats=32):
    """PyTorch-default-style uniform init (deterministic via PRNGKey)."""
    assert num_layers > 2

    def init_conv(k, cin, cout):
        k1, k2 = jax.random.split(k)
        bound = 1.0 / float(np.sqrt(cin * 9))
        w = jax.random.uniform(k1, (3, 3, cin, cout), jnp.float32, -bound, bound)
        b = jax.random.uniform(k2, (cout,), jnp.float32, -bound, bound)
        return w, b

    keys = jax.random.split(key, num_layers)
    return {
        'input': init_conv(keys[0], in_channel, num_feats),
        'main': [init_conv(keys[i], num_feats, num_feats)
                 for i in range(1, num_layers - 1)],
        'output': init_conv(keys[num_layers - 1], num_feats, in_channel),
    }


def _pack_params(params, compute_dtype):
    """Repack HWIO (3,3,Cin,Cout) conv weights into im2col form (Cout, 9*Cin),
    tap-major (kh, kw) then Cin — matching the kernel's im2col row order."""
    def pack_w(w):
        cout = w.shape[3]
        return jnp.transpose(w, (3, 0, 1, 2)).reshape(cout, -1).astype(compute_dtype)

    def pack_b(b):
        return b.reshape(-1, 1).astype(jnp.float32)

    w_in, b_in = params['input']
    w_out, b_out = params['output']
    w_main = jnp.stack([pack_w(w) for w, _ in params['main']])   # (n_main, F, 9F)
    b_main = jnp.stack([pack_b(b) for _, b in params['main']])   # (n_main, F, 1)
    return (pack_w(w_in), pack_b(b_in), w_main, b_main,
            pack_w(w_out), pack_b(b_out))


# ---------------------------------------------------------------------------
# VDSR forward
# ---------------------------------------------------------------------------
def vdsr_forward(x_nchw, params, upf=4, compute_dtype=jnp.bfloat16):
    """x_nchw: (N, C, H, W) f32 -> (N, C, H*upf, W*upf) f32.

    Set compute_dtype=jnp.float32 for exact f32-parity testing; bf16 MXU inputs
    with f32 accumulation/epilogue is the recommended setting on v6e/v7x.
    """
    N, C, H_lr, W_lr = x_nchw.shape
    H, W = H_lr * upf, W_lr * upf
    HW = H * W
    pad = _round_up(W + 1, 128)          # flat zero halo; >= W+1, lane-aligned

    # Preprocess: bicubic upsample (matmul form), flatten to (N, C, H*W) and
    # add the zero halo that the kernel's shifted-slice scheme relies on.
    x0 = bicubic_upsample(x_nchw.astype(jnp.float32), upf)
    x0_padded = jnp.pad(x0.reshape(N, C, HW), ((0, 0), (0, 0), (pad, pad)))

    # Precomputed horizontal-wrap masks (1=valid) for the w-1 / w+1 taps.
    col = np.arange(HW) % W
    masks = jnp.asarray(np.stack([(col != 0), (col != W - 1)]).astype(np.float32),
                        dtype=compute_dtype)

    packed = _pack_params(params, compute_dtype)
    y = vdsr_conv_stack(x0_padded, masks, packed, H=H, W=W, pad=pad,
                        compute_dtype=compute_dtype)
    return y.reshape(N, C, H, W)


if __name__ == "__main__":
    key = jax.random.PRNGKey(0)
    k_x, k_p = jax.random.split(key)

    # Small-but-representative shapes: batch=2, in_channel=3, 8x8 LR input,
    # UPF=4 (-> 32x32 after upsample), num_feats=32, num_layers=4.
    N, C, H, W = 2, 3, 8, 8
    UPF, NUM_FEATS, NUM_LAYERS = 4, 32, 4

    x = jax.random.normal(k_x, (N, C, H, W), dtype=jnp.float32)
    params = init_vdsr_params(k_p, in_channel=C, num_layers=NUM_LAYERS,
                              num_feats=NUM_FEATS)

    fwd = jax.jit(functools.partial(vdsr_forward, upf=UPF))
    out = fwd(x, params)
    jax.block_until_ready(out)

    assert out.shape == (N, C, H * UPF, W * UPF), out.shape
    assert out.dtype == jnp.float32
    print("KERNEL_OK")
</pallas_src>

<mosaic_0001>
module attributes {stable_mosaic.version = 11 : i64} {
  func.func @kernel(%arg0: i32, %arg1: memref<1x3x1280xf32, #tpu.memory_space<vmem>>, %arg2: memref<2x1024xbf16, #tpu.memory_space<vmem>>, %arg3: memref<32x27xbf16, #tpu.memory_space<vmem>>, %arg4: memref<32x1xf32, #tpu.memory_space<vmem>>, %arg5: memref<2x32x288xbf16, #tpu.memory_space<vmem>>, %arg6: memref<2x32x1xf32, #tpu.memory_space<vmem>>, %arg7: memref<3x288xbf16, #tpu.memory_space<vmem>>, %arg8: memref<3x1xf32, #tpu.memory_space<vmem>>, %arg9: memref<1x3x1024xf32, #tpu.memory_space<vmem>>, %arg10: memref<32x1280xbf16, #tpu.memory_space<vmem>>, %arg11: memref<32x1280xbf16, #tpu.memory_space<vmem>>, %arg12: memref<288x1024xbf16, #tpu.memory_space<vmem>>) attributes {dimension_semantics = [#tpu.dimension_semantics<parallel>], iteration_bounds = array<i64: 2>, scalar_prefetch = 0 : i64, scratch_operands = 3 : i64, tpu.core_type = #tpu.core_type<tc>, window_params = [{transform_indices = @transform_0, window_bounds = array<i64: 1, 3, 1280>}, {pipeline_mode = #tpu.pipeline_mode<synchronous>, transform_indices = @transform_1, window_bounds = array<i64: 2, 1024>}, {pipeline_mode = #tpu.pipeline_mode<synchronous>, transform_indices = @transform_2, window_bounds = array<i64: 32, 27>}, {pipeline_mode = #tpu.pipeline_mode<synchronous>, transform_indices = @transform_3, window_bounds = array<i64: 32, 1>}, {pipeline_mode = #tpu.pipeline_mode<synchronous>, transform_indices = @transform_4, window_bounds = array<i64: 2, 32, 288>}, {pipeline_mode = #tpu.pipeline_mode<synchronous>, transform_indices = @transform_5, window_bounds = array<i64: 2, 32, 1>}, {pipeline_mode = #tpu.pipeline_mode<synchronous>, transform_indices = @transform_6, window_bounds = array<i64: 3, 288>}, {pipeline_mode = #tpu.pipeline_mode<synchronous>, transform_indices = @transform_7, window_bounds = array<i64: 3, 1>}, {transform_indices = @transform_8, window_bounds = array<i64: 1, 3, 1024>}]} {
    %c0 = arith.constant 0 : index
    %c0_0 = arith.constant 0 : index
    %0 = vector.load %arg2[%c0, %c0_0] : memref<2x1024xbf16, #tpu.memory_space<vmem>>, vector<1x1024xbf16>
    %c1 = arith.constant 1 : index
    %c0_1 = arith.constant 0 : index
    %1 = vector.load %arg2[%c1, %c0_1] : memref<2x1024xbf16, #tpu.memory_space<vmem>>, vector<1x1024xbf16>
    %cst = arith.constant 0.000000e+00 : bf16
    %2 = vector.broadcast %cst : bf16 to vector<32x128xbf16>
    %c0_2 = arith.constant 0 : index
    %c0_3 = arith.constant 0 : index
    %3 = vector.load %arg10[%c0_2, %c0_3] : memref<32x1280xbf16, #tpu.memory_space<vmem>>, vector<32x128xbf16>
    tpu.vector_store %arg10[%c0_2, %c0_3], %2 {strides = array<i32>} : memref<32x1280xbf16, #tpu.memory_space<vmem>>, vector<32x128xbf16>,
    %c0_4 = arith.constant 0 : index
    %c1152 = arith.constant 1152 : index
    %4 = vector.load %arg10[%c0_4, %c1152] : memref<32x1280xbf16, #tpu.memory_space<vmem>>, vector<32x128xbf16>
    tpu.vector_store %arg10[%c0_4, %c1152], %2 {strides = array<i32>} : memref<32x1280xbf16, #tpu.memory_space<vmem>>, vector<32x128xbf16>,
    %c0_5 = arith.constant 0 : index
    %c0_6 = arith.constant 0 : index
    %5 = vector.load %arg11[%c0_5, %c0_6] : memref<32x1280xbf16, #tpu.memory_space<vmem>>, vector<32x128xbf16>
    tpu.vector_store %arg11[%c0_5, %c0_6], %2 {strides = array<i32>} : memref<32x1280xbf16, #tpu.memory_space<vmem>>, vector<32x128xbf16>,
    %c0_7 = arith.constant 0 : index
    %c1152_8 = arith.constant 1152 : index
    %6 = vector.load %arg11[%c0_7, %c1152_8] : memref<32x1280xbf16, #tpu.memory_space<vmem>>, vector<32x128xbf16>
    tpu.vector_store %arg11[%c0_7, %c1152_8], %2 {strides = array<i32>} : memref<32x1280xbf16, #tpu.memory_space<vmem>>, vector<32x128xbf16>,
    %c0_9 = arith.constant 0 : index
    %c0_10 = arith.constant 0 : index
    %c0_11 = arith.constant 0 : index
    %7 = vector.load %arg1[%c0_9, %c0_10, %c0_11] : memref<1x3x1280xf32, #tpu.memory_space<vmem>>, vector<1x3x1280xf32>
    %8 = vector.shape_cast %7 : vector<1x3x1280xf32> to vector<3x1280xf32>
    %c0_12 = arith.constant 0 : index
    %c0_13 = arith.constant 0 : index
    %9 = vector.load %arg3[%c0_12, %c0_13] : memref<32x27xbf16, #tpu.memory_space<vmem>>, vector<32x27xbf16>
    %cst_14 = arith.constant 0.000000e+00 : f32
    %10 = vector.broadcast %cst_14 : f32 to vector<32x1024xf32>
    %11 = vector.extract_strided_slice %8 {offsets = [0, 95], sizes = [3, 1024], strides = [1, 1]} : vector<3x1280xf32> to vector<3x1024xf32>
    %12 = arith.extf %0 : vector<1x1024xbf16> to vector<1x1024xf32>
    %13 = vector.broadcast %12 : vector<1x1024xf32> to vector<3x1024xf32>
    %14 = arith.mulf %11, %13 : vector<3x1024xf32>
    %15 = arith.truncf %14 : vector<3x1024xf32> to vector<3x1024xbf16>
    %16 = vector.extract_strided_slice %9 {offsets = [0, 0], sizes = [32, 3], strides = [1, 1]} : vector<32x27xbf16> to vector<32x3xbf16>
    %cst_15 = arith.constant dense<0.000000e+00> : vector<32x1024xf32>
    %17 = tpu.matmul %16, %15, %cst_15 {dimension_numbers = #tpu.dot_dimension_numbers<[1], [0], [0], [1], [0, 0, 1, 1], [], []>} : vector<32x3xbf16>, vector<3x1024xbf16>, vector<32x1024xf32> -> vector<32x1024xf32>
    %18 = arith.addf %10, %17 : vector<32x1024xf32>
    %19 = vector.extract_strided_slice %8 {offsets = [0, 96], sizes = [3, 1024], strides = [1, 1]} : vector<3x1280xf32> to vector<3x1024xf32>
    %20 = arith.truncf %19 : vector<3x1024xf32> to vector<3x1024xbf16>
    %21 = vector.extract_strided_slice %9 {offsets = [0, 3], sizes = [32, 3], strides = [1, 1]} : vector<32x27xbf16> to vector<32x3xbf16>
    %cst_16 = arith.constant dense<0.000000e+00> : vector<32x1024xf32>
    %22 = tpu.matmul %21, %20, %cst_16 {dimension_numbers = #tpu.dot_dimension_numbers<[1], [0], [0], [1], [0, 0, 1, 1], [], []>} : vector<32x3xbf16>, vector<3x1024xbf16>, vector<32x1024xf32> -> vector<32x1024xf32>
    %23 = arith.addf %18, %22 : vector<32x1024xf32>
    %24 = vector.extract_strided_slice %8 {offsets = [0, 97], sizes = [3, 1024], strides = [1, 1]} : vector<3x1280xf32> to vector<3x1024xf32>
    %25 = arith.extf %1 : vector<1x1024xbf16> to vector<1x1024xf32>
    %26 = vector.broadcast %25 : vector<1x1024xf32> to vector<3x1024xf32>
    %27 = arith.mulf %24, %26 : vector<3x1024xf32>
    %28 = arith.truncf %27 : vector<3x1024xf32> to vector<3x1024xbf16>
    %29 = vector.extract_strided_slice %9 {offsets = [0, 6], sizes = [32, 3], strides = [1, 1]} : vector<32x27xbf16> to vector<32x3xbf16>
    %cst_17 = arith.constant dense<0.000000e+00> : vector<32x1024xf32>
    %30 = tpu.matmul %29, %28, %cst_17 {dimension_numbers = #tpu.dot_dimension_numbers<[1], [0], [0], [1], [0, 0, 1, 1], [], []>} : vector<32x3xbf16>, vector<3x1024xbf16>, vector<32x1024xf32> -> vector<32x1024xf32>
    %31 = arith.addf %23, %30 : vector<32x1024xf32>
    %32 = vector.extract_strided_slice %8 {offsets = [0, 127], sizes = [3, 1024], strides = [1, 1]} : vector<3x1280xf32> to vector<3x1024xf32>
    %33 = arith.extf %0 : vector<1x1024xbf16> to vector<1x1024xf32>
    %34 = vector.broadcast %33 : vector<1x1024xf32> to vector<3x1024xf32>
    %35 = arith.mulf %32, %34 : vector<3x1024xf32>
    %36 = arith.truncf %35 : vector<3x1024xf32> to vector<3x1024xbf16>
    %37 = vector.extract_strided_slice %9 {offsets = [0, 9], sizes = [32, 3], strides = [1, 1]} : vector<32x27xbf16> to vector<32x3xbf16>
    %cst_18 = arith.constant dense<0.000000e+00> : vector<32x1024xf32>
    %38 = tpu.matmul %37, %36, %cst_18 {dimension_numbers = #tpu.dot_dimension_numbers<[1], [0], [0], [1], [0, 0, 1, 1], [], []>} : vector<32x3xbf16>, vector<3x1024xbf16>, vector<32x1024xf32> -> vector<32x1024xf32>
    %39 = arith.addf %31, %38 : vector<32x1024xf32>
    %40 = vector.extract_strided_slice %8 {offsets = [0, 128], sizes = [3, 1024], strides = [1, 1]} : vector<3x1280xf32> to vector<3x1024xf32>
    %41 = arith.truncf %40 : vector<3x1024xf32> to vector<3x1024xbf16>
    %42 = vector.extract_strided_slice %9 {offsets = [0, 12], sizes = [32, 3], strides = [1, 1]} : vector<32x27xbf16> to vector<32x3xbf16>
    %cst_19 = arith.constant dense<0.000000e+00> : vector<32x1024xf32>
    %43 = tpu.matmul %42, %41, %cst_19 {dimension_numbers = #tpu.dot_dimension_numbers<[1], [0], [0], [1], [0, 0, 1, 1], [], []>} : vector<32x3xbf16>, vector<3x1024xbf16>, vector<32x1024xf32> -> vector<32x1024xf32>
    %44 = arith.addf %39, %43 : vector<32x1024xf32>
    %45 = vector.extract_strided_slice %8 {offsets = [0, 129], sizes = [3, 1024], strides = [1, 1]} : vector<3x1280xf32> to vector<3x1024xf32>
    %46 = arith.extf %1 : vector<1x1024xbf16> to vector<1x1024xf32>
    %47 = vector.broadcast %46 : vector<1x1024xf32> to vector<3x1024xf32>
    %48 = arith.mulf %45, %47 : vector<3x1024xf32>
    %49 = arith.truncf %48 : vector<3x1024xf32> to vector<3x1024xbf16>
    %50 = vector.extract_strided_slice %9 {offsets = [0, 15], sizes = [32, 3], strides = [1, 1]} : vector<32x27xbf16> to vector<32x3xbf16>
    %cst_20 = arith.constant dense<0.000000e+00> : vector<32x1024xf32>
    %51 = tpu.matmul %50, %49, %cst_20 {dimension_numbers = #tpu.dot_dimension_numbers<[1], [0], [0], [1], [0, 0, 1, 1], [], []>} : vector<32x3xbf16>, vector<3x1024xbf16>, vector<32x1024xf32> -> vector<32x1024xf32>
    %52 = arith.addf %44, %51 : vector<32x1024xf32>
    %53 = vector.extract_strided_slice %8 {offsets = [0, 159], sizes = [3, 1024], strides = [1, 1]} : vector<3x1280xf32> to vector<3x1024xf32>
    %54 = arith.extf %0 : vector<1x1024xbf16> to vector<1x1024xf32>
    %55 = vector.broadcast %54 : vector<1x1024xf32> to vector<3x1024xf32>
    %56 = arith.mulf %53, %55 : vector<3x1024xf32>
    %57 = arith.truncf %56 : vector<3x1024xf32> to vector<3x1024xbf16>
    %58 = vector.extract_strided_slice %9 {offsets = [0, 18], sizes = [32, 3], strides = [1, 1]} : vector<32x27xbf16> to vector<32x3xbf16>
    %cst_21 = arith.constant dense<0.000000e+00> : vector<32x1024xf32>
    %59 = tpu.matmul %58, %57, %cst_21 {dimension_numbers = #tpu.dot_dimension_numbers<[1], [0], [0], [1], [0, 0, 1, 1], [], []>} : vector<32x3xbf16>, vector<3x1024xbf16>, vector<32x1024xf32> -> vector<32x1024xf32>
    %60 = arith.addf %52, %59 : vector<32x1024xf32>
    %61 = vector.extract_strided_slice %8 {offsets = [0, 160], sizes = [3, 1024], strides = [1, 1]} : vector<3x1280xf32> to vector<3x1024xf32>
    %62 = arith.truncf %61 : vector<3x1024xf32> to vector<3x1024xbf16>
    %63 = vector.extract_strided_slice %9 {offsets = [0, 21], sizes = [32, 3], strides = [1, 1]} : vector<32x27xbf16> to vector<32x3xbf16>
    %cst_22 = arith.constant dense<0.000000e+00> : vector<32x1024xf32>
    %64 = tpu.matmul %63, %62, %cst_22 {dimension_numbers = #tpu.dot_dimension_numbers<[1], [0], [0], [1], [0, 0, 1, 1], [], []>} : vector<32x3xbf16>, vector<3x1024xbf16>, vector<32x1024xf32> -> vector<32x1024xf32>
    %65 = arith.addf %60, %64 : vector<32x1024xf32>
    %66 = vector.extract_strided_slice %8 {offsets = [0, 161], sizes = [3, 1024], strides = [1, 1]} : vector<3x1280xf32> to vector<3x1024xf32>
    %67 = arith.extf %1 : vector<1x1024xbf16> to vector<1x1024xf32>
    %68 = vector.broadcast %67 : vector<1x1024xf32> to vector<3x1024xf32>
    %69 = arith.mulf %66, %68 : vector<3x1024xf32>
    %70 = arith.truncf %69 : vector<3x1024xf32> to vector<3x1024xbf16>
    %71 = vector.extract_strided_slice %9 {offsets = [0, 24], sizes = [32, 3], strides = [1, 1]} : vector<32x27xbf16> to vector<32x3xbf16>
    %cst_23 = arith.constant dense<0.000000e+00> : vector<32x1024xf32>
    %72 = tpu.matmul %71, %70, %cst_23 {dimension_numbers = #tpu.dot_dimension_numbers<[1], [0], [0], [1], [0, 0, 1, 1], [], []>} : vector<32x3xbf16>, vector<3x1024xbf16>, vector<32x1024xf32> -> vector<32x1024xf32>
    %73 = arith.addf %65, %72 : vector<32x1024xf32>
    %c0_24 = arith.constant 0 : index
    %c0_25 = arith.constant 0 : index
    %74 = vector.load %arg4[%c0_24, %c0_25] : memref<32x1xf32, #tpu.memory_space<vmem>>, vector<32x1xf32>
    %75 = vector.broadcast %74 : vector<32x1xf32> to vector<32x1024xf32>
    %76 = arith.addf %73, %75 : vector<32x1024xf32>
    %cst_26 = arith.constant 0.000000e+00 : f32
    %77 = vector.broadcast %cst_26 : f32 to vector<32x1024xf32>
    %78 = arith.maximumf %76, %77 : vector<32x1024xf32>
    %79 = arith.truncf %78 : vector<32x1024xf32> to vector<32x1024xbf16>
    %c0_27 = arith.constant 0 : index
    %c128 = arith.constant 128 : index
    %80 = vector.load %arg10[%c0_27, %c128] : memref<32x1280xbf16, #tpu.memory_space<vmem>>, vector<32x1024xbf16>
    tpu.vector_store %arg10[%c0_27, %c128], %79 {strides = array<i32>} : memref<32x1280xbf16, #tpu.memory_space<vmem>>, vector<32x1024xbf16>,
    %c0_28 = arith.constant 0 : index
    %c95 = arith.constant 95 : index
    %81 = vector.load %arg10[%c0_28, %c95] : memref<32x1280xbf16, #tpu.memory_space<vmem>>, vector<32x1024xbf16>
    %82 = vector.broadcast %0 : vector<1x1024xbf16> to vector<32x1024xbf16>
    %83 = arith.mulf %81, %82 : vector<32x1024xbf16>
    %c0_29 = arith.constant 0 : index
    %c0_30 = arith.constant 0 : index
    %84 = vector.load %arg12[%c0_29, %c0_30] : memref<288x1024xbf16, #tpu.memory_space<vmem>>, vector<32x1024xbf16>
    tpu.vector_store %arg12[%c0_29, %c0_30], %83 {strides = array<i32>} : memref<288x1024xbf16, #tpu.memory_space<vmem>>, vector<32x1024xbf16>,
    %c0_31 = arith.constant 0 : index
    %c96 = arith.constant 96 : index
    %85 = vector.load %arg10[%c0_31, %c96] : memref<32x1280xbf16, #tpu.memory_space<vmem>>, vector<32x1024xbf16>
    %c32 = arith.constant 32 : index
    %c0_32 = arith.constant 0 : index
    %86 = vector.load %arg12[%c32, %c0_32] : memref<288x1024xbf16, #tpu.memory_space<vmem>>, vector<32x1024xbf16>
    tpu.vector_store %arg12[%c32, %c0_32], %85 {strides = array<i32>} : memref<288x1024xbf16, #tpu.memory_space<vmem>>, vector<32x1024xbf16>,
    %c0_33 = arith.constant 0 : index
    %c97 = arith.constant 97 : index
    %87 = vector.load %arg10[%c0_33, %c97] : memref<32x1280xbf16, #tpu.memory_space<vmem>>, vector<32x1024xbf16>
    %88 = vector.broadcast %1 : vector<1x1024xbf16> to vector<32x1024xbf16>
    %89 = arith.mulf %87, %88 : vector<32x1024xbf16>
    %c64 = arith.constant 64 : index
    %c0_34 = arith.constant 0 : index
    %90 = vector.load %arg12[%c64, %c0_34] : memref<288x1024xbf16, #tpu.memory_space<vmem>>, vector<32x1024xbf16>
    tpu.vector_store %arg12[%c64, %c0_34], %89 {strides = array<i32>} : memref<288x1024xbf16, #tpu.memory_space<vmem>>, vector<32x1024xbf16>,
    %c0_35 = arith.constant 0 : index
    %c127 = arith.constant 127 : index
    %91 = vector.load %arg10[%c0_35, %c127] : memref<32x1280xbf16, #tpu.memory_space<vmem>>, vector<32x1024xbf16>
    %92 = vector.broadcast %0 : vector<1x1024xbf16> to vector<32x1024xbf16>
    %93 = arith.mulf %91, %92 : vector<32x1024xbf16>
    %c96_36 = arith.constant 96 : index
    %c0_37 = arith.constant 0 : index
    %94 = vector.load %arg12[%c96_36, %c0_37] : memref<288x1024xbf16, #tpu.memory_space<vmem>>, vector<32x1024xbf16>
    tpu.vector_store %arg12[%c96_36, %c0_37], %93 {strides = array<i32>} : memref<288x1024xbf16, #tpu.memory_space<vmem>>, vector<32x1024xbf16>,
    %c0_38 = arith.constant 0 : index
    %c128_39 = arith.constant 128 : index
    %95 = vector.load %arg10[%c0_38, %c128_39] : memref<32x1280xbf16, #tpu.memory_space<vmem>>, vector<32x1024xbf16>
    %c128_40 = arith.constant 128 : index
    %c0_41 = arith.constant 0 : index
    %96 = vector.load %arg12[%c128_40, %c0_41] : memref<288x1024xbf16, #tpu.memory_space<vmem>>, vector<32x1024xbf16>
    tpu.vector_store %arg12[%c128_40, %c0_41], %95 {strides = array<i32>} : memref<288x1024xbf16, #tpu.memory_space<vmem>>, vector<32x1024xbf16>,
    %c0_42 = arith.constant 0 : index
    %c129 = arith.constant 129 : index
    %97 = vector.load %arg10[%c0_42, %c129] : memref<32x1280xbf16, #tpu.memory_space<vmem>>, vector<32x1024xbf16>
    %98 = vector.broadcast %1 : vector<1x1024xbf16> to vector<32x1024xbf16>
    %99 = arith.mulf %97, %98 : vector<32x1024xbf16>
    %c160 = arith.constant 160 : index
    %c0_43 = arith.constant 0 : index
    %100 = vector.load %arg12[%c160, %c0_43] : memref<288x1024xbf16, #tpu.memory_space<vmem>>, vector<32x1024xbf16>
    tpu.vector_store %arg12[%c160, %c0_43], %99 {strides = array<i32>} : memref<288x1024xbf16, #tpu.memory_space<vmem>>, vector<32x1024xbf16>,
    %c0_44 = arith.constant 0 : index
    %c159 = arith.constant 159 : index
    %101 = vector.load %arg10[%c0_44, %c159] : memref<32x1280xbf16, #tpu.memory_space<vmem>>, vector<32x1024xbf16>
    %102 = vector.broadcast %0 : vector<1x1024xbf16> to vector<32x1024xbf16>
    %103 = arith.mulf %101, %102 : vector<32x1024xbf16>
    %c192 = arith.constant 192 : index
    %c0_45 = arith.constant 0 : index
    %104 = vector.load %arg12[%c192, %c0_45] : memref<288x1024xbf16, #tpu.memory_space<vmem>>, vector<32x1024xbf16>
    tpu.vector_store %arg12[%c192, %c0_45], %103 {strides = array<i32>} : memref<288x1024xbf16, #tpu.memory_space<vmem>>, vector<32x1024xbf16>,
    %c0_46 = arith.constant 0 : index
    %c160_47 = arith.constant 160 : index
    %105 = vector.load %arg10[%c0_46, %c160_47] : memref<32x1280xbf16, #tpu.memory_space<vmem>>, vector<32x1024xbf16>
    %c224 = arith.constant 224 : index
    %c0_48 = arith.constant 0 : index
    %106 = vector.load %arg12[%c224, %c0_48] : memref<288x1024xbf16, #tpu.memory_space<vmem>>, vector<32x1024xbf16>
    tpu.vector_store %arg12[%c224, %c0_48], %105 {strides = array<i32>} : memref<288x1024xbf16, #tpu.memory_space<vmem>>, vector<32x1024xbf16>,
    %c0_49 = arith.constant 0 : index
    %c161 = arith.constant 161 : index
    %107 = vector.load %arg10[%c0_49, %c161] : memref<32x1280xbf16, #tpu.memory_space<vmem>>, vector<32x1024xbf16>
    %108 = vector.broadcast %1 : vector<1x1024xbf16> to vector<32x1024xbf16>
    %109 = arith.mulf %107, %108 : vector<32x1024xbf16>
    %c256 = arith.constant 256 : index
    %c0_50 = arith.constant 0 : index
    %110 = vector.load %arg12[%c256, %c0_50] : memref<288x1024xbf16, #tpu.memory_space<vmem>>, vector<32x1024xbf16>
    tpu.vector_store %arg12[%c256, %c0_50], %109 {strides = array<i32>} : memref<288x1024xbf16, #tpu.memory_space<vmem>>, vector<32x1024xbf16>,
    %c0_51 = arith.constant 0 : index
    %c0_52 = arith.constant 0 : index
    %c0_53 = arith.constant 0 : index
    %111 = vector.load %arg5[%c0_51, %c0_52, %c0_53] : memref<2x32x288xbf16, #tpu.memory_space<vmem>>, vector<1x32x288xbf16>
    %112 = vector.shape_cast %111 : vector<1x32x288xbf16> to vector<32x288xbf16>
    %c0_54 = arith.constant 0 : index
    %c0_55 = arith.constant 0 : index
    %113 = vector.load %arg12[%c0_54, %c0_55] : memref<288x1024xbf16, #tpu.memory_space<vmem>>, vector<288x1024xbf16>
    %cst_56 = arith.constant dense<0.000000e+00> : vector<32x1024xf32>
    %114 = tpu.matmul %112, %113, %cst_56 {dimension_numbers = #tpu.dot_dimension_numbers<[1], [0], [0], [1], [0, 0, 1, 1], [], []>} : vector<32x288xbf16>, vector<288x1024xbf16>, vector<32x1024xf32> -> vector<32x1024xf32>
    %c0_57 = arith.constant 0 : index
    %c0_58 = arith.constant 0 : index
    %c0_59 = arith.constant 0 : index
    %115 = vector.load %arg6[%c0_57, %c0_58, %c0_59] : memref<2x32x1xf32, #tpu.memory_space<vmem>>, vector<1x32x1xf32>
    %116 = vector.shape_cast %115 : vector<1x32x1xf32> to vector<32x1xf32>
    %117 = vector.broadcast %116 : vector<32x1xf32> to vector<32x1024xf32>
    %118 = arith.addf %114, %117 : vector<32x1024xf32>
    %cst_60 = arith.constant 0.000000e+00 : f32
    %119 = vector.broadcast %cst_60 : f32 to vector<32x1024xf32>
    %120 = arith.maximumf %118, %119 : vector<32x1024xf32>
    %121 = arith.truncf %120 : vector<32x1024xf32> to vector<32x1024xbf16>
    %c0_61 = arith.constant 0 : index
    %c128_62 = arith.constant 128 : index
    %122 = vector.load %arg11[%c0_61, %c128_62] : memref<32x1280xbf16, #tpu.memory_space<vmem>>, vector<32x1024xbf16>
    tpu.vector_store %arg11[%c0_61, %c128_62], %121 {strides = array<i32>} : memref<32x1280xbf16, #tpu.memory_space<vmem>>, vector<32x1024xbf16>,
    %c0_63 = arith.constant 0 : index
    %c95_64 = arith.constant 95 : index
    %123 = vector.load %arg11[%c0_63, %c95_64] : memref<32x1280xbf16, #tpu.memory_space<vmem>>, vector<32x1024xbf16>
    %124 = vector.broadcast %0 : vector<1x1024xbf16> to vector<32x1024xbf16>
    %125 = arith.mulf %123, %124 : vector<32x1024xbf16>
    %c0_65 = arith.constant 0 : index
    %c0_66 = arith.constant 0 : index
    %126 = vector.load %arg12[%c0_65, %c0_66] : memref<288x1024xbf16, #tpu.memory_space<vmem>>, vector<32x1024xbf16>
    tpu.vector_store %arg12[%c0_65, %c0_66], %125 {strides = array<i32>} : memref<288x1024xbf16, #tpu.memory_space<vmem>>, vector<32x1024xbf16>,
    %c0_67 = arith.constant 0 : index
    %c96_68 = arith.constant 96 : index
    %127 = vector.load %arg11[%c0_67, %c96_68] : memref<32x1280xbf16, #tpu.memory_space<vmem>>, vector<32x1024xbf16>
    %c32_69 = arith.constant 32 : index
    %c0_70 = arith.constant 0 : index
    %128 = vector.load %arg12[%c32_69, %c0_70] : memref<288x1024xbf16, #tpu.memory_space<vmem>>, vector<32x1024xbf16>
    tpu.vector_store %arg12[%c32_69, %c0_70], %127 {strides = array<i32>} : memref<288x1024xbf16, #tpu.memory_space<vmem>>, vector<32x1024xbf16>,
    %c0_71 = arith.constant 0 : index
    %c97_72 = arith.constant 97 : index
    %129 = vector.load %arg11[%c0_71, %c97_72] : memref<32x1280xbf16, #tpu.memory_space<vmem>>, vector<32x1024xbf16>
    %130 = vector.broadcast %1 : vector<1x1024xbf16> to vector<32x1024xbf16>
    %131 = arith.mulf %129, %130 : vector<32x1024xbf16>
    %c64_73 = arith.constant 64 : index
    %c0_74 = arith.constant 0 : index
    %132 = vector.load %arg12[%c64_73, %c0_74] : memref<288x1024xbf16, #tpu.memory_space<vmem>>, vector<32x1024xbf16>
    tpu.vector_store %arg12[%c64_73, %c0_74], %131 {strides = array<i32>} : memref<288x1024xbf16, #tpu.memory_space<vmem>>, vector<32x1024xbf16>,
    %c0_75 = arith.constant 0 : index
    %c127_76 = arith.constant 127 : index
    %133 = vector.load %arg11[%c0_75, %c127_76] : memref<32x1280xbf16, #tpu.memory_space<vmem>>, vector<32x1024xbf16>
    %134 = vector.broadcast %0 : vector<1x1024xbf16> to vector<32x1024xbf16>
    %135 = arith.mulf %133, %134 : vector<32x1024xbf16>
    %c96_77 = arith.constant 96 : index
    %c0_78 = arith.constant 0 : index
    %136 = vector.load %arg12[%c96_77, %c0_78] : memref<288x1024xbf16, #tpu.memory_space<vmem>>, vector<32x1024xbf16>
    tpu.vector_store %arg12[%c96_77, %c0_78], %135 {strides = array<i32>} : memref<288x1024xbf16, #tpu.memory_space<vmem>>, vector<32x1024xbf16>,
    %c0_79 = arith.constant 0 : index
    %c128_80 = arith.constant 128 : index
    %137 = vector.load %arg11[%c0_79, %c128_80] : memref<32x1280xbf16, #tpu.memory_space<vmem>>, vector<32x1024xbf16>
    %c128_81 = arith.constant 128 : index
    %c0_82 = arith.constant 0 : index
    %138 = vector.load %arg12[%c128_81, %c0_82] : memref<288x1024xbf16, #tpu.memory_space<vmem>>, vector<32x1024xbf16>
    tpu.vector_store %arg12[%c128_81, %c0_82], %137 {strides = array<i32>} : memref<288x1024xbf16, #tpu.memory_space<vmem>>, vector<32x1024xbf16>,
    %c0_83 = arith.constant 0 : index
    %c129_84 = arith.constant 129 : index
    %139 = vector.load %arg11[%c0_83, %c129_84] : memref<32x1280xbf16, #tpu.memory_space<vmem>>, vector<32x1024xbf16>
    %140 = vector.broadcast %1 : vector<1x1024xbf16> to vector<32x1024xbf16>
    %141 = arith.mulf %139, %140 : vector<32x1024xbf16>
    %c160_85 = arith.constant 160 : index
    %c0_86 = arith.constant 0 : index
    %142 = vector.load %arg12[%c160_85, %c0_86] : memref<288x1024xbf16, #tpu.memory_space<vmem>>, vector<32x1024xbf16>
    tpu.vector_store %arg12[%c160_85, %c0_86], %141 {strides = array<i32>} : memref<288x1024xbf16, #tpu.memory_space<vmem>>, vector<32x1024xbf16>,
    %c0_87 = arith.constant 0 : index
    %c159_88 = arith.constant 159 : index
    %143 = vector.load %arg11[%c0_87, %c159_88] : memref<32x1280xbf16, #tpu.memory_space<vmem>>, vector<32x1024xbf16>
    %144 = vector.broadcast %0 : vector<1x1024xbf16> to vector<32x1024xbf16>
    %145 = arith.mulf %143, %144 : vector<32x1024xbf16>
    %c192_89 = arith.constant 192 : index
    %c0_90 = arith.constant 0 : index
    %146 = vector.load %arg12[%c192_89, %c0_90] : memref<288x1024xbf16, #tpu.memory_space<vmem>>, vector<32x1024xbf16>
    tpu.vector_store %arg12[%c192_89, %c0_90], %145 {strides = array<i32>} : memref<288x1024xbf16, #tpu.memory_space<vmem>>, vector<32x1024xbf16>,
    %c0_91 = arith.constant 0 : index
    %c160_92 = arith.constant 160 : index
    %147 = vector.load %arg11[%c0_91, %c160_92] : memref<32x1280xbf16, #tpu.memory_space<vmem>>, vector<32x1024xbf16>
    %c224_93 = arith.constant 224 : index
    %c0_94 = arith.constant 0 : index
    %148 = vector.load %arg12[%c224_93, %c0_94] : memref<288x1024xbf16, #tpu.memory_space<vmem>>, vector<32x1024xbf16>
    tpu.vector_store %arg12[%c224_93, %c0_94], %147 {strides = array<i32>} : memref<288x1024xbf16, #tpu.memory_space<vmem>>, vector<32x1024xbf16>,
    %c0_95 = arith.constant 0 : index
    %c161_96 = arith.constant 161 : index
    %149 = vector.load %arg11[%c0_95, %c161_96] : memref<32x1280xbf16, #tpu.memory_space<vmem>>, vector<32x1024xbf16>
    %150 = vector.broadcast %1 : vector<1x1024xbf16> to vector<32x1024xbf16>
    %151 = arith.mulf %149, %150 : vector<32x1024xbf16>
    %c256_97 = arith.constant 256 : index
    %c0_98 = arith.constant 0 : index
    %152 = vector.load %arg12[%c256_97, %c0_98] : memref<288x1024xbf16, #tpu.memory_space<vmem>>, vector<32x1024xbf16>
    tpu.vector_store %arg12[%c256_97, %c0_98], %151 {strides = array<i32>} : memref<288x1024xbf16, #tpu.memory_space<vmem>>, vector<32x1024xbf16>,
    %c1_99 = arith.constant 1 : index
    %c0_100 = arith.constant 0 : index
    %c0_101 = arith.constant 0 : index
    %153 = vector.load %arg5[%c1_99, %c0_100, %c0_101] : memref<2x32x288xbf16, #tpu.memory_space<vmem>>, vector<1x32x288xbf16>
    %154 = vector.shape_cast %153 : vector<1x32x288xbf16> to vector<32x288xbf16>
    %c0_102 = arith.constant 0 : index
    %c0_103 = arith.constant 0 : index
    %155 = vector.load %arg12[%c0_102, %c0_103] : memref<288x1024xbf16, #tpu.memory_space<vmem>>, vector<288x1024xbf16>
    %cst_104 = arith.constant dense<0.000000e+00> : vector<32x1024xf32>
    %156 = tpu.matmul %154, %155, %cst_104 {dimension_numbers = #tpu.dot_dimension_numbers<[1], [0], [0], [1], [0, 0, 1, 1], [], []>} : vector<32x288xbf16>, vector<288x1024xbf16>, vector<32x1024xf32> -> vector<32x1024xf32>
    %c1_105 = arith.constant 1 : index
    %c0_106 = arith.constant 0 : index
    %c0_107 = arith.constant 0 : index
    %157 = vector.load %arg6[%c1_105, %c0_106, %c0_107] : memref<2x32x1xf32, #tpu.memory_space<vmem>>, vector<1x32x1xf32>
    %158 = vector.shape_cast %157 : vector<1x32x1xf32> to vector<32x1xf32>
    %159 = vector.broadcast %158 : vector<32x1xf32> to vector<32x1024xf32>
    %160 = arith.addf %156, %159 : vector<32x1024xf32>
    %cst_108 = arith.constant 0.000000e+00 : f32
    %161 = vector.broadcast %cst_108 : f32 to vector<32x1024xf32>
    %162 = arith.maximumf %160, %161 : vector<32x1024xf32>
    %163 = arith.truncf %162 : vector<32x1024xf32> to vector<32x1024xbf16>
    %c0_109 = arith.constant 0 : index
    %c128_110 = arith.constant 128 : index
    %164 = vector.load %arg10[%c0_109, %c128_110] : memref<32x1280xbf16, #tpu.memory_space<vmem>>, vector<32x1024xbf16>
    tpu.vector_store %arg10[%c0_109, %c128_110], %163 {strides = array<i32>} : memref<32x1280xbf16, #tpu.memory_space<vmem>>, vector<32x1024xbf16>,
    %c0_111 = arith.constant 0 : index
    %c95_112 = arith.constant 95 : index
    %165 = vector.load %arg10[%c0_111, %c95_112] : memref<32x1280xbf16, #tpu.memory_space<vmem>>, vector<32x1024xbf16>
    %166 = vector.broadcast %0 : vector<1x1024xbf16> to vector<32x1024xbf16>
    %167 = arith.mulf %165, %166 : vector<32x1024xbf16>
    %c0_113 = arith.constant 0 : index
    %c0_114 = arith.constant 0 : index
    %168 = vector.load %arg12[%c0_113, %c0_114] : memref<288x1024xbf16, #tpu.memory_space<vmem>>, vector<32x1024xbf16>
    tpu.vector_store %arg12[%c0_113, %c0_114], %167 {strides = array<i32>} : memref<288x1024xbf16, #tpu.memory_space<vmem>>, vector<32x1024xbf16>,
    %c0_115 = arith.constant 0 : index
    %c96_116 = arith.constant 96 : index
    %169 = vector.load %arg10[%c0_115, %c96_116] : memref<32x1280xbf16, #tpu.memory_space<vmem>>, vector<32x1024xbf16>
    %c32_117 = arith.constant 32 : index
    %c0_118 = arith.constant 0 : index
    %170 = vector.load %arg12[%c32_117, %c0_118] : memref<288x1024xbf16, #tpu.memory_space<vmem>>, vector<32x1024xbf16>
    tpu.vector_store %arg12[%c32_117, %c0_118], %169 {strides = array<i32>} : memref<288x1024xbf16, #tpu.memory_space<vmem>>, vector<32x1024xbf16>,
    %c0_119 = arith.constant 0 : index
    %c97_120 = arith.constant 97 : index
    %171 = vector.load %arg10[%c0_119, %c97_120] : memref<32x1280xbf16, #tpu.memory_space<vmem>>, vector<32x1024xbf16>
    %172 = vector.broadcast %1 : vector<1x1024xbf16> to vector<32x1024xbf16>
    %173 = arith.mulf %171, %172 : vector<32x1024xbf16>
    %c64_121 = arith.constant 64 : index
    %c0_122 = arith.constant 0 : index
    %174 = vector.load %arg12[%c64_121, %c0_122] : memref<288x1024xbf16, #tpu.memory_space<vmem>>, vector<32x1024xbf16>
    tpu.vector_store %arg12[%c64_121, %c0_122], %173 {strides = array<i32>} : memref<288x1024xbf16, #tpu.memory_space<vmem>>, vector<32x1024xbf16>,
    %c0_123 = arith.constant 0 : index
    %c127_124 = arith.constant 127 : index
    %175 = vector.load %arg10[%c0_123, %c127_124] : memref<32x1280xbf16, #tpu.memory_space<vmem>>, vector<32x1024xbf16>
    %176 = vector.broadcast %0 : vector<1x1024xbf16> to vector<32x1024xbf16>
    %177 = arith.mulf %175, %176 : vector<32x1024xbf16>
    %c96_125 = arith.constant 96 : index
    %c0_126 = arith.constant 0 : index
    %178 = vector.load %arg12[%c96_125, %c0_126] : memref<288x1024xbf16, #tpu.memory_space<vmem>>, vector<32x1024xbf16>
    tpu.vector_store %arg12[%c96_125, %c0_126], %177 {strides = array<i32>} : memref<288x1024xbf16, #tpu.memory_space<vmem>>, vector<32x1024xbf16>,
    %c0_127 = arith.constant 0 : index
    %c128_128 = arith.constant 128 : index
    %179 = vector.load %arg10[%c0_127, %c128_128] : memref<32x1280xbf16, #tpu.memory_space<vmem>>, vector<32x1024xbf16>
    %c128_129 = arith.constant 128 : index
    %c0_130 = arith.constant 0 : index
    %180 = vector.load %arg12[%c128_129, %c0_130] : memref<288x1024xbf16, #tpu.memory_space<vmem>>, vector<32x1024xbf16>
    tpu.vector_store %arg12[%c128_129, %c0_130], %179 {strides = array<i32>} : memref<288x1024xbf16, #tpu.memory_space<vmem>>, vector<32x1024xbf16>,
    %c0_131 = arith.constant 0 : index
    %c129_132 = arith.constant 129 : index
    %181 = vector.load %arg10[%c0_131, %c129_132] : memref<32x1280xbf16, #tpu.memory_space<vmem>>, vector<32x1024xbf16>
    %182 = vector.broadcast %1 : vector<1x1024xbf16> to vector<32x1024xbf16>
    %183 = arith.mulf %181, %182 : vector<32x1024xbf16>
    %c160_133 = arith.constant 160 : index
    %c0_134 = arith.constant 0 : index
    %184 = vector.load %arg12[%c160_133, %c0_134] : memref<288x1024xbf16, #tpu.memory_space<vmem>>, vector<32x1024xbf16>
    tpu.vector_store %arg12[%c160_133, %c0_134], %183 {strides = array<i32>} : memref<288x1024xbf16, #tpu.memory_space<vmem>>, vector<32x1024xbf16>,
    %c0_135 = arith.constant 0 : index
    %c159_136 = arith.constant 159 : index
    %185 = vector.load %arg10[%c0_135, %c159_136] : memref<32x1280xbf16, #tpu.memory_space<vmem>>, vector<32x1024xbf16>
    %186 = vector.broadcast %0 : vector<1x1024xbf16> to vector<32x1024xbf16>
    %187 = arith.mulf %185, %186 : vector<32x1024xbf16>
    %c192_137 = arith.constant 192 : index
    %c0_138 = arith.constant 0 : index
    %188 = vector.load %arg12[%c192_137, %c0_138] : memref<288x1024xbf16, #tpu.memory_space<vmem>>, vector<32x1024xbf16>
    tpu.vector_store %arg12[%c192_137, %c0_138], %187 {strides = array<i32>} : memref<288x1024xbf16, #tpu.memory_space<vmem>>, vector<32x1024xbf16>,
    %c0_139 = arith.constant 0 : index
    %c160_140 = arith.constant 160 : index
    %189 = vector.load %arg10[%c0_139, %c160_140] : memref<32x1280xbf16, #tpu.memory_space<vmem>>, vector<32x1024xbf16>
    %c224_141 = arith.constant 224 : index
    %c0_142 = arith.constant 0 : index
    %190 = vector.load %arg12[%c224_141, %c0_142] : memref<288x1024xbf16, #tpu.memory_space<vmem>>, vector<32x1024xbf16>
    tpu.vector_store %arg12[%c224_141, %c0_142], %189 {strides = array<i32>} : memref<288x1024xbf16, #tpu.memory_space<vmem>>, vector<32x1024xbf16>,
    %c0_143 = arith.constant 0 : index
    %c161_144 = arith.constant 161 : index
    %191 = vector.load %arg10[%c0_143, %c161_144] : memref<32x1280xbf16, #tpu.memory_space<vmem>>, vector<32x1024xbf16>
    %192 = vector.broadcast %1 : vector<1x1024xbf16> to vector<32x1024xbf16>
    %193 = arith.mulf %191, %192 : vector<32x1024xbf16>
    %c256_145 = arith.constant 256 : index
    %c0_146 = arith.constant 0 : index
    %194 = vector.load %arg12[%c256_145, %c0_146] : memref<288x1024xbf16, #tpu.memory_space<vmem>>, vector<32x1024xbf16>
    tpu.vector_store %arg12[%c256_145, %c0_146], %193 {strides = array<i32>} : memref<288x1024xbf16, #tpu.memory_space<vmem>>, vector<32x1024xbf16>,
    %c0_147 = arith.constant 0 : index
    %c0_148 = arith.constant 0 : index
    %195 = vector.load %arg7[%c0_147, %c0_148] : memref<3x288xbf16, #tpu.memory_space<vmem>>, vector<3x288xbf16>
    %c0_149 = arith.constant 0 : index
    %c0_150 = arith.constant 0 : index
    %196 = vector.load %arg12[%c0_149, %c0_150] : memref<288x1024xbf16, #tpu.memory_space<vmem>>, vector<288x1024xbf16>
    %cst_151 = arith.constant dense<0.000000e+00> : vector<3x1024xf32>
    %197 = tpu.matmul %195, %196, %cst_151 {dimension_numbers = #tpu.dot_dimension_numbers<[1], [0], [0], [1], [0, 0, 1, 1], [], []>} : vector<3x288xbf16>, vector<288x1024xbf16>, vector<3x1024xf32> -> vector<3x1024xf32>
    %c0_152 = arith.constant 0 : index
    %c0_153 = arith.constant 0 : index
    %198 = vector.load %arg8[%c0_152, %c0_153] : memref<3x1xf32, #tpu.memory_space<vmem>>, vector<3x1xf32>
    %199 = vector.broadcast %198 : vector<3x1xf32> to vector<3x1024xf32>
    %200 = arith.addf %197, %199 : vector<3x1024xf32>
    %c0_154 = arith.constant 0 : index
    %c0_155 = arith.constant 0 : index
    %c128_156 = arith.constant 128 : index
    %201 = vector.load %arg1[%c0_154, %c0_155, %c128_156] : memref<1x3x1280xf32, #tpu.memory_space<vmem>>, vector<1x3x1024xf32>
    %202 = vector.shape_cast %201 : vector<1x3x1024xf32> to vector<3x1024xf32>
    %203 = arith.addf %200, %202 : vector<3x1024xf32>
    %c0_157 = arith.constant 0 : index
    %c0_158 = arith.constant 0 : index
    %c0_159 = arith.constant 0 : index
    %204 = vector.load %arg9[%c0_157, %c0_158, %c0_159] : memref<1x3x1024xf32, #tpu.memory_space<vmem>>, vector<1x3x1024xf32>
    %205 = vector.shape_cast %204 : vector<1x3x1024xf32> to vector<3x1024xf32>
    %206 = vector.shape_cast %203 : vector<3x1024xf32> to vector<1x3x1024xf32>
    tpu.vector_store %arg9[%c0_157, %c0_158, %c0_159], %206 {strides = array<i32>} : memref<1x3x1024xf32, #tpu.memory_space<vmem>>, vector<1x3x1024xf32>,
    return
  }
  func.func @transform_0(%arg0: i32) -> (i32, i32, i32) {
    %c0_i32 = arith.constant 0 : i32
    %c0_i32_0 = arith.constant 0 : i32
    %c0_i32_1 = arith.constant 0 : i32
    return %arg0, %c0_i32, %c0_i32_0 : i32, i32, i32
  }
  func.func @transform_1(%arg0: i32) -> (i32, i32) {
    %c0_i32 = arith.constant 0 : i32
    %c0_i32_0 = arith.constant 0 : i32
    %c0_i32_1 = arith.constant 0 : i32
    return %c0_i32, %c0_i32_0 : i32, i32
  }
  func.func @transform_2(%arg0: i32) -> (i32, i32) {
    %c0_i32 = arith.constant 0 : i32
    %c0_i32_0 = arith.constant 0 : i32
    %c0_i32_1 = arith.constant 0 : i32
    return %c0_i32, %c0_i32_0 : i32, i32
  }
  func.func @transform_3(%arg0: i32) -> (i32, i32) {
    %c0_i32 = arith.constant 0 : i32
    %c0_i32_0 = arith.constant 0 : i32
    %c0_i32_1 = arith.constant 0 : i32
    return %c0_i32, %c0_i32_0 : i32, i32
  }
  func.func @transform_4(%arg0: i32) -> (i32, i32, i32) {
    %c0_i32 = arith.constant 0 : i32
    %c0_i32_0 = arith.constant 0 : i32
    %c0_i32_1 = arith.constant 0 : i32
    %c0_i32_2 = arith.constant 0 : i32
    return %c0_i32, %c0_i32_0, %c0_i32_1 : i32, i32, i32
  }
  func.func @transform_5(%arg0: i32) -> (i32, i32, i32) {
    %c0_i32 = arith.constant 0 : i32
    %c0_i32_0 = arith.constant 0 : i32
    %c0_i32_1 = arith.constant 0 : i32
    %c0_i32_2 = arith.constant 0 : i32
    return %c0_i32, %c0_i32_0, %c0_i32_1 : i32, i32, i32
  }
  func.func @transform_6(%arg0: i32) -> (i32, i32) {
    %c0_i32 = arith.constant 0 : i32
    %c0_i32_0 = arith.constant 0 : i32
    %c0_i32_1 = arith.constant 0 : i32
    return %c0_i32, %c0_i32_0 : i32, i32
  }
  func.func @transform_7(%arg0: i32) -> (i32, i32) {
    %c0_i32 = arith.constant 0 : i32
    %c0_i32_0 = arith.constant 0 : i32
    %c0_i32_1 = arith.constant 0 : i32
    return %c0_i32, %c0_i32_0 : i32, i32
  }
  func.func @transform_8(%arg0: i32) -> (i32, i32, i32) {
    %c0_i32 = arith.constant 0 : i32
    %c0_i32_0 = arith.constant 0 : i32
    %c0_i32_1 = arith.constant 0 : i32
    return %arg0, %c0_i32, %c0_i32_0 : i32, i32, i32
  }
}

</mosaic_0001>

<bundles_post_ra>
// kernel: vdsr_forward.1
= control target key start
LH: loop header
LB: loop body
LE: loop exit
PB: predicated region body
PF: predicated region fallthrough
CT: control target
= control target key end

     0   :  { %s9945_s27 = smov 0   ;;  %s14593_s0 = inlined_call_operand.vmem [shape: f32[2,3,1280], index: 0, kind: input, shape index: {}]   ;;  %s14594_s1 = inlined_call_operand.vmem [shape: bf16[2,1024], index: 1, kind: input, shape index: {}]   ;;  %s14595_s2 = inlined_call_operand.vmem [shape: bf16[32,27], index: 2, kind: input, shape index: {}]   ;;  %s14596_s3 = inlined_call_operand.vmem [shape: f32[32,1], index: 3, kind: input, shape index: {}]   ;;  %s14597_s4 = inlined_call_operand.vmem [shape: bf16[2,32,288], index: 4, kind: input, shape index: {}]   ;;  %s14598_s5 = inlined_call_operand.vmem [shape: f32[2,32,1], index: 5, kind: input, shape index: {}]   ;;  %s14599_s6 = inlined_call_operand.vmem [shape: bf16[3,288], index: 6, kind: input, shape index: {}]   ;;  %s14600_s7 = inlined_call_operand.vmem [shape: f32[3,1], index: 7, kind: input, shape index: {}]   ;;  %s14601_s8 = inlined_call_operand.vmem [shape: f32[2,3,1024], index: 8, kind: output, shape index: {}]  }
   0x1 LB: > { %s9268_s28 = sadd.s32 4294967295, %s9878_s27   ;;  %p9272_p0 = scmp.ge.s32.totalorder %s9878_s27, 1  ;;  %s9878_s27 = sphi %s9945_s27, %s18_s27  }
   0x2   : > { %p262_p1 = scmp.lt.s32.totalorder %s9878_s27, 3 }
   0x4   : > { %p263_p2 = pnand %p9272_p0, %p262_p1 }
   0x6   : > { %266 = sbr.rel (%p263_p2) target bundleno = 2439 (0x987), region = 52 }
   0xd   : > { %v9956_v0 = vld [vmem:[%s14594_s1] sm:$0xff]  ;;  %v329_v1 = vlaneseq  ;;  %p296_p3 = scmp.lt.s32.totalorder %s9268_s28, 1  ;;  %s9880_s13 = smov 95   ;;  %v10083_v62 = vld [vmem:[%s14595_s2 + $0x8] sm:$0xff]   ;;  %vm425_vm0 = vcmask 777216   ;;  %vm427_vm1 = vcmask 1043456  }
   0xe   : > { %v325_v2 = vunpack.c.l.bf16 %v9956_v0  ;;  %v9962_v4 = vunpack.c.h.bf16 %v9956_v0  ;;  %s9881_s14 = smov 97   ;;  %s9882_s15 = smov 32   ;;  %v10061_v55 = vld [vmem:[%s14595_s2] sm:$0xff]   ;;  %vm544_vm2 = vcmask 1040384   ;;  %vm545_vm3 = vcmask 1041408  }
   0xf   : > { %v9959_v3 = vshrl.u32 %v329_v1, 7  ;;  %s15059_s28 = smov (!%p296_p3, %s9268_s28), 1  ;;  %s9883_s18 = smov 125   ;;  %vm528_vm4 = vcmask 261120   ;;  %vm1158_vm5 = vcmask 793600   ;;  %vm537_vm6 = vcmask 23552  }
  0x10   : > { %s9781_s9 = smul.u32 40, %s15059_s28  ;;  %s9884_s21 = smov 127   ;;  %vm1523_vm7 = vcmask 1039360   ;;  %vm811_vm8 = vcmask 269312   ;;  %vm1228_vm9 = vcmask 252928   ;;  %vm1593_vm10 = vcmask 7168  }
  0x11   : > { %14799 = vst [vmem:[#allocation5_spill] sm:$0xff] %v9959_v3  ;;  %v9967_v5 = vsub.s32 0, %v9959_v3  ;;  %v335_v6 = vsub.s32 2, %v9959_v3  ;;  %v339_v7 = vsub.s32 4, %v9959_v3  ;;  %v343_v8 = vsub.s32 6, %v9959_v3  ;;  %s9887_s22 = smov 33  }
  0x12   : > { %v9973_v9 = vsub.s32 1, %v9959_v3  ;;  %v1072_v10 = vsub.s32 5, %v9959_v3  ;;  %v1076_v11 = vsub.s32 7, %v9959_v3  ;;  %v1068_v12 = vsub.s32 3, %v9959_v3  ;;  %s9998_s12 = scalar_lea.vmem %s14593_s0, %s9781_s9  ;;  %s9888_s23 = smov 31  }
  0x13   : > { %v332_v13 = vrot.slane %v325_v2, %v9967_v5  ;;  %v336_v14 = vrot.slane %v325_v2, %v335_v6  ;;  %v340_v15 = vrot.slane %v325_v2, %v339_v7  ;;  %v344_v16 = vrot.slane %v325_v2, %v343_v8  ;;  %v10016_v41 = vld [vmem:[%s9998_s12] sm:$0x77]  ;;  %v10031_v45 = vld [vmem:[%s9998_s12 + $0x8] sm:$0x77]  ;;  %v10066_v58 = vld [vmem:[%s9998_s12 + $0x10] sm:$0x77] }
  0x14   : > { %v348_v17 = vrot.slane %v9962_v4, %v9967_v5  ;;  %v352_v18 = vrot.slane %v9962_v4, %v335_v6  ;;  %v356_v19 = vrot.slane %v9962_v4, %v339_v7  ;;  %v360_v20 = vrot.slane %v9962_v4, %v343_v8  ;;  %v10092_v1 = vld [vmem:[%s9998_s12 + $0x18] sm:$0x77]  ;;  %s9889_s24 = smov 122   ;;  %s9890_s25 = smov 1  }
  0x15   : > { %v372_v21 = vrot.slane %v332_v13, %v9967_v5  ;;  %v376_v22 = vrot.slane %v336_v14, %v9967_v5  ;;  %v380_v23 = vrot.slane %v340_v15, %v9967_v5  ;;  %v384_v24 = vrot.slane %v344_v16, %v9967_v5  ;;  %s9891_s26 = smov 119   ;;  %s9892_s29 = smov 116  }
  0x16   : > { %v388_v25 = vrot.slane %v348_v17, %v9967_v5  ;;  %v392_v26 = vrot.slane %v352_v18, %v9967_v5  ;;  %v396_v27 = vrot.slane %v356_v19, %v9967_v5  ;;  %v400_v28 = vrot.slane %v360_v20, %v9967_v5  ;;  %s9893_s30 = smov 113   ;;  %s9894_s9 = smov 110  }
  0x17   : > { %v9993_v29 = vcombine.low %v372_v21, %v376_v22  ;;  %v1073_v30 = vrot.slane %v325_v2, %v1072_v10  ;;  %v1077_v31 = vrot.slane %v325_v2, %v1076_v11  ;;  %v1065_v33 = vrot.slane %v325_v2, %v9973_v9  ;;  %s9895_s10 = smov 96   ;;  %s9896_s11 = smov 107  }
  0x18   : > { %v10000_v32 = vcombine.low %v388_v25, %v392_v26  ;;  %v1069_v34 = vrot.slane %v325_v2, %v1068_v12  ;;  %v10005_v35 = vcombine.low %v380_v23, %v384_v24  ;;  %v10007_v36 = vcombine.low %v396_v27, %v400_v28  ;;  %s9897_s16 = smov 104  }
  0x19   : > { %413 = vrot.lane.b32.xlu0 %v9993_v29, %s9880_s13  ;;  %v1113_v37 = vrot.slane %v1073_v30, %v9973_v9  ;;  %v1117_v38 = vrot.slane %v1077_v31, %v9973_v9  ;;  %v1105_v39 = vrot.slane %v1065_v33, %v9973_v9  ;;  %v10024_v43 = vcombine.high %v10016_v41, %v10016_v41 }
  0x1a   : > { %417 = vrot.lane.b32.xlu1 %v10000_v32, %s9880_s13  ;;  %v1109_v40 = vrot.slane %v1069_v34, %v9973_v9  ;;  %v1081_v47 = vrot.slane %v9962_v4, %v9973_v9  ;;  %v1085_v48 = vrot.slane %v9962_v4, %v1068_v12  ;;  %v10046_v49 = vpack.c.bf16 %v10031_v45, %v10031_v45 }
  0x1b   : > { %v10028_v44 = vcombine.low %v1113_v37, %v1117_v38  ;;  %v10037_v46 = vpack.c.bf16 %v10024_v43, %v10024_v43  ;;  %v1089_v50 = vrot.slane %v9962_v4, %v1072_v10  ;;  %v1093_v51 = vrot.slane %v9962_v4, %v1076_v11 }
  0x1c   : > { %v10020_v42 = vcombine.low %v1105_v39, %v1109_v40  ;;  %v478_v52 = vpack.c.bf16 %v10016_v41, %v10016_v41  ;;  %v1121_v53 = vrot.slane %v1081_v47, %v9973_v9  ;;  %v1125_v54 = vrot.slane %v1085_v48, %v9973_v9 }
  0x1d   : > { %415 = vrot.lane.b32.xlu0 %v10005_v35, %s9880_s13  ;;  %v1129_v56 = vrot.slane %v1089_v50, %v9973_v9  ;;  %v1133_v57 = vrot.slane %v1093_v51, %v9973_v9  ;;  %v10076_v61 = vcombine.high %v10066_v58, %v10066_v58  ;;  %v10097_v2 = vpack.c.bf16 %v10092_v1, %v10092_v1 }
  0x1e   : > { %419 = vrot.lane.b32.xlu1 %v10007_v36, %s9880_s13  ;;  %v10069_v59 = vcombine.low %v1121_v53, %v1125_v54  ;;  %v10103_v4 = vpack.c.bf16 %v10066_v58, %v10066_v58  ;;  %v14602_v6 = vmov 0   ;;  %v10131_v25 = vcombine.high %v10031_v45, %v10031_v45 }
  0x1f   : > { %v10072_v60 = vcombine.low %v1129_v56, %v1133_v57  ;;  %v10089_v63 = vpack.c.bf16 %v10076_v61, %v10076_v61  ;;  %604 = vmatprep.mubr.bf16.mxu0 %v14602_v6  ;;  %657 = vmatprep.mubr.bf16.mxu1 %v14602_v6  ;;  %v9886_v27 = vmov 65535   ;;  %vm2839_vm11 = vcmask 785408  }
  0x20   : > { %9826 = vset.pattern.permute.xlu0 %v14602_v6  ;;  %9825 = vset.pattern.permute.xlu1 %v14602_v6  ;;  %v546_v28 = vsel %vm544_vm2, 4294967295, %v9886_v27  ;;  %v10145_v39 = vpack.c.bf16 %v10131_v25, %v10131_v25 }
  0x21   : > { %1146 = vrot.lane.b32.xlu0 %v10020_v42, %s9881_s14  ;;  %v10140_v38 = vsel %vm545_vm3, %v546_v28, 0 }
  0x22   : > { %1148 = vrot.lane.b32.xlu1 %v10028_v44, %s9881_s14 }
  0x25   : > { %512 = vrot.lane.b32.xlu0 %v10037_v46, %s9882_s15 }
  0x26   : > { %514 = vrot.lane.b32.xlu1 %v10046_v49, %s9882_s15 }
  0x29   : > { %510 = vrot.lane.b32.xlu0 %v478_v52, %s9882_s15 }
  0x2a   : > { %497 = vrot.lane.b32.xlu1 %v10061_v55, %s9883_s18 }
  0x2d   : > { %1150 = vrot.lane.b32.xlu0 %v10069_v59, %s9881_s14 }
  0x2e   : > { %1152 = vrot.lane.b32.xlu1 %v10072_v60, %s9881_s14 }
  0x31   : > { %499 = vrot.lane.b32.xlu0 %v10083_v62, %s9883_s18 }
  0x32   : > { %520 = vrot.lane.b32.xlu1 %v10089_v63, %s9882_s15 }
  0x35   : > { %522 = vrot.lane.b32.xlu0 %v10097_v2, %s9882_s15 }
  0x36   : > { %518 = vrot.lane.b32.xlu1 %v10103_v4, %s9882_s15 }
  0x39   : > { %1511 = vrot.lane.b32.xlu0 %v9993_v29, %s9884_s21 }
  0x3a   : > { %1513 = vrot.lane.b32.xlu1 %v10005_v35, %s9884_s21 }
  0x8b   : > { %v414_v7 = vpop.permute.xlu0 %413 }
  0x8c   : > { %v421_v8 = vrot.slane %v414_v7, 4  ;;  %v418_v9 = vpop.permute.xlu1 %417 }
  0x8d   : > { %v423_v11 = vrot.slane %v418_v9, 4 }
  0x8e   : > { %v426_v10 = vsel %vm425_vm0, %v421_v8, %v414_v7 }
  0x8f   : > { %v439_v12 = vmul.f32 %v426_v10, %v10016_v41  ;;  %v416_v13 = vpop.permute.xlu0 %415 }
  0x90   : > { %v422_v14 = vrot.slane %v416_v13, 4  ;;  %v10119_v15 = vpop.permute.xlu1 %419 }
  0x91   : > { %v448_v16 = vcombine.high %v439_v12, %v439_v12  ;;  %v424_v19 = vrot.slane %v10119_v15, 4  ;;  %v456_v34 = vpack.c.bf16 %v439_v12, %v439_v12 }
  0x92   : > { %v428_v17 = vsel %vm427_vm1, %v421_v8, %v422_v14  ;;  %v430_v18 = vsel %vm427_vm1, %v422_v14, %v423_v11 }
  0x93   : > { %v429_v20 = vsel %vm425_vm0, %v428_v17, %v416_v13  ;;  %v457_v21 = vpack.c.bf16 %v448_v16, %v448_v16  ;;  %v1147_v22 = vpop.permute.xlu0 %1146  ;;  %v431_v24 = vsel %vm425_vm0, %v430_v18, %v418_v9  ;;  %v432_v31 = vsel %vm427_vm1, %v423_v11, %v424_v19  ;;  %v10181_v18 = vld [vmem:[%s9998_s12 + $0x20] sm:$0x77] }
  0x94   : > { %v10126_v23 = vmul.f32 %v429_v20, %v10031_v45  ;;  %v1149_v26 = vpop.permute.xlu1 %1148  ;;  %v441_v33 = vmul.f32 %v431_v24, %v10066_v58  ;;  %v433_v47 = vsel %vm425_vm0, %v432_v31, %v10119_v15  ;;  %v1154_v52 = vrot.slane %v1147_v22, 4 }
  0x95   : > { %795 = vrot.lane.b32.xlu0 %v457_v21, %s9887_s22  ;;  %v1155_v51 = vrot.slane %v1149_v26, 4  ;;  %v10156_v56 = vmul.f32 %v433_v47, %v10092_v1  ;;  %v10175_v16 = vcombine.high %v10092_v1, %v10092_v1 }
  0x96   : > { %v458_v30 = vpack.c.bf16 %v10126_v23, %v10126_v23  ;;  %v450_v50 = vcombine.high %v441_v33, %v441_v33  ;;  %v1159_v8 = vsel %vm1158_vm5, %v1154_v52, %v1147_v22  ;;  %v460_v22 = vpack.c.bf16 %v441_v33, %v441_v33 }
  0x97   : > { %v513_v37 = vpop.permute.xlu0 %512  ;;  %v1160_v11 = vsel %vm427_vm1, %v1154_v52, %v1155_v51  ;;  %v1171_v13 = vmul.f32 %v1159_v8, %v10016_v41  ;;  %v462_v14 = vpack.c.bf16 %v10156_v56, %v10156_v56  ;;  %v10192_v27 = vpack.c.bf16 %v10175_v16, %v10175_v16 }
  0x98   : > { %797 = vrot.lane.b32.xlu1 %v458_v30, %s9887_s22  ;;  %v10147_v40 = vpop.permute.xlu1 %514  ;;  %v461_v10 = vpack.c.bf16 %v450_v50, %v450_v50  ;;  %v1161_v20 = vsel %vm1158_vm5, %v1160_v11, %v1149_v26  ;;  %v10197_v26 = vpack.c.bf16 %v10181_v18, %v10181_v18  ;;  %v449_v8 = vcombine.high %v10126_v23, %v10126_v23 }
  0x99   : > { %793 = vrot.lane.b32.xlu0 %v456_v34, %s9887_s22  ;;  %v530_v48 = vsel %vm528_vm4, %v513_v37, %v10147_v40  ;;  %v1180_v28 = vcombine.high %v1171_v13, %v1171_v13  ;;  %v10200_v31 = vmul.f32 %v1161_v20, %v10031_v45  ;;  %v1188_v11 = vpack.c.bf16 %v1171_v13, %v1171_v13 }
  0x9a   : > { %v552_v54 = vand.u32 %v10140_v38, %v530_v48 }
  0x9b   : > { %v511_v53 = vpop.permute.xlu0 %510  ;;  %v1189_v47 = vpack.c.bf16 %v1180_v28, %v1180_v28  ;;  %v1190_v52 = vpack.c.bf16 %v10200_v31, %v10200_v31 }
  0x9c   : > { %516 = vrot.lane.b32.xlu1 %v10145_v39, %s9882_s15  ;;  %v529_v57 = vsel %vm528_vm4, %v511_v53, %v513_v37  ;;  %v10161_v7 = vpop.permute.xlu1 %497  ;;  %572 = vmatprep.subr.bf16.mxu0 %v552_v54 }
  0x9d   : > { %1515 = vrot.lane.b32.xlu0 %v10000_v32, %s9884_s21  ;;  %v549_v9 = vand.u32 %v10140_v38, %v529_v57 }
  0x9f   : > { %v1151_v12 = vpop.permute.xlu0 %1150  ;;  %573 = vmatpush1.bf16.msra.mxu0 %v549_v9 }
  0xa0   : > { %1517 = vrot.lane.b32.xlu1 %v10007_v36, %s9884_s21  ;;  %v10177_v17 = vpop.permute.xlu1 %1152  ;;  %v1156_v21 = vrot.slane %v1151_v12, 4 }
  0xa1   : > { %803 = vrot.lane.b32.xlu0 %v461_v10, %s9887_s22  ;;  %v1157_v34 = vrot.slane %v10177_v17, 4 }
  0xa2   : > { %9278 = vmatmul.mubr.msk.bf16.vlgmr.msra.gmra.mrb[0].mxu0 %vm537_vm6, %v10161_v7  ;;  %v1162_v33 = vsel %vm427_vm1, %v1155_v51, %v1156_v21 }
  0xa3   : > { %v10186_v24 = vpop.permute.xlu0 %499  ;;  %614 = vmatprep.mubr.bf16.mxu0 %v14602_v6  ;;  %v1163_v51 = vsel %vm1158_vm5, %v1162_v33, %v1151_v12  ;;  %v1164_v9 = vsel %vm427_vm1, %v1156_v21, %v1157_v34 }
  0xa4   : > { %805 = vrot.lane.b32.xlu1 %v462_v14, %s9887_s22  ;;  %v521_v30 = vpop.permute.xlu1 %520  ;;  %v1173_v10 = vmul.f32 %v1163_v51, %v10066_v58  ;;  %v1165_v23 = vsel %vm1158_vm5, %v1164_v9, %v10177_v17  ;;  %v459_v14 = vpack.c.bf16 %v449_v8, %v449_v8 }
  0xa5   : > { %801 = vrot.lane.b32.xlu0 %v460_v22, %s9887_s22  ;;  %v10239_v28 = vmul.f32 %v1165_v23, %v10092_v1 }
  0xa6   : > { %v1182_v21 = vcombine.high %v1173_v10, %v1173_v10 }
  0xa7   : > { %v10204_v37 = vpop.permute.xlu0 %522 }
  0xa8   : > { %524 = vrot.lane.b32.xlu1 %v10192_v27, %s9882_s15  ;;  %v10208_v48 = vpop.permute.xlu1 %518  ;;  %v534_v50 = vsel %vm528_vm4, %v521_v30, %v10204_v37  ;;  %v1193_v33 = vpack.c.bf16 %v1182_v21, %v1182_v21 }
  0xa9   : > { %526 = vrot.lane.b32.xlu0 %v10197_v26, %s9882_s15  ;;  %v533_v53 = vsel %vm528_vm4, %v10208_v48, %v521_v30  ;;  %v564_v54 = vand.u32 %v10140_v38, %v534_v50  ;;  %v451_v50 = vcombine.high %v10156_v56, %v10156_v56 }
  0xaa   : > { %v561_v57 = vand.u32 %v10140_v38, %v533_v53  ;;  %9279 = vmatmul.mubr.msk.bf16.gmra.mrb[4].mxu0 %vm537_vm6, %v10186_v24  ;;  %v1192_v53 = vpack.c.bf16 %v1173_v10, %v1173_v10 }
  0xab   : > { %678 = vmatprep.subr.bf16.mxu0 %v564_v54  ;;  %710 = vmatprep.mubr.bf16.mxu0 %v14602_v6  ;;  %v1512_v12 = vpop.permute.xlu0 %1511  ;;  %v443_v54 = vmul.f32 %v424_v19, %v10181_v18 }
  0xac   : > { %1212 = vrot.lane.b32.xlu1 %v1189_v47, %s9888_s23  ;;  %679 = vmatpush1.bf16.msra.mxu0 %v561_v57  ;;  %v10234_v20 = vpop.permute.xlu1 %1513  ;;  %v1519_v22 = vrot.slane %v1512_v12, 4  ;;  %v1194_v47 = vpack.c.bf16 %v10239_v28, %v10239_v28  ;;  %v463_v57 = vpack.c.bf16 %v451_v50, %v451_v50 }
  0xad   : > { %1214 = vrot.lane.b32.xlu0 %v1190_v52, %s9888_s23  ;;  %v1520_v13 = vrot.slane %v10234_v20, 4  ;;  %v464_v56 = vpack.c.bf16 %v443_v54, %v443_v54 }
  0xae   : > { %v1524_v30 = vsel %vm1523_vm7, %v1519_v22, %v1512_v12 }
  0xaf   : > { %v1536_v52 = vmul.f32 %v1524_v30, %v10016_v41  ;;  %v1525_v51 = vsel %vm427_vm1, %v1519_v22, %v1520_v13 }
  0xb0   : > { %1210 = vrot.lane.b32.xlu1 %v1188_v11, %s9888_s23  ;;  %v1526_v8 = vsel %vm1523_vm7, %v1525_v51, %v10234_v20  ;;  %v1181_v11 = vcombine.high %v10200_v31, %v10200_v31 }
  0xb1   : > { %799 = vrot.lane.b32.xlu0 %v459_v14, %s9887_s22  ;;  %v1545_v9 = vcombine.high %v1536_v52, %v1536_v52  ;;  %v10266_v10 = vmul.f32 %v1526_v8, %v10031_v45  ;;  %v1553_v12 = vpack.c.bf16 %v1536_v52, %v1536_v52 }
  0xb2   : > { %9282 = vmatmul.mubr.msk.bf16.vlgmr.msra.gmra.mrb[8].mxu0 %vm537_vm6, %v10161_v7  ;;  %v1191_v23 = vpack.c.bf16 %v1181_v11, %v1181_v11 }
  0xb3   : > { %720 = vmatprep.mubr.bf16.mxu0 %v14602_v6  ;;  %v1554_v15 = vpack.c.bf16 %v1545_v9, %v1545_v9  ;;  %v1555_v19 = vpack.c.bf16 %v10266_v10, %v10266_v10 }
  0xb4   : > { %1197 = vrot.lane.b32.xlu1 %v10061_v55, %s9889_s24 }
  0xb5   : > { %1199 = vrot.lane.b32.xlu0 %v10083_v62, %s9889_s24 }
  0xb8   : > { %1220 = vrot.lane.b32.xlu1 %v1193_v33, %s9888_s23 }
  0xb9   : > { %1222 = vrot.lane.b32.xlu0 %v1194_v47, %s9888_s23 }
  0xba   : > { %9283 = vmatmul.mubr.msk.bf16.gmra.mrb[12].mxu0 %vm537_vm6, %v10186_v24 }
  0xbb   : > { %882 = vmatprep.mubr.bf16.mxu0 %v14602_v6 }
  0xbc   : > { %1218 = vrot.lane.b32.xlu1 %v1192_v53, %s9888_s23 }
  0xbd   : > { %807 = vrot.lane.b32.xlu0 %v463_v57, %s9887_s22 }
  0xc0   : > { %809 = vrot.lane.b32.xlu1 %v464_v56, %s9887_s22 }
  0xc1   : > { %1577 = vrot.lane.b32.xlu0 %v1554_v15, %s9890_s25 }
  0xc4   : > { %1579 = vrot.lane.b32.xlu1 %v1555_v19, %s9890_s25 }
  0xc5   : > { %1575 = vrot.lane.b32.xlu0 %v1553_v12, %s9890_s25 }
  0xc8   : > { %1216 = vrot.lane.b32.xlu1 %v1191_v23, %s9888_s23 }
  0xc9   : > { %1562 = vrot.lane.b32.xlu0 %v10061_v55, %s9891_s26 }
  0xcc   : > { %1564 = vrot.lane.b32.xlu1 %v10083_v62, %s9891_s26 }
 0x107   : > { %v796_v14 = vpop.permute.xlu0 %795 }
 0x10a   : > { %v10280_v20 = vpop.permute.xlu1 %797 }
 0x10b   : > { %v813_v31 = vsel %vm811_vm8, %v796_v14, %v10280_v20  ;;  %v794_v21 = vpop.permute.xlu0 %793 }
 0x10c   : > { %v812_v22 = vsel %vm811_vm8, %v794_v21, %v796_v14  ;;  %v830_v30 = vand.u32 %v813_v31, %v10140_v38 }
 0x10d   : > { %v827_v33 = vand.u32 %v812_v22, %v10140_v38 }
 0x10e   : > { %v517_v47 = vpop.permute.xlu1 %516  ;;  %850 = vmatprep.subr.bf16.mxu0 %v830_v30 }
 0x10f   : > { %851 = vmatpush1.bf16.msra.mxu0 %v827_v33  ;;  %v1516_v50 = vpop.permute.xlu0 %1515  ;;  %v532_v52 = vsel %vm528_vm4, %v517_v47, %v10208_v48  ;;  %v531_v51 = vsel %vm528_vm4, %v10147_v40, %v517_v47 }
 0x110   : > { %v1521_v53 = vrot.slane %v1516_v50, 4  ;;  %v558_v54 = vand.u32 %v10140_v38, %v532_v52  ;;  %v555_v57 = vand.u32 %v10140_v38, %v531_v51 }
 0x112   : > { %v1527_v8 = vsel %vm427_vm1, %v1520_v13, %v1521_v53  ;;  %625 = vmatprep.subr.bf16.mxu1 %v558_v54  ;;  %v10294_v9 = vpop.permute.xlu1 %1517  ;;  %9286 = vmatmul.mubr.msk.bf16.vlgmr.msra.gmra.mrb[0].mxu0 %vm537_vm6, %v10061_v55 }
 0x113   : > { %v1528_v56 = vsel %vm1523_vm7, %v1527_v8, %v1516_v50  ;;  %v1522_v48 = vrot.slane %v10294_v9, 4  ;;  %626 = vmatpush1.bf16.msra.mxu1 %v555_v57  ;;  %v804_v15 = vpop.permute.xlu0 %803  ;;  %892 = vmatprep.mubr.bf16.mxu0 %v14602_v6  ;;  %v1183_v50 = vcombine.high %v10239_v28, %v10239_v28  ;;  %v1175_v8 = vmul.f32 %v1157_v34, %v10181_v18 }
 0x114   : > { %v1538_v40 = vmul.f32 %v1528_v56, %v10066_v58 }
 0x115   : > { %v1529_v19 = vsel %vm427_vm1, %v1521_v53, %v1522_v48 }
 0x116   : > { %v1530_v13 = vsel %vm1523_vm7, %v1529_v19, %v10294_v9  ;;  %9280 = vmatmul.mubr.msk.bf16.vlgmr.msra.gmra.mrb[0].mxu1 %vm537_vm6, %v10161_v7  ;;  %v10307_v11 = vpop.permute.xlu1 %805  ;;  %v1547_v12 = vcombine.high %v1538_v40, %v1538_v40  ;;  %v1557_v57 = vpack.c.bf16 %v1538_v40, %v1538_v40  ;;  %v1195_v9 = vpack.c.bf16 %v1183_v50, %v1183_v50 }
 0x117   : > { %v1539_v23 = vmul.f32 %v1530_v13, %v10092_v1  ;;  %v817_v14 = vsel %vm811_vm8, %v804_v15, %v10307_v11  ;;  %v802_v31 = vpop.permute.xlu0 %801  ;;  %667 = vmatprep.mubr.bf16.mxu1 %v14602_v6  ;;  %v1540_v50 = vmul.f32 %v1522_v48, %v10181_v18 }
 0x118   : > { %v816_v21 = vsel %vm811_vm8, %v802_v31, %v804_v15  ;;  %v1558_v22 = vpack.c.bf16 %v1547_v12, %v1547_v12  ;;  %v842_v30 = vand.u32 %v817_v14, %v10140_v38  ;;  %v1196_v15 = vpack.c.bf16 %v1175_v8, %v1175_v8 }
 0x119   : > { %v839_v33 = vand.u32 %v816_v21, %v10140_v38  ;;  %v1559_v47 = vpack.c.bf16 %v1539_v23, %v1539_v23  ;;  %v1561_v48 = vpack.c.bf16 %v1540_v50, %v1540_v50  ;;  %v9810_v50 = vpack.i.bf16 %v10131_v25, %v10031_v45 }
 0x11a   : > { %v525_v52 = vpop.permute.xlu1 %524  ;;  %1585 = vrot.lane.b32.xlu0 %v1558_v22, %s9890_s25  ;;  %956 = vmatprep.subr.bf16.mxu0 %v842_v30  ;;  %v1548_v30 = vcombine.high %v1539_v23, %v1539_v23  ;;  %v9815_v25 = vpack.i.bf16 %v10175_v16, %v10092_v1 }
 0x11b   : > { %v535_v51 = vsel %vm528_vm4, %v10204_v37, %v525_v52  ;;  %1587 = vrot.lane.b32.xlu1 %v1559_v47, %s9890_s25  ;;  %957 = vmatpush1.bf16.msra.mxu0 %v839_v33  ;;  %v527_v53 = vpop.permute.xlu0 %526  ;;  %v1546_v37 = vcombine.high %v10266_v10, %v10266_v10 }
 0x11c   : > { %v536_v54 = vsel %vm528_vm4, %v525_v52, %v527_v53  ;;  %9287 = vmatmul.mubr.msk.bf16.gmra.mrb[4].mxu0 %vm537_vm6, %v10083_v62  ;;  %v567_v56 = vand.u32 %v10140_v38, %v535_v51 }
 0x11d   : > { %v570_v28 = vand.u32 %v10140_v38, %v536_v54  ;;  %988 = vmatprep.mubr.bf16.mxu0 %v14602_v6  ;;  %v1556_v40 = vpack.c.bf16 %v1546_v37, %v1546_v37 }
 0x11e   : > { %9281 = vmatmul.mubr.msk.bf16.gmra.mrb[4].mxu1 %vm537_vm6, %v10186_v24  ;;  %1583 = vrot.lane.b32.xlu0 %v1557_v57, %s9890_s25  ;;  %v1213_v17 = vpop.permute.xlu1 %1212 }
 0x11f   : > { %1224 = vrot.lane.b32.xlu1 %v1195_v9, %s9888_s23  ;;  %731 = vmatprep.subr.bf16.mxu1 %v570_v28  ;;  %v10337_v34 = vpop.permute.xlu0 %1214 }
 0x120   : > { %732 = vmatpush1.bf16.msra.mxu1 %v567_v56  ;;  %763 = vmatprep.mubr.bf16.mxu1 %v14602_v6  ;;  %v1230_v10 = vsel %vm1228_vm9, %v1213_v17, %v10337_v34 }
 0x121   : > { %v1247_v19 = vand.u32 %v1230_v10, %v10140_v38 }
 0x122   : > { %1226 = vrot.lane.b32.xlu0 %v1196_v15, %s9888_s23  ;;  %v1211_v13 = vpop.permute.xlu1 %1210 }
 0x123   : > { %1581 = vrot.lane.b32.xlu1 %v1556_v40, %s9890_s25  ;;  %v800_v12 = vpop.permute.xlu0 %799  ;;  %v1229_v14 = vsel %vm1228_vm9, %v1211_v13, %v1213_v17  ;;  %1267 = vmatprep.subr.bf16.mxu0 %v1247_v19 }
 0x124   : > { %v814_v21 = vsel %vm811_vm8, %v10280_v20, %v800_v12  ;;  %v815_v22 = vsel %vm811_vm8, %v800_v12, %v802_v31  ;;  %9290 = vmatmul.mubr.msk.bf16.vlgmr.msra.gmra.mrb[8].mxu0 %vm537_vm6, %v10061_v55  ;;  %v1244_v52 = vand.u32 %v1229_v14, %v10140_v38  ;;  %v1560_v31 = vpack.c.bf16 %v1548_v30, %v1548_v30 }
 0x125   : > { %v833_v33 = vand.u32 %v814_v21, %v10140_v38  ;;  %v836_v47 = vand.u32 %v815_v22, %v10140_v38  ;;  %998 = vmatprep.mubr.bf16.mxu0 %v14602_v6 }
 0x126   : > { %1876 = vrot.lane.b32.xlu0 %v10061_v55, %s9892_s29  ;;  %9284 = vmatmul.mubr.msk.bf16.vlgmr.msra.gmra.mrb[8].mxu1 %vm537_vm6, %v10161_v7  ;;  %v10359_v20 = vpop.permute.xlu1 %1197 }
 0x127   : > { %1878 = vrot.lane.b32.xlu1 %v10083_v62, %s9892_s29  ;;  %903 = vmatprep.subr.bf16.mxu1 %v836_v47  ;;  %v10362_v23 = vpop.permute.xlu0 %1199 }
 0x128   : > { %904 = vmatpush1.bf16.msra.mxu1 %v833_v33  ;;  %773 = vmatprep.mubr.bf16.mxu1 %v14602_v6 }
 0x129   : > { %1268 = vmatpush1.bf16.msra.mxu0 %v1244_v52 }
 0x12a   : > { %1589 = vrot.lane.b32.xlu0 %v1560_v31, %s9890_s25  ;;  %v1221_v51 = vpop.permute.xlu1 %1220  ;;  %v3473_v31 = vld [vmem:[%s14596_s3 + $0x10] sm:$0xff] }
 0x12b   : > { %1591 = vrot.lane.b32.xlu1 %v1561_v48, %s9890_s25  ;;  %v10367_v53 = vpop.permute.xlu0 %1222 }
 0x12c   : > { %v1234_v7 = vsel %vm1228_vm9, %v1221_v51, %v10367_v53  ;;  %9291 = vmatmul.mubr.msk.bf16.gmra.mrb[12].mxu0 %vm537_vm6, %v10083_v62 }
 0x12d   : > { %1299 = vmatprep.mubr.bf16.mxu0 %v14602_v6  ;;  %v1259_v54 = vand.u32 %v1234_v7, %v10140_v38 }
 0x12e   : > { %9285 = vmatmul.mubr.msk.bf16.gmra.mrb[12].mxu1 %vm537_vm6, %v10186_v24  ;;  %2154 = vrot.lane.b32.xlu0 %v10016_v41, %s9884_s21  ;;  %v1219_v57 = vpop.permute.xlu1 %1218 }
 0x12f   : > { %2156 = vrot.lane.b32.xlu1 %v10031_v45, %s9884_s21  ;;  %935 = vmatprep.mubr.bf16.mxu1 %v14602_v6  ;;  %v1233_v8 = vsel %vm1228_vm9, %v1219_v57, %v1221_v51  ;;  %v808_v28 = vpop.permute.xlu0 %807 }
 0x130   : > { %v818_v9 = vsel %vm811_vm8, %v10307_v11, %v808_v28  ;;  %1373 = vmatprep.subr.bf16.mxu0 %v1259_v54  ;;  %v1256_v37 = vand.u32 %v1233_v8, %v10140_v38 }
 0x131   : > { %v845_v17 = vand.u32 %v818_v9, %v10140_v38 }
 0x132   : > { %v810_v56 = vpop.permute.xlu1 %809  ;;  %2158 = vrot.lane.b32.xlu0 %v10066_v58, %s9884_s21 }
 0x133   : > { %v819_v24 = vsel %vm811_vm8, %v808_v28, %v810_v56  ;;  %2160 = vrot.lane.b32.xlu1 %v10092_v1, %s9884_s21  ;;  %v1578_v10 = vpop.permute.xlu0 %1577 }
 0x134   : > { %v848_v15 = vand.u32 %v819_v24, %v10140_v38  ;;  %9294 = vmatmul.mubr.msk.bf16.vlgmr.msra.gmra.mrb[0].mxu0 %vm537_vm6, %v10359_v20 }
 0x135   : > { %1309 = vmatprep.mubr.bf16.mxu0 %v14602_v6  ;;  %1374 = vmatpush1.bf16.msra.mxu0 %v1256_v37 }
 0x136   : > { %9288 = vmatmul.mubr.msk.bf16.vlgmr.msra.gmra.mrb[0].mxu1 %vm537_vm6, %v10061_v55  ;;  %1009 = vmatprep.subr.bf16.mxu1 %v848_v15  ;;  %v10398_v11 = vpop.permute.xlu1 %1579 }
 0x137   : > { %945 = vmatprep.mubr.bf16.mxu1 %v14602_v6  ;;  %1010 = vmatpush1.bf16.msra.mxu1 %v845_v17  ;;  %v1595_v40 = vsel %vm1593_vm10, %v1578_v10, %v10398_v11  ;;  %v1576_v21 = vpop.permute.xlu0 %1575 }
 0x138   : > { %2209 = vrot.lane.b32.xlu0 %v10061_v55, %s9893_s30  ;;  %2211 = vrot.lane.b32.xlu1 %v10083_v62, %s9893_s30  ;;  %v1612_v19 = vand.u32 %v1595_v40, %v10140_v38  ;;  %v1594_v22 = vsel %vm1593_vm10, %v1576_v21, %v1578_v10 }
 0x139   : > { %v1609_v33 = vand.u32 %v1594_v22, %v10140_v38 }
 0x13a   : > { %v1217_v13 = vpop.permute.xlu1 %1216  ;;  %1632 = vmatprep.subr.bf16.mxu0 %v1612_v19 }
 0x13b   : > { %v1232_v12 = vsel %vm1228_vm9, %v1217_v13, %v1219_v57  ;;  %v1231_v30 = vsel %vm1228_vm9, %v10337_v34, %v1217_v13  ;;  %v10454_v34 = vpop.permute.xlu0 %1562 }
 0x13c   : > { %9295 = vmatmul.mubr.msk.bf16.gmra.mrb[4].mxu0 %vm537_vm6, %v10362_v23  ;;  %v1253_v14 = vand.u32 %v1232_v12, %v10140_v38  ;;  %2489 = vrot.lane.b32.xlu1 %v10031_v45, %s9881_s14  ;;  %v1250_v47 = vand.u32 %v1231_v30, %v10140_v38 }
 0x13d   : > { %2487 = vrot.lane.b32.xlu0 %v10016_v41, %s9881_s14  ;;  %1405 = vmatprep.mubr.bf16.mxu0 %v14602_v6 }
 0x13e   : > { %9289 = vmatmul.mubr.msk.bf16.gmra.mrb[4].mxu1 %vm537_vm6, %v10083_v62  ;;  %1320 = vmatprep.subr.bf16.mxu1 %v1253_v14  ;;  %v10471_v16 = vpop.permute.xlu1 %1564 }
 0x13f   : > { %1041 = vmatprep.mubr.bf16.mxu1 %v14602_v6 }
 0x140   : > { %2493 = vrot.lane.b32.xlu1 %v10092_v1, %s9881_s14 }
 0x141   : > { %2491 = vrot.lane.b32.xlu0 %v10066_v58, %s9881_s14 }
 0x144   : > { %9298 = vmatmul.mubr.msk.bf16.vlgmr.msra.gmra.mrb[8].mxu0 %vm537_vm6, %v10359_v20  ;;  %2162 = vrot.lane.b32.xlu1 %v10181_v18, %s9884_s21 }
 0x145   : > { %2542 = vrot.lane.b32.xlu0 %v10061_v55, %s9894_s9  ;;  %1415 = vmatprep.mubr.bf16.mxu0 %v14602_v6 }
 0x146   : > { %9292 = vmatmul.mubr.msk.bf16.vlgmr.msra.gmra.mrb[8].mxu1 %vm537_vm6, %v10061_v55  ;;  %1633 = vmatpush1.bf16.msra.mxu0 %v1609_v33  ;;  %v1890_v33 = vand.u32 %v10140_v38, %v10046_v49 }
 0x147   : > { %1051 = vmatprep.mubr.bf16.mxu1 %v14602_v6  ;;  %1321 = vmatpush1.bf16.msra.mxu1 %v1250_v47 }
 0x148   : > { %9811 = vrot.lane.b32.xlu1 %v9810_v50, %s9895_s10 }
 0x149   : > { %2544 = vrot.lane.b32.xlu0 %v10083_v62, %s9894_s9 }
 0x14c   : > { %9299 = vmatmul.mubr.msk.bf16.gmra.mrb[12].mxu0 %vm537_vm6, %v10362_v23  ;;  %2864 = vrot.lane.b32.xlu1 %v10061_v55, %s9896_s11 }
 0x14d   : > { %2821 = vrot.lane.b32.xlu0 %v10024_v43, %s9895_s10  ;;  %1664 = vmatprep.mubr.bf16.mxu0 %v14602_v6  ;;  %v2820_v43 = vcombine.high %v10181_v18, %v10181_v18 }
 0x14e   : > { %9293 = vmatmul.mubr.msk.bf16.gmra.mrb[12].mxu1 %vm537_vm6, %v10083_v62 }
 0x14f   : > { %1352 = vmatprep.mubr.bf16.mxu1 %v14602_v6 }
 0x150   : > { %9816 = vrot.lane.b32.xlu1 %v9815_v25, %s9895_s10 }
 0x151   : > { %2495 = vrot.lane.b32.xlu0 %v10181_v18, %s9881_s14 }
 0x154   : > { %9302 = vmatmul.mubr.msk.bf16.vlgmr.msra.gmra.mrb[0].mxu0 %vm537_vm6, %v10454_v34  ;;  %2866 = vrot.lane.b32.xlu1 %v10083_v62, %s9896_s11 }
 0x155   : > { %1674 = vmatprep.mubr.bf16.mxu0 %v14602_v6  ;;  %2829 = vrot.lane.b32.xlu0 %v10076_v61, %s9895_s10  ;;  %v9820_v61 = vpack.i.bf16 %v2820_v43, %v10181_v18  ;;  %v1887_v43 = vand.u32 %v10140_v38, %v10037_v46 }
 0x156   : > { %9296 = vmatmul.mubr.msk.bf16.vlgmr.msra.gmra.mrb[0].mxu1 %vm537_vm6, %v10359_v20 }
 0x157   : > { %1362 = vmatprep.mubr.bf16.mxu1 %v14602_v6 }
 0x158   : > { %3144 = vrot.lane.b32.xlu1 %v10031_v45, %s9880_s13 }
 0x159   : > { %3142 = vrot.lane.b32.xlu0 %v10016_v41, %s9880_s13  ;;  %v9898_v41 = vmov 1966171168  }
 0x15a   : > { %v3612_v45 = vunpack.c.l.s4 %v9898_v41 }
 0x15c   : > { %9303 = vmatmul.mubr.msk.bf16.gmra.mrb[4].mxu0 %vm537_vm6, %v10471_v16  ;;  %3193 = vrot.lane.b32.xlu1 %v10061_v55, %s9897_s16  ;;  %v3471_v55 = vld [vmem:[%s14596_s3] sm:$0xff]  ;;  %v3613_v52 = vunpack.c.0.s8 %v3612_v45 }
 0x15d   : > { %1770 = vmatprep.mubr.bf16.mxu0 %v14602_v6  ;;  %2827 = vrot.lane.b32.xlu0 %v10066_v58, %s9895_s10 }
 0x15e   : > { %9297 = vmatmul.mubr.msk.bf16.gmra.mrb[4].mxu1 %vm537_vm6, %v10362_v23 }
 0x15f   : > { %1458 = vmatprep.mubr.bf16.mxu1 %v14602_v6 }
 0x160   : > { %9821 = vrot.lane.b32.xlu1 %v9820_v61, %s9895_s10 }
 0x161   : > { %3195 = vrot.lane.b32.xlu0 %v10083_v62, %s9897_s16  ;;  %v3472_v62 = vld [vmem:[%s14596_s3 + $0x8] sm:$0xff] }
 0x164   : > { %3148 = vrot.lane.b32.xlu1 %v10092_v1, %s9880_s13  ;;  %v10498_v1 = vsub.s32 %v3613_v52, %v9959_v3 }
 0x165   : > { %3146 = vrot.lane.b32.xlu0 %v10066_v58, %s9880_s13 }
 0x166   : > { %v3617_v58 = vrot.slane %v9956_v0, %v10498_v1 }
 0x168   : > { %3477 = vperm.xlu1 %9825, %v3471_v55   ;;  %v3633_v48 = vrot.slane %v3617_v58, %v10498_v1  ;;  %v3625_v0 = vcombine.high %v3617_v58, %v3617_v58  ;;  %v1902_v55 = vand.u32 %v10140_v38, %v10097_v2 }
 0x169   : > { %3150 = vrot.lane.b32.xlu0 %v10181_v18, %s9880_s13  ;;  %v3474_v18 = vld [vmem:[%s14596_s3 + $0x18] sm:$0xff] }
 0x16a   : > { %v3660_v51 = vpack.i.b16 %v3633_v48, %v3633_v48  ;;  %v10515_v54 = vrot.slane %v3625_v0, %v10498_v1  ;;  %v4014_v28 = vshrl.u32 %v3633_v48, 16  ;;  %v10522_v9 = vcombine.high %v3633_v48, %v3633_v48 }
 0x16c   : > { %3487 = vperm.xlu1 %9825, %v3473_v31   ;;  %v10510_v7 = vrot.slane %v3660_v51, %v9967_v5  ;;  %v3667_v57 = vpack.i.b16 %v10515_v54, %v10515_v54  ;;  %v4015_v37 = vpack.i.b16 %v4014_v28, %v4014_v28  ;;  %v3674_v56 = vpack.i.b16 %v10522_v9, %v10522_v9 }
 0x16d   : > { %3482 = vperm.xlu0 %9826, %v3472_v62   ;;  %v4021_v15 = vshrl.u32 %v10515_v54, 16 }
 0x16e   : > { %v10520_v8 = vrot.slane %v3667_v57, %v9967_v5  ;;  %v10529_v24 = vrot.slane %v4015_v37, %v9967_v5  ;;  %v10532_v17 = vrot.slane %v3674_v56, %v9967_v5 }
 0x16f   : > { %v4022_v10 = vpack.i.b16 %v4021_v15, %v4021_v15 }
 0x170   : > { %3492 = vperm.xlu1 %9825, %v3474_v18  }
 0x171   : > { %3723 = vrot.lane.b32.xlu0 %v10510_v7, %s9880_s13  ;;  %v10540_v40 = vrot.slane %v4022_v10, %v9967_v5 }
 0x174   : > { %3725 = vrot.lane.b32.xlu1 %v10520_v8, %s9880_s13 }
 0x175   : > { %3727 = vrot.lane.b32.xlu0 %v10532_v17, %s9880_s13 }
 0x178   : > { %4078 = vrot.lane.b32.xlu1 %v10529_v24, %s9881_s14 }
 0x179   : > { %4080 = vrot.lane.b32.xlu0 %v10540_v40, %s9881_s14 }
 0x17d   : > { %4249 = vrot.lane.b32.xlu0 %v10510_v7, %s9884_s21 }
 0x181   : > { %4253 = vrot.lane.b32.xlu0 %v10532_v17, %s9884_s21 }
 0x18c   : > { %v1586_v19 = vpop.permute.xlu0 %1585 }
 0x18d   : > { %v1588_v13 = vpop.permute.xlu1 %1587 }
 0x18e   : > { %v1599_v12 = vsel %vm1593_vm10, %v1586_v19, %v1588_v13 }
 0x18f   : > { %v1624_v14 = vand.u32 %v1599_v12, %v10140_v38 }
 0x190   : > { %v1584_v21 = vpop.permute.xlu0 %1583 }
 0x191   : > { %v1598_v22 = vsel %vm1593_vm10, %v1584_v21, %v1586_v19  ;;  %v1225_v30 = vpop.permute.xlu1 %1224  ;;  %1738 = vmatprep.subr.bf16.mxu0 %v1624_v14 }
 0x192   : > { %v1621_v47 = vand.u32 %v1598_v22, %v10140_v38  ;;  %v1235_v50 = vsel %vm1228_vm9, %v10367_v53, %v1225_v30 }
 0x193   : > { %v1262_v53 = vand.u32 %v1235_v50, %v10140_v38 }
 0x194   : > { %1739 = vmatpush1.bf16.msra.mxu0 %v1621_v47  ;;  %v1227_v25 = vpop.permute.xlu0 %1226 }
 0x195   : > { %v1236_v61 = vsel %vm1228_vm9, %v1225_v30, %v1227_v25  ;;  %v1582_v41 = vpop.permute.xlu1 %1581  ;;  %1910 = vmatprep.subr.bf16.mxu0 %v1890_v33  ;;  %v1896_v33 = vand.u32 %v10140_v38, %v10103_v4 }
 0x196   : > { %v1265_v45 = vand.u32 %v1236_v61, %v10140_v38  ;;  %v1597_v49 = vsel %vm1593_vm10, %v1582_v41, %v1584_v21  ;;  %v1596_v46 = vsel %vm1593_vm10, %v10398_v11, %v1582_v41 }
 0x197   : > { %9306 = vmatmul.mubr.msk.bf16.vlgmr.msra.gmra.mrb[8].mxu0 %vm537_vm6, %v10454_v34  ;;  %v1618_v52 = vand.u32 %v1597_v49, %v10140_v38  ;;  %v1615_v2 = vand.u32 %v1596_v46, %v10140_v38 }
 0x198   : > { %1426 = vmatprep.subr.bf16.mxu1 %v1265_v45  ;;  %v10569_v62 = vpop.permute.xlu0 %1876  ;;  %1780 = vmatprep.mubr.bf16.mxu0 %v14602_v6 }
 0x199   : > { %v10572_v58 = vpop.permute.xlu1 %1878  ;;  %1427 = vmatpush1.bf16.msra.mxu1 %v1262_v53  ;;  %1911 = vmatpush1.bf16.msra.mxu0 %v1887_v43 }
 0x19a   : > { %1685 = vmatprep.subr.bf16.mxu1 %v1618_v52  ;;  %2016 = vmatprep.subr.bf16.mxu0 %v1902_v55 }
 0x19c   : > { %9300 = vmatmul.mubr.msk.bf16.vlgmr.msra.gmra.mrb[8].mxu1 %vm537_vm6, %v10359_v20  ;;  %v1590_v31 = vpop.permute.xlu0 %1589  ;;  %v1899_v20 = vand.u32 %v10140_v38, %v10089_v63 }
 0x19d   : > { %v1592_v48 = vpop.permute.xlu1 %1591  ;;  %1686 = vmatpush1.bf16.msra.mxu1 %v1615_v2  ;;  %1468 = vmatprep.mubr.bf16.mxu1 %v14602_v6  ;;  %v1600_v63 = vsel %vm1593_vm10, %v1588_v13, %v1590_v31 }
 0x19e   : > { %v1601_v11 = vsel %vm1593_vm10, %v1590_v31, %v1592_v48  ;;  %v1627_v50 = vand.u32 %v1600_v63, %v10140_v38 }
 0x19f   : > { %v1630_v18 = vand.u32 %v1601_v11, %v10140_v38  ;;  %9307 = vmatmul.mubr.msk.bf16.gmra.mrb[12].mxu0 %vm537_vm6, %v10471_v16 }
 0x1a0   : > { %1942 = vmatprep.mubr.bf16.mxu0 %v14602_v6  ;;  %v2155_v51 = vpop.permute.xlu0 %2154 }
 0x1a1   : > { %1791 = vmatprep.subr.bf16.mxu1 %v1630_v18  ;;  %v2157_v0 = vpop.permute.xlu1 %2156  ;;  %v2164_v57 = vrot.slane %v2155_v51, 4  ;;  %v1893_v51 = vand.u32 %v10140_v38, %v10145_v39 }
 0x1a2   : > { %v2165_v28 = vrot.slane %v2157_v0, 4 }
 0x1a4   : > { %9301 = vmatmul.mubr.msk.bf16.gmra.mrb[12].mxu1 %vm537_vm6, %v10362_v23  ;;  %v2169_v37 = vsel %vm427_vm1, %v2164_v57, %v2165_v28  ;;  %v2159_v56 = vpop.permute.xlu0 %2158  ;;  %v1908_v57 = vand.u32 %v10140_v38, %v10197_v26 }
 0x1a5   : > { %1717 = vmatprep.mubr.bf16.mxu1 %v14602_v6  ;;  %v2170_v15 = vsel %vm1523_vm7, %v2169_v37, %v2157_v0  ;;  %v2166_v10 = vrot.slane %v2159_v56, 4  ;;  %v10590_v19 = vpop.permute.xlu1 %2160 }
 0x1a6   : > { %v2185_v12 = vmul.f32 %v2170_v15, %v10020_v42  ;;  %v2167_v14 = vrot.slane %v10590_v19, 4 }
 0x1a7   : > { %9310 = vmatmul.mubr.msk.bf16.vlgmr.msra.gmra.mrb[0].mxu0 %vm537_vm6, %v10569_v62  ;;  %v2171_v18 = vsel %vm427_vm1, %v2165_v28, %v2166_v10 }
 0x1a8   : > { %1952 = vmatprep.mubr.bf16.mxu0 %v14602_v6  ;;  %2017 = vmatpush1.bf16.msra.mxu0 %v1899_v20  ;;  %v2193_v23 = vcombine.high %v2185_v12, %v2185_v12  ;;  %v2173_v21 = vsel %vm427_vm1, %v2166_v10, %v2167_v14  ;;  %v2201_v49 = vpack.c.bf16 %v2185_v12, %v2185_v12 }
 0x1a9   : > { %v2174_v30 = vsel %vm1523_vm7, %v2173_v21, %v10590_v19  ;;  %v2172_v37 = vsel %vm1523_vm7, %v2171_v18, %v2159_v56  ;;  %v4028_v19 = vshrl.u32 %v10522_v9, 16 }
 0x1aa   : > { %v2202_v22 = vpack.c.bf16 %v2193_v23, %v2193_v23  ;;  %v10605_v47 = vpop.permute.xlu1 %2211  ;;  %v2187_v13 = vmul.f32 %v2174_v30, %v10069_v59  ;;  %v10609_v25 = vpop.permute.xlu0 %2209  ;;  %v2220_v46 = vand.u32 %v2201_v49, %v10140_v38  ;;  %v1905_v49 = vand.u32 %v10140_v38, %v10192_v27 }
 0x1ac   : > { %9304 = vmatmul.mubr.msk.bf16.vlgmr.msra.gmra.mrb[0].mxu1 %vm537_vm6, %v10454_v34  ;;  %v2223_v43 = vand.u32 %v2202_v22, %v10140_v38  ;;  %v2195_v61 = vcombine.high %v2187_v13, %v2187_v13  ;;  %v2205_v15 = vpack.c.bf16 %v2187_v13, %v2187_v13 }
 0x1ad   : > { %1792 = vmatpush1.bf16.msra.mxu1 %v1627_v50  ;;  %1727 = vmatprep.mubr.bf16.mxu1 %v14602_v6 }
 0x1ae   : > { %2243 = vmatprep.subr.bf16.mxu0 %v2223_v43  ;;  %1963 = vmatprep.subr.bf16.mxu1 %v1896_v33  ;;  %v10615_v4 = vpop.permute.xlu1 %2489  ;;  %v2206_v53 = vpack.c.bf16 %v2195_v61, %v2195_v61  ;;  %v2232_v21 = vand.u32 %v2205_v15, %v10140_v38 }
 0x1af   : > { %9311 = vmatmul.mubr.msk.bf16.gmra.mrb[4].mxu0 %vm537_vm6, %v10572_v58  ;;  %v2498_v41 = vrot.slane %v10615_v4, 4  ;;  %v2488_v45 = vpop.permute.xlu0 %2487 }
 0x1b0   : > { %2048 = vmatprep.mubr.bf16.mxu0 %v14602_v6  ;;  %v2497_v55 = vrot.slane %v2488_v45, 4  ;;  %v2235_v31 = vand.u32 %v2206_v53, %v10140_v38 }
 0x1b2   : > { %v2502_v52 = vsel %vm427_vm1, %v2497_v55, %v2498_v41  ;;  %v10635_v11 = vpop.permute.xlu1 %2493 }
 0x1b3   : > { %v10627_v2 = vpop.permute.xlu0 %2491  ;;  %v2503_v48 = vsel %vm1158_vm5, %v2502_v52, %v10615_v4  ;;  %v2500_v26 = vrot.slane %v10635_v11, 4 }
 0x1b4   : > { %9305 = vmatmul.mubr.msk.bf16.gmra.mrb[4].mxu1 %vm537_vm6, %v10471_v16  ;;  %v10642_v0 = vmul.f32 %v2503_v48, %v9993_v29  ;;  %v10655_v29 = vmul.f32 %v2172_v37, %v10028_v44  ;;  %v2499_v56 = vrot.slane %v10627_v2, 4  ;;  %v4029_v48 = vpack.i.b16 %v4028_v19, %v4028_v19 }
 0x1b5   : > { %1823 = vmatprep.mubr.bf16.mxu1 %v14602_v6 }
 0x1b6   : > { %v2163_v28 = vpop.permute.xlu1 %2162  ;;  %v2526_v39 = vcombine.high %v10642_v0, %v10642_v0  ;;  %v2194_v63 = vcombine.high %v10655_v29, %v10655_v29  ;;  %v2506_v23 = vsel %vm427_vm1, %v2499_v56, %v2500_v26  ;;  %v2534_v37 = vpack.c.bf16 %v10642_v0, %v10642_v0 }
 0x1b7   : > { %9314 = vmatmul.mubr.msk.bf16.vlgmr.msra.gmra.mrb[8].mxu0 %vm537_vm6, %v10569_v62  ;;  %v10646_v20 = vpop.permute.xlu0 %2542  ;;  %v2168_v22 = vrot.slane %v2163_v28, 4  ;;  %v2507_v43 = vsel %vm1158_vm5, %v2506_v23, %v10635_v11  ;;  %v3657_v23 = vcombine.high %v10515_v54, %v10515_v54  ;;  %v2504_v54 = vsel %vm427_vm1, %v2498_v41, %v2499_v56 }
 0x1b8   : > { %2058 = vmatprep.mubr.bf16.mxu0 %v14602_v6  ;;  %2244 = vmatpush1.bf16.msra.mxu0 %v2220_v46  ;;  %v2535_v10 = vpack.c.bf16 %v2526_v39, %v2526_v39  ;;  %v2204_v50 = vpack.c.bf16 %v2194_v63, %v2194_v63  ;;  %v10696_v55 = vmul.f32 %v2507_v43, %v10000_v32 }
 0x1b9   : > { %2349 = vmatprep.subr.bf16.mxu0 %v2235_v31  ;;  %v2175_v45 = vsel %vm427_vm1, %v2167_v14, %v2168_v22  ;;  %v2553_v63 = vand.u32 %v2534_v37, %v10140_v38  ;;  %v3681_v43 = vpack.i.b16 %v3657_v23, %v3657_v23  ;;  %v2505_v41 = vsel %vm1158_vm5, %v2504_v54, %v10627_v2 }
 0x1ba   : > { %v10664_v12 = vpop.permute.xlu1 %9811  ;;  %v2556_v30 = vand.u32 %v2535_v10, %v10140_v38  ;;  %v2229_v52 = vand.u32 %v2204_v50, %v10140_v38  ;;  %v2176_v46 = vsel %vm1523_vm7, %v2175_v45, %v2163_v28  ;;  %v2528_v27 = vcombine.high %v10696_v55, %v10696_v55 }
 0x1bb   : > { %v10720_v9 = vmul.f32 %v2176_v46, %v10072_v60  ;;  %v10790_v19 = vmul.f32 %v2505_v41, %v10005_v35  ;;  %v2538_v35 = vpack.c.bf16 %v10696_v55, %v10696_v55 }
 0x1bc   : > { %9308 = vmatmul.mubr.msk.bf16.vlgmr.msra.gmra.mrb[8].mxu1 %vm537_vm6, %v10454_v34  ;;  %v10662_v34 = vpop.permute.xlu0 %2544  ;;  %v2539_v39 = vpack.c.bf16 %v2528_v27, %v2528_v27 }
 0x1bd   : > { %1833 = vmatprep.mubr.bf16.mxu1 %v14602_v6  ;;  %1964 = vmatpush1.bf16.msra.mxu1 %v1893_v51  ;;  %v10725_v51 = vrot.slane %v4029_v48, %v9967_v5  ;;  %v2196_v10 = vcombine.high %v10720_v9, %v10720_v9  ;;  %v2565_v55 = vand.u32 %v2538_v35, %v10140_v38 }
 0x1be   : > { %2069 = vmatprep.subr.bf16.mxu1 %v1908_v57  ;;  %v10678_v33 = vpop.permute.xlu1 %2864  ;;  %v2568_v22 = vand.u32 %v2539_v39, %v10140_v38  ;;  %v4035_v39 = vshrl.u32 %v3657_v23, 16  ;;  %v2207_v23 = vpack.c.bf16 %v10720_v9, %v10720_v9 }
 0x1bf   : > { %9315 = vmatmul.mubr.msk.bf16.gmra.mrb[12].mxu0 %vm537_vm6, %v10572_v58  ;;  %4082 = vrot.lane.b32.xlu1 %v10725_v51, %s9881_s14  ;;  %v2208_v50 = vpack.c.bf16 %v2196_v10, %v2196_v10 }
 0x1c0   : > { %2275 = vmatprep.mubr.bf16.mxu0 %v14602_v6  ;;  %v10680_v13 = vpop.permute.xlu0 %2821 }
 0x1c1   : > { %v2241_v45 = vand.u32 %v2208_v50, %v10140_v38 }
 0x1c2   : > { %v10703_v31 = vpop.permute.xlu1 %9816 }
 0x1c3   : > { %4251 = vrot.lane.b32.xlu1 %v10520_v8, %s9884_s21  ;;  %v9819_v54 = vunpack.i.h.bf16 %v10703_v31 }
 0x1c4   : > { %9309 = vmatmul.mubr.msk.bf16.gmra.mrb[12].mxu1 %vm537_vm6, %v10471_v16  ;;  %v9871_v16 = vld [vmem:[%s14594_s1] sm:$0xff]  ;;  %v10712_v32 = vpop.permute.xlu0 %2495 }
 0x1c5   : > { %1995 = vmatprep.mubr.bf16.mxu1 %v14602_v6  ;;  %v3610_v61 = vcombine.high %v9871_v16, %v9871_v16 }
 0x1c6   : > { %v10735_v15 = vpop.permute.xlu1 %2866 }
 0x1c7   : > { %9318 = vmatmul.mubr.msk.bf16.vlgmr.msra.gmra.mrb[0].mxu0 %vm537_vm6, %v10609_v25  ;;  %v10699_v53 = vrot.slane %v3610_v61, %v10498_v1 }
 0x1c8   : > { %2285 = vmatprep.mubr.bf16.mxu0 %v14602_v6  ;;  %2350 = vmatpush1.bf16.msra.mxu0 %v2232_v21  ;;  %v10733_v28 = vpop.permute.xlu0 %2829  ;;  %v2203_v21 = vpack.c.bf16 %v10655_v29, %v10655_v29  ;;  %v10769_v29 = vrot.slane %v3681_v43, %v9967_v5 }
 0x1c9   : > { %2576 = vmatprep.subr.bf16.mxu0 %v2556_v30  ;;  %v10708_v14 = vrot.slane %v10699_v53, %v10498_v1 }
 0x1ca   : > { %v10754_v30 = vpop.permute.xlu1 %3144  ;;  %v2226_v16 = vand.u32 %v2203_v21, %v10140_v38  ;;  %3729 = vrot.lane.b32.xlu1 %v10769_v29, %s9880_s13  ;;  %v2501_v21 = vrot.slane %v10712_v32, 4 }
 0x1cb   : > { %v3688_v18 = vpack.i.b16 %v10708_v14, %v10708_v14  ;;  %v4042_v56 = vshrl.u32 %v10708_v14, 16 }
 0x1cc   : > { %9312 = vmatmul.mubr.msk.bf16.vlgmr.msra.gmra.mrb[0].mxu1 %vm537_vm6, %v10569_v62  ;;  %v10746_v0 = vpop.permute.xlu0 %3142  ;;  %v2508_v9 = vsel %vm427_vm1, %v2500_v26, %v2501_v21 }
 0x1cd   : > { %2005 = vmatprep.mubr.bf16.mxu1 %v14602_v6  ;;  %2070 = vmatpush1.bf16.msra.mxu1 %v1905_v49  ;;  %v10728_v57 = vrot.slane %v3688_v18, %v9967_v5  ;;  %v9814_v49 = vunpack.i.h.bf16 %v10664_v12  ;;  %v4043_v46 = vpack.i.b16 %v4042_v56, %v4042_v56  ;;  %v2527_v18 = vcombine.high %v10790_v19, %v10790_v19 }
 0x1ce   : > { %2296 = vmatprep.subr.bf16.mxu1 %v2229_v52  ;;  %v10772_v61 = vpop.permute.xlu1 %3193  ;;  %v9813_v52 = vunpack.i.l.bf16 %v10664_v12  ;;  %4452 = vrot.lane.b32.xlu1 %v10529_v24, %s9890_s25  ;;  %v2509_v11 = vsel %vm1158_vm5, %v2508_v9, %v10712_v32  ;;  %v3153_v32 = vrot.slane %v10754_v30, 4 }
 0x1cf   : > { %9319 = vmatmul.mubr.msk.bf16.gmra.mrb[4].mxu0 %vm537_vm6, %v10605_v47  ;;  %3731 = vrot.lane.b32.xlu0 %v10728_v57, %s9880_s13  ;;  %v10809_v48 = vrot.slane %v4043_v46, %v9967_v5  ;;  %v10871_v35 = vmul.f32 %v2509_v11, %v10007_v36 }
 0x1d0   : > { %2381 = vmatprep.mubr.bf16.mxu0 %v14602_v6  ;;  %v10777_v4 = vpop.permute.xlu0 %2827  ;;  %v2840_v26 = vsel %vm2839_vm11, %v10680_v13, %v9813_v52 }
 0x1d1   : > { %v2856_v13 = vpack.c.bf16 %v2840_v26, %v2840_v26 }
 0x1d2   : > { %v10799_v2 = vpop.permute.xlu1 %9821  ;;  %4456 = vrot.lane.b32.xlu1 %v10725_v51, %s9890_s25 }
 0x1d3   : > { %4454 = vrot.lane.b32.xlu0 %v10540_v40, %s9890_s25 }
 0x1d4   : > { %9313 = vmatmul.mubr.msk.bf16.gmra.mrb[4].mxu1 %vm537_vm6, %v10572_v58  ;;  %v10795_v27 = vpop.permute.xlu0 %3195 }
 0x1d5   : > { %2101 = vmatprep.mubr.bf16.mxu1 %v14602_v6 }
 0x1d6   : > { %v10813_v37 = vpop.permute.xlu1 %3148  ;;  %4624 = vrot.lane.b32.xlu1 %v10520_v8, %s9888_s23 }
 0x1d7   : > { %9322 = vmatmul.mubr.msk.bf16.vlgmr.msra.gmra.mrb[8].mxu0 %vm537_vm6, %v10609_v25  ;;  %4622 = vrot.lane.b32.xlu0 %v10510_v7, %s9888_s23  ;;  %v2841_v7 = vsel %vm2839_vm11, %v9813_v52, %v9814_v49 }
 0x1d8   : > { %2391 = vmatprep.mubr.bf16.mxu0 %v14602_v6  ;;  %2577 = vmatpush1.bf16.msra.mxu0 %v2553_v63  ;;  %v10820_v10 = vpop.permute.xlu0 %3146  ;;  %v4036_v63 = vpack.i.b16 %v4035_v39, %v4035_v39 }
 0x1d9   : > { %2682 = vmatprep.subr.bf16.mxu0 %v2568_v22  ;;  %v2537_v22 = vpack.c.bf16 %v2527_v18, %v2527_v18 }
 0x1db   : > { %4626 = vrot.lane.b32.xlu0 %v10532_v17, %s9888_s23  ;;  %v2562_v8 = vand.u32 %v2537_v22, %v10140_v38  ;;  %v2536_v22 = vpack.c.bf16 %v10790_v19, %v10790_v19 }
 0x1dc   : > { %9316 = vmatmul.mubr.msk.bf16.vlgmr.msra.gmra.mrb[8].mxu1 %vm537_vm6, %v10569_v62  ;;  %v2857_v62 = vpack.c.bf16 %v2841_v7, %v2841_v7  ;;  %v10839_v43 = vpop.permute.xlu0 %3150  ;;  %v3152_v7 = vrot.slane %v10746_v0, 4  ;;  %v3626_v0 = vcombine.high %v10699_v53, %v10699_v53 }
 0x1dd   : > { %2297 = vmatpush1.bf16.msra.mxu1 %v2226_v16  ;;  %2111 = vmatprep.mubr.bf16.mxu1 %v14602_v6  ;;  %v9818_v16 = vunpack.i.l.bf16 %v10703_v31 }
 0x1de   : > { %2402 = vmatprep.subr.bf16.mxu1 %v2241_v45  ;;  %v2878_v17 = vand.u32 %v2857_v62, %v10140_v38  ;;  %v2238_v45 = vand.u32 %v2207_v23, %v10140_v38  ;;  %v3157_v39 = vsel %vm427_vm1, %v3152_v7, %v3153_v32  ;;  %v10906_v53 = vrot.slane %v3626_v0, %v10498_v1 }
 0x1df   : > { %9323 = vmatmul.mubr.msk.bf16.gmra.mrb[12].mxu0 %vm537_vm6, %v10605_v47  ;;  %4086 = vrot.lane.b32.xlu0 %v10809_v48, %s9881_s14  ;;  %v2845_v46 = vsel %vm2839_vm11, %v9818_v16, %v9819_v54  ;;  %v3158_v21 = vsel %vm425_vm0, %v3157_v39, %v10754_v30  ;;  %v3656_v39 = vcombine.high %v10708_v14, %v10708_v14 }
 0x1e0   : > { %2608 = vmatprep.mubr.bf16.mxu0 %v14602_v6  ;;  %v2861_v62 = vpack.c.bf16 %v2845_v46, %v2845_v46  ;;  %v10910_v9 = vmul.f32 %v3158_v21, %v10020_v42  ;;  %v3695_v1 = vpack.i.b16 %v10906_v53, %v10906_v53  ;;  %v2843_v0 = vsel %vm2839_vm11, %v10777_v4, %v10733_v28 }
 0x1e1   : > { %v2540_v21 = vpack.c.bf16 %v10871_v35, %v10871_v35 }
 0x1e2   : > { %v3177_v11 = vcombine.high %v10910_v9, %v10910_v9  ;;  %v10940_v26 = vrot.slane %v3695_v1, %v9967_v5 }
 0x1e3   : > { %4255 = vrot.lane.b32.xlu0 %v10769_v29, %s9884_s21  ;;  %v2571_v1 = vand.u32 %v2540_v21, %v10140_v38 }
 0x1e4   : > { %9317 = vmatmul.mubr.msk.bf16.gmra.mrb[12].mxu1 %vm537_vm6, %v10572_v58  ;;  %v10834_v58 = vrot.slane %v4036_v63, %v9967_v5  ;;  %v2890_v63 = vand.u32 %v2861_v62, %v10140_v38  ;;  %v3186_v7 = vpack.c.bf16 %v3177_v11, %v3177_v11  ;;  %v4049_v11 = vshrl.u32 %v10906_v53, 16 }
 0x1e5   : > { %2328 = vmatprep.mubr.bf16.mxu1 %v14602_v6 }
 0x1e6   : > { %4084 = vrot.lane.b32.xlu1 %v10834_v58, %s9881_s14  ;;  %v3207_v14 = vand.u32 %v3186_v7, %v10140_v38  ;;  %v3185_v7 = vpack.c.bf16 %v10910_v9, %v10910_v9 }
 0x1e7   : > { %9326 = vmatmul.mubr.msk.bf16.vlgmr.msra.gmra.mrb[0].mxu0 %vm537_vm6, %v10646_v20  ;;  %v10836_v50 = vpop.permute.xlu1 %3477 }
 0x1e8   : > { %2618 = vmatprep.mubr.bf16.mxu0 %v14602_v6  ;;  %2683 = vmatpush1.bf16.msra.mxu0 %v2565_v55  ;;  %v2529_v55 = vcombine.high %v10871_v35, %v10871_v35 }
 0x1e9   : > { %2898 = vmatprep.subr.bf16.mxu0 %v2878_v17  ;;  %v2875_v17 = vand.u32 %v2856_v13, %v10140_v38 }
 0x1ea   : > { %v2541_v23 = vpack.c.bf16 %v2529_v55, %v2529_v55 }
 0x1eb   : > { %v10861_v56 = vpop.permute.xlu1 %3487 }
 0x1ec   : > { %9320 = vmatmul.mubr.msk.bf16.vlgmr.msra.gmra.mrb[0].mxu1 %vm537_vm6, %v10609_v25  ;;  %v10854_v41 = vpop.permute.xlu0 %3482 }
 0x1ed   : > { %2403 = vmatpush1.bf16.msra.mxu1 %v2238_v45  ;;  %2338 = vmatprep.mubr.bf16.mxu1 %v14602_v6  ;;  %v2844_v45 = vsel %vm2839_vm11, %v10733_v28, %v9818_v16 }
 0x1ee   : > { %2629 = vmatprep.subr.bf16.mxu1 %v2562_v8  ;;  %v2559_v8 = vand.u32 %v2536_v22, %v10140_v38  ;;  %v2860_v46 = vpack.c.bf16 %v2844_v45, %v2844_v45 }
 0x1ef   : > { %9327 = vmatmul.mubr.msk.bf16.gmra.mrb[4].mxu0 %vm537_vm6, %v10662_v34  ;;  %v10886_v36 = vpop.permute.xlu1 %3492 }
 0x1f0   : > { %2714 = vmatprep.mubr.bf16.mxu0 %v14602_v6  ;;  %v10874_v52 = vpop.permute.xlu0 %3723 }
 0x1f1   : > { %v10877_v18 = vmul.bf16 0, %v10874_v52 }
 0x1f3   : > { %14800 = vst [vmem:[#allocation6_spill] sm:$0xff] %v10877_v18  ;;  %3810 = vrot.lane.b32.xlu0 %v10877_v18, %s9887_s22  ;;  %3792 = vrot.lane.b32.xlu1 %v10877_v18, %s9887_s22  ;;  %v10914_v19 = vpop.permute.xlu1 %3725 }
 0x1f4   : > { %9321 = vmatmul.mubr.msk.bf16.gmra.mrb[4].mxu1 %vm537_vm6, %v10605_v47  ;;  %v10924_v42 = vpop.permute.xlu0 %3727 }
 0x1f5   : > { %2434 = vmatprep.mubr.bf16.mxu1 %v14602_v6 }
 0x1f7   : > { %9330 = vmatmul.mubr.msk.bf16.vlgmr.msra.gmra.mrb[8].mxu0 %vm537_vm6, %v10646_v20  ;;  %4913 = vrot.lane.b32.xlu0 %v10529_v24, %s9887_s22  ;;  %v2574_v24 = vand.u32 %v2541_v23, %v10140_v38  ;;  %v10942_v16 = vpop.permute.xlu1 %4078 }
 0x1f8   : > { %2724 = vmatprep.mubr.bf16.mxu0 %v14602_v6  ;;  %2899 = vmatpush1.bf16.msra.mxu0 %v2875_v17  ;;  %v10948_v13 = vmul.bf16 0, %v10942_v16  ;;  %v10950_v62 = vpop.permute.xlu0 %4080  ;;  %v2859_v17 = vpack.c.bf16 %v2843_v0, %v2843_v0 }
 0x1f9   : > { %3004 = vmatprep.subr.bf16.mxu0 %v2890_v63  ;;  %4257 = vrot.lane.b32.xlu1 %v10728_v57, %s9884_s21  ;;  %v3702_v63 = vpack.i.b16 %v3656_v39, %v3656_v39 }
 0x1fa   : > { %14801 = vst [vmem:[#allocation7_spill] sm:$0xff] %v10948_v13 }
 0x1fb   : > { %4917 = vrot.lane.b32.xlu0 %v10725_v51, %s9887_s22  ;;  %v3154_v51 = vrot.slane %v10820_v10, 4  ;;  %v10989_v35 = vrot.slane %v3702_v63, %v9967_v5 }
 0x1fc   : > { %9324 = vmatmul.mubr.msk.bf16.vlgmr.msra.gmra.mrb[8].mxu1 %vm537_vm6, %v10609_v25  ;;  %v3155_v25 = vrot.slane %v10813_v37, 4  ;;  %v10980_v22 = vpop.permute.xlu0 %4249 }
 0x1fd   : > { %2630 = vmatpush1.bf16.msra.mxu1 %v2559_v8  ;;  %2444 = vmatprep.mubr.bf16.mxu1 %v14602_v6  ;;  %v2884_v8 = vand.u32 %v2859_v17, %v10140_v38  ;;  %v3658_v17 = vcombine.high %v10906_v53, %v10906_v53 }
 0x1fe   : > { %2735 = vmatprep.subr.bf16.mxu1 %v2574_v24  ;;  %9828 = vrot.lane.b32.xlu1 %v14602_v6, %s9882_s15  ;;  %v3161_v55 = vsel %vm427_vm1, %v3154_v51, %v3155_v25  ;;  %v10995_v24 = vmul.bf16 0, %v10980_v22 }
 0x1ff   : > { %9331 = vmatmul.mubr.msk.bf16.gmra.mrb[12].mxu0 %vm537_vm6, %v10662_v34  ;;  %4458 = vrot.lane.b32.xlu0 %v10834_v58, %s9890_s25  ;;  %v3162_v28 = vsel %vm425_vm0, %v3161_v55, %v10813_v37  ;;  %v2842_v55 = vsel %vm2839_vm11, %v9814_v49, %v10777_v4  ;;  %v4063_v53 = vshrl.u32 %v3658_v17, 16 }
 0x200   : > { %2930 = vmatprep.mubr.bf16.mxu0 %v14602_v6  ;;  %v10983_v23 = vmul.f32 %v3162_v28, %v10069_v59  ;;  %14802 = vst [vmem:[#allocation8_spill] sm:$0xff] %v10995_v24  ;;  %v2858_v9 = vpack.c.bf16 %v2842_v55, %v2842_v55 }
 0x202   : > { %4915 = vrot.lane.b32.xlu1 %v10540_v40, %s9887_s22  ;;  %v2887_v40 = vand.u32 %v2860_v46, %v10140_v38  ;;  %v3179_v59 = vcombine.high %v10983_v23, %v10983_v23  ;;  %v2881_v28 = vand.u32 %v2858_v9, %v10140_v38 }
 0x203   : > { %3733 = vrot.lane.b32.xlu0 %v10940_v26, %s9880_s13 }
 0x204   : > { %9325 = vmatmul.mubr.msk.bf16.gmra.mrb[12].mxu1 %vm537_vm6, %v10605_v47  ;;  %v4056_v47 = vshrl.u32 %v3656_v39, 16  ;;  %v9823_v39 = vunpack.i.l.bf16 %v10799_v2  ;;  %v3190_v0 = vpack.c.bf16 %v3179_v59, %v3179_v59 }
 0x205   : > { %2661 = vmatprep.mubr.bf16.mxu1 %v14602_v6 }
 0x206   : > { %4147 = vrot.lane.b32.xlu1 %v10948_v13, %s9888_s23  ;;  %v4057_v45 = vpack.i.b16 %v4056_v47, %v4056_v47  ;;  %v3219_v12 = vand.u32 %v3190_v0, %v10140_v38  ;;  %v2846_v47 = vsel %vm2839_vm11, %v9819_v54, %v9823_v39 }
 0x207   : > { %9334 = vmatmul.mubr.msk.bf16.vlgmr.msra.gmra.mrb[0].mxu0 %vm537_vm6, %v10678_v33  ;;  %4165 = vrot.lane.b32.xlu0 %v10948_v13, %s9888_s23 }
 0x208   : > { %2940 = vmatprep.mubr.bf16.mxu0 %v14602_v6  ;;  %3005 = vmatpush1.bf16.msra.mxu0 %v2887_v40  ;;  %v11011_v46 = vrot.slane %v4057_v45, %v9967_v5  ;;  %v4050_v40 = vpack.i.b16 %v4049_v11, %v4049_v11 }
 0x209   : > { %3227 = vmatprep.subr.bf16.mxu0 %v3207_v14 }
 0x20a   : > { %4460 = vrot.lane.b32.xlu1 %v10809_v48, %s9890_s25  ;;  %v4055_v4 = vrot.slane %v4050_v40, %v9967_v5 }
 0x20b   : > { %4628 = vrot.lane.b32.xlu0 %v10769_v29, %s9888_s23  ;;  %v9824_v29 = vunpack.i.h.bf16 %v10799_v2  ;;  %v3204_v2 = vand.u32 %v3185_v7, %v10140_v38 }
 0x20c   : > { %9328 = vmatmul.mubr.msk.bf16.vlgmr.msra.gmra.mrb[0].mxu1 %vm537_vm6, %v10646_v20 }
 0x20d   : > { %2736 = vmatpush1.bf16.msra.mxu1 %v2571_v1  ;;  %2671 = vmatprep.mubr.bf16.mxu1 %v14602_v6  ;;  %v2847_v14 = vsel %vm2839_vm11, %v9823_v39, %v9824_v29 }
 0x20e   : > { %2951 = vmatprep.subr.bf16.mxu1 %v2884_v8  ;;  %3735 = vrot.lane.b32.xlu1 %v10989_v35, %s9880_s13  ;;  %v2863_v49 = vpack.c.bf16 %v2847_v14, %v2847_v14  ;;  %v3156_v8 = vrot.slane %v10839_v43, 4 }
 0x20f   : > { %9335 = vmatmul.mubr.msk.bf16.gmra.mrb[4].mxu0 %vm537_vm6, %v10735_v15  ;;  %4336 = vrot.lane.b32.xlu0 %v10995_v24, %s9890_s25 }
 0x210   : > { %3036 = vmatprep.mubr.bf16.mxu0 %v14602_v6  ;;  %v2896_v63 = vand.u32 %v2863_v49, %v10140_v38  ;;  %v11154_v49 = vpop.permute.xlu0 %4253 }
 0x212   : > { %4318 = vrot.lane.b32.xlu1 %v10995_v24, %s9890_s25 }
 0x213   : > { %4090 = vrot.lane.b32.xlu0 %v11011_v46, %s9881_s14 }
 0x214   : > { %9329 = vmatmul.mubr.msk.bf16.gmra.mrb[4].mxu1 %vm537_vm6, %v10662_v34 }
 0x215   : > { %2767 = vmatprep.mubr.bf16.mxu1 %v14602_v6 }
 0x216   : > { %4630 = vrot.lane.b32.xlu1 %v10728_v57, %s9888_s23  ;;  %v3159_v57 = vsel %vm427_vm1, %v3153_v32, %v3154_v51  ;;  %v3709_v32 = vpack.i.b16 %v3658_v17, %v3658_v17 }
 0x217   : > { %9338 = vmatmul.mubr.msk.bf16.vlgmr.msra.gmra.mrb[8].mxu0 %vm537_vm6, %v10678_v33  ;;  %4259 = vrot.lane.b32.xlu0 %v10940_v26, %s9884_s21  ;;  %v3160_v21 = vsel %vm425_vm0, %v3159_v57, %v10820_v10 }
 0x218   : > { %3046 = vmatprep.mubr.bf16.mxu0 %v14602_v6  ;;  %3228 = vmatpush1.bf16.msra.mxu0 %v3204_v2  ;;  %v3170_v30 = vmul.f32 %v3160_v21, %v10028_v44  ;;  %v3714_v44 = vrot.slane %v3709_v32, %v9967_v5 }
 0x219   : > { %3333 = vmatprep.subr.bf16.mxu0 %v3219_v12 }
 0x21a   : > { %4088 = vrot.lane.b32.xlu1 %v4055_v4, %s9881_s14  ;;  %v3178_v10 = vcombine.high %v3170_v30, %v3170_v30 }
 0x21b   : > { %4921 = vrot.lane.b32.xlu0 %v10809_v48, %s9887_s22  ;;  %v4064_v48 = vpack.i.b16 %v4063_v53, %v4063_v53 }
 0x21c   : > { %9332 = vmatmul.mubr.msk.bf16.vlgmr.msra.gmra.mrb[8].mxu1 %vm537_vm6, %v10646_v20  ;;  %v3189_v20 = vpack.c.bf16 %v10983_v23, %v10983_v23 }
 0x21d   : > { %2952 = vmatpush1.bf16.msra.mxu1 %v2881_v28  ;;  %2777 = vmatprep.mubr.bf16.mxu1 %v14602_v6  ;;  %v11072_v51 = vrot.slane %v4064_v48, %v9967_v5  ;;  %v3163_v5 = vsel %vm427_vm1, %v3155_v25, %v3156_v8  ;;  %v3187_v25 = vpack.c.bf16 %v3170_v30, %v3170_v30 }
 0x21e   : > { %3057 = vmatprep.subr.bf16.mxu1 %v2896_v63  ;;  %4261 = vrot.lane.b32.xlu1 %v10989_v35, %s9884_s21  ;;  %v3216_v23 = vand.u32 %v3189_v20, %v10140_v38  ;;  %v3164_v54 = vsel %vm425_vm0, %v3163_v5, %v10839_v43 }
 0x21f   : > { %9339 = vmatmul.mubr.msk.bf16.gmra.mrb[12].mxu0 %vm537_vm6, %v10735_v15  ;;  %4464 = vrot.lane.b32.xlu0 %v11011_v46, %s9890_s25  ;;  %v3172_v37 = vmul.f32 %v3164_v54, %v10072_v60  ;;  %v3210_v1 = vand.u32 %v3187_v25, %v10140_v38 }
 0x220   : > { %3259 = vmatprep.mubr.bf16.mxu0 %v14602_v6 }
 0x221   : > { %v3180_v43 = vcombine.high %v3172_v37, %v3172_v37  ;;  %v3191_v45 = vpack.c.bf16 %v3172_v37, %v3172_v37 }
 0x222   : > { %4919 = vrot.lane.b32.xlu1 %v10834_v58, %s9887_s22  ;;  %v3188_v58 = vpack.c.bf16 %v3178_v10, %v3178_v10 }
 0x223   : > { %4632 = vrot.lane.b32.xlu0 %v10940_v26, %s9888_s23  ;;  %v2862_v26 = vpack.c.bf16 %v2846_v47, %v2846_v47  ;;  %v3192_v60 = vpack.c.bf16 %v3180_v43, %v3180_v43  ;;  %v3222_v59 = vand.u32 %v3191_v45, %v10140_v38 }
 0x224   : > { %9333 = vmatmul.mubr.msk.bf16.gmra.mrb[12].mxu1 %vm537_vm6, %v10662_v34  ;;  %v3213_v34 = vand.u32 %v3188_v58, %v10140_v38 }
 0x225   : > { %2983 = vmatprep.mubr.bf16.mxu1 %v14602_v6  ;;  %v2893_v31 = vand.u32 %v2862_v26, %v10140_v38 }
 0x226   : > { %3737 = vrot.lane.b32.xlu1 %v3714_v44, %s9880_s13 }
 0x227   : > { %9342 = vmatmul.mubr.msk.bf16.vlgmr.msra.gmra.mrb[0].mxu0 %vm537_vm6, %v10772_v61  ;;  %4092 = vrot.lane.b32.xlu0 %v11072_v51, %s9881_s14 }
 0x228   : > { %3269 = vmatprep.mubr.bf16.mxu0 %v14602_v6  ;;  %3334 = vmatpush1.bf16.msra.mxu0 %v3216_v23 }
 0x22a   : > { %4462 = vrot.lane.b32.xlu1 %v4055_v4, %s9890_s25 }
 0x22b   : > { %4923 = vrot.lane.b32.xlu0 %v4055_v4, %s9887_s22 }
 0x22c   : > { %9336 = vmatmul.mubr.msk.bf16.vlgmr.msra.gmra.mrb[0].mxu1 %vm537_vm6, %v10678_v33 }
 0x22d   : > { %3058 = vmatpush1.bf16.msra.mxu1 %v2893_v31  ;;  %2993 = vmatprep.mubr.bf16.mxu1 %v14602_v6 }
 0x22e   : > { %3280 = vmatprep.subr.bf16.mxu1 %v3213_v34  ;;  %4634 = vrot.lane.b32.xlu1 %v10989_v35, %s9888_s23  ;;  %v3225_v35 = vand.u32 %v3192_v60, %v10140_v38 }
 0x22f   : > { %9343 = vmatmul.mubr.msk.bf16.gmra.mrb[4].mxu0 %vm537_vm6, %v10795_v27  ;;  %4466 = vrot.lane.b32.xlu0 %v11072_v51, %s9890_s25 }
 0x230   : > { %3365 = vmatprep.mubr.bf16.mxu0 %v14602_v6 }
 0x231   : > { %v11140_v38 = vpop.permute.xlu1 %4082 }
 0x232   : > { %4263 = vrot.lane.b32.xlu1 %v3714_v44, %s9884_s21 }
 0x234   : > { %9337 = vmatmul.mubr.msk.bf16.gmra.mrb[4].mxu1 %vm537_vm6, %v10735_v15 }
 0x235   : > { %3089 = vmatprep.mubr.bf16.mxu1 %v14602_v6 }
 0x236   : > { %4925 = vrot.lane.b32.xlu1 %v11011_v46, %s9887_s22 }
 0x237   : > { %9346 = vmatmul.mubr.msk.bf16.vlgmr.msra.gmra.mrb[8].mxu0 %vm537_vm6, %v10772_v61 }
 0x238   : > { %3375 = vmatprep.mubr.bf16.mxu0 %v14602_v6 }
 0x23a   : > { %4636 = vrot.lane.b32.xlu1 %v3714_v44, %s9888_s23 }
 0x23c   : > { %9340 = vmatmul.mubr.msk.bf16.vlgmr.msra.gmra.mrb[8].mxu1 %vm537_vm6, %v10678_v33  ;;  %v11142_v33 = vpop.permute.xlu1 %4251 }
 0x23d   : > { %3281 = vmatpush1.bf16.msra.mxu1 %v3210_v1  ;;  %3099 = vmatprep.mubr.bf16.mxu1 %v14602_v6 }
 0x23e   : > { %3386 = vmatprep.subr.bf16.mxu1 %v3225_v35 }
 0x23f   : > { %9347 = vmatmul.mubr.msk.bf16.gmra.mrb[12].mxu0 %vm537_vm6, %v10795_v27 }
 0x241   : > { %v11170_v10 = vpop.permute.xlu0 %3731 }
 0x244   : > { %9341 = vmatmul.mubr.msk.bf16.gmra.mrb[12].mxu1 %vm537_vm6, %v10735_v15  ;;  %v11144_v15 = vpop.permute.xlu1 %3729 }
 0x245   : > { %3312 = vmatprep.mubr.bf16.mxu1 %v14602_v6  ;;  %v11184_v60 = vpop.permute.xlu0 %4454 }
 0x248   : > { %v11146_v11 = vpop.permute.xlu1 %4452 }
 0x249   : > { %14803 = vst [vmem:[#allocation9_spill] sm:$0xff] %v11146_v11 }
 0x24c   : > { %9344 = vmatmul.mubr.msk.bf16.vlgmr.msra.gmra.mrb[0].mxu1 %vm537_vm6, %v10772_v61  ;;  %v11152_v40 = vpop.permute.xlu1 %4456 }
 0x24d   : > { %3322 = vmatprep.mubr.bf16.mxu1 %v14602_v6  ;;  %3387 = vmatpush1.bf16.msra.mxu1 %v3222_v59 }
 0x250   : > { %v11166_v30 = vpop.permute.xlu1 %4624 }
 0x254   : > { %9345 = vmatmul.mubr.msk.bf16.gmra.mrb[4].mxu1 %vm537_vm6, %v10795_v27 }
 0x255   : > { %3418 = vmatprep.mubr.bf16.mxu1 %v14602_v6 }
 0x258   : > { %v11178_v34 = vpop.permute.xlu1 %4084 }
 0x25c   : > { %9348 = vmatmul.mubr.msk.bf16.vlgmr.msra.gmra.mrb[8].mxu1 %vm537_vm6, %v10772_v61 }
 0x25d   : > { %3428 = vmatprep.mubr.bf16.mxu1 %v14602_v6 }
 0x264   : > { %9349 = vmatmul.mubr.msk.bf16.gmra.mrb[12].mxu1 %vm537_vm6, %v10795_v27 }
 0x2fa   : > { %v3261_v29 = vpop.f32.mrb[0].mxu0 }
 0x2fb   : > { %v3495_v46 = vadd.f32 %v10836_v50, %v3261_v29  ;;  %v3263_v7 = vpop.f32.mrb[1].mxu0 }
 0x2fc   : > { %v3496_v39 = vadd.f32 %v10836_v50, %v3263_v7  ;;  %v3265_v61 = vpop.f32.mrb[2].mxu0  ;;  %v11188_v7 = vpop.permute.xlu1 %3792 }
 0x2fd   : > { %v3503_v0 = vadd.f32 %v10854_v41, %v3265_v61  ;;  %v3267_v55 = vpop.f32.mrb[3].mxu0  ;;  %v3527_v14 = vmax.f32 %v3495_v46, 0.0 }
 0x2fe   : > { %v3504_v27 = vadd.f32 %v10854_v41, %v3267_v55  ;;  %v3528_v9 = vmax.f32 %v3496_v39, 0.0  ;;  %v11194_v55 = vpop.permute.xlu0 %4622 }
 0x2ff   : > { %v3535_v2 = vmax.f32 %v3503_v0, 0.0  ;;  %14807 = vst [vmem:[#allocation13_spill] sm:$0xff] %v11194_v55 }
 0x300   : > { %v3536_v12 = vmax.f32 %v3504_v27, 0.0 }
 0x301   : > { %v11156_v4 = vpack.c.bf16 %v3535_v2, %v3527_v14 }
 0x302   : > { %v11158_v17 = vpack.c.bf16 %v3536_v12, %v3528_v9  ;;  %v3271_v57 = vpop.f32.mrb[4].mxu0 }
 0x303   : > { %14804 = vst [vmem:[#allocation10_spill] sm:$0xff] %v11156_v4  ;;  %v3511_v28 = vadd.f32 %v10861_v56, %v3271_v57  ;;  %v3273_v63 = vpop.f32.mrb[5].mxu0  ;;  %4810 = vrot.lane.b32.xlu0 %v11156_v4, %s9895_s10  ;;  %3914 = vrot.lane.b32.xlu1 %v11156_v4, %s9882_s15 }
 0x304   : > { %14805 = vst [vmem:[#allocation11_spill] sm:$0xff] %v11158_v17  ;;  %v3512_v21 = vadd.f32 %v10861_v56, %v3273_v63  ;;  %v3275_v53 = vpop.f32.mrb[6].mxu0  ;;  %v11200_v63 = vpop.permute.xlu1 %4257 }
 0x305   : > { %v3519_v32 = vadd.f32 %v10886_v36, %v3275_v53  ;;  %v3277_v48 = vpop.f32.mrb[7].mxu0  ;;  %v3543_v44 = vmax.f32 %v3511_v28, 0.0 }
 0x306   : > { %v3520_v20 = vadd.f32 %v10886_v36, %v3277_v48  ;;  %v3544_v23 = vmax.f32 %v3512_v21, 0.0 }
 0x307   : > { %v3551_v47 = vmax.f32 %v3519_v32, 0.0  ;;  %3916 = vrot.lane.b32.xlu0 %v11158_v17, %s9882_s15 }
 0x308   : > { %v3552_v8 = vmax.f32 %v3520_v20, 0.0  ;;  %v11202_v20 = vpop.permute.xlu0 %4626 }
 0x309   : > { %v11174_v58 = vpack.c.bf16 %v3551_v47, %v3543_v44 }
 0x30a   : > { %v11176_v26 = vpack.c.bf16 %v3552_v8, %v3544_v23  ;;  %v3367_v5 = vpop.f32.mrb[8].mxu0  ;;  %v11208_v23 = vpop.permute.xlu1 %9828 }
 0x30b   : > { %v3499_v31 = vadd.f32 %v10836_v50, %v3367_v5  ;;  %v3369_v54 = vpop.f32.mrb[9].mxu0  ;;  %4812 = vrot.lane.b32.xlu0 %v11158_v17, %s9895_s10 }
 0x30c   : > { %v3500_v37 = vadd.f32 %v10836_v50, %v3369_v54  ;;  %v3371_v43 = vpop.f32.mrb[10].mxu0  ;;  %v11210_v8 = vpop.permute.xlu0 %4086 }
 0x30d   : > { %v3507_v25 = vadd.f32 %v10854_v41, %v3371_v43  ;;  %v3373_v35 = vpop.f32.mrb[11].mxu0  ;;  %v3531_v45 = vmax.f32 %v3499_v31, 0.0 }
 0x30e   : > { %v3508_v1 = vadd.f32 %v10854_v41, %v3373_v35  ;;  %v3532_v29 = vmax.f32 %v3500_v37, 0.0 }
 0x30f   : > { %v3539_v59 = vmax.f32 %v3507_v25, 0.0 }
 0x310   : > { %v3540_v46 = vmax.f32 %v3508_v1, 0.0  ;;  %v11215_v1 = vpop.permute.xlu1 %4915 }
 0x311   : > { %v11190_v39 = vpack.c.bf16 %v3539_v59, %v3531_v45 }
 0x312   : > { %v11192_v61 = vpack.c.bf16 %v3540_v46, %v3532_v29  ;;  %v3377_v0 = vpop.f32.mrb[12].mxu0  ;;  %v11218_v46 = vpop.permute.xlu0 %4255 }
 0x313   : > { %14806 = vst [vmem:[#allocation12_spill] sm:$0xff] %v11190_v39  ;;  %v3515_v27 = vadd.f32 %v10861_v56, %v3377_v0  ;;  %v3379_v14 = vpop.f32.mrb[13].mxu0 }
 0x314   : > { %v3516_v2 = vadd.f32 %v10861_v56, %v3379_v14  ;;  %v3381_v9 = vpop.f32.mrb[14].mxu0 }
 0x315   : > { %v3523_v12 = vadd.f32 %v10886_v36, %v3381_v9  ;;  %v3383_v57 = vpop.f32.mrb[15].mxu0  ;;  %v3547_v21 = vmax.f32 %v3515_v27, 0.0 }
 0x316   : > { %v3524_v28 = vadd.f32 %v10886_v36, %v3383_v57  ;;  %v3548_v32 = vmax.f32 %v3516_v2, 0.0 }
 0x317   : > { %v3555_v53 = vmax.f32 %v3523_v12, 0.0 }
 0x318   : > { %v3556_v48 = vmax.f32 %v3524_v28, 0.0  ;;  %v11227_v28 = vpop.permute.xlu1 %4147 }
 0x319   : > { %v11204_v44 = vpack.c.bf16 %v3555_v53, %v3547_v21 }
 0x31a   : > { %v11206_v47 = vpack.c.bf16 %v3556_v48, %v3548_v32 }
 0x31b   : > { %14808 = vst [vmem:[#allocation14_spill] sm:$0xff] %v11204_v44 }
 0x31f   : > { %v3314_v5 = vpop.f32.mrb[0].mxu1 }
 0x320   : > { %v3497_v31 = vadd.f32 %v10836_v50, %v3314_v5  ;;  %v3316_v54 = vpop.f32.mrb[1].mxu1  ;;  %v11233_v5 = vpop.permute.xlu0 %3810 }
 0x321   : > { %v3498_v37 = vadd.f32 %v10836_v50, %v3316_v54  ;;  %v3318_v43 = vpop.f32.mrb[2].mxu1 }
 0x322   : > { %v3505_v25 = vadd.f32 %v10854_v41, %v3318_v43  ;;  %v3320_v35 = vpop.f32.mrb[3].mxu1  ;;  %v3529_v59 = vmax.f32 %v3497_v31, 0.0  ;;  %v11241_v43 = vsel %vm425_vm0, %v10874_v52, %v10914_v19 }
 0x323   : > { %v3506_v45 = vadd.f32 %v10854_v41, %v3320_v35  ;;  %v3530_v0 = vmax.f32 %v3498_v37, 0.0  ;;  %14811 = vst [vmem:[#allocation17_spill] sm:$0xff] %v11241_v43 }
 0x324   : > { %v3537_v29 = vmax.f32 %v3505_v25, 0.0 }
 0x325   : > { %v3538_v27 = vmax.f32 %v3506_v45, 0.0  ;;  %v11248_v45 = vsel %vm425_vm0, %v10914_v19, %v10924_v42  ;;  %v11265_v19 = vsel %vm1158_vm5, %v10942_v16, %v10950_v62 }
 0x326   : > { %v11220_v14 = vpack.c.bf16 %v3537_v29, %v3529_v59  ;;  %14812 = vst [vmem:[#allocation18_spill] sm:$0xff] %v11248_v45  ;;  %v3757_v29 = vmul.bf16 %v11241_v43, %v11156_v4  ;;  %14815 = vst [vmem:[#allocation21_spill] sm:$0xff] %v11265_v19 }
 0x327   : > { %v11222_v2 = vpack.c.bf16 %v3538_v27, %v3530_v0  ;;  %v3324_v9 = vpop.f32.mrb[4].mxu1  ;;  %v11254_v0 = vpop.permute.xlu1 %4460 }
 0x328   : > { %14809 = vst [vmem:[#allocation15_spill] sm:$0xff] %v11220_v14  ;;  %v3513_v12 = vadd.f32 %v10861_v56, %v3324_v9  ;;  %v3326_v57 = vpop.f32.mrb[5].mxu1  ;;  %3918 = vrot.lane.b32.xlu1 %v11220_v14, %s9882_s15  ;;  %v3758_v9 = vmul.bf16 %v11248_v45, %v11158_v17 }
 0x329   : > { %14810 = vst [vmem:[#allocation16_spill] sm:$0xff] %v11222_v2  ;;  %v3514_v21 = vadd.f32 %v10861_v56, %v3326_v57  ;;  %v3328_v53 = vpop.f32.mrb[6].mxu1  ;;  %3920 = vrot.lane.b32.xlu0 %v11222_v2, %s9882_s15 }
 0x32a   : > { %v3521_v32 = vadd.f32 %v10886_v36, %v3328_v53  ;;  %v3330_v48 = vpop.f32.mrb[7].mxu1  ;;  %v3545_v54 = vmax.f32 %v3513_v12, 0.0 }
 0x32b   : > { %v3522_v31 = vadd.f32 %v10886_v36, %v3330_v48  ;;  %v3546_v25 = vmax.f32 %v3514_v21, 0.0  ;;  %v11267_v21 = vpop.permute.xlu0 %4913  ;;  %v11274_v48 = vsel %vm1158_vm5, %v10950_v62, %v11140_v38  ;;  %v11291_v62 = vsel %vm1523_vm7, %v10980_v22, %v11142_v33 }
 0x32c   : > { %v3553_v37 = vmax.f32 %v3521_v32, 0.0  ;;  %4814 = vrot.lane.b32.xlu1 %v11220_v14, %s9895_s10  ;;  %14816 = vst [vmem:[#allocation22_spill] sm:$0xff] %v11267_v21  ;;  %14817 = vst [vmem:[#allocation23_spill] sm:$0xff] %v11274_v48 }
 0x32d   : > { %v3554_v35 = vmax.f32 %v3522_v31, 0.0  ;;  %4816 = vrot.lane.b32.xlu0 %v11222_v2, %s9895_s10  ;;  %14819 = vst [vmem:[#allocation25_spill] sm:$0xff] %v11291_v62 }
 0x32e   : > { %v11250_v59 = vpack.c.bf16 %v3553_v37, %v3545_v54  ;;  %v4112_v37 = vmul.bf16 %v11265_v19, %v11156_v4 }
 0x32f   : > { %v11256_v27 = vpack.c.bf16 %v3554_v35, %v3546_v25  ;;  %v3420_v52 = vpop.f32.mrb[8].mxu1  ;;  %v4113_v25 = vmul.bf16 %v11274_v48, %v11158_v17 }
 0x330   : > { %14813 = vst [vmem:[#allocation19_spill] sm:$0xff] %v11250_v59  ;;  %v3501_v12 = vadd.f32 %v10836_v50, %v3420_v52  ;;  %v3422_v57 = vpop.f32.mrb[9].mxu1  ;;  %3794 = vrot.lane.b32.xlu1 %v3757_v29, %s9887_s22  ;;  %v11293_v52 = vpop.permute.xlu1 %3735 }
 0x331   : > { %14814 = vst [vmem:[#allocation20_spill] sm:$0xff] %v11256_v27  ;;  %v3502_v53 = vadd.f32 %v10836_v50, %v3422_v57  ;;  %v3424_v32 = vpop.f32.mrb[10].mxu1  ;;  %3796 = vrot.lane.b32.xlu0 %v3758_v9, %s9887_s22  ;;  %v11285_v50 = vsel %vm1523_vm7, %v11142_v33, %v11154_v49  ;;  %v11309_v33 = vsel %vm1593_vm10, %v11184_v60, %v11152_v40 }
 0x332   : > { %v3509_v31 = vadd.f32 %v10854_v41, %v3424_v32  ;;  %v3426_v54 = vpop.f32.mrb[11].mxu1  ;;  %14818 = vst [vmem:[#allocation24_spill] sm:$0xff] %v11285_v50  ;;  %v3533_v35 = vmax.f32 %v3501_v12, 0.0  ;;  %v4283_v32 = vmul.bf16 %v11291_v62, %v11156_v4  ;;  %v11300_v12 = vpop.permute.xlu0 %4917  ;;  %v4284_v22 = vmul.bf16 %v11285_v50, %v11158_v17  ;;  %14820 = vst [vmem:[#allocation26_spill] sm:$0xff] %v11309_v33 }
 0x333   : > { %v3510_v16 = vadd.f32 %v10854_v41, %v3426_v54  ;;  %v3534_v41 = vmax.f32 %v3502_v53, 0.0 }
 0x334   : > { %v3541_v29 = vmax.f32 %v3509_v31, 0.0  ;;  %4149 = vrot.lane.b32.xlu1 %v4112_v37, %s9888_s23 }
 0x335   : > { %v3542_v9 = vmax.f32 %v3510_v16, 0.0  ;;  %4151 = vrot.lane.b32.xlu0 %v4113_v25, %s9888_s23 }
 0x336   : > { %v11296_v57 = vpack.c.bf16 %v3541_v29, %v3533_v35 }
 0x337   : > { %v11302_v31 = vpack.c.bf16 %v3542_v9, %v3534_v41  ;;  %v3430_v54 = vpop.f32.mrb[12].mxu1  ;;  %v4484_v41 = vmul.bf16 %v11146_v11, %v11156_v4  ;;  %v11318_v9 = vpop.permute.xlu1 %4318 }
 0x338   : > { %v3517_v53 = vadd.f32 %v10861_v56, %v3430_v54  ;;  %v3432_v37 = vpop.f32.mrb[13].mxu1  ;;  %4320 = vrot.lane.b32.xlu1 %v4283_v32, %s9890_s25  ;;  %v4486_v54 = vmul.bf16 %v11309_v33, %v11220_v14 }
 0x339   : > { %v3518_v16 = vadd.f32 %v10861_v56, %v3432_v37  ;;  %v3434_v25 = vpop.f32.mrb[14].mxu1  ;;  %4322 = vrot.lane.b32.xlu0 %v4284_v22, %s9890_s25  ;;  %v11326_v56 = vsel %vm1228_vm9, %v11166_v30, %v11202_v20  ;;  %v11329_v37 = vpop.permute.xlu0 %4458 }
 0x33a   : > { %v3525_v35 = vadd.f32 %v10886_v36, %v3434_v25  ;;  %v3436_v29 = vpop.f32.mrb[15].mxu1  ;;  %14821 = vst [vmem:[#allocation27_spill] sm:$0xff] %v11326_v56  ;;  %v3549_v32 = vmax.f32 %v3517_v53, 0.0  ;;  %v4656_v13 = vmul.bf16 %v11326_v56, %v11220_v14 }
 0x33b   : > { %v3526_v6 = vadd.f32 %v10886_v36, %v3436_v29  ;;  %v3550_v25 = vmax.f32 %v3518_v16, 0.0  ;;  %v4654_v36 = vmul.bf16 %v11194_v55, %v11156_v4  ;;  %v11341_v53 = vpop.permute.xlu1 %4630  ;;  %v4945_v16 = vmul.bf16 %v11267_v21, %v11156_v4 }
 0x33c   : > { %v3557_v22 = vmax.f32 %v3525_v35, 0.0  ;;  %4520 = vrot.lane.b32.xlu1 %v4484_v41, %s9884_s21  ;;  %v11358_v41 = vsel %vm811_vm8, %v11267_v21, %v11215_v1  ;;  %v11428_v4 = vsel %vm811_vm8, %v11215_v1, %v11300_v12  ;;  %v11446_v1 = vsel %vm1523_vm7, %v11218_v46, %v11200_v63 }
 0x33d   : > { %v3558_v3 = vmax.f32 %v3526_v6, 0.0  ;;  %4524 = vrot.lane.b32.xlu0 %v4486_v54, %s9884_s21  ;;  %v11347_v6 = vsel %vm1523_vm7, %v11154_v49, %v11218_v46  ;;  %v11351_v35 = vpop.permute.xlu0 %3733  ;;  %14823 = vst [vmem:[#allocation29_spill] sm:$0xff] %v11358_v41  ;;  %14831 = vst [vmem:[#allocation37_spill] sm:$0xff] %v11428_v4 }
 0x33e   : > { %v11332_v24 = vpack.c.bf16 %v3557_v22, %v3549_v32  ;;  %14822 = vst [vmem:[#allocation28_spill] sm:$0xff] %v11347_v6  ;;  %v4946_v32 = vmul.bf16 %v11358_v41, %v11158_v17  ;;  %v11376_v22 = vsel %vm1593_vm10, %v11146_v11, %v11184_v60  ;;  %14833 = vst [vmem:[#allocation39_spill] sm:$0xff] %v11446_v1 }
 0x33f   : > { %v11336_v29 = vpack.c.bf16 %v3558_v3, %v3550_v25  ;;  %v4285_v3 = vmul.bf16 %v11347_v6, %v11220_v14  ;;  %v11369_v54 = vpop.permute.xlu1 %4088  ;;  %14825 = vst [vmem:[#allocation31_spill] sm:$0xff] %v11376_v22 }
 0x340   : > { %4690 = vrot.lane.b32.xlu1 %v4654_v36, %s9881_s14  ;;  %v4485_v36 = vmul.bf16 %v11376_v22, %v11158_v17 }
 0x341   : > { %4694 = vrot.lane.b32.xlu0 %v4656_v13, %s9881_s14  ;;  %v11364_v13 = vsel %vm425_vm0, %v10924_v42, %v11144_v15  ;;  %v11379_v25 = vpop.permute.xlu0 %4165  ;;  %v11385_v42 = vsel %vm425_vm0, %v11144_v15, %v11170_v10 }
 0x342   : > { %14824 = vst [vmem:[#allocation30_spill] sm:$0xff] %v11364_v13  ;;  %v3759_v49 = vmul.bf16 %v11364_v13, %v11220_v14  ;;  %14826 = vst [vmem:[#allocation32_spill] sm:$0xff] %v11385_v42  ;;  %v3760_v60 = vmul.bf16 %v11385_v42, %v11222_v2 }
 0x343   : > { %v11402_v15 = vpop.permute.xlu1 %4261 }
 0x344   : > { %4981 = vrot.lane.b32.xlu1 %v4945_v16, %s9880_s13  ;;  %v11392_v16 = vsel %vm1228_vm9, %v11194_v55, %v11166_v30 }
 0x345   : > { %4324 = vrot.lane.b32.xlu0 %v4285_v3, %s9890_s25  ;;  %14827 = vst [vmem:[#allocation33_spill] sm:$0xff] %v11392_v16  ;;  %v11399_v3 = vsel %vm1158_vm5, %v11178_v34, %v11210_v8 }
 0x346   : > { %14828 = vst [vmem:[#allocation34_spill] sm:$0xff] %v11399_v3  ;;  %v4115_v30 = vmul.bf16 %v11399_v3, %v11222_v2 }
 0x348   : > { %3798 = vrot.lane.b32.xlu1 %v3759_v49, %s9887_s22  ;;  %v4655_v49 = vmul.bf16 %v11392_v16, %v11158_v17  ;;  %v11430_v17 = vpop.permute.xlu1 %4919 }
 0x349   : > { %4983 = vrot.lane.b32.xlu0 %v4946_v32, %s9880_s13  ;;  %v11407_v32 = vpop.permute.xlu0 %4628 }
 0x34a   : > { %v11414_v18 = vsel %vm1228_vm9, %v11202_v20, %v11407_v32 }
 0x34b   : > { %14829 = vst [vmem:[#allocation35_spill] sm:$0xff] %v11414_v18  ;;  %v4657_v20 = vmul.bf16 %v11414_v18, %v11222_v2 }
 0x34c   : > { %4522 = vrot.lane.b32.xlu1 %v4485_v36, %s9884_s21  ;;  %v11420_v36 = vsel %vm1158_vm5, %v11140_v38, %v11178_v34  ;;  %v11437_v38 = vsel %vm811_vm8, %v11300_v12, %v11430_v17  ;;  %v4947_v34 = vmul.bf16 %v11428_v4, %v11220_v14  ;;  %v4286_v12 = vmul.bf16 %v11446_v1, %v11222_v2 }
 0x34d   : > { %3800 = vrot.lane.b32.xlu0 %v3760_v60, %s9887_s22  ;;  %14830 = vst [vmem:[#allocation36_spill] sm:$0xff] %v11420_v36  ;;  %v4114_v60 = vmul.bf16 %v11420_v36, %v11220_v14  ;;  %14832 = vst [vmem:[#allocation38_spill] sm:$0xff] %v11437_v38  ;;  %v4663_v14 = vmul.bf16 %v11194_v55, %v11174_v58  ;;  %v4293_v55 = vmul.bf16 %v11285_v50, %v11176_v26 }
 0x350   : > { %4692 = vrot.lane.b32.xlu1 %v4655_v49, %s9881_s14  ;;  %v4948_v49 = vmul.bf16 %v11437_v38, %v11222_v2 }
 0x351   : > { %4155 = vrot.lane.b32.xlu0 %v4115_v30, %s9888_s23  ;;  %v11451_v30 = vpop.permute.xlu0 %4336 }
 0x354   : > { %4153 = vrot.lane.b32.xlu1 %v4114_v60, %s9888_s23  ;;  %v11459_v60 = vsel %vm1593_vm10, %v11152_v40, %v11329_v37 }
 0x355   : > { %4696 = vrot.lane.b32.xlu0 %v4657_v20, %s9881_s14  ;;  %14834 = vst [vmem:[#allocation40_spill] sm:$0xff] %v11459_v60  ;;  %v4487_v46 = vmul.bf16 %v11459_v60, %v11222_v2  ;;  %v11466_v20 = vpop.permute.xlu0 %4090 }
 0x358   : > { %4985 = vrot.lane.b32.xlu1 %v4947_v34, %s9880_s13  ;;  %v3766_v34 = vmul.bf16 %v11241_v43, %v11174_v58 }
 0x359   : > { %4987 = vrot.lane.b32.xlu0 %v4948_v49, %s9880_s13  ;;  %v11473_v40 = vpop.permute.xlu0 %4259 }
 0x35c   : > { %4326 = vrot.lane.b32.xlu1 %v4286_v12, %s9890_s25  ;;  %v4121_v12 = vmul.bf16 %v11265_v19, %v11174_v58  ;;  %v11501_v19 = vpop.permute.xlu1 %3737 }
 0x35d   : > { %3934 = vrot.lane.b32.xlu0 %v11176_v26, %s9882_s15  ;;  %v11482_v49 = vpop.permute.xlu0 %4921  ;;  %14835 = vst [vmem:[#allocation41_spill] sm:$0xff] %v11501_v19 }
 0x360   : > { %4526 = vrot.lane.b32.xlu1 %v4487_v46, %s9884_s21  ;;  %v4292_v46 = vmul.bf16 %v11291_v62, %v11174_v58 }
 0x361   : > { %3936 = vrot.lane.b32.xlu0 %v11250_v59, %s9882_s15  ;;  %v11493_v43 = vpop.permute.xlu0 %4464 }
 0x364   : > { %3932 = vrot.lane.b32.xlu1 %v11174_v58, %s9882_s15 }
 0x365   : > { %4832 = vrot.lane.b32.xlu0 %v11250_v59, %s9895_s10  ;;  %v11505_v62 = vpop.permute.xlu0 %4632 }
 0x368   : > { %4828 = vrot.lane.b32.xlu1 %v11174_v58, %s9895_s10 }
 0x369   : > { %3812 = vrot.lane.b32.xlu0 %v3766_v34, %s9887_s22  ;;  %v4493_v34 = vmul.bf16 %v11146_v11, %v11174_v58  ;;  %v11515_v11 = vpop.permute.xlu1 %4462 }
 0x36c   : > { %4830 = vrot.lane.b32.xlu1 %v11176_v26, %s9895_s10 }
 0x36d   : > { %4167 = vrot.lane.b32.xlu0 %v4121_v12, %s9888_s23  ;;  %v3767_v12 = vmul.bf16 %v11248_v45, %v11176_v26  ;;  %v11518_v45 = vpop.permute.xlu0 %4092 }
 0x370   : > { %3938 = vrot.lane.b32.xlu1 %v11256_v27, %s9882_s15 }
 0x371   : > { %4338 = vrot.lane.b32.xlu0 %v4292_v46, %s9890_s25  ;;  %v4122_v46 = vmul.bf16 %v11274_v48, %v11176_v26 }
 0x374   : > { %4834 = vrot.lane.b32.xlu1 %v11256_v27, %s9895_s10 }
 0x375   : > { %4538 = vrot.lane.b32.xlu0 %v4493_v34, %s9884_s21  ;;  %v4954_v34 = vmul.bf16 %v11267_v21, %v11174_v58  ;;  %v4495_v21 = vmul.bf16 %v11309_v33, %v11250_v59 }
 0x378   : > { %3814 = vrot.lane.b32.xlu1 %v3767_v12, %s9887_s22  ;;  %v11525_v12 = vpop.permute.xlu1 %4634 }
 0x379   : > { %4708 = vrot.lane.b32.xlu0 %v4663_v14, %s9881_s14  ;;  %v3768_v14 = vmul.bf16 %v11364_v13, %v11250_v59  ;;  %v4665_v13 = vmul.bf16 %v11326_v56, %v11250_v59 }
 0x37c   : > { %4169 = vrot.lane.b32.xlu1 %v4122_v46, %s9888_s23  ;;  %v11531_v46 = vpop.permute.xlu0 %4923  ;;  %v11537_v50 = vpop.permute.xlu1 %4263 }
 0x37d   : > { %4999 = vrot.lane.b32.xlu0 %v4954_v34, %s9880_s13  ;;  %v4494_v34 = vmul.bf16 %v11376_v22, %v11176_v26  ;;  %14836 = vst [vmem:[#allocation42_spill] sm:$0xff] %v11537_v50  ;;  %v4123_v22 = vmul.bf16 %v11420_v36, %v11250_v59 }
 0x380   : > { %4340 = vrot.lane.b32.xlu1 %v4293_v55, %s9890_s25  ;;  %v11541_v55 = vpop.permute.xlu0 %4466  ;;  %v11553_v33 = vpop.permute.xlu1 %4925 }
 0x381   : > { %3816 = vrot.lane.b32.xlu0 %v3768_v14, %s9887_s22  ;;  %v4664_v14 = vmul.bf16 %v11392_v16, %v11176_v26  ;;  %v4956_v16 = vmul.bf16 %v11428_v4, %v11250_v59  ;;  %v11616_v4 = vsel %vm1593_vm10, %v11329_v37, %v11254_v0  ;;  %v11631_v37 = vsel %vm1523_vm7, %v11200_v63, %v11473_v40 }
 0x382   : > { %14843 = vst [vmem:[#allocation49_spill] sm:$0xff] %v11616_v4  ;;  %14844 = vst [vmem:[#allocation50_spill] sm:$0xff] %v11631_v37  ;;  %v4488_v48 = vmul.bf16 %v11616_v4, %v11190_v39 }
 0x384   : > { %4542 = vrot.lane.b32.xlu1 %v4495_v21, %s9884_s21  ;;  %v11549_v21 = vpop.permute.xlu0 %4810  ;;  %v11565_v36 = vpop.permute.xlu1 %4636 }
 0x385   : > { %4540 = vrot.lane.b32.xlu0 %v4494_v34, %s9884_s21  ;;  %14837 = vst [vmem:[#allocation43_spill] sm:$0xff] %v11549_v21  ;;  %v4294_v34 = vmul.bf16 %v11347_v6, %v11250_v59  ;;  %v3769_v6 = vmul.bf16 %v11385_v42, %v11256_v27 }
 0x388   : > { %4712 = vrot.lane.b32.xlu1 %v4665_v13, %s9881_s14  ;;  %v4955_v13 = vmul.bf16 %v11358_v41, %v11176_v26 }
 0x389   : > { %4710 = vrot.lane.b32.xlu0 %v4664_v14, %s9881_s14  ;;  %v11562_v14 = vpop.permute.xlu0 %3916 }
 0x38c   : > { %4171 = vrot.lane.b32.xlu1 %v4123_v22, %s9888_s23  ;;  %v4124_v22 = vmul.bf16 %v11399_v3, %v11256_v27 }
 0x38d   : > { %4342 = vrot.lane.b32.xlu0 %v4294_v34, %s9890_s25  ;;  %v11573_v34 = vpop.permute.xlu1 %3914  ;;  %v11577_v41 = vpop.permute.xlu0 %4812 }
 0x38e   : > { %14838 = vst [vmem:[#allocation44_spill] sm:$0xff] %v11577_v41 }
 0x390   : > { %5003 = vrot.lane.b32.xlu1 %v4956_v16, %s9880_s13  ;;  %v4295_v16 = vmul.bf16 %v11446_v1, %v11256_v27  ;;  %v11611_v1 = vsel %vm1228_vm9, %v11407_v32, %v11341_v53 }
 0x391   : > { %5001 = vrot.lane.b32.xlu0 %v4955_v13, %s9880_s13  ;;  %v4496_v13 = vmul.bf16 %v11459_v60, %v11256_v27  ;;  %v4957_v60 = vmul.bf16 %v11437_v38, %v11256_v27  ;;  %14842 = vst [vmem:[#allocation48_spill] sm:$0xff] %v11611_v1  ;;  %v4658_v32 = vmul.bf16 %v11611_v1, %v11190_v39 }
 0x394   : > { %3818 = vrot.lane.b32.xlu1 %v3769_v6, %s9887_s22  ;;  %v4666_v6 = vmul.bf16 %v11414_v18, %v11256_v27 }
 0x395   : > { %4173 = vrot.lane.b32.xlu0 %v4124_v22, %s9888_s23 }
 0x398   : > { %4344 = vrot.lane.b32.xlu1 %v4295_v16, %s9890_s25  ;;  %v11597_v16 = vsel %vm425_vm0, %v11170_v10, %v11351_v35 }
 0x399   : > { %4544 = vrot.lane.b32.xlu0 %v4496_v13, %s9884_s21  ;;  %14840 = vst [vmem:[#allocation46_spill] sm:$0xff] %v11597_v16  ;;  %v3770_v41 = vmul.bf16 %v11597_v16, %v11204_v44 }
 0x39a   : > { %v11583_v42 = vpop.permute.xlu1 %3918 }
 0x39b   : > { %v11585_v3 = vpop.permute.xlu0 %3920 }
 0x39c   : > { %4818 = vrot.lane.b32.xlu1 %v11190_v39, %s9895_s10 }
 0x39d   : > { %4714 = vrot.lane.b32.xlu0 %v4666_v6, %s9881_s14  ;;  %v3761_v6 = vmul.bf16 %v11597_v16, %v11190_v39  ;;  %v4296_v16 = vmul.bf16 %v11631_v37, %v11204_v44 }
 0x39e   : > { %v11592_v22 = vpop.permute.xlu1 %4814 }
 0x39f   : > { %14839 = vst [vmem:[#allocation45_spill] sm:$0xff] %v11592_v22  ;;  %v11599_v13 = vpop.permute.xlu0 %4816 }
 0x3a0   : > { %14841 = vst [vmem:[#allocation47_spill] sm:$0xff] %v11599_v13  ;;  %3924 = vrot.lane.b32.xlu1 %v11192_v61, %s9882_s15  ;;  %v11678_v13 = vsel %vm1158_vm5, %v11369_v54, %v11466_v20 }
 0x3a1   : > { %5005 = vrot.lane.b32.xlu0 %v4957_v60, %s9880_s13  ;;  %14849 = vst [vmem:[#allocation55_spill] sm:$0xff] %v11678_v13 }
 0x3a2   : > { %v3795_v18 = vpop.permute.xlu1 %3794 }
 0x3a3   : > { %v3797_v10 = vpop.permute.xlu0 %3796  ;;  %v3828_v60 = vsel %vm811_vm8, %v11188_v7, %v3795_v18  ;;  %v11645_v7 = vsel %vm1158_vm5, %v11210_v8, %v11369_v54  ;;  %v4117_v54 = vmul.bf16 %v11678_v13, %v11192_v61 }
 0x3a4   : > { %3802 = vrot.lane.b32.xlu1 %v3761_v6, %s9887_s22  ;;  %v3829_v38 = vsel %vm811_vm8, %v3795_v18, %v3797_v10  ;;  %v11640_v18 = vld [vmem:[%s14597_s4 + $0x4] ss:$12 sps:$4 sm:$0xff]   ;;  %14846 = vst [vmem:[#allocation52_spill] sm:$0xff] %v11645_v7 }
 0x3a5   : > { %3922 = vrot.lane.b32.xlu0 %v11190_v39, %s9882_s15  ;;  %5278 = vmatprep.subr.bf16.mxu0 %v3829_v38  ;;  %14845 = vst [vmem:[#allocation51_spill] sm:$0xff] %v11640_v18  ;;  %v4287_v38 = vmul.bf16 %v11631_v37, %v11190_v39 }
 0x3a6   : > { %v11624_v56 = vpop.permute.xlu1 %4149  ;;  %5279 = vmatpush1.bf16.msra.mxu0 %v3828_v60  ;;  %5310 = vmatprep.mubr.bf16.mxu0 %v11640_v18  ;;  %v11658_v60 = vsel %vm811_vm8, %v11430_v17, %v11482_v49 }
 0x3a7   : > { %v11633_v6 = vpop.permute.xlu0 %4151  ;;  %5416 = vmatprep.mubr.bf16.mxu1 %v11640_v18  ;;  %14847 = vst [vmem:[#allocation53_spill] sm:$0xff] %v11658_v60  ;;  %v4949_v17 = vmul.bf16 %v11658_v60, %v11190_v39 }
 0x3a8   : > { %4698 = vrot.lane.b32.xlu1 %v4658_v32, %s9881_s14  ;;  %v4116_v32 = vmul.bf16 %v11645_v7, %v11190_v39 }
 0x3a9   : > { %4528 = vrot.lane.b32.xlu0 %v4488_v48, %s9884_s21  ;;  %v11667_v48 = vsel %vm425_vm0, %v11351_v35, %v11293_v52 }
 0x3aa   : > { %v11650_v63 = vpop.permute.xlu1 %4320  ;;  %14848 = vst [vmem:[#allocation54_spill] sm:$0xff] %v11667_v48  ;;  %v3762_v35 = vmul.bf16 %v11667_v48, %v11192_v61 }
 0x3ab   : > { %v11660_v8 = vpop.permute.xlu0 %4322 }
 0x3ac   : > { %4328 = vrot.lane.b32.xlu1 %v4287_v38, %s9890_s25  ;;  %v11687_v38 = vsel %vm1523_vm7, %v11473_v40, %v11402_v15 }
 0x3ad   : > { %4157 = vrot.lane.b32.xlu0 %v4116_v32, %s9888_s23  ;;  %14850 = vst [vmem:[#allocation56_spill] sm:$0xff] %v11687_v38  ;;  %v4288_v27 = vmul.bf16 %v11687_v38, %v11192_v61 }
 0x3ae   : > { %v11671_v18 = vpop.permute.xlu1 %4520 }
 0x3af   : > { %v11680_v59 = vpop.permute.xlu0 %4524 }
 0x3b0   : > { %4989 = vrot.lane.b32.xlu1 %v4949_v17, %s9880_s13 }
 0x3b1   : > { %3804 = vrot.lane.b32.xlu0 %v3762_v35, %s9887_s22  ;;  %v4497_v35 = vmul.bf16 %v11616_v4, %v11204_v44 }
 0x3b2   : > { %v11691_v32 = vpop.permute.xlu1 %4690 }
 0x3b3   : > { %v11695_v39 = vpop.permute.xlu0 %4694 }
 0x3b4   : > { %4159 = vrot.lane.b32.xlu1 %v4117_v54, %s9888_s23  ;;  %v4667_v54 = vmul.bf16 %v11611_v1, %v11204_v44  ;;  %v4125_v1 = vmul.bf16 %v11645_v7, %v11204_v44 }
 0x3b5   : > { %4330 = vrot.lane.b32.xlu0 %v4288_v27, %s9890_s25 }
 0x3b6   : > { %v11701_v40 = vpop.permute.xlu1 %4981 }
 0x3b7   : > { %14851 = vst [vmem:[#allocation57_spill] sm:$0xff] %v11701_v40  ;;  %v11703_v2 = vpop.permute.xlu0 %4324 }
 0x3b8   : > { %3942 = vrot.lane.b32.xlu1 %v11206_v47, %s9882_s15 }
 0x3b9   : > { %3940 = vrot.lane.b32.xlu0 %v11204_v44, %s9882_s15 }
 0x3ba   : > { %v3799_v17 = vpop.permute.xlu1 %3798 }
 0x3bb   : > { %v11711_v21 = vpop.permute.xlu0 %4983 }
 0x3bc   : > { %14852 = vst [vmem:[#allocation58_spill] sm:$0xff] %v11711_v21  ;;  %4546 = vrot.lane.b32.xlu1 %v4497_v35, %s9884_s21  ;;  %v3830_v35 = vsel %vm811_vm8, %v3797_v10, %v3799_v17  ;;  %v3771_v10 = vmul.bf16 %v11667_v48, %v11206_v47 }
 0x3bd   : > { %4836 = vrot.lane.b32.xlu0 %v11204_v44, %s9895_s10 }
 0x3be   : > { %v11716_v27 = vpop.permute.xlu1 %4522 }
 0x3bf   : > { %v11720_v40 = vpop.permute.xlu0 %3800 }
 0x3c0   : > { %14853 = vst [vmem:[#allocation59_spill] sm:$0xff] %v11720_v40  ;;  %4716 = vrot.lane.b32.xlu1 %v4667_v54, %s9881_s14  ;;  %v3831_v4 = vsel %vm811_vm8, %v3799_v17, %v11720_v40  ;;  %v4297_v40 = vmul.bf16 %v11687_v38, %v11206_v47 }
 0x3c1   : > { %3820 = vrot.lane.b32.xlu0 %v3770_v41, %s9887_s22  ;;  %5384 = vmatprep.subr.bf16.mxu1 %v3831_v4  ;;  %v11741_v41 = vsel %vm425_vm0, %v11293_v52, %v11501_v19 }
 0x3c2   : > { %v11729_v21 = vpop.permute.xlu1 %4692  ;;  %5385 = vmatpush1.bf16.msra.mxu1 %v3830_v35  ;;  %14854 = vst [vmem:[#allocation60_spill] sm:$0xff] %v11741_v41  ;;  %v3763_v54 = vmul.bf16 %v11741_v41, %v11296_v57 }
 0x3c3   : > { %v11733_v22 = vpop.permute.xlu0 %4155 }
 0x3c4   : > { %4175 = vrot.lane.b32.xlu1 %v4125_v1, %s9888_s23  ;;  %v11755_v1 = vsel %vm1593_vm10, %v11254_v0, %v11515_v11 }
 0x3c5   : > { %4346 = vrot.lane.b32.xlu0 %v4296_v16, %s9890_s25  ;;  %14856 = vst [vmem:[#allocation62_spill] sm:$0xff] %v11755_v1  ;;  %v4958_v16 = vmul.bf16 %v11658_v60, %v11204_v44  ;;  %v4489_v37 = vmul.bf16 %v11755_v1, %v11192_v61  ;;  %v4126_v60 = vmul.bf16 %v11678_v13, %v11206_v47 }
 0x3c6   : > { %v11744_v4 = vpop.permute.xlu1 %4153  ;;  %v11801_v44 = vsel %vm1228_vm9, %v11505_v62, %v11525_v12 }
 0x3c7   : > { %v11748_v17 = vpop.permute.xlu0 %4696  ;;  %14862 = vst [vmem:[#allocation68_spill] sm:$0xff] %v11801_v44 }
 0x3c8   : > { %14855 = vst [vmem:[#allocation61_spill] sm:$0xff] %v11748_v17  ;;  %3822 = vrot.lane.b32.xlu1 %v3771_v10, %s9887_s22  ;;  %v3764_v10 = vmul.bf16 %v11501_v19, %v11302_v31 }
 0x3c9   : > { %3806 = vrot.lane.b32.xlu0 %v3763_v54, %s9887_s22  ;;  %v11776_v54 = vsel %vm1593_vm10, %v11515_v11, %v11493_v43  ;;  %v11794_v11 = vsel %vm1228_vm9, %v11341_v53, %v11505_v62 }
 0x3ca   : > { %v11759_v52 = vpop.permute.xlu1 %4985  ;;  %14859 = vst [vmem:[#allocation65_spill] sm:$0xff] %v11776_v54  ;;  %14861 = vst [vmem:[#allocation67_spill] sm:$0xff] %v11794_v11  ;;  %v4659_v13 = vmul.bf16 %v11794_v11, %v11192_v61 }
 0x3cb   : > { %14857 = vst [vmem:[#allocation63_spill] sm:$0xff] %v11759_v52  ;;  %v11763_v35 = vpop.permute.xlu0 %4987  ;;  %v4498_v52 = vmul.bf16 %v11755_v1, %v11206_v47 }
 0x3cc   : > { %14858 = vst [vmem:[#allocation64_spill] sm:$0xff] %v11763_v35  ;;  %5007 = vrot.lane.b32.xlu1 %v4958_v16, %s9880_s13 }
 0x3cd   : > { %4530 = vrot.lane.b32.xlu0 %v4489_v37, %s9884_s21  ;;  %v4490_v37 = vmul.bf16 %v11776_v54, %v11296_v57 }
 0x3ce   : > { %v11769_v0 = vpop.permute.xlu1 %4326 }
 0x3cf   : > { %v11778_v7 = vpop.permute.xlu0 %3934 }
 0x3d0   : > { %3808 = vrot.lane.b32.xlu1 %v3764_v10, %s9887_s22 }
 0x3d1   : > { %3926 = vrot.lane.b32.xlu0 %v11296_v57, %s9882_s15 }
 0x3d2   : > { %v11783_v16 = vpop.permute.xlu1 %4526 }
 0x3d3   : > { %14860 = vst [vmem:[#allocation66_spill] sm:$0xff] %v11783_v16  ;;  %v11787_v48 = vpop.permute.xlu0 %3936 }
 0x3d4   : > { %4532 = vrot.lane.b32.xlu1 %v4490_v37, %s9884_s21 }
 0x3d5   : > { %4177 = vrot.lane.b32.xlu0 %v4126_v60, %s9888_s23  ;;  %v4660_v60 = vmul.bf16 %v11801_v44, %v11296_v57 }
 0x3d6   : > { %v3933_v10 = vpop.permute.xlu1 %3932 }
 0x3d7   : > { %v11803_v35 = vpop.permute.xlu0 %4832 }
 0x3d8   : > { %3928 = vrot.lane.b32.xlu1 %v11302_v31, %s9882_s15 }
 0x3d9   : > { %4700 = vrot.lane.b32.xlu0 %v4659_v13, %s9881_s14 }
 0x3da   : > { %v11810_v53 = vpop.permute.xlu1 %4828 }
 0x3db   : > { %14863 = vst [vmem:[#allocation69_spill] sm:$0xff] %v11810_v53  ;;  %v3813_v37 = vpop.permute.xlu0 %3812  ;;  %v4668_v53 = vmul.bf16 %v11794_v11, %v11206_v47  ;;  %v9830_v11 = vunpack.i.l.bf16 %v11208_v23 }
 0x3dc   : > { %4702 = vrot.lane.b32.xlu1 %v4660_v60, %s9881_s14  ;;  %v3772_v60 = vmul.bf16 %v11741_v41, %v11332_v24 }
 0x3dd   : > { %4927 = vrot.lane.b32.xlu0 %v11072_v51, %s9887_s22 }
 0x3de   : > { %v11817_v62 = vpop.permute.xlu1 %4830 }
 0x3df   : > { %v4168_v17 = vpop.permute.xlu0 %4167 }
 0x3e0   : > { %4348 = vrot.lane.b32.xlu1 %v4297_v40, %s9890_s25  ;;  %v4499_v40 = vmul.bf16 %v11776_v54, %v11332_v24  ;;  %v4669_v54 = vmul.bf16 %v11801_v44, %v11332_v24  ;;  %v3773_v44 = vmul.bf16 %v11501_v19, %v11336_v29 }
 0x3e1   : > { %3946 = vrot.lane.b32.xlu0 %v11336_v29, %s9882_s15 }
 0x3e2   : > { %v11824_v13 = vpop.permute.xlu1 %3938 }
 0x3e3   : > { %v11826_v16 = vpop.permute.xlu0 %4338 }
 0x3e4   : > { %3944 = vrot.lane.b32.xlu1 %v11332_v24, %s9882_s15 }
 0x3e5   : > { %3824 = vrot.lane.b32.xlu0 %v3772_v60, %s9887_s22 }
 0x3e6   : > { %v11833_v51 = vpop.permute.xlu1 %4834 }
 0x3e7   : > { %14864 = vst [vmem:[#allocation70_spill] sm:$0xff] %v11833_v51  ;;  %v11837_v38 = vpop.permute.xlu0 %4538 }
 0x3e8   : > { %4550 = vrot.lane.b32.xlu1 %v4499_v40, %s9884_s21  ;;  %v3836_v40 = vsel %vm811_vm8, %v11233_v5, %v3813_v37  ;;  %v4119_v5 = vmul.bf16 %v11518_v45, %v11302_v31 }
 0x3e9   : > { %4548 = vrot.lane.b32.xlu0 %v4498_v52, %s9884_s21  ;;  %v3949_v52 = vsel %vm528_vm4, %v11573_v34, %v11562_v14 }
 0x3ea   : > { %v11843_v41 = vpop.permute.xlu1 %3814 }
 0x3eb   : > { %v11847_v60 = vpop.permute.xlu0 %4708  ;;  %v3837_v51 = vsel %vm811_vm8, %v3813_v37, %v11843_v41  ;;  %v3948_v37 = vsel %vm528_vm4, %v9830_v11, %v11573_v34  ;;  %v4184_v34 = vsel %vm1228_vm9, %v11624_v56, %v11633_v6 }
 0x3ec   : > { %4718 = vrot.lane.b32.xlu1 %v4668_v53, %s9881_s14  ;;  %5280 = vmatprep.subr.bf16.mxu0 %v3837_v51  ;;  %v3957_v51 = vsel %vm528_vm4, %v3933_v10, %v11778_v7 }
 0x3ed   : > { %4720 = vrot.lane.b32.xlu0 %v4669_v54, %s9881_s14  ;;  %5281 = vmatpush1.bf16.msra.mxu0 %v3836_v40  ;;  %v11872_v54 = vsel %vm1158_vm5, %v11466_v20, %v11518_v45  ;;  %v9831_v40 = vunpack.i.h.bf16 %v11208_v23 }
 0x3ee   : > { %v11861_v1 = vpop.permute.xlu1 %4169  ;;  %5282 = vmatprep.subr.bf16.mxu0 %v3949_v52  ;;  %14865 = vst [vmem:[#allocation71_spill] sm:$0xff] %v11872_v54  ;;  %v4118_v20 = vmul.bf16 %v11872_v54, %v11296_v57 }
 0x3ef   : > { %v11865_v53 = vpop.permute.xlu0 %4999 }
 0x3f0   : > { %3826 = vrot.lane.b32.xlu1 %v3773_v44, %s9887_s22  ;;  %v3956_v44 = vsel %vm528_vm4, %v9831_v40, %v3933_v10  ;;  %v4183_v10 = vsel %vm1228_vm9, %v11227_v28, %v11624_v56  ;;  %v4191_v28 = vsel %vm1228_vm9, %v11379_v25, %v4168_v17  ;;  %v4355_v56 = vsel %vm1593_vm10, %v11650_v63, %v11660_v8 }
 0x3f1   : > { %4163 = vrot.lane.b32.xlu0 %v4119_v5, %s9888_s23  ;;  %5283 = vmatpush1.bf16.msra.mxu0 %v3948_v37  ;;  %v4192_v5 = vsel %vm1228_vm9, %v4168_v17, %v11861_v1  ;;  %v4354_v25 = vsel %vm1593_vm10, %v11318_v9, %v11650_v63  ;;  %v11951_v9 = vsel %vm811_vm8, %v11531_v46, %v11553_v33 }
 0x3f2   : > { %v11881_v52 = vpop.permute.xlu1 %4340  ;;  %5284 = vmatprep.subr.bf16.mxu0 %v3957_v51  ;;  %v4127_v51 = vmul.bf16 %v11872_v54, %v11332_v24  ;;  %v4362_v63 = vsel %vm1593_vm10, %v11451_v30, %v11826_v16 }
 0x3f3   : > { %v3817_v19 = vpop.permute.xlu0 %3816  ;;  %v4363_v17 = vsel %vm1593_vm10, %v11826_v16, %v11881_v52  ;;  %v4951_v16 = vmul.bf16 %v11951_v9, %v11296_v57 }
 0x3f4   : > { %4161 = vrot.lane.b32.xlu1 %v4118_v20, %s9888_s23  ;;  %v4128_v20 = vmul.bf16 %v11518_v45, %v11336_v29 }
 0x3f5   : > { %4822 = vrot.lane.b32.xlu0 %v11296_v57, %s9895_s10  ;;  %5285 = vmatpush1.bf16.msra.mxu0 %v3956_v44 }
 0x3f6   : > { %v11892_v23 = vpop.permute.xlu1 %4542  ;;  %5286 = vmatprep.subr.bf16.mxu0 %v4184_v34 }
 0x3f7   : > { %v11894_v11 = vpop.permute.xlu0 %4540 }
 0x3f8   : > { %4820 = vrot.lane.b32.xlu1 %v11192_v61, %s9895_s10 }
 0x3f9   : > { %4840 = vrot.lane.b32.xlu0 %v11332_v24, %s9895_s10  ;;  %5287 = vmatpush1.bf16.msra.mxu0 %v4183_v10  ;;  %v4290_v10 = vmul.bf16 %v11537_v50, %v11302_v31 }
 0x3fa   : > { %v11905_v37 = vpop.permute.xlu1 %4712  ;;  %5288 = vmatprep.subr.bf16.mxu0 %v4192_v5  ;;  %v11929_v5 = vsel %vm1523_vm7, %v11402_v15, %v11537_v50 }
 0x3fb   : > { %v11909_v40 = vpop.permute.xlu0 %4710  ;;  %14866 = vst [vmem:[#allocation72_spill] sm:$0xff] %v11929_v5  ;;  %v4289_v15 = vmul.bf16 %v11929_v5, %v11296_v57 }
 0x3fc   : > { %4179 = vrot.lane.b32.xlu1 %v4127_v51, %s9888_s23 }
 0x3fd   : > { %4181 = vrot.lane.b32.xlu0 %v4128_v20, %s9888_s23  ;;  %5289 = vmatpush1.bf16.msra.mxu0 %v4191_v28  ;;  %v4299_v28 = vmul.bf16 %v11537_v50, %v11336_v29 }
 0x3fe   : > { %v11920_v44 = vpop.permute.xlu1 %4171  ;;  %5290 = vmatprep.subr.bf16.mxu0 %v4355_v56 }
 0x3ff   : > { %v11922_v34 = vpop.permute.xlu0 %4342 }
 0x400   : > { %4838 = vrot.lane.b32.xlu1 %v11206_v47, %s9895_s10 }
 0x401   : > { %4334 = vrot.lane.b32.xlu0 %v4290_v10, %s9890_s25  ;;  %5291 = vmatpush1.bf16.msra.mxu0 %v4354_v25  ;;  %v14867_v10 = vld [vmem:[#allocation11_spill] sm:$0xff]  ;;  %v4298_v25 = vmul.bf16 %v11929_v5, %v11332_v24 }
 0x402   : > { %v11940_v51 = vpop.permute.xlu1 %5003  ;;  %5292 = vmatprep.subr.bf16.mxu0 %v4363_v17  ;;  %v11966_v17 = vsel %vm811_vm8, %v11482_v49, %v11531_v46  ;;  %v3951_v46 = vsel %vm528_vm4, %v11583_v42, %v11585_v3 }
 0x403   : > { %v11944_v20 = vpop.permute.xlu0 %5001 }
 0x404   : > { %4332 = vrot.lane.b32.xlu1 %v4289_v15, %s9890_s25 }
 0x405   : > { %4352 = vrot.lane.b32.xlu0 %v4299_v28, %s9890_s25  ;;  %5293 = vmatpush1.bf16.msra.mxu0 %v4362_v63  ;;  %v14868_v28 = vld [vmem:[#allocation10_spill] sm:$0xff]  ;;  %v3838_v63 = vsel %vm811_vm8, %v11843_v41, %v3817_v19 }
 0x406   : > { %v11958_v56 = vpop.permute.xlu1 %3818  ;;  %5294 = vmatprep.subr.bf16.mxu0 %v14867_v10  ;;  %v4950_v10 = vmul.bf16 %v11966_v17, %v11192_v61 }
 0x407   : > { %v11968_v15 = vpop.permute.xlu0 %4173  ;;  %v3839_v30 = vsel %vm811_vm8, %v3817_v19, %v11958_v56  ;;  %v4557_v19 = vsel %vm1523_vm7, %v11716_v27, %v11680_v59 }
 0x408   : > { %4350 = vrot.lane.b32.xlu1 %v4298_v25, %s9890_s25  ;;  %5386 = vmatprep.subr.bf16.mxu1 %v3839_v30  ;;  %v4960_v30 = vmul.bf16 %v11951_v9, %v11332_v24 }
 0x409   : > { %4993 = vrot.lane.b32.xlu0 %v4951_v16, %s9880_s13  ;;  %5295 = vmatpush1.bf16.msra.mxu0 %v14868_v28  ;;  %v3959_v16 = vsel %vm528_vm4, %v11787_v48, %v11824_v13  ;;  %v4959_v28 = vmul.bf16 %v11966_v17, %v11206_v47 }
 0x40a   : > { %5387 = vmatpush1.bf16.msra.mxu1 %v3838_v63  ;;  %v11979_v49 = vpop.permute.xlu1 %4344  ;;  %5296 = vmatprep.subr.bf16.mxu0 %v11176_v26  ;;  %v3950_v26 = vsel %vm528_vm4, %v11562_v14, %v11583_v42  ;;  %v12013_v42 = vmul.bf16 0, %v11541_v55  ;;  %v4556_v63 = vsel %vm1523_vm7, %v11671_v18, %v11716_v27  ;;  %v4186_v18 = vsel %vm1228_vm9, %v11744_v4, %v11733_v22 }
 0x40b   : > { %5388 = vmatprep.subr.bf16.mxu1 %v3951_v46  ;;  %v11987_v25 = vpop.permute.xlu0 %4544 }
 0x40c   : > { %4991 = vrot.lane.b32.xlu1 %v4950_v10, %s9880_s13  ;;  %14870 = vst [vmem:[#allocation10_spill] sm:$0xff] %v12013_v42 }
 0x40d   : > { %5011 = vrot.lane.b32.xlu0 %v4960_v30, %s9880_s13  ;;  %5297 = vmatpush1.bf16.msra.mxu0 %v11174_v58  ;;  %v12010_v58 = vsel %vm1593_vm10, %v11493_v43, %v11541_v55  ;;  %v3958_v43 = vsel %vm528_vm4, %v11778_v7, %v11787_v48  ;;  %v4565_v55 = vsel %vm1523_vm7, %v11894_v11, %v11892_v23 }
 0x40e   : > { %5389 = vmatpush1.bf16.msra.mxu1 %v3950_v26  ;;  %v12000_v41 = vpop.permute.xlu1 %4818  ;;  %5298 = vmatprep.subr.bf16.mxu0 %v4557_v19  ;;  %14869 = vst [vmem:[#allocation11_spill] sm:$0xff] %v12010_v58  ;;  %v4491_v27 = vmul.bf16 %v12010_v58, %v11302_v31  ;;  %v4564_v7 = vsel %vm1523_vm7, %v11837_v38, %v11894_v11 }
 0x40f   : > { %5390 = vmatprep.subr.bf16.mxu1 %v3959_v16  ;;  %v12015_v14 = vpop.permute.xlu0 %4714  ;;  %v4185_v48 = vsel %vm1228_vm9, %v11633_v6, %v11744_v4  ;;  %v4727_v30 = vsel %vm1158_vm5, %v11729_v21, %v11695_v39  ;;  %v4194_v38 = vsel %vm1228_vm9, %v11920_v44, %v11968_v15  ;;  %v4500_v11 = vmul.bf16 %v12010_v58, %v11336_v29 }
 0x410   : > { %5009 = vrot.lane.b32.xlu1 %v4959_v28, %s9880_s13  ;;  %v12060_v19 = vsel %vm1228_vm9, %v11525_v12, %v11565_v36  ;;  %v12063_v6 = vmul.bf16 0, %v11565_v36  ;;  %v4726_v16 = vsel %vm1158_vm5, %v11691_v32, %v11729_v21  ;;  %v4193_v12 = vsel %vm1228_vm9, %v11861_v1, %v11920_v44 }
 0x411   : > { %4536 = vrot.lane.b32.xlu0 %v12013_v42, %s9884_s21  ;;  %5299 = vmatpush1.bf16.msra.mxu0 %v4556_v63  ;;  %14871 = vst [vmem:[#allocation73_spill] sm:$0xff] %v12060_v19  ;;  %v4735_v36 = vsel %vm1158_vm5, %v11909_v40, %v11905_v37  ;;  %v4357_v21 = vsel %vm1593_vm10, %v11703_v2, %v11769_v0 }
 0x412   : > { %5391 = vmatpush1.bf16.msra.mxu1 %v3958_v43  ;;  %v12029_v46 = vpop.permute.xlu1 %3924  ;;  %5300 = vmatprep.subr.bf16.mxu0 %v4565_v55  ;;  %14872 = vst [vmem:[#allocation74_spill] sm:$0xff] %v12063_v6  ;;  %v4661_v32 = vmul.bf16 %v12060_v19, %v11302_v31  ;;  %v4734_v1 = vsel %vm1158_vm5, %v11847_v60, %v11909_v40  ;;  %v14873_v43 = vld [vmem:[#allocation45_spill] sm:$0xff]  ;;  %v14874_v55 = vld [vmem:[#allocation44_spill] sm:$0xff] }
 0x413   : > { %5392 = vmatprep.subr.bf16.mxu1 %v4186_v18  ;;  %v12036_v10 = vpop.permute.xlu0 %5005  ;;  %v4356_v44 = vsel %vm1593_vm10, %v11660_v8, %v11703_v2  ;;  %v4848_v18 = vsel %vm2839_vm11, %v14874_v55, %v14873_v43  ;;  %v4365_v60 = vsel %vm1593_vm10, %v11922_v34, %v11979_v49  ;;  %v4670_v40 = vmul.bf16 %v12060_v19, %v11336_v29  ;;  %v14875_v2 = vld [vmem:[#allocation43_spill] sm:$0xff] }
 0x414   : > { %4534 = vrot.lane.b32.xlu1 %v4491_v27, %s9884_s21  ;;  %v4847_v8 = vsel %vm2839_vm11, %v14875_v2, %v14874_v55  ;;  %v14881_v55 = vld [vmem:[#allocation15_spill] sm:$0xff] }
 0x415   : > { %4554 = vrot.lane.b32.xlu0 %v12013_v42, %s9884_s21  ;;  %5301 = vmatpush1.bf16.msra.mxu0 %v4564_v7 }
 0x416   : > { %5393 = vmatpush1.bf16.msra.mxu1 %v4185_v48  ;;  %v12050_v26 = vpop.permute.xlu1 %3802  ;;  %5302 = vmatprep.subr.bf16.mxu0 %v4727_v30  ;;  %v4364_v48 = vsel %vm1593_vm10, %v11881_v52, %v11922_v34  ;;  %v4856_v30 = vsel %vm2839_vm11, %v11817_v62, %v11803_v35  ;;  %v14878_v52 = vld [vmem:[#allocation69_spill] sm:$0xff] }
 0x417   : > { %5394 = vmatprep.subr.bf16.mxu1 %v4194_v38  ;;  %v12065_v4 = vpop.permute.xlu0 %3922  ;;  %v14876_v38 = vmov 0   ;;  %v4855_v34 = vsel %vm2839_vm11, %v14878_v52, %v11817_v62 }
 0x418   : > { %4552 = vrot.lane.b32.xlu1 %v4500_v11, %s9884_s21 }
 0x419   : > { %4706 = vrot.lane.b32.xlu0 %v12063_v6, %s9881_s14  ;;  %5303 = vmatpush1.bf16.msra.mxu0 %v4726_v16  ;;  %v14877_v16 = vld [vmem:[#allocation16_spill] sm:$0xff] }
 0x41a   : > { %5395 = vmatpush1.bf16.msra.mxu1 %v4193_v12  ;;  %v12079_v28 = vpop.permute.xlu1 %4698  ;;  %5304 = vmatprep.subr.bf16.mxu0 %v4735_v36  ;;  %v12134_v36 = vld [vmem:[%s14597_s4] ss:$12 sps:$4 sm:$0xff]  }
 0x41b   : > { %5396 = vmatprep.subr.bf16.mxu1 %v4357_v21  ;;  %v12086_v63 = vpop.permute.xlu0 %4528  ;;  %v14879_v21 = vld [vmem:[#allocation63_spill] sm:$0xff] }
 0x41c   : > { %4704 = vrot.lane.b32.xlu1 %v4661_v32, %s9881_s14  ;;  %v14880_v32 = vld [vmem:[#allocation58_spill] sm:$0xff] }
 0x41d   : > { %4724 = vrot.lane.b32.xlu0 %v12063_v6, %s9881_s14  ;;  %5305 = vmatpush1.bf16.msra.mxu0 %v4734_v1  ;;  %v5018_v1 = vsel %vm425_vm0, %v14880_v32, %v14879_v21 }
 0x41e   : > { %5397 = vmatpush1.bf16.msra.mxu1 %v4356_v44  ;;  %v12100_v27 = vpop.permute.xlu1 %4328  ;;  %5306 = vmatprep.subr.bf16.mxu0 %v4848_v18  ;;  %v12144_v44 = vld [vmem:[%s14597_s4 + $0x1c] ss:$12 sps:$4 sm:$0xff]  }
 0x41f   : > { %5398 = vmatprep.subr.bf16.mxu1 %v4365_v60  ;;  %v12107_v7 = vpop.permute.xlu0 %4157  ;;  %v14882_v18 = vld [vmem:[#allocation20_spill] sm:$0xff] }
 0x420   : > { %4722 = vrot.lane.b32.xlu1 %v4670_v40, %s9881_s14  ;;  %v14883_v40 = vld [vmem:[#allocation57_spill] sm:$0xff] }
 0x421   : > { %5307 = vmatpush1.bf16.msra.mxu0 %v4847_v8  ;;  %4826 = vrot.lane.b32.xlu0 %v14876_v38, %s9895_s10  ;;  %v5017_v2 = vsel %vm425_vm0, %v14883_v40, %v14880_v32  ;;  %v5026_v8 = vsel %vm425_vm0, %v11944_v20, %v11940_v51  ;;  %v5025_v32 = vsel %vm425_vm0, %v11865_v53, %v11944_v20 }
 0x422   : > { %5399 = vmatpush1.bf16.msra.mxu1 %v4364_v48  ;;  %v12121_v11 = vpop.permute.xlu1 %4989  ;;  %5308 = vmatprep.subr.bf16.mxu0 %v4856_v30  ;;  %v14884_v48 = vld [vmem:[#allocation19_spill] sm:$0xff] }
 0x423   : > { %5400 = vmatprep.subr.bf16.mxu1 %v14877_v16  ;;  %v12124_v12 = vpop.permute.xlu0 %3804  ;;  %v14885_v16 = vld [vmem:[#allocation66_spill] sm:$0xff] }
 0x424   : > { %4824 = vrot.lane.b32.xlu1 %v11302_v31, %s9895_s10  ;;  %v4559_v52 = vsel %vm1523_vm7, %v14885_v16, %v12086_v63 }
 0x425   : > { %5309 = vmatpush1.bf16.msra.mxu0 %v4855_v34  ;;  %4844 = vrot.lane.b32.xlu0 %v14876_v38, %s9895_s10 }
 0x426   : > { %5401 = vmatpush1.bf16.msra.mxu1 %v14881_v55  ;;  %v12147_v62 = vpop.permute.xlu1 %4159  ;;  %5331 = vmatprep.subr.bf16.mxu0 %v5018_v1  ;;  %v12176_v1 = vld [vmem:[%s14597_s4 + $0x18] ss:$12 sps:$4 sm:$0xff]   ;;  %v4558_v55 = vsel %vm1523_vm7, %v11680_v59, %v14885_v16  ;;  %v4566_v59 = vsel %vm1523_vm7, %v11892_v23, %v11987_v25 }
 0x427   : > { %5402 = vmatprep.subr.bf16.mxu1 %v14882_v18  ;;  %v12150_v60 = vpop.permute.xlu0 %4330  ;;  %v3833_v18 = vsel %vm811_vm8, %v12050_v26, %v12124_v12 }
 0x428   : > { %4842 = vrot.lane.b32.xlu1 %v11336_v29, %s9895_s10  ;;  %5311 = vmatmul.mubr.bf16.vlgmr.msra.gmra.mrb[16].mxu0 %v12134_v36 }
 0x429   : > { %5332 = vmatpush1.bf16.msra.mxu0 %v5017_v2  ;;  %5320 = vmatprep.mubr.bf16.mxu0 %v12144_v44 }
 0x42a   : > { %5403 = vmatpush1.bf16.msra.mxu1 %v14884_v48  ;;  %v12163_v30 = vpop.permute.xlu1 %3942  ;;  %5333 = vmatprep.subr.bf16.mxu0 %v5026_v8  ;;  %v14886_v8 = vld [vmem:[#allocation61_spill] sm:$0xff] }
 0x42b   : > { %5404 = vmatprep.subr.bf16.mxu1 %v4559_v52  ;;  %v12168_v34 = vpop.permute.xlu0 %3940  ;;  %v4729_v48 = vsel %vm1158_vm5, %v14886_v8, %v12079_v28  ;;  %v12204_v52 = vld [vmem:[%s14597_s4 + $0x8] ss:$12 sps:$4 sm:$0xff]   ;;  %v4728_v23 = vsel %vm1158_vm5, %v11695_v39, %v14886_v8  ;;  %v4736_v39 = vsel %vm1158_vm5, %v11905_v37, %v12015_v14  ;;  %v12237_v37 = vld [vmem:[%s14597_s4 + $0x20] ss:$12 sps:$4 sm:$0xff]  }
 0x42c   : > { %v14888_v8 = vld [vmem:[#allocation47_spill] sm:$0xff] }
 0x42d   : > { %5334 = vmatpush1.bf16.msra.mxu0 %v5025_v32 }
 0x42e   : > { %5405 = vmatpush1.bf16.msra.mxu1 %v4558_v55  ;;  %v12184_v40 = vpop.permute.xlu1 %4546  ;;  %5490 = vmatprep.subr.bf16.mxu0 %v3833_v18  ;;  %v14887_v18 = vld [vmem:[#allocation59_spill] sm:$0xff] }
 0x42f   : > { %v12186_v2 = vpop.permute.xlu0 %4836  ;;  %v4567_v53 = vsel %vm1523_vm7, %v11987_v25, %v12184_v40 }
 0x430   : > { %5321 = vmatmul.mubr.bf16.gmra.mrb[20].mxu0 %v12176_v1  ;;  %5406 = vmatprep.subr.bf16.mxu1 %v4567_v53  ;;  %v3832_v53 = vsel %vm811_vm8, %v14887_v18, %v12050_v26  ;;  %v3953_v18 = vsel %vm528_vm4, %v12065_v4, %v12029_v46 }
 0x431   : > { %5363 = vmatprep.mubr.bf16.mxu0 %v14876_v38 }
 0x432   : > { %5407 = vmatpush1.bf16.msra.mxu1 %v4566_v59  ;;  %v12196_v20 = vpop.permute.xlu1 %4716 }
 0x433   : > { %5408 = vmatprep.subr.bf16.mxu1 %v4729_v48  ;;  %v3821_v16 = vpop.permute.xlu0 %3820  ;;  %v4737_v32 = vsel %vm1158_vm5, %v12015_v14, %v12196_v20  ;;  %v4850_v48 = vsel %vm2839_vm11, %v14888_v8, %v12000_v41  ;;  %v4849_v14 = vsel %vm2839_vm11, %v14873_v43, %v14888_v8  ;;  %v3952_v43 = vsel %vm528_vm4, %v11585_v3, %v12065_v4 }
 0x436   : > { %5409 = vmatpush1.bf16.msra.mxu1 %v4728_v23  ;;  %v4176_v25 = vpop.permute.xlu1 %4175 }
 0x437   : > { %5410 = vmatprep.subr.bf16.mxu1 %v4737_v32  ;;  %v12212_v55 = vpop.permute.xlu0 %4346  ;;  %v3840_v32 = vsel %vm811_vm8, %v11958_v56, %v3821_v16 }
 0x438   : > { %9356 = vmatmul.mubr.msk.bf16.vlgmr.msra.gmra.mrb[16].mxu0 %vm528_vm4, %v12204_v52 }
 0x439   : > { %5491 = vmatpush1.bf16.msra.mxu0 %v3832_v53  ;;  %5373 = vmatprep.mubr.bf16.mxu0 %v14876_v38 }
 0x43a   : > { %5411 = vmatpush1.bf16.msra.mxu1 %v4736_v39  ;;  %v12223_v59 = vpop.permute.xlu1 %3822  ;;  %v14889_v39 = vld [vmem:[#allocation70_spill] sm:$0xff] }
 0x43b   : > { %5412 = vmatprep.subr.bf16.mxu1 %v4850_v48  ;;  %v12228_v23 = vpop.permute.xlu0 %3806  ;;  %v3841_v26 = vsel %vm811_vm8, %v3821_v16, %v12223_v59  ;;  %v4858_v56 = vsel %vm2839_vm11, %v14889_v39, %v12186_v2  ;;  %v4857_v8 = vsel %vm2839_vm11, %v11803_v35, %v14889_v39  ;;  %v3961_v48 = vsel %vm528_vm4, %v12168_v34, %v12163_v30 }
 0x43c   : > { %5492 = vmatprep.subr.bf16.mxu0 %v3841_v26  ;;  %v14890_v26 = vld [vmem:[#allocation51_spill] sm:$0xff]  ;;  %v3960_v35 = vsel %vm528_vm4, %v11824_v13, %v12168_v34  ;;  %v4188_v39 = vsel %vm1228_vm9, %v12107_v7, %v12147_v62 }
 0x43d   : > { %5493 = vmatpush1.bf16.msra.mxu0 %v3840_v32 }
 0x43e   : > { %5413 = vmatpush1.bf16.msra.mxu1 %v4849_v14  ;;  %v12245_v53 = vpop.permute.xlu1 %5007  ;;  %5494 = vmatprep.subr.bf16.mxu0 %v3953_v18  ;;  %v14891_v14 = vld [vmem:[#allocation64_spill] sm:$0xff] }
 0x43f   : > { %5414 = vmatprep.subr.bf16.mxu1 %v4858_v56  ;;  %v12250_v16 = vpop.permute.xlu0 %4530  ;;  %v5020_v18 = vsel %vm425_vm0, %v14891_v14, %v12121_v11  ;;  %v5019_v4 = vsel %vm425_vm0, %v14879_v21, %v14891_v14  ;;  %v4187_v21 = vsel %vm1228_vm9, %v11733_v22, %v12107_v7  ;;  %v4195_v22 = vsel %vm1228_vm9, %v11968_v15, %v4176_v25 }
 0x440   : > { %9357 = vmatmul.mubr.msk.bf16.gmra.mrb[20].mxu0 %vm528_vm4, %v12237_v37  ;;  %v4358_v15 = vsel %vm1593_vm10, %v11769_v0, %v12100_v27  ;;  %v4366_v0 = vsel %vm1593_vm10, %v11979_v49, %v12212_v55 }
 0x441   : > { %5495 = vmatpush1.bf16.msra.mxu0 %v3952_v43  ;;  %5522 = vmatprep.mubr.bf16.mxu0 %v14890_v26  ;;  %v5028_v43 = vsel %vm425_vm0, %v12036_v10, %v12245_v53 }
 0x442   : > { %5415 = vmatpush1.bf16.msra.mxu1 %v4857_v8  ;;  %v3809_v32 = vpop.permute.xlu1 %3808  ;;  %5496 = vmatprep.subr.bf16.mxu0 %v3961_v48  ;;  %v5027_v8 = vsel %vm425_vm0, %v11940_v51, %v12036_v10  ;;  %v4359_v51 = vsel %vm1593_vm10, %v12100_v27, %v12150_v60  ;;  %v3834_v27 = vsel %vm811_vm8, %v12124_v12, %v12228_v23  ;;  %v5217_v12 = vld [vmem:[%s14598_s5] sm:$0xff] }
 0x443   : > { %5437 = vmatprep.subr.bf16.mxu1 %v5020_v18  ;;  %v12267_v3 = vpop.permute.xlu0 %3926  ;;  %v3835_v14 = vsel %vm811_vm8, %v12228_v23, %v3809_v32  ;;  %v14894_v23 = vld [vmem:[#allocation12_spill] sm:$0xff] }
 0x445   : > { %5417 = vmatmul.mubr.bf16.vlgmr.msra.gmra.mrb[16].mxu1 %v12134_v36  ;;  %5497 = vmatpush1.bf16.msra.mxu0 %v3960_v35 }
 0x446   : > { %5438 = vmatpush1.bf16.msra.mxu1 %v5019_v4  ;;  %v12279_v56 = vpop.permute.xlu1 %4532  ;;  %5498 = vmatprep.subr.bf16.mxu0 %v4188_v39 }
 0x447   : > { %5439 = vmatprep.subr.bf16.mxu1 %v5028_v43  ;;  %v12284_v13 = vpop.permute.xlu0 %4177  ;;  %5426 = vmatprep.mubr.bf16.mxu1 %v12144_v44 }
 0x448   : > { %v4196_v34 = vsel %vm1228_vm9, %v4176_v25, %v12284_v13 }
 0x449   : > { %5499 = vmatpush1.bf16.msra.mxu0 %v4187_v21 }
 0x44a   : > { %5440 = vmatpush1.bf16.msra.mxu1 %v5027_v8  ;;  %v12295_v48 = vpop.permute.xlu1 %3928  ;;  %5500 = vmatprep.subr.bf16.mxu0 %v4196_v34  ;;  %v5220_v8 = vld [vmem:[%s14598_s5 + $0x18] sm:$0xff] }
 0x44b   : > { %5596 = vmatprep.subr.bf16.mxu1 %v3835_v14  ;;  %v12299_v18 = vpop.permute.xlu0 %4700  ;;  %v5219_v14 = vld [vmem:[%s14598_s5 + $0x10] sm:$0xff] }
 0x44d   : > { %5427 = vmatmul.mubr.bf16.gmra.mrb[20].mxu1 %v12176_v1  ;;  %5501 = vmatpush1.bf16.msra.mxu0 %v4195_v22  ;;  %v14895_v22 = vld [vmem:[#allocation14_spill] sm:$0xff] }
 0x44e   : > { %v12307_v10 = vpop.permute.xlu1 %4702  ;;  %5502 = vmatprep.subr.bf16.mxu0 %v4359_v51  ;;  %5469 = vmatprep.mubr.bf16.mxu1 %v14876_v38 }
 0x44f   : > { %v4928_v7 = vpop.permute.xlu0 %4927 }
 0x450   : > { %v12312_v32 = vsel %vm811_vm8, %v11553_v33, %v4928_v7  ;;  %v12314_v35 = vmul.bf16 0, %v4928_v7 }
 0x451   : > { %14892 = vst [vmem:[#allocation45_spill] sm:$0xff] %v12312_v32  ;;  %5503 = vmatpush1.bf16.msra.mxu0 %v4358_v15  ;;  %v4952_v25 = vmul.bf16 %v12312_v32, %v11302_v31  ;;  %v4961_v43 = vmul.bf16 %v12312_v32, %v11336_v29  ;;  %v4560_v15 = vsel %vm1523_vm7, %v12086_v63, %v12250_v16 }
 0x452   : > { %14893 = vst [vmem:[#allocation44_spill] sm:$0xff] %v12314_v35  ;;  %v12321_v4 = vpop.permute.xlu1 %4348  ;;  %4997 = vrot.lane.b32.xlu0 %v12314_v35, %s9880_s13 }
 0x453   : > { %4995 = vrot.lane.b32.xlu1 %v4952_v25, %s9880_s13  ;;  %v3947_v39 = vpop.permute.xlu0 %3946  ;;  %v4367_v33 = vsel %vm1593_vm10, %v12212_v55, %v12321_v4  ;;  %v5218_v55 = vld [vmem:[%s14598_s5 + $0x8] sm:$0xff] }
 0x454   : > { %5504 = vmatprep.subr.bf16.mxu0 %v4367_v33 }
 0x455   : > { %9358 = vmatmul.mubr.msk.bf16.vlgmr.msra.gmra.mrb[16].mxu1 %vm528_vm4, %v12204_v52  ;;  %5505 = vmatpush1.bf16.msra.mxu0 %v4366_v0  ;;  %v14896_v0 = vld [vmem:[#allocation6_spill] sm:$0xff] }
 0x456   : > { %5597 = vmatpush1.bf16.msra.mxu1 %v3834_v27  ;;  %v3945_v21 = vpop.permute.xlu1 %3944  ;;  %5506 = vmatprep.subr.bf16.mxu0 %v11192_v61 }
 0x457   : > { %5015 = vrot.lane.b32.xlu0 %v12314_v35, %s9880_s13  ;;  %5013 = vrot.lane.b32.xlu1 %v4961_v43, %s9880_s13  ;;  %v3825_v49 = vpop.permute.xlu0 %3824  ;;  %v14943_v35 = vld [vmem:[#allocation52_spill] sm:$0xff] }
 0x458   : > { %5479 = vmatprep.mubr.bf16.mxu1 %v14876_v38  ;;  %v3842_v63 = vsel %vm811_vm8, %v12223_v59, %v3825_v49  ;;  %v4730_v59 = vsel %vm1158_vm5, %v12079_v28, %v12299_v18 }
 0x459   : > { %5507 = vmatpush1.bf16.msra.mxu0 %v14894_v23  ;;  %v14897_v23 = vld [vmem:[#allocation7_spill] sm:$0xff] }
 0x45a   : > { %v12351_v34 = vpop.permute.xlu1 %4550  ;;  %5508 = vmatprep.subr.bf16.mxu0 %v11206_v47  ;;  %v4561_v47 = vsel %vm1523_vm7, %v12250_v16, %v12279_v56  ;;  %v4731_v16 = vsel %vm1158_vm5, %v12299_v18, %v12307_v10 }
 0x45b   : > { %5228 = vperm.xlu0 %9826, %v5218_v55   ;;  %5223 = vperm.xlu1 %9825, %v5217_v12   ;;  %v4549_v61 = vpop.permute.xlu0 %4548  ;;  %v3955_v55 = vsel %vm528_vm4, %v12267_v3, %v12295_v48 }
 0x45c   : > { %v4569_v25 = vsel %vm1523_vm7, %v4549_v61, %v12351_v34  ;;  %v4568_v43 = vsel %vm1523_vm7, %v12184_v40, %v4549_v61  ;;  %v3963_v61 = vsel %vm528_vm4, %v3945_v21, %v3947_v39 }
 0x45d   : > { %9359 = vmatmul.mubr.msk.bf16.gmra.mrb[20].mxu1 %vm528_vm4, %v12237_v37  ;;  %5509 = vmatpush1.bf16.msra.mxu0 %v14895_v22 }
 0x45e   : > { %v4719_v51 = vpop.permute.xlu1 %4718  ;;  %5510 = vmatprep.subr.bf16.mxu0 %v4561_v47  ;;  %5628 = vmatprep.mubr.bf16.mxu1 %v14890_v26 }
 0x45f   : > { %5238 = vperm.xlu0 %9826, %v5220_v8   ;;  %5233 = vperm.xlu1 %9825, %v5219_v14   ;;  %v12367_v7 = vpop.permute.xlu0 %4720  ;;  %v14898_v14 = vld [vmem:[#allocation8_spill] sm:$0xff] }
 0x460   : > { %v4739_v48 = vsel %vm1158_vm5, %v4719_v51, %v12367_v7 }
 0x461   : > { %5511 = vmatpush1.bf16.msra.mxu0 %v4560_v15 }
 0x462   : > { %v3827_v33 = vpop.permute.xlu1 %3826  ;;  %5512 = vmatprep.subr.bf16.mxu0 %v4569_v25 }
 0x463   : > { %5838 = vrot.lane.b32.xlu0 %v14896_v0, %s9887_s22  ;;  %5820 = vrot.lane.b32.xlu1 %v14896_v0, %s9887_s22  ;;  %v4164_v26 = vpop.permute.xlu0 %4163  ;;  %v3843_v27 = vsel %vm811_vm8, %v3825_v49, %v3827_v33  ;;  %v3954_v49 = vsel %vm528_vm4, %v12029_v46, %v12267_v3  ;;  %v4738_v46 = vsel %vm1158_vm5, %v12196_v20, %v4719_v51  ;;  %v14942_v0 = vld [vmem:[#allocation56_spill] sm:$0xff] }
 0x464   : > { %5598 = vmatprep.subr.bf16.mxu1 %v3843_v27  ;;  %v3962_v3 = vsel %vm528_vm4, %v12163_v30, %v3945_v21 }
 0x465   : > { %5513 = vmatpush1.bf16.msra.mxu0 %v4568_v43  ;;  %5599 = vmatpush1.bf16.msra.mxu1 %v3842_v63 }
 0x466   : > { %v4162_v12 = vpop.permute.xlu1 %4161  ;;  %5514 = vmatprep.subr.bf16.mxu0 %v4731_v16  ;;  %5600 = vmatprep.subr.bf16.mxu1 %v3955_v55 }
 0x467   : > { %6078 = vrot.lane.b32.xlu0 %v14897_v23, %s9888_s23  ;;  %9833 = vrot.lane.b32.xlu1 %v14876_v38, %s9882_s15  ;;  %v12393_v40 = vpop.permute.xlu0 %4822  ;;  %v4190_v39 = vsel %vm1228_vm9, %v4162_v12, %v4164_v26  ;;  %v4189_v30 = vsel %vm1228_vm9, %v12147_v62, %v4162_v12 }
 0x469   : > { %5515 = vmatpush1.bf16.msra.mxu0 %v4730_v59  ;;  %5601 = vmatpush1.bf16.msra.mxu1 %v3954_v49 }
 0x46a   : > { %v4821_v8 = vpop.permute.xlu1 %4820  ;;  %5516 = vmatprep.subr.bf16.mxu0 %v4739_v48  ;;  %5602 = vmatprep.subr.bf16.mxu1 %v3963_v61 }
 0x46b   : > { %6216 = vrot.lane.b32.xlu0 %v14898_v14, %s9890_s25  ;;  %6096 = vrot.lane.b32.xlu1 %v14897_v23, %s9888_s23  ;;  %v12408_v28 = vpop.permute.xlu0 %4840  ;;  %v4852_v18 = vsel %vm2839_vm11, %v4821_v8, %v12393_v40  ;;  %v4851_v20 = vsel %vm2839_vm11, %v12000_v41, %v4821_v8 }
 0x46d   : > { %5517 = vmatpush1.bf16.msra.mxu0 %v4738_v46  ;;  %5603 = vmatpush1.bf16.msra.mxu1 %v3962_v3 }
 0x46e   : > { %v4180_v22 = vpop.permute.xlu1 %4179  ;;  %5518 = vmatprep.subr.bf16.mxu0 %v4852_v18  ;;  %5604 = vmatprep.subr.bf16.mxu1 %v4190_v39 }
 0x46f   : > { %6234 = vrot.lane.b32.xlu1 %v14898_v14, %s9890_s25  ;;  %v4182_v47 = vpop.permute.xlu0 %4181  ;;  %v4197_v41 = vsel %vm1228_vm9, %v12284_v13, %v4180_v22  ;;  %v14926_v14 = vld [vmem:[#allocation40_spill] sm:$0xff] }
 0x470   : > { %v4198_v21 = vsel %vm1228_vm9, %v4180_v22, %v4182_v47 }
 0x471   : > { %5519 = vmatpush1.bf16.msra.mxu0 %v4851_v20  ;;  %5605 = vmatpush1.bf16.msra.mxu1 %v4189_v30 }
 0x472   : > { %v4839_v51 = vpop.permute.xlu1 %4838  ;;  %5606 = vmatprep.subr.bf16.mxu1 %v4198_v21 }
 0x473   : > { %v4335_v15 = vpop.permute.xlu0 %4334  ;;  %v4860_v25 = vsel %vm2839_vm11, %v4839_v51, %v12408_v28  ;;  %v4859_v33 = vsel %vm2839_vm11, %v12186_v2, %v4839_v51 }
 0x474   : > { %5520 = vmatprep.subr.bf16.mxu0 %v4860_v25 }
 0x475   : > { %5521 = vmatpush1.bf16.msra.mxu0 %v4859_v33  ;;  %5607 = vmatpush1.bf16.msra.mxu1 %v4197_v41 }
 0x476   : > { %v4333_v62 = vpop.permute.xlu1 %4332 }
 0x477   : > { %v4353_v26 = vpop.permute.xlu0 %4352  ;;  %v4361_v27 = vsel %vm1593_vm10, %v4333_v62, %v4335_v15  ;;  %v4360_v43 = vsel %vm1593_vm10, %v12150_v60, %v4333_v62 }
 0x478   : > { %5523 = vmatmul.mubr.bf16.vlgmr.msra.gmra.mrb[24].mxu0 %v12134_v36  ;;  %5608 = vmatprep.subr.bf16.mxu1 %v4361_v27 }
 0x479   : > { %5609 = vmatpush1.bf16.msra.mxu1 %v4360_v43  ;;  %5532 = vmatprep.mubr.bf16.mxu0 %v12144_v44 }
 0x47a   : > { %v4351_v2 = vpop.permute.xlu1 %4350 }
 0x47b   : > { %v12435_v63 = vpop.permute.xlu0 %4993  ;;  %v4369_v13 = vsel %vm1593_vm10, %v4351_v2, %v4353_v26  ;;  %v4368_v16 = vsel %vm1593_vm10, %v12321_v4, %v4351_v2 }
 0x47c   : > { %5610 = vmatprep.subr.bf16.mxu1 %v4369_v13 }
 0x47d   : > { %5611 = vmatpush1.bf16.msra.mxu1 %v4368_v16 }
 0x47e   : > { %v4992_v55 = vpop.permute.xlu1 %4991  ;;  %5612 = vmatprep.subr.bf16.mxu1 %v11302_v31 }
 0x47f   : > { %v12441_v60 = vpop.permute.xlu0 %5011  ;;  %v5022_v12 = vsel %vm425_vm0, %v4992_v55, %v12435_v63  ;;  %v5021_v59 = vsel %vm425_vm0, %v12121_v11, %v4992_v55 }
 0x480   : > { %5533 = vmatmul.mubr.bf16.gmra.mrb[28].mxu0 %v12176_v1  ;;  %5543 = vmatprep.subr.bf16.mxu0 %v5022_v12 }
 0x481   : > { %5544 = vmatpush1.bf16.msra.mxu0 %v5021_v59  ;;  %5613 = vmatpush1.bf16.msra.mxu1 %v11296_v57 }
 0x482   : > { %v5010_v4 = vpop.permute.xlu1 %5009  ;;  %5614 = vmatprep.subr.bf16.mxu1 %v11336_v29  ;;  %5575 = vmatprep.mubr.bf16.mxu0 %v14876_v38 }
 0x483   : > { %v4537_v31 = vpop.permute.xlu0 %4536  ;;  %v5030_v49 = vsel %vm425_vm0, %v5010_v4, %v12441_v60  ;;  %v5029_v48 = vsel %vm425_vm0, %v12245_v53, %v5010_v4 }
 0x484   : > { %5545 = vmatprep.subr.bf16.mxu0 %v5030_v49 }
 0x485   : > { %5546 = vmatpush1.bf16.msra.mxu0 %v5029_v48  ;;  %5615 = vmatpush1.bf16.msra.mxu1 %v11332_v24 }
 0x486   : > { %v4535_v11 = vpop.permute.xlu1 %4534 }
 0x487   : > { %v4555_v61 = vpop.permute.xlu0 %4554  ;;  %v4563_v57 = vsel %vm1523_vm7, %v4535_v11, %v4537_v31  ;;  %v4562_v29 = vsel %vm1523_vm7, %v12279_v56, %v4535_v11 }
 0x488   : > { %9360 = vmatmul.mubr.msk.bf16.vlgmr.msra.gmra.mrb[24].mxu0 %vm528_vm4, %v12204_v52  ;;  %5616 = vmatprep.subr.bf16.mxu1 %v4563_v57 }
 0x489   : > { %5617 = vmatpush1.bf16.msra.mxu1 %v4562_v29  ;;  %5585 = vmatprep.mubr.bf16.mxu0 %v14876_v38 }
 0x48a   : > { %v4553_v8 = vpop.permute.xlu1 %4552 }
 0x48b   : > { %v4707_v53 = vpop.permute.xlu0 %4706  ;;  %v4571_v46 = vsel %vm1523_vm7, %v4553_v8, %v4555_v61  ;;  %v4570_v24 = vsel %vm1523_vm7, %v12351_v34, %v4553_v8 }
 0x48c   : > { %5618 = vmatprep.subr.bf16.mxu1 %v4571_v46 }
 0x48d   : > { %5619 = vmatpush1.bf16.msra.mxu1 %v4570_v24 }
 0x48e   : > { %v4705_v3 = vpop.permute.xlu1 %4704 }
 0x48f   : > { %v4725_v18 = vpop.permute.xlu0 %4724  ;;  %v4733_v56 = vsel %vm1158_vm5, %v4705_v3, %v4707_v53  ;;  %v4732_v39 = vsel %vm1158_vm5, %v12307_v10, %v4705_v3 }
 0x490   : > { %9361 = vmatmul.mubr.msk.bf16.gmra.mrb[28].mxu0 %vm528_vm4, %v12237_v37  ;;  %5620 = vmatprep.subr.bf16.mxu1 %v4733_v56 }
 0x491   : > { %5621 = vmatpush1.bf16.msra.mxu1 %v4732_v39 }
 0x492   : > { %v4723_v22 = vpop.permute.xlu1 %4722 }
 0x493   : > { %v4741_v47 = vsel %vm1158_vm5, %v4723_v22, %v4725_v18  ;;  %v4740_v34 = vsel %vm1158_vm5, %v12367_v7, %v4723_v22  ;;  %v4827_v20 = vpop.permute.xlu0 %4826 }
 0x494   : > { %5622 = vmatprep.subr.bf16.mxu1 %v4741_v47 }
 0x495   : > { %5623 = vmatpush1.bf16.msra.mxu1 %v4740_v34 }
 0x496   : > { %v4825_v30 = vpop.permute.xlu1 %4824 }
 0x497   : > { %v4854_v21 = vsel %vm2839_vm11, %v4825_v30, %v4827_v20  ;;  %v4853_v10 = vsel %vm2839_vm11, %v12393_v40, %v4825_v30  ;;  %v4845_v51 = vpop.permute.xlu0 %4844 }
 0x498   : > { %5624 = vmatprep.subr.bf16.mxu1 %v4854_v21 }
 0x499   : > { %5625 = vmatpush1.bf16.msra.mxu1 %v4853_v10 }
 0x49a   : > { %v4843_v15 = vpop.permute.xlu1 %4842 }
 0x49b   : > { %v4862_v25 = vsel %vm2839_vm11, %v4843_v15, %v4845_v51  ;;  %v4861_v33 = vsel %vm2839_vm11, %v12408_v28, %v4843_v15 }
 0x49c   : > { %5626 = vmatprep.subr.bf16.mxu1 %v4862_v25 }
 0x49d   : > { %5627 = vmatpush1.bf16.msra.mxu1 %v4861_v33 }
 0x4a0   : > { %5629 = vmatmul.mubr.bf16.vlgmr.msra.gmra.mrb[24].mxu1 %v12134_v36 }
 0x4a1   : > { %5638 = vmatprep.mubr.bf16.mxu1 %v12144_v44 }
 0x4a8   : > { %5639 = vmatmul.mubr.bf16.gmra.mrb[28].mxu1 %v12176_v1 }
 0x4a9   : > { %5681 = vmatprep.mubr.bf16.mxu1 %v14876_v38 }
 0x4c4   : > { %v4998_v7 = vpop.permute.xlu0 %4997 }
 0x4c5   : > { %v4996_v40 = vpop.permute.xlu1 %4995 }
 0x4c6   : > { %v5024_v41 = vsel %vm425_vm0, %v4996_v40, %v4998_v7  ;;  %v5023_v62 = vsel %vm425_vm0, %v12435_v63, %v4996_v40 }
 0x4c7   : > { %5649 = vmatprep.subr.bf16.mxu1 %v5024_v41 }
 0x4c8   : > { %5650 = vmatpush1.bf16.msra.mxu1 %v5023_v62 }
 0x4c9   : > { %v5014_v28 = vpop.permute.xlu1 %5013  ;;  %v5016_v26 = vpop.permute.xlu0 %5015 }
 0x4ca   : > { %v5032_v27 = vsel %vm425_vm0, %v5014_v28, %v5016_v26  ;;  %v5031_v36 = vsel %vm425_vm0, %v12441_v60, %v5014_v28 }
 0x4cb   : > { %5651 = vmatprep.subr.bf16.mxu1 %v5032_v27 }
 0x4cc   : > { %5652 = vmatpush1.bf16.msra.mxu1 %v5031_v36 }
 0x4cf   : > { %9362 = vmatmul.mubr.msk.bf16.vlgmr.msra.gmra.mrb[24].mxu1 %vm528_vm4, %v12204_v52 }
 0x4d0   : > { %5691 = vmatprep.mubr.bf16.mxu1 %v14876_v38 }
 0x4d7   : > { %9363 = vmatmul.mubr.msk.bf16.gmra.mrb[28].mxu1 %vm528_vm4, %v12237_v37 }
 0x4da   : > { %v12494_v44 = vpop.permute.xlu1 %5223  ;;  %v12497_v63 = vpop.permute.xlu0 %5228 }
 0x4de   : > { %v12504_v49 = vpop.permute.xlu1 %5233  ;;  %v12513_v29 = vpop.permute.xlu0 %5238 }
 0x50b   : > { %v5365_v1 = vpop.f32.mrb[16].mxu0 }
 0x50c   : > { %v9397_v43 = vadd.f32 %v5365_v1, %v12494_v44  ;;  %v5367_v2 = vpop.f32.mrb[17].mxu0 }
 0x50d   : > { %v9398_v13 = vadd.f32 %v5367_v2, %v12494_v44  ;;  %v5369_v16 = vpop.f32.mrb[18].mxu0 }
 0x50e   : > { %v9399_v55 = vadd.f32 %v5369_v16, %v12497_v63  ;;  %v5371_v60 = vpop.f32.mrb[19].mxu0  ;;  %v5702_v12 = vmax.f32 %v9397_v43, 0.0 }
 0x50f   : > { %v9400_v52 = vadd.f32 %v5371_v60, %v12497_v63  ;;  %v5703_v4 = vmax.f32 %v9398_v13, 0.0 }
 0x510   : > { %v5710_v59 = vmax.f32 %v9399_v55, 0.0  ;;  %v14901_v55 = vld [vmem:[#allocation17_spill] sm:$0xff] }
 0x511   : > { %v5711_v37 = vmax.f32 %v9400_v52, 0.0 }
 0x512   : > { %v12502_v31 = vpack.c.bf16 %v5710_v59, %v5702_v12 }
 0x513   : > { %v12506_v48 = vpack.c.bf16 %v5711_v37, %v5703_v4  ;;  %v5375_v11 = vpop.f32.mrb[20].mxu0 }
 0x514   : > { %v9401_v61 = vadd.f32 %v5375_v11, %v12504_v49  ;;  %v5377_v57 = vpop.f32.mrb[21].mxu0  ;;  %6644 = vrot.lane.b32.xlu0 %v12502_v31, %s9895_s10  ;;  %5942 = vrot.lane.b32.xlu1 %v12502_v31, %s9882_s15  ;;  %v5785_v60 = vmul.bf16 %v12502_v31, %v14901_v55 }
 0x515   : > { %v9402_v8 = vadd.f32 %v5377_v57, %v12504_v49  ;;  %v5379_v53 = vpop.f32.mrb[22].mxu0 }
 0x516   : > { %v9403_v46 = vadd.f32 %v5379_v53, %v12513_v29  ;;  %v5381_v24 = vpop.f32.mrb[23].mxu0  ;;  %v5718_v18 = vmax.f32 %v9401_v61, 0.0  ;;  %v14903_v61 = vld [vmem:[#allocation21_spill] sm:$0xff] }
 0x517   : > { %v9404_v3 = vadd.f32 %v5381_v24, %v12513_v29  ;;  %v5719_v39 = vmax.f32 %v9402_v8, 0.0  ;;  %v6043_v57 = vmul.bf16 %v12502_v31, %v14903_v61  ;;  %v14905_v53 = vld [vmem:[#allocation25_spill] sm:$0xff]  ;;  %v14906_v24 = vld [vmem:[#allocation23_spill] sm:$0xff] }
 0x518   : > { %v5726_v56 = vmax.f32 %v9403_v46, 0.0  ;;  %5944 = vrot.lane.b32.xlu0 %v12506_v48, %s9882_s15  ;;  %v6181_v46 = vmul.bf16 %v12502_v31, %v14905_v53 }
 0x519   : > { %v5727_v22 = vmax.f32 %v9404_v3, 0.0  ;;  %v6044_v3 = vmul.bf16 %v12506_v48, %v14906_v24 }
 0x51a   : > { %v12520_v47 = vpack.c.bf16 %v5726_v56, %v5718_v18  ;;  %v14907_v18 = vld [vmem:[#allocation9_spill] sm:$0xff] }
 0x51b   : > { %v12522_v34 = vpack.c.bf16 %v5727_v22, %v5719_v39  ;;  %v6350_v56 = vmul.bf16 %v12502_v31, %v14907_v18  ;;  %v14908_v39 = vld [vmem:[#allocation24_spill] sm:$0xff] }
 0x51c   : > { %v6182_v22 = vmul.bf16 %v12506_v48, %v14908_v39  ;;  %v6190_v23 = vmul.bf16 %v12520_v47, %v14905_v53 }
 0x528   : > { %v5471_v20 = vpop.f32.mrb[16].mxu1 }
 0x529   : > { %v9405_v30 = vadd.f32 %v5471_v20, %v12494_v44  ;;  %v5473_v21 = vpop.f32.mrb[17].mxu1  ;;  %v14909_v20 = vld [vmem:[#allocation13_spill] sm:$0xff] }
 0x52a   : > { %v9406_v10 = vadd.f32 %v5473_v21, %v12494_v44  ;;  %v5475_v51 = vpop.f32.mrb[18].mxu1  ;;  %v14910_v21 = vld [vmem:[#allocation26_spill] sm:$0xff] }
 0x52b   : > { %v9407_v15 = vadd.f32 %v5475_v51, %v12497_v63  ;;  %v5477_v25 = vpop.f32.mrb[19].mxu1  ;;  %v5704_v7 = vmax.f32 %v9405_v30, 0.0  ;;  %v6488_v30 = vmul.bf16 %v12502_v31, %v14909_v20  ;;  %v14911_v51 = vld [vmem:[#allocation22_spill] sm:$0xff] }
 0x52c   : > { %v9408_v33 = vadd.f32 %v5477_v25, %v12497_v63  ;;  %v5705_v41 = vmax.f32 %v9406_v10, 0.0  ;;  %v14912_v25 = vld [vmem:[#allocation27_spill] sm:$0xff] }
 0x52d   : > { %v5712_v40 = vmax.f32 %v9407_v15, 0.0  ;;  %v6746_v15 = vmul.bf16 %v12502_v31, %v14911_v51 }
 0x52e   : > { %v5713_v62 = vmax.f32 %v9408_v33, 0.0 }
 0x52f   : > { %v12528_v28 = vpack.c.bf16 %v5712_v40, %v5704_v7  ;;  %v14913_v7 = vld [vmem:[#allocation37_spill] sm:$0xff] }
 0x530   : > { %v12530_v26 = vpack.c.bf16 %v5713_v62, %v5705_v41  ;;  %v5481_v27 = vpop.f32.mrb[20].mxu1  ;;  %v14914_v41 = vld [vmem:[#allocation18_spill] sm:$0xff] }
 0x531   : > { %14899 = vst [vmem:[#allocation43_spill] sm:$0xff] %v12528_v28  ;;  %v9409_v36 = vadd.f32 %v5481_v27, %v12504_v49  ;;  %v5483_v1 = vpop.f32.mrb[21].mxu1  ;;  %5946 = vrot.lane.b32.xlu0 %v12528_v28, %s9882_s15  ;;  %6648 = vrot.lane.b32.xlu1 %v12528_v28, %s9895_s10  ;;  %v6352_v10 = vmul.bf16 %v12528_v28, %v14910_v21  ;;  %v14915_v27 = vld [vmem:[#allocation32_spill] sm:$0xff] }
 0x532   : > { %14900 = vst [vmem:[#allocation16_spill] sm:$0xff] %v12530_v26  ;;  %v9410_v43 = vadd.f32 %v5483_v1, %v12504_v49  ;;  %v5485_v2 = vpop.f32.mrb[22].mxu1  ;;  %v6490_v33 = vmul.bf16 %v12528_v28, %v14912_v25  ;;  %v6748_v40 = vmul.bf16 %v12528_v28, %v14913_v7  ;;  %v5786_v62 = vmul.bf16 %v12506_v48, %v14914_v41  ;;  %v14916_v1 = vld [vmem:[#allocation30_spill] sm:$0xff] }
 0x533   : > { %v9411_v13 = vadd.f32 %v5485_v2, %v12513_v29  ;;  %v5487_v16 = vpop.f32.mrb[23].mxu1  ;;  %v5720_v12 = vmax.f32 %v9409_v36, 0.0  ;;  %v5788_v36 = vmul.bf16 %v12530_v26, %v14915_v27  ;;  %v14917_v2 = vld [vmem:[#allocation34_spill] sm:$0xff] }
 0x534   : > { %v9412_v52 = vadd.f32 %v5487_v16, %v12513_v29  ;;  %v5721_v4 = vmax.f32 %v9410_v43, 0.0  ;;  %v5787_v43 = vmul.bf16 %v12528_v28, %v14916_v1  ;;  %v14918_v16 = vld [vmem:[#allocation36_spill] sm:$0xff] }
 0x535   : > { %v5728_v59 = vmax.f32 %v9411_v13, 0.0  ;;  %6646 = vrot.lane.b32.xlu0 %v12506_v48, %s9895_s10  ;;  %5822 = vrot.lane.b32.xlu1 %v5785_v60, %s9887_s22  ;;  %v6046_v13 = vmul.bf16 %v12530_v26, %v14917_v2  ;;  %v6045_v60 = vmul.bf16 %v12528_v28, %v14918_v16 }
 0x536   : > { %v5729_v37 = vmax.f32 %v9412_v52, 0.0  ;;  %v14919_v52 = vld [vmem:[#allocation39_spill] sm:$0xff] }
 0x537   : > { %v12545_v11 = vpack.c.bf16 %v5728_v59, %v5720_v12  ;;  %v6184_v12 = vmul.bf16 %v12530_v26, %v14919_v52 }
 0x538   : > { %v12549_v8 = vpack.c.bf16 %v5729_v37, %v5721_v4  ;;  %v14920_v4 = vld [vmem:[#allocation31_spill] sm:$0xff] }
 0x539   : > { %14902 = vst [vmem:[#allocation69_spill] sm:$0xff] %v12545_v11  ;;  %6080 = vrot.lane.b32.xlu0 %v6043_v57, %s9888_s23  ;;  %5948 = vrot.lane.b32.xlu1 %v12530_v26, %s9882_s15  ;;  %v6351_v37 = vmul.bf16 %v12506_v48, %v14920_v4 }
 0x53a   : > { %14904 = vst [vmem:[#allocation63_spill] sm:$0xff] %v12549_v8 }
 0x53d   : > { %6218 = vrot.lane.b32.xlu0 %v6181_v46, %s9890_s25  ;;  %6082 = vrot.lane.b32.xlu1 %v6044_v3, %s9888_s23 }
 0x541   : > { %6386 = vrot.lane.b32.xlu0 %v6350_v56, %s9884_s21  ;;  %6220 = vrot.lane.b32.xlu1 %v6182_v22, %s9890_s25 }
 0x545   : > { %6524 = vrot.lane.b32.xlu0 %v6488_v30, %s9881_s14  ;;  %6390 = vrot.lane.b32.xlu1 %v6352_v10, %s9884_s21 }
 0x549   : > { %6782 = vrot.lane.b32.xlu0 %v6746_v15, %s9880_s13  ;;  %6528 = vrot.lane.b32.xlu1 %v6490_v33, %s9881_s14  ;;  %v14921_v15 = vld [vmem:[#allocation28_spill] sm:$0xff] }
 0x54a   : > { %v6183_v33 = vmul.bf16 %v12528_v28, %v14921_v15 }
 0x54d   : > { %6650 = vrot.lane.b32.xlu0 %v12530_v26, %s9895_s10  ;;  %6786 = vrot.lane.b32.xlu1 %v6748_v40, %s9880_s13 }
 0x551   : > { %5824 = vrot.lane.b32.xlu0 %v5786_v62, %s9887_s22  ;;  %5828 = vrot.lane.b32.xlu1 %v5788_v36, %s9887_s22 }
 0x555   : > { %5826 = vrot.lane.b32.xlu0 %v5787_v43, %s9887_s22  ;;  %6086 = vrot.lane.b32.xlu1 %v6046_v13, %s9888_s23 }
 0x559   : > { %6084 = vrot.lane.b32.xlu0 %v6045_v60, %s9888_s23  ;;  %6224 = vrot.lane.b32.xlu1 %v6184_v12, %s9890_s25 }
 0x55b   : > { %v5577_v59 = vpop.f32.mrb[24].mxu0 }
 0x55c   : > { %v9413_v57 = vadd.f32 %v5577_v59, %v12494_v44  ;;  %v5579_v46 = vpop.f32.mrb[25].mxu0  ;;  %v14923_v59 = vld [vmem:[#allocation33_spill] sm:$0xff] }
 0x55d   : > { %v9414_v3 = vadd.f32 %v5579_v46, %v12494_v44  ;;  %6388 = vrot.lane.b32.xlu0 %v6351_v37, %s9884_s21  ;;  %6662 = vrot.lane.b32.xlu1 %v12520_v47, %s9895_s10  ;;  %v5581_v56 = vpop.f32.mrb[26].mxu0  ;;  %v6489_v37 = vmul.bf16 %v12506_v48, %v14923_v59 }
 0x55e   : > { %v9415_v22 = vadd.f32 %v5581_v56, %v12497_v63  ;;  %v5583_v30 = vpop.f32.mrb[27].mxu0  ;;  %v5706_v40 = vmax.f32 %v9413_v57, 0.0 }
 0x55f   : > { %v9416_v10 = vadd.f32 %v5583_v30, %v12497_v63  ;;  %v5707_v36 = vmax.f32 %v9414_v3, 0.0 }
 0x560   : > { %v5714_v62 = vmax.f32 %v9415_v22, 0.0 }
 0x561   : > { %v5715_v43 = vmax.f32 %v9416_v10, 0.0  ;;  %6222 = vrot.lane.b32.xlu0 %v6183_v33, %s9890_s25  ;;  %5962 = vrot.lane.b32.xlu1 %v12522_v34, %s9882_s15  ;;  %v14924_v33 = vld [vmem:[#allocation29_spill] sm:$0xff] }
 0x562   : > { %v12615_v13 = vpack.c.bf16 %v5714_v62, %v5706_v40  ;;  %v6747_v40 = vmul.bf16 %v12506_v48, %v14924_v33  ;;  %v6052_v62 = vmul.bf16 %v12520_v47, %v14903_v61 }
 0x563   : > { %v12617_v60 = vpack.c.bf16 %v5715_v43, %v5707_v36  ;;  %v5587_v12 = vpop.f32.mrb[28].mxu0 }
 0x564   : > { %14922 = vst [vmem:[#allocation58_spill] sm:$0xff] %v12615_v13  ;;  %v9417_v46 = vadd.f32 %v5587_v12, %v12504_v49  ;;  %v5589_v56 = vpop.f32.mrb[29].mxu0 }
 0x565   : > { %v9418_v57 = vadd.f32 %v5589_v56, %v12504_v49  ;;  %6526 = vrot.lane.b32.xlu0 %v6489_v37, %s9881_s14  ;;  %6664 = vrot.lane.b32.xlu1 %v12522_v34, %s9895_s10  ;;  %v5591_v3 = vpop.f32.mrb[30].mxu0 }
 0x566   : > { %v9419_v22 = vadd.f32 %v5591_v3, %v12513_v29  ;;  %v5593_v30 = vpop.f32.mrb[31].mxu0  ;;  %v5722_v36 = vmax.f32 %v9417_v46, 0.0  ;;  %v14927_v46 = vld [vmem:[#allocation35_spill] sm:$0xff] }
 0x567   : > { %v9420_v10 = vadd.f32 %v5593_v30, %v12513_v29  ;;  %v5723_v12 = vmax.f32 %v9418_v57, 0.0  ;;  %v6353_v30 = vmul.bf16 %v12530_v26, %v14926_v14  ;;  %v6491_v57 = vmul.bf16 %v12530_v26, %v14927_v46 }
 0x568   : > { %v5730_v43 = vmax.f32 %v9419_v22, 0.0  ;;  %v14928_v22 = vld [vmem:[#allocation38_spill] sm:$0xff] }
 0x569   : > { %v5731_v56 = vmax.f32 %v9420_v10, 0.0  ;;  %6784 = vrot.lane.b32.xlu0 %v6747_v40, %s9880_s13  ;;  %6098 = vrot.lane.b32.xlu1 %v6052_v62, %s9888_s23  ;;  %v6749_v10 = vmul.bf16 %v12530_v26, %v14928_v22  ;;  %v6359_v40 = vmul.bf16 %v12520_v47, %v14907_v18  ;;  %v6755_v62 = vmul.bf16 %v12520_v47, %v14911_v51  ;;  %v14946_v26 = vld [vmem:[#allocation50_spill] sm:$0xff] }
 0x56a   : > { %v12634_v37 = vpack.c.bf16 %v5730_v43, %v5722_v36  ;;  %v5795_v36 = vmul.bf16 %v12522_v34, %v14914_v41  ;;  %v5796_v43 = vmul.bf16 %v12545_v11, %v14916_v1  ;;  %v6756_v1 = vmul.bf16 %v12522_v34, %v14924_v33  ;;  %v14933_v41 = vld [vmem:[#allocation48_spill] sm:$0xff] }
 0x56b   : > { %v12636_v3 = vpack.c.bf16 %v5731_v56, %v5723_v12  ;;  %v5794_v12 = vmul.bf16 %v12520_v47, %v14901_v55  ;;  %v6054_v56 = vmul.bf16 %v12545_v11, %v14918_v16 }
 0x56c   : > { %14925 = vst [vmem:[#allocation15_spill] sm:$0xff] %v12634_v37 }
 0x56d   : > { %6392 = vrot.lane.b32.xlu0 %v6353_v30, %s9884_s21  ;;  %6236 = vrot.lane.b32.xlu1 %v6190_v23, %s9890_s25  ;;  %v6497_v23 = vmul.bf16 %v12520_v47, %v14909_v20  ;;  %v12678_v30 = vpop.permute.xlu0 %5838 }
 0x571   : > { %6530 = vrot.lane.b32.xlu0 %v6491_v57, %s9881_s14  ;;  %5966 = vrot.lane.b32.xlu1 %v12549_v8, %s9882_s15  ;;  %v12680_v57 = vpop.permute.xlu1 %5820 }
 0x575   : > { %6788 = vrot.lane.b32.xlu0 %v6749_v10, %s9880_s13  ;;  %6404 = vrot.lane.b32.xlu1 %v6359_v40, %s9884_s21  ;;  %v6360_v10 = vmul.bf16 %v12522_v34, %v14920_v4  ;;  %v6053_v40 = vmul.bf16 %v12522_v34, %v14906_v24 }
 0x579   : > { %5960 = vrot.lane.b32.xlu0 %v12520_v47, %s9882_s15  ;;  %6542 = vrot.lane.b32.xlu1 %v6497_v23, %s9881_s14  ;;  %v12691_v23 = vpop.permute.xlu0 %6078 }
 0x57d   : > { %5964 = vrot.lane.b32.xlu0 %v12545_v11, %s9882_s15  ;;  %6800 = vrot.lane.b32.xlu1 %v6755_v62, %s9880_s13  ;;  %v12693_v62 = vpop.permute.xlu1 %9833 }
 0x581   : > { %6666 = vrot.lane.b32.xlu0 %v12545_v11, %s9895_s10  ;;  %5842 = vrot.lane.b32.xlu1 %v5795_v36, %s9887_s22  ;;  %v6192_v36 = vmul.bf16 %v12545_v11, %v14921_v15  ;;  %v6500_v15 = vmul.bf16 %v12549_v8, %v14927_v46 }
 0x585   : > { %5844 = vrot.lane.b32.xlu1 %v5796_v43, %s9887_s22  ;;  %5840 = vrot.lane.b32.xlu0 %v5794_v12, %s9887_s22  ;;  %v6191_v43 = vmul.bf16 %v12522_v34, %v14908_v39  ;;  %v6498_v12 = vmul.bf16 %v12522_v34, %v14923_v59 }
 0x589   : > { %6102 = vrot.lane.b32.xlu1 %v6054_v56, %s9888_s23  ;;  %6668 = vrot.lane.b32.xlu0 %v12549_v8, %s9895_s10  ;;  %v6361_v56 = vmul.bf16 %v12545_v11, %v14910_v21 }
 0x58d   : > { %6406 = vrot.lane.b32.xlu1 %v6360_v10, %s9884_s21  ;;  %6100 = vrot.lane.b32.xlu0 %v6053_v40, %s9888_s23  ;;  %v12705_v10 = vpop.permute.xlu0 %6216  ;;  %v12707_v40 = vpop.permute.xlu1 %6096 }
 0x591   : > { %6240 = vrot.lane.b32.xlu1 %v6192_v36, %s9890_s25  ;;  %6238 = vrot.lane.b32.xlu0 %v6191_v43, %s9890_s25  ;;  %v6499_v36 = vmul.bf16 %v12545_v11, %v14912_v25  ;;  %v12715_v43 = vpop.permute.xlu0 %6644  ;;  %v12719_v21 = vpop.permute.xlu1 %6234 }
 0x592   : > { %14929 = vst [vmem:[#allocation20_spill] sm:$0xff] %v12715_v43  ;;  %v14947_v43 = vld [vmem:[#allocation60_spill] sm:$0xff] }
 0x595   : > { %6544 = vrot.lane.b32.xlu1 %v6498_v12, %s9881_s14  ;;  %6408 = vrot.lane.b32.xlu0 %v6361_v56, %s9884_s21  ;;  %v6757_v12 = vmul.bf16 %v12545_v11, %v14913_v7  ;;  %v12727_v56 = vpop.permute.xlu1 %5942  ;;  %v12729_v25 = vpop.permute.xlu0 %5944  ;;  %v6186_v11 = vmul.bf16 %v12617_v60, %v14942_v0 }
 0x599   : > { %6802 = vrot.lane.b32.xlu1 %v6756_v1, %s9880_s13  ;;  %6546 = vrot.lane.b32.xlu0 %v6499_v36, %s9881_s14  ;;  %v5797_v1 = vmul.bf16 %v12549_v8, %v14915_v27 }
 0x59d   : > { %6548 = vrot.lane.b32.xlu1 %v6500_v15, %s9881_s14  ;;  %6804 = vrot.lane.b32.xlu0 %v6757_v12, %s9880_s13  ;;  %v6055_v15 = vmul.bf16 %v12549_v8, %v14917_v2  ;;  %v14932_v2 = vld [vmem:[#allocation49_spill] sm:$0xff] }
 0x5a1   : > { %6652 = vrot.lane.b32.xlu1 %v12615_v13, %s9895_s10  ;;  %5846 = vrot.lane.b32.xlu0 %v5797_v1, %s9887_s22 }
 0x5a2   : > { %v5683_v36 = vpop.f32.mrb[24].mxu1 }
 0x5a3   : > { %v12736_v46 = vpop.permute.xlu1 %6648  ;;  %v12738_v16 = vpop.permute.xlu0 %5946  ;;  %v9421_v12 = vadd.f32 %v5683_v36, %v12494_v44  ;;  %v6354_v36 = vmul.bf16 %v12615_v13, %v14932_v2 }
 0x5a4   : > { %14930 = vst [vmem:[#allocation57_spill] sm:$0xff] %v12736_v46  ;;  %v5685_v7 = vpop.f32.mrb[25].mxu1 }
 0x5a5   : > { %v9422_v59 = vadd.f32 %v5685_v7, %v12494_v44  ;;  %v5687_v4 = vpop.f32.mrb[26].mxu1  ;;  %5952 = vrot.lane.b32.xlu1 %v12617_v60, %s9882_s15  ;;  %6104 = vrot.lane.b32.xlu0 %v6055_v15, %s9888_s23  ;;  %v6193_v44 = vmul.bf16 %v12549_v8, %v14919_v52  ;;  %v5708_v7 = vmax.f32 %v9421_v12, 0.0  ;;  %v6492_v52 = vmul.bf16 %v12615_v13, %v14933_v41 }
 0x5a6   : > { %v9423_v1 = vadd.f32 %v5687_v4, %v12497_v63  ;;  %v5689_v27 = vpop.f32.mrb[27].mxu1 }
 0x5a7   : > { %v9424_v20 = vadd.f32 %v5689_v27, %v12497_v63  ;;  %v12749_v18 = vpop.permute.xlu1 %5822  ;;  %v12751_v53 = vpop.permute.xlu0 %6646  ;;  %v5709_v61 = vmax.f32 %v9422_v59, 0.0  ;;  %v6362_v59 = vmul.bf16 %v12549_v8, %v14926_v14  ;;  %v14934_v14 = vld [vmem:[#allocation53_spill] sm:$0xff] }
 0x5a8   : > { %14931 = vst [vmem:[#allocation19_spill] sm:$0xff] %v12751_v53  ;;  %v5716_v39 = vmax.f32 %v9423_v1, 0.0 }
 0x5a9   : > { %v5717_v24 = vmax.f32 %v9424_v20, 0.0  ;;  %6394 = vrot.lane.b32.xlu1 %v6354_v36, %s9884_s21  ;;  %6242 = vrot.lane.b32.xlu0 %v6193_v44, %s9890_s25 }
 0x5aa   : > { %v12759_v4 = vpack.c.bf16 %v5716_v39, %v5708_v7  ;;  %v5693_v63 = vpop.f32.mrb[28].mxu1 }
 0x5ab   : > { %v12761_v27 = vpack.c.bf16 %v5717_v24, %v5709_v61  ;;  %v12763_v15 = vpop.permute.xlu1 %5948  ;;  %v12765_v55 = vpop.permute.xlu0 %6080  ;;  %v9425_v20 = vadd.f32 %v5693_v63, %v12504_v49  ;;  %v6750_v63 = vmul.bf16 %v12615_v13, %v14934_v14 }
 0x5ac   : > { %v5695_v12 = vpop.f32.mrb[29].mxu1  ;;  %v5791_v38 = vmul.bf16 %v12759_v4, %v14947_v43 }
 0x5ad   : > { %v9426_v1 = vadd.f32 %v5695_v12, %v12504_v49  ;;  %v5697_v39 = vpop.f32.mrb[30].mxu1  ;;  %6532 = vrot.lane.b32.xlu1 %v6492_v52, %s9881_s14  ;;  %6410 = vrot.lane.b32.xlu0 %v6362_v59, %s9884_s21  ;;  %v6758_v49 = vmul.bf16 %v12549_v8, %v14928_v22  ;;  %v5724_v12 = vmax.f32 %v9425_v20, 0.0  ;;  %v12798_v22 = vld [vmem:[%s14597_s4 + $0x34] ss:$12 sps:$4 sm:$0xff]   ;;  %v14936_v20 = vld [vmem:[#allocation54_spill] sm:$0xff] }
 0x5ae   : > { %v9427_v61 = vadd.f32 %v5697_v39, %v12513_v29  ;;  %v5699_v24 = vpop.f32.mrb[31].mxu1  ;;  %14935 = vst [vmem:[#allocation66_spill] sm:$0xff] %v12798_v22  ;;  %7112 = vmatprep.mubr.bf16.mxu0 %v12798_v22  ;;  %7218 = vmatprep.mubr.bf16.mxu1 %v12798_v22 }
 0x5af   : > { %v9428_v36 = vadd.f32 %v5699_v24, %v12513_v29  ;;  %v12777_v44 = vpop.permute.xlu1 %6082  ;;  %v12779_v7 = vpop.permute.xlu0 %6218  ;;  %v5725_v52 = vmax.f32 %v9426_v1, 0.0  ;;  %v5790_v1 = vmul.bf16 %v12617_v60, %v14936_v20 }
 0x5b0   : > { %v5732_v33 = vmax.f32 %v9427_v61, 0.0 }
 0x5b1   : > { %v5733_v51 = vmax.f32 %v9428_v36, 0.0  ;;  %6790 = vrot.lane.b32.xlu1 %v6750_v63, %s9880_s13  ;;  %6806 = vrot.lane.b32.xlu0 %v6758_v49, %s9880_s13  ;;  %v14938_v63 = vld [vmem:[#allocation55_spill] sm:$0xff] }
 0x5b2   : > { %v12787_v59 = vpack.c.bf16 %v5732_v33, %v5724_v12  ;;  %v6048_v49 = vmul.bf16 %v12617_v60, %v14938_v63  ;;  %v14939_v12 = vld [vmem:[#allocation46_spill] sm:$0xff] }
 0x5b3   : > { %v12789_v29 = vpack.c.bf16 %v5733_v51, %v5725_v52  ;;  %v12791_v39 = vpop.permute.xlu1 %6220  ;;  %v12793_v24 = vpop.permute.xlu0 %6386  ;;  %v5789_v52 = vmul.bf16 %v12615_v13, %v14939_v12 }
 0x5b5   : > { %5956 = vrot.lane.b32.xlu1 %v12761_v27, %s9882_s15  ;;  %5950 = vrot.lane.b32.xlu0 %v12615_v13, %s9882_s15 }
 0x5b7   : > { %v12805_v33 = vpop.permute.xlu1 %6390  ;;  %v12807_v51 = vpop.permute.xlu0 %6524 }
 0x5b9   : > { %5832 = vrot.lane.b32.xlu1 %v5790_v1, %s9887_s22  ;;  %5954 = vrot.lane.b32.xlu0 %v12759_v4, %s9882_s15 }
 0x5bb   : > { %v12815_v61 = vpop.permute.xlu1 %6528  ;;  %v12817_v36 = vpop.permute.xlu0 %6782 }
 0x5bc   : > { %14937 = vst [vmem:[#allocation61_spill] sm:$0xff] %v12817_v36  ;;  %v6047_v36 = vmul.bf16 %v12615_v13, %v14943_v35 }
 0x5bd   : > { %6090 = vrot.lane.b32.xlu1 %v6048_v49, %s9888_s23  ;;  %5830 = vrot.lane.b32.xlu0 %v5789_v52, %s9887_s22  ;;  %v14945_v49 = vld [vmem:[#allocation41_spill] sm:$0xff] }
 0x5be   : > { %v5792_v52 = vmul.bf16 %v12761_v27, %v14945_v49 }
 0x5bf   : > { %v12825_v22 = vpop.permute.xlu1 %6786  ;;  %v12827_v1 = vpop.permute.xlu0 %6650 }
 0x5c0   : > { %14940 = vst [vmem:[#allocation59_spill] sm:$0xff] %v12825_v22  ;;  %14941 = vst [vmem:[#allocation47_spill] sm:$0xff] %v12827_v1  ;;  %v6185_v22 = vmul.bf16 %v12615_v13, %v14946_v26 }
 0x5c1   : > { %6228 = vrot.lane.b32.xlu1 %v6186_v11, %s9890_s25  ;;  %6088 = vrot.lane.b32.xlu0 %v6047_v36, %s9888_s23  ;;  %v5856_v11 = vsel %vm811_vm8, %v12680_v57, %v12749_v18 }
 0x5c3   : > { %v12835_v8 = vpop.permute.xlu1 %5828  ;;  %v5825_v28 = vpop.permute.xlu0 %5824 }
 0x5c4   : > { %14944 = vst [vmem:[#allocation70_spill] sm:$0xff] %v12835_v8  ;;  %v5857_v1 = vsel %vm811_vm8, %v12749_v18, %v5825_v28 }
 0x5c5   : > { %5836 = vrot.lane.b32.xlu1 %v5792_v52, %s9887_s22  ;;  %6226 = vrot.lane.b32.xlu0 %v6185_v22, %s9890_s25 }
 0x5c6   : > { %7080 = vmatprep.subr.bf16.mxu0 %v5857_v1  ;;  %v6501_v1 = vmul.bf16 %v12634_v37, %v14933_v41 }
 0x5c7   : > { %7081 = vmatpush1.bf16.msra.mxu0 %v5856_v11  ;;  %v12848_v36 = vpop.permute.xlu1 %6086  ;;  %v5827_v32 = vpop.permute.xlu0 %5826 }
 0x5c8   : > { %v5859_v13 = vsel %vm811_vm8, %v5827_v32, %v12835_v8  ;;  %v5858_v53 = vsel %vm811_vm8, %v5825_v28, %v5827_v32  ;;  %v6363_v28 = vmul.bf16 %v12634_v37, %v14932_v2  ;;  %v6049_v2 = vmul.bf16 %v12759_v4, %v11872_v54 }
 0x5c9   : > { %6670 = vrot.lane.b32.xlu1 %v12634_v37, %s9895_s10  ;;  %5834 = vrot.lane.b32.xlu0 %v5791_v38, %s9887_s22 }
 0x5ca   : > { %7186 = vmatprep.subr.bf16.mxu1 %v5859_v13  ;;  %v6050_v13 = vmul.bf16 %v12761_v27, %v11518_v45 }
 0x5cb   : > { %7187 = vmatpush1.bf16.msra.mxu1 %v5858_v53  ;;  %v12858_v18 = vpop.permute.xlu1 %6224  ;;  %v12860_v22 = vpop.permute.xlu0 %6084 }
 0x5cd   : > { %5970 = vrot.lane.b32.xlu1 %v12636_v3, %s9882_s15  ;;  %5968 = vrot.lane.b32.xlu0 %v12634_v37, %s9882_s15 }
 0x5cf   : > { %v12866_v57 = vpop.permute.xlu1 %6662  ;;  %v12868_v32 = vpop.permute.xlu0 %6388 }
 0x5d0   : > { %14948 = vst [vmem:[#allocation51_spill] sm:$0xff] %v12866_v57 }
 0x5d1   : > { %6412 = vrot.lane.b32.xlu1 %v6363_v28, %s9884_s21  ;;  %5972 = vrot.lane.b32.xlu0 %v12787_v59, %s9882_s15  ;;  %v6759_v28 = vmul.bf16 %v12634_v37, %v14934_v14 }
 0x5d3   : > { %v12875_v38 = vpop.permute.xlu1 %5962  ;;  %v12877_v53 = vpop.permute.xlu0 %6222 }
 0x5d4   : > { %14949 = vst [vmem:[#allocation64_spill] sm:$0xff] %v12877_v53 }
 0x5d5   : > { %6094 = vrot.lane.b32.xlu1 %v6050_v13, %s9888_s23  ;;  %6550 = vrot.lane.b32.xlu0 %v6501_v1, %s9881_s14  ;;  %v5798_v13 = vmul.bf16 %v12634_v37, %v14939_v12 }
 0x5d7   : > { %v12885_v52 = vpop.permute.xlu1 %6664  ;;  %v12887_v11 = vpop.permute.xlu0 %6526 }
 0x5d8   : > { %14950 = vst [vmem:[#allocation12_spill] sm:$0xff] %v12885_v52  ;;  %v14955_v52 = vld [vmem:[#allocation65_spill] sm:$0xff] }
 0x5d9   : > { %6808 = vrot.lane.b32.xlu1 %v6759_v28, %s9880_s13  ;;  %6092 = vrot.lane.b32.xlu0 %v6049_v2, %s9888_s23  ;;  %v5799_v28 = vmul.bf16 %v12636_v3, %v14936_v20  ;;  %v14953_v2 = vld [vmem:[#allocation62_spill] sm:$0xff] }
 0x5da   : > { %v6355_v57 = vmul.bf16 %v12617_v60, %v14953_v2 }
 0x5db   : > { %v12895_v8 = vpop.permute.xlu1 %6098  ;;  %v12897_v41 = vpop.permute.xlu0 %6784 }
 0x5dc   : > { %14951 = vst [vmem:[#allocation14_spill] sm:$0xff] %v12897_v41 }
 0x5dd   : > { %5974 = vrot.lane.b32.xlu1 %v12789_v29, %s9882_s15  ;;  %5848 = vrot.lane.b32.xlu0 %v5798_v13, %s9887_s22  ;;  %v6356_v13 = vmul.bf16 %v12759_v4, %v14955_v52 }
 0x5df   : > { %v12904_v1 = vpop.permute.xlu1 %6236  ;;  %v12906_v14 = vpop.permute.xlu0 %6392 }
 0x5e0   : > { %14952 = vst [vmem:[#allocation75_spill] sm:$0xff] %v12906_v14  ;;  %v6056_v14 = vmul.bf16 %v12634_v37, %v14943_v35 }
 0x5e1   : > { %5850 = vrot.lane.b32.xlu1 %v5799_v28, %s9887_s22  ;;  %6396 = vrot.lane.b32.xlu0 %v6355_v57, %s9884_s21  ;;  %v6188_v57 = vmul.bf16 %v12761_v27, %v11537_v50  ;;  %v6194_v28 = vmul.bf16 %v12634_v37, %v14946_v26 }
 0x5e3   : > { %v12914_v12 = vpop.permute.xlu1 %5966  ;;  %v12916_v41 = vpop.permute.xlu0 %6530 }
 0x5e4   : > { %14954 = vst [vmem:[#allocation62_spill] sm:$0xff] %v12916_v41 }
 0x5e5   : > { %6398 = vrot.lane.b32.xlu1 %v6356_v13, %s9884_s21  ;;  %6106 = vrot.lane.b32.xlu0 %v6056_v14, %s9888_s23  ;;  %v6057_v14 = vmul.bf16 %v12636_v3, %v14938_v63  ;;  %v6187_v13 = vmul.bf16 %v12759_v4, %v11929_v5 }
 0x5e7   : > { %v12924_v20 = vpop.permute.xlu1 %6404  ;;  %v12926_v46 = vpop.permute.xlu0 %6788 }
 0x5e8   : > { %14956 = vst [vmem:[#allocation76_spill] sm:$0xff] %v12926_v46 }
 0x5e9   : > { %6232 = vrot.lane.b32.xlu1 %v6188_v57, %s9890_s25  ;;  %6244 = vrot.lane.b32.xlu0 %v6194_v28, %s9890_s25  ;;  %v6195_v57 = vmul.bf16 %v12636_v3, %v14942_v0  ;;  %v14959_v28 = vld [vmem:[#allocation67_spill] sm:$0xff] }
 0x5ea   : > { %v6493_v37 = vmul.bf16 %v12617_v60, %v14959_v28 }
 0x5eb   : > { %v12934_v41 = vpop.permute.xlu1 %6542  ;;  %v5961_v35 = vpop.permute.xlu0 %5960 }
 0x5ec   : > { %14957 = vst [vmem:[#allocation77_spill] sm:$0xff] %v12934_v41 }
 0x5ed   : > { %6108 = vrot.lane.b32.xlu1 %v6057_v14, %s9888_s23  ;;  %6230 = vrot.lane.b32.xlu0 %v6187_v13, %s9890_s25  ;;  %v6365_v14 = vmul.bf16 %v12787_v59, %v14955_v52  ;;  %v5800_v13 = vmul.bf16 %v12787_v59, %v14947_v43  ;;  %v14961_v43 = vld [vmem:[#allocation68_spill] sm:$0xff] }
 0x5ee   : > { %v6494_v53 = vmul.bf16 %v12759_v4, %v14961_v43 }
 0x5ef   : > { %v12942_v46 = vpop.permute.xlu1 %6800  ;;  %v12944_v26 = vpop.permute.xlu0 %5964 }
 0x5f0   : > { %14958 = vst [vmem:[#allocation78_spill] sm:$0xff] %v12942_v46 }
 0x5f1   : > { %6246 = vrot.lane.b32.xlu1 %v6195_v57, %s9890_s25  ;;  %6534 = vrot.lane.b32.xlu0 %v6493_v37, %s9881_s14  ;;  %v5801_v37 = vmul.bf16 %v12789_v29, %v14945_v49  ;;  %v6058_v57 = vmul.bf16 %v12787_v59, %v11872_v54  ;;  %v5977_v54 = vsel %vm528_vm4, %v12727_v56, %v12729_v25 }
 0x5f3   : > { %v12952_v63 = vpop.permute.xlu1 %5842  ;;  %v12954_v41 = vpop.permute.xlu0 %6666 }
 0x5f4   : > { %14960 = vst [vmem:[#allocation79_spill] sm:$0xff] %v12954_v41 }
 0x5f5   : > { %6416 = vrot.lane.b32.xlu1 %v6365_v14, %s9884_s21  ;;  %5852 = vrot.lane.b32.xlu0 %v5800_v13, %s9887_s22  ;;  %v9835_v14 = vunpack.i.l.bf16 %v12693_v62 }
 0x5f7   : > { %v12962_v0 = vpop.permute.xlu1 %5844  ;;  %v5841_v46 = vpop.permute.xlu0 %5840 }
 0x5f8   : > { %v5865_v41 = vsel %vm811_vm8, %v5841_v46, %v12952_v63  ;;  %v5864_v52 = vsel %vm811_vm8, %v12678_v30, %v5841_v46  ;;  %v6364_v46 = vmul.bf16 %v12636_v3, %v14953_v2 }
 0x5f9   : > { %5854 = vrot.lane.b32.xlu1 %v5801_v37, %s9887_s22  ;;  %6110 = vrot.lane.b32.xlu0 %v6058_v57, %s9888_s23  ;;  %v6503_v57 = vmul.bf16 %v12787_v59, %v14961_v43  ;;  %v6502_v43 = vmul.bf16 %v12636_v3, %v14959_v28 }
 0x5fa   : > { %7082 = vmatprep.subr.bf16.mxu0 %v5865_v41  ;;  %v5976_v41 = vsel %vm528_vm4, %v9835_v14, %v12727_v56 }
 0x5fb   : > { %7083 = vmatpush1.bf16.msra.mxu0 %v5864_v52  ;;  %v12975_v13 = vpop.permute.xlu1 %6102  ;;  %v12980_v49 = vpop.permute.xlu0 %6668  ;;  %v5985_v52 = vsel %vm528_vm4, %v5961_v35, %v12875_v38 }
 0x5fc   : > { %7084 = vmatprep.subr.bf16.mxu0 %v5977_v54  ;;  %v6196_v54 = vmul.bf16 %v12787_v59, %v11929_v5 }
 0x5fd   : > { %6536 = vrot.lane.b32.xlu1 %v6494_v53, %s9881_s14  ;;  %6414 = vrot.lane.b32.xlu0 %v6364_v46, %s9884_s21  ;;  %v9836_v53 = vunpack.i.h.bf16 %v12693_v62  ;;  %v6115_v46 = vsel %vm1228_vm9, %v12765_v55, %v12777_v44 }
 0x5ff   : > { %7085 = vmatpush1.bf16.msra.mxu0 %v5976_v41  ;;  %v12990_v30 = vpop.permute.xlu1 %6406  ;;  %v12994_v37 = vpop.permute.xlu0 %6100  ;;  %v5984_v56 = vsel %vm528_vm4, %v9836_v53, %v5961_v35  ;;  %v6114_v35 = vsel %vm1228_vm9, %v12691_v23, %v12765_v55  ;;  %v6122_v55 = vsel %vm1228_vm9, %v12707_v40, %v12895_v8 }
 0x600   : > { %7086 = vmatprep.subr.bf16.mxu0 %v5985_v52  ;;  %v6123_v52 = vsel %vm1228_vm9, %v12895_v8, %v12994_v37  ;;  %v6252_v8 = vsel %vm1593_vm10, %v12705_v10, %v12779_v7  ;;  %v6260_v10 = vsel %vm1593_vm10, %v12719_v21, %v12904_v1  ;;  %v5866_v21 = vsel %vm811_vm8, %v12952_v63, %v12962_v0 }
 0x601   : > { %6554 = vrot.lane.b32.xlu1 %v6503_v57, %s9881_s14  ;;  %6248 = vrot.lane.b32.xlu0 %v6196_v54, %s9890_s25  ;;  %v6059_v54 = vmul.bf16 %v12789_v29, %v11518_v45  ;;  %v6423_v63 = vsel %vm1523_vm7, %v12868_v32, %v12805_v33 }
 0x603   : > { %7087 = vmatpush1.bf16.msra.mxu0 %v5984_v56  ;;  %v13004_v14 = vpop.permute.xlu1 %6240  ;;  %v13009_v41 = vpop.permute.xlu0 %6238 }
 0x604   : > { %7088 = vmatprep.subr.bf16.mxu0 %v6115_v46  ;;  %v6261_v56 = vsel %vm1593_vm10, %v12904_v1, %v13009_v41 }
 0x605   : > { %6656 = vrot.lane.b32.xlu1 %v12759_v4, %s9895_s10  ;;  %6552 = vrot.lane.b32.xlu0 %v6502_v43, %s9881_s14  ;;  %v6253_v43 = vsel %vm1593_vm10, %v12779_v7, %v12791_v39 }
 0x607   : > { %7089 = vmatpush1.bf16.msra.mxu0 %v6114_v35  ;;  %v13019_v62 = vpop.permute.xlu1 %6544  ;;  %v13024_v57 = vpop.permute.xlu0 %6408  ;;  %v6197_v35 = vmul.bf16 %v12789_v29, %v11537_v50 }
 0x608   : > { %7090 = vmatprep.subr.bf16.mxu0 %v6123_v52  ;;  %v6357_v52 = vmul.bf16 %v12761_v27, %v12010_v58 }
 0x609   : > { %6112 = vrot.lane.b32.xlu1 %v6059_v54, %s9888_s23  ;;  %6654 = vrot.lane.b32.xlu0 %v12617_v60, %s9895_s10 }
 0x60b   : > { %7091 = vmatpush1.bf16.msra.mxu0 %v6122_v55  ;;  %v13034_v23 = vpop.permute.xlu1 %6802  ;;  %v13039_v53 = vpop.permute.xlu0 %6546  ;;  %v6495_v55 = vmul.bf16 %v12761_v27, %v12060_v19 }
 0x60c   : > { %7092 = vmatprep.subr.bf16.mxu0 %v6253_v43 }
 0x60d   : > { %6674 = vrot.lane.b32.xlu1 %v12787_v59, %s9895_s10  ;;  %6672 = vrot.lane.b32.xlu0 %v12636_v3, %s9895_s10 }
 0x60f   : > { %7093 = vmatpush1.bf16.msra.mxu0 %v6252_v8  ;;  %v13048_v40 = vpop.permute.xlu1 %6548  ;;  %v13053_v46 = vpop.permute.xlu0 %6804 }
 0x610   : > { %7094 = vmatprep.subr.bf16.mxu0 %v6261_v56  ;;  %v6751_v56 = vmul.bf16 %v12617_v60, %v11966_v17 }
 0x611   : > { %6250 = vrot.lane.b32.xlu1 %v6197_v35, %s9890_s25  ;;  %6400 = vrot.lane.b32.xlu0 %v6357_v52, %s9884_s21  ;;  %v6366_v52 = vmul.bf16 %v12789_v29, %v12010_v58  ;;  %v14985_v58 = vld [vmem:[#allocation62_spill] sm:$0xff] }
 0x613   : > { %7095 = vmatpush1.bf16.msra.mxu0 %v6260_v10  ;;  %v13064_v7 = vpop.permute.xlu1 %6652  ;;  %v13066_v54 = vpop.permute.xlu0 %5846 }
 0x614   : > { %7096 = vmatprep.subr.bf16.mxu0 %v12506_v48  ;;  %v5867_v43 = vsel %vm811_vm8, %v12962_v0, %v13066_v54  ;;  %v5979_v48 = vsel %vm528_vm4, %v12738_v16, %v12763_v15  ;;  %v5978_v0 = vsel %vm528_vm4, %v12729_v25, %v12738_v16  ;;  %v5986_v25 = vsel %vm528_vm4, %v12875_v38, %v12944_v26 }
 0x615   : > { %6402 = vrot.lane.b32.xlu1 %v12013_v42, %s9884_s21  ;;  %6538 = vrot.lane.b32.xlu0 %v6495_v55, %s9881_s14  ;;  %v6760_v16 = vmul.bf16 %v12636_v3, %v11966_v17  ;;  %v6431_v55 = vsel %vm1523_vm7, %v12990_v30, %v13024_v57  ;;  %v6116_v38 = vsel %vm1228_vm9, %v12777_v44, %v12860_v22 }
 0x616   : > { %7188 = vmatprep.subr.bf16.mxu1 %v5867_v43  ;;  %v6117_v43 = vsel %vm1228_vm9, %v12860_v22, %v12848_v36  ;;  %v6560_v44 = vsel %vm1158_vm5, %v12807_v51, %v12887_v11  ;;  %v6124_v22 = vsel %vm1228_vm9, %v12994_v37, %v12975_v13  ;;  %v6761_v51 = vmul.bf16 %v12787_v59, %v11951_v9 }
 0x617   : > { %7097 = vmatpush1.bf16.msra.mxu0 %v12502_v31  ;;  %7189 = vmatpush1.bf16.msra.mxu1 %v5866_v21  ;;  %v13081_v1 = vpop.permute.xlu1 %5952  ;;  %v13086_v8 = vpop.permute.xlu0 %6104 }
 0x618   : > { %7098 = vmatprep.subr.bf16.mxu0 %v12522_v34  ;;  %7190 = vmatprep.subr.bf16.mxu1 %v5979_v48  ;;  %v5987_v34 = vsel %vm528_vm4, %v12944_v26, %v12914_v12  ;;  %v6752_v26 = vmul.bf16 %v12759_v4, %v11951_v9  ;;  %v6561_v48 = vsel %vm1158_vm5, %v12887_v11, %v12815_v61  ;;  %v14963_v11 = vld [vmem:[#allocation77_spill] sm:$0xff] }
 0x619   : > { %6420 = vrot.lane.b32.xlu1 %v12013_v42, %s9884_s21  ;;  %6792 = vrot.lane.b32.xlu0 %v6751_v56, %s9880_s13  ;;  %v6125_v56 = vsel %vm1228_vm9, %v12975_v13, %v13086_v8  ;;  %v6568_v13 = vsel %vm1158_vm5, %v14963_v11, %v13019_v62  ;;  %v13220_v11 = vld [vmem:[%s14597_s4 + $0x30] ss:$12 sps:$4 sm:$0xff]  }
 0x61b   : > { %7099 = vmatpush1.bf16.msra.mxu0 %v12520_v47  ;;  %7191 = vmatpush1.bf16.msra.mxu1 %v5978_v0  ;;  %v13098_v31 = vpop.permute.xlu1 %6394  ;;  %v13106_v35 = vpop.permute.xlu0 %6242  ;;  %v6422_v47 = vsel %vm1523_vm7, %v12793_v24, %v12868_v32  ;;  %v6430_v32 = vsel %vm1523_vm7, %v12924_v20, %v12990_v30  ;;  %v6504_v20 = vmul.bf16 %v12789_v29, %v12060_v19 }
 0x61c   : > { %7100 = vmatprep.subr.bf16.mxu0 %v6423_v63  ;;  %7192 = vmatprep.subr.bf16.mxu1 %v5987_v34  ;;  %v6569_v63 = vsel %vm1158_vm5, %v13019_v62, %v13039_v53  ;;  %v14962_v34 = vld [vmem:[#allocation64_spill] sm:$0xff]  ;;  %v14966_v62 = vmov 0  }
 0x61d   : > { %6540 = vrot.lane.b32.xlu1 %v12063_v6, %s9881_s14  ;;  %6418 = vrot.lane.b32.xlu0 %v6366_v52, %s9884_s21  ;;  %v6255_v52 = vsel %vm1593_vm10, %v14962_v34, %v12858_v18  ;;  %v6254_v37 = vsel %vm1593_vm10, %v12791_v39, %v14962_v34  ;;  %v14967_v39 = vld [vmem:[#allocation20_spill] sm:$0xff]  ;;  %v14970_v34 = vld [vmem:[#allocation45_spill] sm:$0xff] }
 0x61f   : > { %7101 = vmatpush1.bf16.msra.mxu0 %v6422_v47  ;;  %7193 = vmatpush1.bf16.msra.mxu1 %v5986_v25  ;;  %v13121_v10 = vpop.permute.xlu1 %6532  ;;  %v13129_v24 = vpop.permute.xlu0 %6410 }
 0x620   : > { %7102 = vmatprep.subr.bf16.mxu0 %v6431_v55  ;;  %7194 = vmatprep.subr.bf16.mxu1 %v6117_v43  ;;  %v14965_v55 = vld [vmem:[#allocation19_spill] sm:$0xff]  ;;  %v6432_v28 = vsel %vm1523_vm7, %v13024_v57, %v13129_v24  ;;  %v6563_v50 = vsel %vm1158_vm5, %v14985_v58, %v13121_v10 }
 0x621   : > { %6794 = vrot.lane.b32.xlu1 %v6752_v26, %s9880_s13  ;;  %6810 = vrot.lane.b32.xlu0 %v6760_v16, %s9880_s13  ;;  %v14964_v16 = vld [vmem:[#allocation57_spill] sm:$0xff]  ;;  %v6263_v26 = vsel %vm1593_vm10, %v13004_v14, %v13106_v35 }
 0x622   : > { %v6681_v43 = vsel %vm2839_vm11, %v14965_v55, %v14964_v16 }
 0x623   : > { %7103 = vmatpush1.bf16.msra.mxu0 %v6430_v32  ;;  %7195 = vmatpush1.bf16.msra.mxu1 %v6116_v38  ;;  %v13141_v21 = vpop.permute.xlu1 %6790  ;;  %v13149_v0 = vpop.permute.xlu0 %6806  ;;  %v6680_v38 = vsel %vm2839_vm11, %v14967_v39, %v14965_v55  ;;  %v14974_v55 = vld [vmem:[#allocation59_spill] sm:$0xff] }
 0x624   : > { %7104 = vmatprep.subr.bf16.mxu0 %v6561_v48  ;;  %7196 = vmatprep.subr.bf16.mxu1 %v6125_v56  ;;  %v6262_v48 = vsel %vm1593_vm10, %v13009_v41, %v13004_v14  ;;  %v14972_v14 = vld [vmem:[#allocation51_spill] sm:$0xff] }
 0x625   : > { %6558 = vrot.lane.b32.xlu1 %v12063_v6, %s9881_s14  ;;  %6556 = vrot.lane.b32.xlu0 %v6504_v20, %s9881_s14  ;;  %v14968_v20 = vld [vmem:[#allocation79_spill] sm:$0xff]  ;;  %v14984_v6 = vld [vmem:[#allocation70_spill] sm:$0xff] }
 0x627   : > { %7105 = vmatpush1.bf16.msra.mxu0 %v6560_v44  ;;  %7197 = vmatpush1.bf16.msra.mxu1 %v6124_v22  ;;  %v13162_v30 = vpop.permute.xlu1 %5956  ;;  %v13170_v47 = vpop.permute.xlu0 %5950  ;;  %v14969_v44 = vld [vmem:[#allocation12_spill] sm:$0xff] }
 0x628   : > { %7106 = vmatprep.subr.bf16.mxu0 %v6569_v63  ;;  %7198 = vmatprep.subr.bf16.mxu1 %v6255_v52  ;;  %v6689_v22 = vsel %vm2839_vm11, %v14969_v44, %v14968_v20  ;;  %v6753_v52 = vmul.bf16 %v12761_v27, %v14970_v34  ;;  %v6688_v41 = vsel %vm2839_vm11, %v14972_v14, %v14969_v44  ;;  %v14977_v44 = vld [vmem:[#allocation44_spill] sm:$0xff] }
 0x629   : > { %6812 = vrot.lane.b32.xlu1 %v6761_v51, %s9880_s13  ;;  %6658 = vrot.lane.b32.xlu0 %v12761_v27, %s9895_s10  ;;  %v14971_v51 = vld [vmem:[#allocation16_spill] sm:$0xff] }
 0x62a   : > { %v13246_v14 = vld [vmem:[%s14597_s4 + $0x4c] ss:$12 sps:$4 sm:$0xff]  }
 0x62b   : > { %7107 = vmatpush1.bf16.msra.mxu0 %v6568_v13  ;;  %7199 = vmatpush1.bf16.msra.mxu1 %v6254_v37  ;;  %v13183_v25 = vpop.permute.xlu1 %5832  ;;  %v13191_v32 = vpop.permute.xlu0 %5954  ;;  %v14973_v13 = vld [vmem:[#allocation43_spill] sm:$0xff] }
 0x62c   : > { %7108 = vmatprep.subr.bf16.mxu0 %v6681_v43  ;;  %7200 = vmatprep.subr.bf16.mxu1 %v6263_v26  ;;  %v14975_v43 = vld [vmem:[#allocation14_spill] sm:$0xff] }
 0x62d   : > { %6660 = vrot.lane.b32.xlu1 %v14966_v62, %s9895_s10  ;;  %6676 = vrot.lane.b32.xlu0 %v12789_v29, %s9895_s10  ;;  %v6819_v26 = vsel %vm425_vm0, %v14975_v43, %v14974_v55 }
 0x62f   : > { %7109 = vmatpush1.bf16.msra.mxu0 %v6680_v38  ;;  %7201 = vmatpush1.bf16.msra.mxu1 %v6262_v48  ;;  %v13203_v56 = vpop.permute.xlu1 %6090  ;;  %v5831_v63 = vpop.permute.xlu0 %5830  ;;  %v6762_v38 = vmul.bf16 %v12789_v29, %v14970_v34  ;;  %v14976_v48 = vld [vmem:[#allocation63_spill] sm:$0xff]  ;;  %v9373_v34 = vld [vmem:[%s14598_s5 + $0x28] sm:$0xff] }
 0x630   : > { %7110 = vmatprep.subr.bf16.mxu0 %v6689_v22  ;;  %7202 = vmatprep.subr.bf16.mxu1 %v14971_v51  ;;  %v14978_v22 = vld [vmem:[#allocation61_spill] sm:$0xff]  ;;  %v5860_v19 = vsel %vm811_vm8, %v14984_v6, %v5831_v63  ;;  %v14986_v6 = vld [vmem:[#allocation8_spill] sm:$0xff] }
 0x631   : > { %6678 = vrot.lane.b32.xlu1 %v14966_v62, %s9895_s10  ;;  %6796 = vrot.lane.b32.xlu0 %v6753_v52, %s9880_s13  ;;  %v6818_v52 = vsel %vm425_vm0, %v14978_v22, %v14975_v43  ;;  %v9372_v51 = vld [vmem:[%s14598_s5 + $0x20] sm:$0xff]  ;;  %v14980_v43 = vld [vmem:[#allocation75_spill] sm:$0xff]  ;;  %v14981_v22 = vld [vmem:[#allocation78_spill] sm:$0xff] }
 0x633   : > { %7111 = vmatpush1.bf16.msra.mxu0 %v6688_v41  ;;  %7203 = vmatpush1.bf16.msra.mxu1 %v14973_v13  ;;  %v13223_v37 = vpop.permute.xlu1 %6228  ;;  %v13228_v39 = vpop.permute.xlu0 %6088  ;;  %v14979_v41 = vld [vmem:[#allocation69_spill] sm:$0xff] }
 0x634   : > { %7133 = vmatprep.subr.bf16.mxu0 %v6819_v26  ;;  %7204 = vmatprep.subr.bf16.mxu1 %v14976_v48  ;;  %v6827_v26 = vsel %vm425_vm0, %v13034_v23, %v13053_v46 }
 0x635   : > { %6798 = vrot.lane.b32.xlu1 %v14977_v44, %s9880_s13  ;;  %6814 = vrot.lane.b32.xlu0 %v6762_v38, %s9880_s13  ;;  %v6425_v38 = vsel %vm1523_vm7, %v14980_v43, %v13098_v31 }
 0x636   : > { %7113 = vmatmul.mubr.bf16.vlgmr.msra.gmra.mrb[32].mxu0 %v13220_v11 }
 0x637   : > { %7134 = vmatpush1.bf16.msra.mxu0 %v6818_v52  ;;  %7205 = vmatpush1.bf16.msra.mxu1 %v14979_v41  ;;  %v13249_v13 = vpop.permute.xlu1 %5836  ;;  %v13257_v48 = vpop.permute.xlu0 %6226  ;;  %v6826_v52 = vsel %vm425_vm0, %v14981_v22, %v13034_v23  ;;  %v6424_v41 = vsel %vm1523_vm7, %v12805_v33, %v14980_v43  ;;  %v5861_v33 = vsel %vm811_vm8, %v5831_v63, %v13183_v25  ;;  %v14987_v63 = vld [vmem:[#allocation47_spill] sm:$0xff] }
 0x638   : > { %7135 = vmatprep.subr.bf16.mxu0 %v6827_v26  ;;  %7206 = vmatprep.subr.bf16.mxu1 %v6425_v38  ;;  %v9374_v26 = vld [vmem:[%s14598_s5 + $0x30] sm:$0xff]  ;;  %v9375_v38 = vld [vmem:[%s14598_s5 + $0x38] sm:$0xff] }
 0x639   : > { %6816 = vrot.lane.b32.xlu1 %v14977_v44, %s9880_s13  ;;  %7026 = vperm.xlu0 %9826, %v9372_v51   ;;  %v13277_v51 = vld [vmem:[%s14597_s4 + $0x48] ss:$12 sps:$4 sm:$0xff]  }
 0x63a   : > { %7122 = vmatprep.mubr.bf16.mxu0 %v13246_v14  ;;  %v14982_v44 = vld [vmem:[#allocation6_spill] sm:$0xff] }
 0x63b   : > { %7136 = vmatpush1.bf16.msra.mxu0 %v6826_v52  ;;  %7207 = vmatpush1.bf16.msra.mxu1 %v6424_v41  ;;  %v13279_v23 = vpop.permute.xlu1 %6670  ;;  %v13283_v43 = vpop.permute.xlu0 %5834 }
 0x63c   : > { %7292 = vmatprep.subr.bf16.mxu0 %v5861_v33 }
 0x63d   : > { %7031 = vperm.xlu1 %9825, %v9373_v34   ;;  %7036 = vperm.xlu0 %9826, %v9374_v26   ;;  %v13299_v34 = vld [vmem:[%s14597_s4 + $0x38] ss:$12 sps:$4 sm:$0xff]  }
 0x63e   : > { %7123 = vmatmul.mubr.bf16.gmra.mrb[36].mxu0 %v13277_v51 }
 0x63f   : > { %v13289_v22 = vpop.permute.xlu1 %5970  ;;  %v13291_v52 = vpop.permute.xlu0 %5968  ;;  %7165 = vmatprep.mubr.bf16.mxu0 %v14966_v62 }
 0x641   : > { %7041 = vperm.xlu1 %9825, %v9375_v38   ;;  %9838 = vrot.lane.b32.xlu0 %v14966_v62, %s9882_s15  ;;  %v14983_v38 = vld [vmem:[#allocation7_spill] sm:$0xff] }
 0x643   : > { %v13301_v41 = vpop.permute.xlu1 %6412  ;;  %v13303_v26 = vpop.permute.xlu0 %5972 }
 0x644   : > { %v6433_v33 = vsel %vm1523_vm7, %v13129_v24, %v13301_v41 }
 0x645   : > { %7622 = vrot.lane.b32.xlu1 %v14982_v44, %s9887_s22  ;;  %7898 = vrot.lane.b32.xlu0 %v14983_v38, %s9888_s23 }
 0x646   : > { %9382 = vmatmul.mubr.msk.bf16.vlgmr.msra.gmra.mrb[32].mxu0 %vm528_vm4, %v13299_v34  ;;  %7208 = vmatprep.subr.bf16.mxu1 %v6433_v33 }
 0x647   : > { %7293 = vmatpush1.bf16.msra.mxu0 %v5860_v19  ;;  %7209 = vmatpush1.bf16.msra.mxu1 %v6432_v28  ;;  %v13319_v42 = vpop.permute.xlu1 %6094  ;;  %v13324_v5 = vpop.permute.xlu0 %6550  ;;  %v6562_v19 = vsel %vm1158_vm5, %v12815_v61, %v14985_v58  ;;  %v13337_v28 = vld [vmem:[%s14597_s4 + $0x50] ss:$12 sps:$4 sm:$0xff]   ;;  %v6570_v58 = vsel %vm1158_vm5, %v13039_v53, %v13048_v40 }
 0x648   : > { %7210 = vmatprep.subr.bf16.mxu1 %v6563_v50  ;;  %7175 = vmatprep.mubr.bf16.mxu0 %v14966_v62  ;;  %v6571_v50 = vsel %vm1158_vm5, %v13048_v40, %v13324_v5  ;;  %v6691_v40 = vsel %vm2839_vm11, %v12980_v49, %v13279_v23 }
 0x649   : > { %7640 = vrot.lane.b32.xlu1 %v14982_v44, %s9887_s22  ;;  %8036 = vrot.lane.b32.xlu0 %v14986_v6, %s9890_s25  ;;  %v6683_v44 = vsel %vm2839_vm11, %v14987_v63, %v13064_v7 }
 0x64b   : > { %7211 = vmatpush1.bf16.msra.mxu1 %v6562_v19  ;;  %v13339_v57 = vpop.permute.xlu1 %6808  ;;  %v13344_v24 = vpop.permute.xlu0 %6092  ;;  %v14988_v19 = vld [vmem:[#allocation66_spill] sm:$0xff] }
 0x64c   : > { %7212 = vmatprep.subr.bf16.mxu1 %v6571_v50 }
 0x64d   : > { %7880 = vrot.lane.b32.xlu1 %v14983_v38, %s9888_s23  ;;  %v6682_v38 = vsel %vm2839_vm11, %v14964_v16, %v14987_v63  ;;  %v6690_v16 = vsel %vm2839_vm11, %v14968_v20, %v12980_v49  ;;  %v5981_v63 = vsel %vm528_vm4, %v13170_v47, %v13081_v1  ;;  %v5989_v20 = vsel %vm528_vm4, %v13291_v52, %v13289_v22 }
 0x64e   : > { %9383 = vmatmul.mubr.msk.bf16.gmra.mrb[36].mxu0 %vm528_vm4, %v13337_v28 }
 0x64f   : > { %7213 = vmatpush1.bf16.msra.mxu1 %v6570_v58  ;;  %v13353_v61 = vpop.permute.xlu1 %5974  ;;  %v5849_v33 = vpop.permute.xlu0 %5848  ;;  %7324 = vmatprep.mubr.bf16.mxu0 %v14988_v19 }
 0x650   : > { %7214 = vmatprep.subr.bf16.mxu1 %v6683_v44 }
 0x651   : > { %8018 = vrot.lane.b32.xlu1 %v14986_v6, %s9890_s25  ;;  %v5868_v6 = vsel %vm811_vm8, %v13066_v54, %v5849_v33  ;;  %v5980_v54 = vsel %vm528_vm4, %v12763_v15, %v13170_v47  ;;  %v5988_v47 = vsel %vm528_vm4, %v12914_v12, %v13291_v52  ;;  %v6118_v12 = vsel %vm1228_vm9, %v12848_v36, %v13228_v39 }
 0x652   : > { %v6257_v36 = vsel %vm1593_vm10, %v13257_v48, %v13223_v37 }
 0x653   : > { %7215 = vmatpush1.bf16.msra.mxu1 %v6682_v38  ;;  %v13364_v53 = vpop.permute.xlu1 %5850  ;;  %v13369_v50 = vpop.permute.xlu0 %6396  ;;  %v14989_v38 = vld [vmem:[#allocation76_spill] sm:$0xff] }
 0x654   : > { %7216 = vmatprep.subr.bf16.mxu1 %v6691_v40  ;;  %v5869_v58 = vsel %vm811_vm8, %v5849_v33, %v13364_v53  ;;  %v6821_v40 = vsel %vm425_vm0, %v14989_v38, %v13141_v21  ;;  %v6820_v49 = vsel %vm425_vm0, %v14974_v55, %v14989_v38  ;;  %v6828_v55 = vsel %vm425_vm0, %v13053_v46, %v13149_v0 }
 0x655   : > { %7294 = vmatprep.subr.bf16.mxu0 %v5869_v58  ;;  %v5863_v38 = vsel %vm811_vm8, %v13283_v43, %v13249_v13 }
 0x656   : > { %7295 = vmatpush1.bf16.msra.mxu0 %v5868_v6  ;;  %v6829_v6 = vsel %vm425_vm0, %v13149_v0, %v13339_v57 }
 0x657   : > { %7217 = vmatpush1.bf16.msra.mxu1 %v6690_v16  ;;  %v13381_v44 = vpop.permute.xlu1 %6398  ;;  %7296 = vmatprep.subr.bf16.mxu0 %v5981_v63  ;;  %v6107_v58 = vpop.permute.xlu0 %6106  ;;  %v6119_v16 = vsel %vm1228_vm9, %v13228_v39, %v13203_v56 }
 0x658   : > { %7239 = vmatprep.subr.bf16.mxu1 %v6821_v40  ;;  %v6126_v13 = vsel %vm1228_vm9, %v13086_v8, %v6107_v58  ;;  %v5862_v8 = vsel %vm811_vm8, %v13183_v25, %v13283_v43  ;;  %v5983_v43 = vsel %vm528_vm4, %v13191_v32, %v13162_v30 }
 0x65a   : > { %7219 = vmatmul.mubr.bf16.vlgmr.msra.gmra.mrb[32].mxu1 %v13220_v11  ;;  %7297 = vmatpush1.bf16.msra.mxu0 %v5980_v54 }
 0x65b   : > { %7240 = vmatpush1.bf16.msra.mxu1 %v6820_v49  ;;  %v13396_v33 = vpop.permute.xlu1 %6232  ;;  %7298 = vmatprep.subr.bf16.mxu0 %v5989_v20  ;;  %v6245_v15 = vpop.permute.xlu0 %6244  ;;  %v6256_v49 = vsel %vm1593_vm10, %v12858_v18, %v13257_v48 }
 0x65c   : > { %7241 = vmatprep.subr.bf16.mxu1 %v6829_v6  ;;  %7228 = vmatprep.mubr.bf16.mxu1 %v13246_v14  ;;  %v6264_v18 = vsel %vm1593_vm10, %v13106_v35, %v6245_v15  ;;  %v5982_v35 = vsel %vm528_vm4, %v13081_v1, %v13191_v32  ;;  %v6427_v1 = vsel %vm1523_vm7, %v13369_v50, %v13381_v44 }
 0x65d   : > { %v6121_v32 = vsel %vm1228_vm9, %v13344_v24, %v13319_v42 }
 0x65e   : > { %7299 = vmatpush1.bf16.msra.mxu0 %v5988_v47 }
 0x65f   : > { %7242 = vmatpush1.bf16.msra.mxu1 %v6828_v55  ;;  %v13411_v63 = vpop.permute.xlu1 %6108  ;;  %7300 = vmatprep.subr.bf16.mxu0 %v6119_v16  ;;  %v13416_v40 = vpop.permute.xlu0 %6230  ;;  %v14990_v16 = vld [vmem:[#allocation58_spill] sm:$0xff] }
 0x660   : > { %7398 = vmatprep.subr.bf16.mxu1 %v5863_v38  ;;  %v6127_v46 = vsel %vm1228_vm9, %v6107_v58, %v13411_v63  ;;  %v5990_v38 = vsel %vm528_vm4, %v13289_v22, %v13303_v26  ;;  %v6120_v22 = vsel %vm1228_vm9, %v13203_v56, %v13344_v24 }
 0x662   : > { %7229 = vmatmul.mubr.bf16.gmra.mrb[36].mxu1 %v13277_v51  ;;  %7301 = vmatpush1.bf16.msra.mxu0 %v6118_v12 }
 0x663   : > { %v13424_v0 = vpop.permute.xlu1 %6246  ;;  %7302 = vmatprep.subr.bf16.mxu0 %v6127_v46  ;;  %v13426_v52 = vpop.permute.xlu0 %6534  ;;  %7271 = vmatprep.mubr.bf16.mxu1 %v14966_v62 }
 0x664   : > { %v6265_v58 = vsel %vm1593_vm10, %v6245_v15, %v13424_v0  ;;  %v14991_v15 = vld [vmem:[#allocation15_spill] sm:$0xff] }
 0x666   : > { %7303 = vmatpush1.bf16.msra.mxu0 %v6126_v13 }
 0x667   : > { %v13434_v39 = vpop.permute.xlu1 %6416  ;;  %7304 = vmatprep.subr.bf16.mxu0 %v6257_v36  ;;  %v5853_v54 = vpop.permute.xlu0 %5852 }
 0x668   : > { %v5870_v25 = vsel %vm811_vm8, %v13364_v53, %v5853_v54 }
 0x66a   : > { %9384 = vmatmul.mubr.msk.bf16.vlgmr.msra.gmra.mrb[32].mxu1 %vm528_vm4, %v13299_v34  ;;  %7305 = vmatpush1.bf16.msra.mxu0 %v6256_v49 }
 0x66b   : > { %7399 = vmatpush1.bf16.msra.mxu1 %v5862_v8  ;;  %v5855_v20 = vpop.permute.xlu1 %5854  ;;  %7306 = vmatprep.subr.bf16.mxu0 %v6265_v58  ;;  %v6111_v6 = vpop.permute.xlu0 %6110 }
 0x66c   : > { %v5871_v47 = vsel %vm811_vm8, %v5853_v54, %v5855_v20  ;;  %7281 = vmatprep.mubr.bf16.mxu1 %v14966_v62 }
 0x66d   : > { %7400 = vmatprep.subr.bf16.mxu1 %v5871_v47 }
 0x66e   : > { %7307 = vmatpush1.bf16.msra.mxu0 %v6264_v18 }
 0x66f   : > { %7401 = vmatpush1.bf16.msra.mxu1 %v5870_v25  ;;  %v13452_v48 = vpop.permute.xlu1 %6536  ;;  %7308 = vmatprep.subr.bf16.mxu0 %v12617_v60  ;;  %v6415_v55 = vpop.permute.xlu0 %6414  ;;  %v5991_v60 = vsel %vm528_vm4, %v13303_v26, %v13353_v61 }
 0x670   : > { %7402 = vmatprep.subr.bf16.mxu1 %v5983_v43  ;;  %v6435_v26 = vsel %vm1523_vm7, %v6415_v55, %v13434_v39  ;;  %v6434_v13 = vsel %vm1523_vm7, %v13301_v41, %v6415_v55  ;;  %v6565_v56 = vsel %vm1158_vm5, %v13426_v52, %v13452_v48  ;;  %v6564_v41 = vsel %vm1158_vm5, %v13121_v10, %v13426_v52 }
 0x672   : > { %9385 = vmatmul.mubr.msk.bf16.gmra.mrb[36].mxu1 %vm528_vm4, %v13337_v28  ;;  %7309 = vmatpush1.bf16.msra.mxu0 %v14990_v16 }
 0x673   : > { %7403 = vmatpush1.bf16.msra.mxu1 %v5982_v35  ;;  %v13464_v53 = vpop.permute.xlu1 %6554  ;;  %7310 = vmatprep.subr.bf16.mxu0 %v12636_v3  ;;  %v6249_v30 = vpop.permute.xlu0 %6248 }
 0x674   : > { %7404 = vmatprep.subr.bf16.mxu1 %v5991_v60  ;;  %7430 = vmatprep.mubr.bf16.mxu1 %v14988_v19  ;;  %v6426_v19 = vsel %vm1523_vm7, %v13098_v31, %v13369_v50  ;;  %v6128_v31 = vsel %vm1228_vm9, %v13411_v63, %v6111_v6  ;;  %v6259_v50 = vsel %vm1593_vm10, %v13416_v40, %v13396_v33 }
 0x675   : > { %v6258_v63 = vsel %vm1593_vm10, %v13223_v37, %v13416_v40  ;;  %v6266_v10 = vsel %vm1593_vm10, %v13424_v0, %v6249_v30 }
 0x676   : > { %7311 = vmatpush1.bf16.msra.mxu0 %v14991_v15 }
 0x677   : > { %7405 = vmatpush1.bf16.msra.mxu1 %v5990_v38  ;;  %v13478_v3 = vpop.permute.xlu1 %6656  ;;  %7312 = vmatprep.subr.bf16.mxu0 %v6427_v1  ;;  %v6553_v61 = vpop.permute.xlu0 %6552 }
 0x678   : > { %7406 = vmatprep.subr.bf16.mxu1 %v6121_v32  ;;  %v6573_v54 = vsel %vm1158_vm5, %v6553_v61, %v13464_v53  ;;  %v6572_v58 = vsel %vm1158_vm5, %v13324_v5, %v6553_v61 }
 0x67a   : > { %7313 = vmatpush1.bf16.msra.mxu0 %v6426_v19 }
 0x67b   : > { %7407 = vmatpush1.bf16.msra.mxu1 %v6120_v22  ;;  %v6113_v12 = vpop.permute.xlu1 %6112  ;;  %7314 = vmatprep.subr.bf16.mxu0 %v6435_v26  ;;  %v6655_v46 = vpop.permute.xlu0 %6654 }
 0x67c   : > { %v6129_v42 = vsel %vm1228_vm9, %v6111_v6, %v6113_v12  ;;  %v6685_v37 = vsel %vm2839_vm11, %v6655_v46, %v13478_v3  ;;  %v6684_v20 = vsel %vm2839_vm11, %v13064_v7, %v6655_v46 }
 0x67d   : > { %7408 = vmatprep.subr.bf16.mxu1 %v6129_v42 }
 0x67e   : > { %7315 = vmatpush1.bf16.msra.mxu0 %v6434_v13 }
 0x67f   : > { %7409 = vmatpush1.bf16.msra.mxu1 %v6128_v31  ;;  %v13499_v24 = vpop.permute.xlu1 %6674  ;;  %7316 = vmatprep.subr.bf16.mxu0 %v6565_v56  ;;  %v6673_v36 = vpop.permute.xlu0 %6672 }
 0x680   : > { %7410 = vmatprep.subr.bf16.mxu1 %v6259_v50  ;;  %v6693_v5 = vsel %vm2839_vm11, %v6673_v36, %v13499_v24  ;;  %v6692_v47 = vsel %vm2839_vm11, %v13279_v23, %v6673_v36 }
 0x682   : > { %7317 = vmatpush1.bf16.msra.mxu0 %v6564_v41 }
 0x683   : > { %7411 = vmatpush1.bf16.msra.mxu1 %v6258_v63  ;;  %v6251_v49 = vpop.permute.xlu1 %6250  ;;  %7318 = vmatprep.subr.bf16.mxu0 %v6573_v54  ;;  %v6401_v8 = vpop.permute.xlu0 %6400 }
 0x684   : > { %v6267_v33 = vsel %vm1593_vm10, %v6249_v30, %v6251_v49 }
 0x685   : > { %7412 = vmatprep.subr.bf16.mxu1 %v6267_v33 }
 0x686   : > { %7319 = vmatpush1.bf16.msra.mxu0 %v6572_v58 }
 0x687   : > { %7413 = vmatpush1.bf16.msra.mxu1 %v6266_v10  ;;  %v6403_v40 = vpop.permute.xlu1 %6402  ;;  %7320 = vmatprep.subr.bf16.mxu0 %v6685_v37  ;;  %v6539_v52 = vpop.permute.xlu0 %6538 }
 0x688   : > { %7414 = vmatprep.subr.bf16.mxu1 %v12761_v27  ;;  %v6429_v7 = vsel %vm1523_vm7, %v6401_v8, %v6403_v40  ;;  %v6566_v60 = vsel %vm1158_vm5, %v13452_v48, %v6539_v52 }
 0x68a   : > { %7321 = vmatpush1.bf16.msra.mxu0 %v6684_v20 }
 0x68b   : > { %7415 = vmatpush1.bf16.msra.mxu1 %v12759_v4  ;;  %v6421_v6 = vpop.permute.xlu1 %6420  ;;  %7322 = vmatprep.subr.bf16.mxu0 %v6693_v5  ;;  %v6793_v0 = vpop.permute.xlu0 %6792  ;;  %v6428_v4 = vsel %vm1523_vm7, %v13381_v44, %v6401_v8 }
 0x68c   : > { %7416 = vmatprep.subr.bf16.mxu1 %v12789_v29  ;;  %v6822_v43 = vsel %vm425_vm0, %v13141_v21, %v6793_v0 }
 0x68e   : > { %7323 = vmatpush1.bf16.msra.mxu0 %v6692_v47 }
 0x68f   : > { %7417 = vmatpush1.bf16.msra.mxu1 %v12787_v59  ;;  %v6541_v27 = vpop.permute.xlu1 %6540  ;;  %v6419_v18 = vpop.permute.xlu0 %6418 }
 0x690   : > { %7418 = vmatprep.subr.bf16.mxu1 %v6429_v7  ;;  %v6437_v25 = vsel %vm1523_vm7, %v6419_v18, %v6421_v6  ;;  %v6436_v55 = vsel %vm1523_vm7, %v13434_v39, %v6419_v18  ;;  %v6567_v16 = vsel %vm1158_vm5, %v6539_v52, %v6541_v27  ;;  %v14992_v7 = vld [vmem:[#allocation22_spill] sm:$0xff] }
 0x691   : > { %7325 = vmatmul.mubr.bf16.vlgmr.msra.gmra.mrb[40].mxu0 %v13220_v11 }
 0x692   : > { %7334 = vmatprep.mubr.bf16.mxu0 %v13246_v14 }
 0x693   : > { %7419 = vmatpush1.bf16.msra.mxu1 %v6428_v4  ;;  %v6795_v29 = vpop.permute.xlu1 %6794  ;;  %v6811_v23 = vpop.permute.xlu0 %6810 }
 0x694   : > { %7420 = vmatprep.subr.bf16.mxu1 %v6437_v25  ;;  %v6823_v59 = vsel %vm425_vm0, %v6793_v0, %v6795_v29  ;;  %v6830_v38 = vsel %vm425_vm0, %v13339_v57, %v6811_v23 }
 0x695   : > { %7345 = vmatprep.subr.bf16.mxu0 %v6823_v59 }
 0x696   : > { %7346 = vmatpush1.bf16.msra.mxu0 %v6822_v43 }
 0x697   : > { %7421 = vmatpush1.bf16.msra.mxu1 %v6436_v55  ;;  %v6559_v44 = vpop.permute.xlu1 %6558  ;;  %v6557_v35 = vpop.permute.xlu0 %6556  ;;  %v14993_v55 = vld [vmem:[#allocation29_spill] sm:$0xff] }
 0x698   : > { %7422 = vmatprep.subr.bf16.mxu1 %v6567_v16  ;;  %v6575_v21 = vsel %vm1158_vm5, %v6557_v35, %v6559_v44  ;;  %v6574_v1 = vsel %vm1158_vm5, %v13464_v53, %v6557_v35  ;;  %v14994_v35 = vld [vmem:[#allocation18_spill] sm:$0xff] }
 0x699   : > { %7335 = vmatmul.mubr.bf16.gmra.mrb[44].mxu0 %v13277_v51 }
 0x69a   : > { %7377 = vmatprep.mubr.bf16.mxu0 %v14966_v62 }
 0x69b   : > { %7423 = vmatpush1.bf16.msra.mxu1 %v6566_v60  ;;  %v6813_v30 = vpop.permute.xlu1 %6812  ;;  %v6659_v15 = vpop.permute.xlu0 %6658 }
 0x69c   : > { %7424 = vmatprep.subr.bf16.mxu1 %v6575_v21  ;;  %v6831_v39 = vsel %vm425_vm0, %v6811_v23, %v6813_v30  ;;  %v6686_v19 = vsel %vm2839_vm11, %v13478_v3, %v6659_v15 }
 0x69d   : > { %7347 = vmatprep.subr.bf16.mxu0 %v6831_v39 }
 0x69e   : > { %7348 = vmatpush1.bf16.msra.mxu0 %v6830_v38  ;;  %v14997_v38 = vld [vmem:[#allocation21_spill] sm:$0xff] }
 0x69f   : > { %7425 = vmatpush1.bf16.msra.mxu1 %v6574_v1  ;;  %v6661_v48 = vpop.permute.xlu1 %6660  ;;  %v6677_v32 = vpop.permute.xlu0 %6676 }
 0x6a0   : > { %v6687_v61 = vsel %vm2839_vm11, %v6659_v15, %v6661_v48  ;;  %v6694_v53 = vsel %vm2839_vm11, %v13499_v24, %v6677_v32  ;;  %v14996_v15 = vld [vmem:[#allocation23_spill] sm:$0xff]  ;;  %v14998_v48 = vld [vmem:[#allocation24_spill] sm:$0xff] }
 0x6a1   : > { %9386 = vmatmul.mubr.msk.bf16.vlgmr.msra.gmra.mrb[40].mxu0 %vm528_vm4, %v13299_v34  ;;  %7426 = vmatprep.subr.bf16.mxu1 %v6687_v61  ;;  %v14999_v61 = vld [vmem:[#allocation25_spill] sm:$0xff] }
 0x6a2   : > { %7387 = vmatprep.mubr.bf16.mxu0 %v14966_v62 }
 0x6a3   : > { %7427 = vmatpush1.bf16.msra.mxu1 %v6686_v19  ;;  %v6679_v57 = vpop.permute.xlu1 %6678  ;;  %v6797_v26 = vpop.permute.xlu0 %6796 }
 0x6a4   : > { %v6695_v22 = vsel %vm2839_vm11, %v6677_v32, %v6679_v57  ;;  %v6824_v3 = vsel %vm425_vm0, %v6795_v29, %v6797_v26  ;;  %v15000_v57 = vld [vmem:[#allocation9_spill] sm:$0xff] }
 0x6a5   : > { %7428 = vmatprep.subr.bf16.mxu1 %v6695_v22 }
 0x6a7   : > { %7429 = vmatpush1.bf16.msra.mxu1 %v6694_v53  ;;  %v6799_v12 = vpop.permute.xlu1 %6798  ;;  %v6815_v42 = vpop.permute.xlu0 %6814 }
 0x6a8   : > { %v6825_v46 = vsel %vm425_vm0, %v6797_v26, %v6799_v12  ;;  %v6832_v56 = vsel %vm425_vm0, %v6813_v30, %v6815_v42  ;;  %v14995_v30 = vld [vmem:[#allocation17_spill] sm:$0xff] }
 0x6a9   : > { %9387 = vmatmul.mubr.msk.bf16.gmra.mrb[44].mxu0 %vm528_vm4, %v13337_v28  ;;  %7451 = vmatprep.subr.bf16.mxu1 %v6825_v46  ;;  %v15001_v26 = vld [vmem:[#allocation13_spill] sm:$0xff] }
 0x6aa   : > { %7431 = vmatmul.mubr.bf16.vlgmr.msra.gmra.mrb[40].mxu1 %v13220_v11 }
 0x6ab   : > { %7452 = vmatpush1.bf16.msra.mxu1 %v6824_v3  ;;  %v6817_v13 = vpop.permute.xlu1 %6816  ;;  %7440 = vmatprep.mubr.bf16.mxu1 %v13246_v14 }
 0x6ac   : > { %v6833_v31 = vsel %vm425_vm0, %v6815_v42, %v6817_v13 }
 0x6ad   : > { %7453 = vmatprep.subr.bf16.mxu1 %v6833_v31 }
 0x6af   : > { %7454 = vmatpush1.bf16.msra.mxu1 %v6832_v56 }
 0x6b2   : > { %7441 = vmatmul.mubr.bf16.gmra.mrb[44].mxu1 %v13277_v51 }
 0x6b3   : > { %7483 = vmatprep.mubr.bf16.mxu1 %v14966_v62 }
 0x6b8   : > { %v13576_v11 = vpop.permute.xlu0 %7026 }
 0x6ba   : > { %9388 = vmatmul.mubr.msk.bf16.vlgmr.msra.gmra.mrb[40].mxu1 %vm528_vm4, %v13299_v34 }
 0x6bb   : > { %7493 = vmatprep.mubr.bf16.mxu1 %v14966_v62 }
 0x6bc   : > { %v13579_v36 = vpop.permute.xlu1 %7031  ;;  %v13586_v10 = vpop.permute.xlu0 %7036 }
 0x6c0   : > { %v13595_v5 = vpop.permute.xlu1 %7041 }
 0x6c2   : > { %9389 = vmatmul.mubr.msk.bf16.gmra.mrb[44].mxu1 %vm528_vm4, %v13337_v28 }
 0x6c3   : > { %8914 = vmatprep.mubr.bf16.mxu1 %v14966_v62 }
 0x719   : > { %v7167_v14 = vpop.f32.mrb[32].mxu0 }
 0x71a   : > { %v9429_v24 = vadd.f32 %v7167_v14, %v13576_v11  ;;  %v7169_v50 = vpop.f32.mrb[33].mxu0  ;;  %v15002_v14 = vld [vmem:[#allocation31_spill] sm:$0xff] }
 0x71b   : > { %v9430_v51 = vadd.f32 %v7169_v50, %v13576_v11  ;;  %v7171_v41 = vpop.f32.mrb[34].mxu0 }
 0x71c   : > { %v9431_v34 = vadd.f32 %v7171_v41, %v13579_v36  ;;  %v7173_v63 = vpop.f32.mrb[35].mxu0  ;;  %v7504_v49 = vmax.f32 %v9429_v24, 0.0 }
 0x71d   : > { %v9432_v54 = vadd.f32 %v7173_v63, %v13579_v36  ;;  %v7505_v8 = vmax.f32 %v9430_v51, 0.0 }
 0x71e   : > { %v7512_v28 = vmax.f32 %v9431_v34, 0.0 }
 0x71f   : > { %v7513_v33 = vmax.f32 %v9432_v54, 0.0 }
 0x720   : > { %v13584_v58 = vpack.c.bf16 %v7512_v28, %v7504_v49  ;;  %v15004_v49 = vld [vmem:[#allocation33_spill] sm:$0xff] }
 0x721   : > { %v13588_v37 = vpack.c.bf16 %v7513_v33, %v7505_v8  ;;  %v7177_v40 = vpop.f32.mrb[36].mxu0 }
 0x722   : > { %v9433_v52 = vadd.f32 %v7177_v40, %v13586_v10  ;;  %v7179_v20 = vpop.f32.mrb[37].mxu0  ;;  %8446 = vrot.lane.b32.xlu1 %v13584_v58, %s9895_s10  ;;  %7744 = vrot.lane.b32.xlu0 %v13584_v58, %s9882_s15  ;;  %v8548_v18 = vmul.bf16 %v13584_v58, %v14992_v7  ;;  %v7587_v21 = vmul.bf16 %v13584_v58, %v14995_v30 }
 0x723   : > { %v9434_v6 = vadd.f32 %v7179_v20, %v13586_v10  ;;  %v7181_v0 = vpop.f32.mrb[38].mxu0  ;;  %v8549_v44 = vmul.bf16 %v13588_v37, %v14993_v55  ;;  %v7588_v60 = vmul.bf16 %v13588_v37, %v14994_v35  ;;  %v7846_v39 = vmul.bf16 %v13588_v37, %v14996_v15 }
 0x724   : > { %v9435_v47 = vadd.f32 %v7181_v0, %v13595_v5  ;;  %v7183_v27 = vpop.f32.mrb[39].mxu0  ;;  %v7520_v29 = vmax.f32 %v9433_v52, 0.0  ;;  %v7845_v1 = vmul.bf16 %v13584_v58, %v14997_v38  ;;  %v7984_v32 = vmul.bf16 %v13588_v37, %v14998_v48 }
 0x725   : > { %v9436_v4 = vadd.f32 %v7183_v27, %v13595_v5  ;;  %v7521_v23 = vmax.f32 %v9434_v6, 0.0  ;;  %v7983_v19 = vmul.bf16 %v13584_v58, %v14999_v61  ;;  %v8152_v22 = vmul.bf16 %v13584_v58, %v15000_v57 }
 0x726   : > { %v7528_v25 = vmax.f32 %v9435_v47, 0.0  ;;  %7746 = vrot.lane.b32.xlu1 %v13588_v37, %s9882_s15  ;;  %8584 = vrot.lane.b32.xlu0 %v8548_v18, %s9880_s13  ;;  %v8290_v53 = vmul.bf16 %v13584_v58, %v15001_v26  ;;  %v8153_v24 = vmul.bf16 %v13588_v37, %v15002_v14  ;;  %v8291_v28 = vmul.bf16 %v13588_v37, %v15004_v49 }
 0x727   : > { %v7529_v59 = vmax.f32 %v9436_v4, 0.0 }
 0x728   : > { %v13605_v43 = vpack.c.bf16 %v7528_v25, %v7520_v29 }
 0x729   : > { %v13609_v16 = vpack.c.bf16 %v7529_v59, %v7521_v23 }
 0x72a   : > { %8448 = vrot.lane.b32.xlu1 %v13588_v37, %s9895_s10  ;;  %8586 = vrot.lane.b32.xlu0 %v8549_v44, %s9880_s13  ;;  %v8557_v8 = vmul.bf16 %v13605_v43, %v14992_v7  ;;  %v7854_v18 = vmul.bf16 %v13605_v43, %v14997_v38  ;;  %v7992_v44 = vmul.bf16 %v13605_v43, %v14999_v61  ;;  %v15008_v61 = vld [vmem:[#allocation37_spill] sm:$0xff] }
 0x72b   : > { %v7855_v38 = vmul.bf16 %v13609_v16, %v14996_v15  ;;  %v7597_v15 = vmul.bf16 %v13609_v16, %v14994_v35 }
 0x72e   : > { %7626 = vrot.lane.b32.xlu0 %v7588_v60, %s9887_s22  ;;  %7624 = vrot.lane.b32.xlu1 %v7587_v21, %s9887_s22  ;;  %v7596_v60 = vmul.bf16 %v13605_v43, %v14995_v30  ;;  %v7993_v30 = vmul.bf16 %v13609_v16, %v14998_v48  ;;  %v8162_v48 = vmul.bf16 %v13609_v16, %v15002_v14 }
 0x732   : > { %7884 = vrot.lane.b32.xlu0 %v7846_v39, %s9888_s23  ;;  %7882 = vrot.lane.b32.xlu1 %v7845_v1, %s9888_s23  ;;  %v8161_v39 = vmul.bf16 %v13605_v43, %v15000_v57  ;;  %v8299_v1 = vmul.bf16 %v13605_v43, %v15001_v26  ;;  %v15009_v57 = vld [vmem:[#allocation36_spill] sm:$0xff] }
 0x736   : > { %8022 = vrot.lane.b32.xlu0 %v7984_v32, %s9890_s25  ;;  %8020 = vrot.lane.b32.xlu1 %v7983_v19, %s9890_s25  ;;  %v8558_v32 = vmul.bf16 %v13609_v16, %v14993_v55  ;;  %v8300_v55 = vmul.bf16 %v13609_v16, %v15004_v49 }
 0x73a   : > { %8188 = vrot.lane.b32.xlu1 %v8152_v22, %s9884_s21  ;;  %8464 = vrot.lane.b32.xlu0 %v13605_v43, %s9895_s10  ;;  %v15010_v22 = vld [vmem:[#allocation28_spill] sm:$0xff] }
 0x73d   : > { %v7273_v12 = vpop.f32.mrb[32].mxu1 }
 0x73e   : > { %v9437_v46 = vadd.f32 %v7273_v12, %v13576_v11  ;;  %v7275_v3 = vpop.f32.mrb[33].mxu1  ;;  %8326 = vrot.lane.b32.xlu1 %v8290_v53, %s9881_s14  ;;  %7764 = vrot.lane.b32.xlu0 %v13609_v16, %s9882_s15  ;;  %v15011_v53 = vld [vmem:[#allocation32_spill] sm:$0xff] }
 0x73f   : > { %v9438_v42 = vadd.f32 %v7275_v3, %v13576_v11  ;;  %v7277_v13 = vpop.f32.mrb[34].mxu1 }
 0x740   : > { %v9439_v31 = vadd.f32 %v7277_v13, %v13579_v36  ;;  %v7279_v56 = vpop.f32.mrb[35].mxu1  ;;  %v7506_v51 = vmax.f32 %v9437_v46, 0.0  ;;  %v15012_v46 = vld [vmem:[#allocation30_spill] sm:$0xff] }
 0x741   : > { %v9440_v50 = vadd.f32 %v7279_v56, %v13579_v36  ;;  %v7507_v34 = vmax.f32 %v9438_v42, 0.0  ;;  %v15013_v42 = vld [vmem:[#allocation40_spill] sm:$0xff]  ;;  %v15014_v56 = vld [vmem:[#allocation26_spill] sm:$0xff] }
 0x742   : > { %v7514_v41 = vmax.f32 %v9439_v31, 0.0  ;;  %8190 = vrot.lane.b32.xlu1 %v8153_v24, %s9884_s21  ;;  %8466 = vrot.lane.b32.xlu0 %v13609_v16, %s9895_s10  ;;  %v15015_v24 = vld [vmem:[#allocation35_spill] sm:$0xff] }
 0x743   : > { %v7515_v63 = vmax.f32 %v9440_v50, 0.0 }
 0x744   : > { %v13651_v54 = vpack.c.bf16 %v7514_v41, %v7506_v51 }
 0x745   : > { %v13657_v33 = vpack.c.bf16 %v7515_v63, %v7507_v34  ;;  %v7283_v40 = vpop.f32.mrb[36].mxu1 }
 0x746   : > { %15003 = vst [vmem:[#allocation64_spill] sm:$0xff] %v13651_v54  ;;  %v9441_v52 = vadd.f32 %v7283_v40, %v13586_v10  ;;  %v7285_v20 = vpop.f32.mrb[37].mxu1  ;;  %8328 = vrot.lane.b32.xlu1 %v8291_v28, %s9881_s14  ;;  %8602 = vrot.lane.b32.xlu0 %v8557_v8, %s9880_s13  ;;  %v8550_v19 = vmul.bf16 %v13651_v54, %v15008_v61  ;;  %v15016_v40 = vld [vmem:[#allocation27_spill] sm:$0xff] }
 0x747   : > { %15005 = vst [vmem:[#allocation77_spill] sm:$0xff] %v13657_v33  ;;  %v9442_v6 = vadd.f32 %v7285_v20, %v13586_v10  ;;  %v7287_v0 = vpop.f32.mrb[38].mxu1  ;;  %v7847_v35 = vmul.bf16 %v13651_v54, %v15009_v57  ;;  %v7985_v26 = vmul.bf16 %v13651_v54, %v15010_v22  ;;  %v7590_v12 = vmul.bf16 %v13657_v33, %v15011_v53  ;;  %v15017_v20 = vld [vmem:[#allocation38_spill] sm:$0xff] }
 0x748   : > { %v9443_v47 = vadd.f32 %v7287_v0, %v13595_v5  ;;  %v7289_v27 = vpop.f32.mrb[39].mxu1  ;;  %v7522_v4 = vmax.f32 %v9441_v52, 0.0  ;;  %v7589_v3 = vmul.bf16 %v13651_v54, %v15012_v46  ;;  %v8155_v13 = vmul.bf16 %v13657_v33, %v15013_v42 }
 0x749   : > { %v9444_v7 = vadd.f32 %v7289_v27, %v13595_v5  ;;  %v7523_v25 = vmax.f32 %v9442_v6, 0.0  ;;  %v8154_v14 = vmul.bf16 %v13651_v54, %v15014_v56  ;;  %v8293_v50 = vmul.bf16 %v13657_v33, %v15015_v24 }
 0x74a   : > { %v7530_v29 = vmax.f32 %v9443_v47, 0.0  ;;  %7762 = vrot.lane.b32.xlu1 %v13605_v43, %s9882_s15  ;;  %7900 = vrot.lane.b32.xlu0 %v7854_v18, %s9888_s23  ;;  %v8292_v52 = vmul.bf16 %v13651_v54, %v15016_v40  ;;  %v8551_v6 = vmul.bf16 %v13657_v33, %v15017_v20 }
 0x74b   : > { %v7531_v23 = vmax.f32 %v9444_v7, 0.0 }
 0x74c   : > { %v13670_v59 = vpack.c.bf16 %v7530_v29, %v7522_v4 }
 0x74d   : > { %v13676_v21 = vpack.c.bf16 %v7531_v23, %v7523_v25  ;;  %v15019_v25 = vld [vmem:[#allocation34_spill] sm:$0xff] }
 0x74e   : > { %15006 = vst [vmem:[#allocation57_spill] sm:$0xff] %v13670_v59  ;;  %8038 = vrot.lane.b32.xlu0 %v7992_v44, %s9890_s25  ;;  %7642 = vrot.lane.b32.xlu1 %v7596_v60, %s9887_s22  ;;  %v7848_v23 = vmul.bf16 %v13657_v33, %v15019_v25 }
 0x74f   : > { %15007 = vst [vmem:[#allocation19_spill] sm:$0xff] %v13676_v21 }
 0x752   : > { %8206 = vrot.lane.b32.xlu0 %v8161_v39, %s9884_s21  ;;  %7902 = vrot.lane.b32.xlu1 %v7855_v38, %s9888_s23  ;;  %v13753_v39 = vpop.permute.xlu1 %7622 }
 0x756   : > { %8344 = vrot.lane.b32.xlu0 %v8299_v1, %s9881_s14  ;;  %8040 = vrot.lane.b32.xlu1 %v7993_v30, %s9890_s25 }
 0x75a   : > { %8604 = vrot.lane.b32.xlu0 %v8558_v32, %s9880_s13  ;;  %7748 = vrot.lane.b32.xlu1 %v13651_v54, %s9882_s15 }
 0x75e   : > { %7644 = vrot.lane.b32.xlu0 %v7597_v15, %s9887_s22  ;;  %8452 = vrot.lane.b32.xlu1 %v13657_v33, %s9895_s10 }
 0x762   : > { %8208 = vrot.lane.b32.xlu0 %v8162_v48, %s9884_s21  ;;  %8588 = vrot.lane.b32.xlu1 %v8550_v19, %s9880_s13  ;;  %v15020_v48 = vld [vmem:[#allocation39_spill] sm:$0xff] }
 0x763   : > { %v7986_v19 = vmul.bf16 %v13657_v33, %v15020_v48 }
 0x766   : > { %8346 = vrot.lane.b32.xlu0 %v8300_v55, %s9881_s14  ;;  %7886 = vrot.lane.b32.xlu1 %v7847_v35, %s9888_s23 }
 0x76a   : > { %8450 = vrot.lane.b32.xlu0 %v13651_v54, %s9895_s10  ;;  %8024 = vrot.lane.b32.xlu1 %v7985_v26, %s9890_s25 }
 0x76e   : > { %7750 = vrot.lane.b32.xlu0 %v13657_v33, %s9882_s15  ;;  %7630 = vrot.lane.b32.xlu1 %v7590_v12, %s9887_s22 }
 0x772   : > { %7628 = vrot.lane.b32.xlu0 %v7589_v3, %s9887_s22  ;;  %8194 = vrot.lane.b32.xlu1 %v8155_v13, %s9884_s21  ;;  %v9899_v3 = vmov 1983009808  }
 0x773   : > { %v8822_v13 = vunpack.c.l.s4 %v9899_v3 }
 0x774   : > { %v7379_v31 = vpop.f32.mrb[40].mxu0 }
 0x775   : > { %v9445_v51 = vadd.f32 %v7379_v31, %v13576_v11  ;;  %v7381_v41 = vpop.f32.mrb[41].mxu0  ;;  %v13766_v31 = vpop.permute.xlu0 %9838 }
 0x776   : > { %v9446_v34 = vadd.f32 %v7381_v41, %v13576_v11  ;;  %8192 = vrot.lane.b32.xlu0 %v8154_v14, %s9884_s21  ;;  %8332 = vrot.lane.b32.xlu1 %v8293_v50, %s9881_s14  ;;  %v7383_v63 = vpop.f32.mrb[42].mxu0  ;;  %v13773_v50 = vld [vmem:[%s14599_s6] sm:$0x3f] }
 0x777   : > { %v9447_v49 = vadd.f32 %v7383_v63, %v13579_v36  ;;  %v7385_v28 = vpop.f32.mrb[43].mxu0  ;;  %v7508_v0 = vmax.f32 %v9445_v51, 0.0  ;;  %v13775_v51 = vpop.permute.xlu1 %7640  ;;  %v8820_v63 = vcombine.high %v13773_v50, %v13773_v50 }
 0x778   : > { %v9448_v8 = vadd.f32 %v7385_v28, %v13579_v36  ;;  %v7509_v27 = vmax.f32 %v9446_v34, 0.0  ;;  %v8823_v34 = vunpack.c.0.s8 %v8822_v13  ;;  %v8559_v28 = vmul.bf16 %v13670_v59, %v15008_v61 }
 0x779   : > { %v7516_v47 = vmax.f32 %v9447_v49, 0.0  ;;  %v7856_v49 = vmul.bf16 %v13670_v59, %v15009_v57  ;;  %v7598_v57 = vmul.bf16 %v13670_v59, %v15012_v46  ;;  %v7995_v46 = vmul.bf16 %v13676_v21, %v15020_v48 }
 0x77a   : > { %v7517_v18 = vmax.f32 %v9448_v8, 0.0  ;;  %8330 = vrot.lane.b32.xlu0 %v8292_v52, %s9881_s14  ;;  %8590 = vrot.lane.b32.xlu1 %v8551_v6, %s9880_s13  ;;  %v15022_v8 = vld [vmem:[#allocation5_spill] sm:$0xff]  ;;  %v13790_v6 = vpop.permute.xlu0 %7898  ;;  %v8164_v48 = vmul.bf16 %v13676_v21, %v15013_v42 }
 0x77b   : > { %v13746_v7 = vpack.c.bf16 %v7516_v47, %v7508_v0  ;;  %v8826_v52 = vsub.s32 %v8823_v34, %v15022_v8  ;;  %v13792_v0 = vpop.permute.xlu1 %7880 }
 0x77c   : > { %v13748_v4 = vpack.c.bf16 %v7517_v18, %v7509_v27  ;;  %v7389_v29 = vpop.f32.mrb[44].mxu0  ;;  %v7599_v27 = vmul.bf16 %v13676_v21, %v15011_v53 }
 0x77d   : > { %15018 = vst [vmem:[#allocation20_spill] sm:$0xff] %v13746_v7  ;;  %v9449_v44 = vadd.f32 %v7389_v29, %v13586_v10  ;;  %v7391_v60 = vpop.f32.mrb[45].mxu0  ;;  %v13796_v47 = vrot.slane %v8820_v63, %v8826_v52 }
 0x77e   : > { %v9450_v38 = vadd.f32 %v7391_v60, %v13586_v10  ;;  %7888 = vrot.lane.b32.xlu0 %v7848_v23, %s9888_s23  ;;  %8468 = vrot.lane.b32.xlu1 %v13670_v59, %s9895_s10  ;;  %v7393_v1 = vpop.f32.mrb[46].mxu0  ;;  %v13805_v23 = vpop.permute.xlu0 %8036 }
 0x77f   : > { %v9451_v30 = vadd.f32 %v7393_v1, %v13595_v5  ;;  %v7395_v32 = vpop.f32.mrb[47].mxu0  ;;  %v7524_v55 = vmax.f32 %v9449_v44, 0.0 }
 0x780   : > { %v9452_v15 = vadd.f32 %v7395_v32, %v13595_v5  ;;  %v7525_v26 = vmax.f32 %v9450_v38, 0.0  ;;  %v13808_v38 = vpop.permute.xlu1 %8018 }
 0x781   : > { %v7532_v35 = vmax.f32 %v9451_v30, 0.0  ;;  %v7994_v30 = vmul.bf16 %v13670_v59, %v15010_v22 }
 0x782   : > { %v7533_v12 = vmax.f32 %v9452_v15, 0.0  ;;  %8026 = vrot.lane.b32.xlu0 %v7986_v19, %s9890_s25  ;;  %7768 = vrot.lane.b32.xlu1 %v13676_v21, %s9882_s15 }
 0x783   : > { %v13768_v14 = vpack.c.bf16 %v7532_v35, %v7524_v55 }
 0x784   : > { %v13777_v41 = vpack.c.bf16 %v7533_v12, %v7525_v26 }
 0x785   : > { %15021 = vst [vmem:[#allocation79_spill] sm:$0xff] %v13768_v14 }
 0x786   : > { %7766 = vrot.lane.b32.xlu0 %v13670_v59, %s9882_s15  ;;  %8470 = vrot.lane.b32.xlu1 %v13676_v21, %s9895_s10 }
 0x78a   : > { %7904 = vrot.lane.b32.xlu0 %v7856_v49, %s9888_s23  ;;  %8606 = vrot.lane.b32.xlu1 %v8559_v28, %s9880_s13 }
 0x78d   : > { %v7485_v18 = vpop.f32.mrb[40].mxu1 }
 0x78e   : > { %v9453_v61 = vadd.f32 %v7485_v18, %v13576_v11  ;;  %v7487_v29 = vpop.f32.mrb[41].mxu1  ;;  %7648 = vrot.lane.b32.xlu0 %v7599_v27, %s9887_s22  ;;  %7646 = vrot.lane.b32.xlu1 %v7598_v57, %s9887_s22  ;;  %v8301_v27 = vmul.bf16 %v13670_v59, %v15016_v40 }
 0x78f   : > { %v9454_v44 = vadd.f32 %v7487_v29, %v13576_v11  ;;  %v7489_v60 = vpop.f32.mrb[42].mxu1 }
 0x790   : > { %v9455_v53 = vadd.f32 %v7489_v60, %v13579_v36  ;;  %v7491_v1 = vpop.f32.mrb[43].mxu1  ;;  %v7510_v15 = vmax.f32 %v9453_v61, 0.0 }
 0x791   : > { %v9456_v32 = vadd.f32 %v7491_v1, %v13579_v36  ;;  %v7511_v11 = vmax.f32 %v9454_v44, 0.0  ;;  %v8163_v36 = vmul.bf16 %v13670_v59, %v15014_v56  ;;  %v8302_v56 = vmul.bf16 %v13676_v21, %v15015_v24 }
 0x792   : > { %v7518_v19 = vmax.f32 %v9455_v53, 0.0  ;;  %8044 = vrot.lane.b32.xlu0 %v7995_v46, %s9890_s25  ;;  %8042 = vrot.lane.b32.xlu1 %v7994_v30, %s9890_s25  ;;  %v7857_v24 = vmul.bf16 %v13676_v21, %v15019_v25  ;;  %v13857_v1 = vrot.slane %v13773_v50, %v8826_v52  ;;  %v8560_v30 = vmul.bf16 %v13676_v21, %v15017_v20  ;;  %v15023_v52 = vld [vmem:[#allocation49_spill] sm:$0xff] }
 0x793   : > { %v7519_v55 = vmax.f32 %v9456_v32, 0.0 }
 0x794   : > { %v13818_v35 = vpack.c.bf16 %v7518_v19, %v7510_v15  ;;  %v13820_v26 = vpop.permute.xlu1 %8446  ;;  %v13822_v12 = vpop.permute.xlu0 %7744  ;;  %v13870_v15 = vcombine.high %v13857_v1, %v13857_v1 }
 0x795   : > { %v13828_v22 = vpack.c.bf16 %v7519_v55, %v7511_v11  ;;  %v7495_v3 = vpop.f32.mrb[44].mxu1  ;;  %v15024_v55 = vld [vmem:[#allocation48_spill] sm:$0xff] }
 0x796   : > { %v9457_v13 = vadd.f32 %v7495_v3, %v13586_v10  ;;  %v7497_v34 = vpop.f32.mrb[45].mxu1  ;;  %8212 = vrot.lane.b32.xlu0 %v8164_v48, %s9884_s21  ;;  %8210 = vrot.lane.b32.xlu1 %v8163_v36, %s9884_s21  ;;  %v8294_v48 = vmul.bf16 %v13746_v7, %v15024_v55  ;;  %v15025_v36 = vld [vmem:[#allocation46_spill] sm:$0xff]  ;;  %v8303_v59 = vmul.bf16 %v13768_v14, %v15024_v55 }
 0x797   : > { %v9458_v63 = vadd.f32 %v7497_v34, %v13586_v10  ;;  %v7499_v49 = vpop.f32.mrb[46].mxu1  ;;  %8873 = vmatprep.mubr.bf16.mxu0 %v13870_v15  ;;  %v7591_v3 = vmul.bf16 %v13746_v7, %v15025_v36 }
 0x798   : > { %v9459_v28 = vadd.f32 %v7499_v49, %v13595_v5  ;;  %v7501_v8 = vpop.f32.mrb[47].mxu1  ;;  %v13835_v42 = vpop.permute.xlu1 %7746  ;;  %v7526_v61 = vmax.f32 %v9457_v13, 0.0 }
 0x799   : > { %v9460_v57 = vadd.f32 %v7501_v8, %v13595_v5  ;;  %v13842_v18 = vpop.permute.xlu0 %8584  ;;  %v7527_v10 = vmax.f32 %v9458_v63, 0.0  ;;  %v15026_v63 = vld [vmem:[#allocation53_spill] sm:$0xff] }
 0x79a   : > { %v7534_v29 = vmax.f32 %v9459_v28, 0.0  ;;  %8350 = vrot.lane.b32.xlu0 %v8302_v56, %s9881_s14  ;;  %8348 = vrot.lane.b32.xlu1 %v8301_v27, %s9881_s14  ;;  %v8552_v49 = vmul.bf16 %v13746_v7, %v15026_v63  ;;  %v15027_v28 = vld [vmem:[#allocation52_spill] sm:$0xff] }
 0x79b   : > { %v7535_v44 = vmax.f32 %v9460_v57, 0.0  ;;  %v7849_v8 = vmul.bf16 %v13746_v7, %v15027_v28  ;;  %v15028_v57 = vld [vmem:[#allocation54_spill] sm:$0xff] }
 0x79c   : > { %v13846_v60 = vpack.c.bf16 %v7534_v29, %v7526_v61  ;;  %v13848_v53 = vpop.permute.xlu1 %8448  ;;  %v7592_v61 = vmul.bf16 %v13748_v4, %v15028_v57  ;;  %v15029_v29 = vld [vmem:[#allocation50_spill] sm:$0xff]  ;;  %v7601_v54 = vmul.bf16 %v13777_v41, %v15028_v57 }
 0x79d   : > { %v13852_v40 = vpack.c.bf16 %v7535_v44, %v7527_v10  ;;  %v13854_v5 = vpop.permute.xlu0 %8586  ;;  %v7987_v10 = vmul.bf16 %v13746_v7, %v15029_v29  ;;  %v7996_v57 = vmul.bf16 %v13768_v14, %v15029_v29  ;;  %v7779_v29 = vsel %vm528_vm4, %v13822_v12, %v13835_v42 }
 0x79e   : > { %8454 = vrot.lane.b32.xlu0 %v13746_v7, %s9895_s10  ;;  %7906 = vrot.lane.b32.xlu1 %v7857_v24, %s9888_s23 }
 0x7a0   : > { %v7625_v46 = vpop.permute.xlu1 %7624 }
 0x7a1   : > { %v13864_v32 = vpop.permute.xlu0 %7626  ;;  %v7658_v25 = vsel %vm811_vm8, %v13753_v39, %v7625_v46  ;;  %v8156_v39 = vmul.bf16 %v13746_v7, %v15023_v52 }
 0x7a2   : > { %7754 = vrot.lane.b32.xlu0 %v13748_v4, %s9882_s15  ;;  %8608 = vrot.lane.b32.xlu1 %v8560_v30, %s9880_s13  ;;  %v7659_v50 = vsel %vm811_vm8, %v7625_v46, %v13864_v32  ;;  %v15030_v46 = vld [vmem:[#allocation55_spill] sm:$0xff] }
 0x7a3   : > { %8841 = vmatprep.subr.bf16.mxu0 %v7659_v50  ;;  %v7850_v30 = vmul.bf16 %v13748_v4, %v15030_v46 }
 0x7a4   : > { %8842 = vmatpush1.bf16.msra.mxu0 %v7658_v25  ;;  %v13878_v20 = vpop.permute.xlu1 %7882  ;;  %v8553_v25 = vmul.bf16 %v13748_v4, %v11966_v17 }
 0x7a5   : > { %v13882_v19 = vpop.permute.xlu0 %7884 }
 0x7a6   : > { %8196 = vrot.lane.b32.xlu0 %v8156_v39, %s9884_s21  ;;  %7752 = vrot.lane.b32.xlu1 %v13746_v7, %s9882_s15 }
 0x7a8   : > { %v13887_v11 = vpop.permute.xlu1 %8020 }
 0x7a9   : > { %v13893_v13 = vpop.permute.xlu0 %8022 }
 0x7aa   : > { %8334 = vrot.lane.b32.xlu0 %v8294_v48, %s9881_s14  ;;  %7632 = vrot.lane.b32.xlu1 %v7591_v3, %s9887_s22  ;;  %v15031_v48 = vld [vmem:[#allocation56_spill] sm:$0xff] }
 0x7ab   : > { %v7988_v3 = vmul.bf16 %v13748_v4, %v15031_v48 }
 0x7ac   : > { %v13897_v34 = vpop.permute.xlu1 %8188 }
 0x7ad   : > { %v13903_v56 = vpop.permute.xlu0 %8464 }
 0x7ae   : > { %8592 = vrot.lane.b32.xlu0 %v8552_v49, %s9880_s13  ;;  %7890 = vrot.lane.b32.xlu1 %v7849_v8, %s9888_s23  ;;  %v8157_v49 = vmul.bf16 %v13748_v4, %v14953_v2 }
 0x7b0   : > { %v13907_v27 = vpop.permute.xlu1 %8326 }
 0x7b1   : > { %v13913_v44 = vpop.permute.xlu0 %7764 }
 0x7b2   : > { %7634 = vrot.lane.b32.xlu0 %v7592_v61, %s9887_s22  ;;  %8028 = vrot.lane.b32.xlu1 %v7987_v10, %s9890_s25 }
 0x7b4   : > { %v13917_v24 = vpop.permute.xlu1 %8190 }
 0x7b5   : > { %v13923_v50 = vpop.permute.xlu0 %8466 }
 0x7b6   : > { %7892 = vrot.lane.b32.xlu0 %v7850_v30, %s9888_s23  ;;  %8594 = vrot.lane.b32.xlu1 %v8553_v25, %s9880_s13  ;;  %v8165_v25 = vmul.bf16 %v13768_v14, %v15023_v52 }
 0x7b8   : > { %v13927_v39 = vpop.permute.xlu1 %8328 }
 0x7b9   : > { %v13933_v8 = vpop.permute.xlu0 %8602 }
 0x7ba   : > { %8030 = vrot.lane.b32.xlu0 %v7988_v3, %s9890_s25  ;;  %8198 = vrot.lane.b32.xlu1 %v8157_v49, %s9884_s21  ;;  %v8561_v49 = vmul.bf16 %v13768_v14, %v15026_v63  ;;  %v7859_v63 = vmul.bf16 %v13777_v41, %v15030_v46 }
 0x7bc   : > { %v7763_v61 = vpop.permute.xlu1 %7762 }
 0x7bd   : > { %v13937_v10 = vpop.permute.xlu0 %7900 }
 0x7be   : > { %8472 = vrot.lane.b32.xlu0 %v13768_v14, %s9895_s10  ;;  %7770 = vrot.lane.b32.xlu1 %v13768_v14, %s9882_s15 }
 0x7c0   : > { %v7643_v30 = vpop.permute.xlu1 %7642 }
 0x7c1   : > { %v13945_v7 = vpop.permute.xlu0 %8038  ;;  %v7666_v46 = vsel %vm811_vm8, %v13775_v51, %v7643_v30 }
 0x7c2   : > { %7772 = vrot.lane.b32.xlu0 %v13777_v41, %s9882_s15  ;;  %8214 = vrot.lane.b32.xlu1 %v8165_v25, %s9884_s21  ;;  %v7600_v25 = vmul.bf16 %v13768_v14, %v15025_v36 }
 0x7c4   : > { %v13950_v3 = vpop.permute.xlu1 %7902 }
 0x7c5   : > { %v13956_v21 = vpop.permute.xlu0 %8206 }
 0x7c6   : > { %8610 = vrot.lane.b32.xlu0 %v8561_v49, %s9880_s13  ;;  %8352 = vrot.lane.b32.xlu1 %v8303_v59, %s9881_s14  ;;  %v7858_v59 = vmul.bf16 %v13768_v14, %v15027_v28 }
 0x7c8   : > { %v13960_v52 = vpop.permute.xlu1 %8040 }
 0x7c9   : > { %v13966_v33 = vpop.permute.xlu0 %8344 }
 0x7ca   : > { %7652 = vrot.lane.b32.xlu0 %v7601_v54, %s9887_s22  ;;  %7650 = vrot.lane.b32.xlu1 %v7600_v25, %s9887_s22  ;;  %v7997_v54 = vmul.bf16 %v13777_v41, %v15031_v48  ;;  %v8562_v48 = vmul.bf16 %v13777_v41, %v11966_v17  ;;  %v8620_v17 = vsel %vm425_vm0, %v13842_v18, %v13854_v5 }
 0x7cc   : > { %v13970_v55 = vpop.permute.xlu1 %7748 }
 0x7cd   : > { %v13976_v49 = vpop.permute.xlu0 %8604 }
 0x7ce   : > { %7910 = vrot.lane.b32.xlu0 %v7859_v63, %s9888_s23  ;;  %7908 = vrot.lane.b32.xlu1 %v7858_v59, %s9888_s23  ;;  %v9840_v59 = vunpack.i.l.bf16 %v13766_v31 }
 0x7d0   : > { %v13980_v36 = vpop.permute.xlu1 %8452  ;;  %v7778_v51 = vsel %vm528_vm4, %v9840_v59, %v13822_v12  ;;  %v15033_v59 = vld [vmem:[#allocation60_spill] sm:$0xff] }
 0x7d1   : > { %15032 = vst [vmem:[#allocation12_spill] sm:$0xff] %v13980_v36  ;;  %v13986_v25 = vpop.permute.xlu0 %7644  ;;  %v15037_v36 = vld [vmem:[#allocation42_spill] sm:$0xff] }
 0x7d2   : > { %8048 = vrot.lane.b32.xlu0 %v7997_v54, %s9890_s25  ;;  %8046 = vrot.lane.b32.xlu1 %v7996_v57, %s9890_s25  ;;  %v7667_v28 = vsel %vm811_vm8, %v7643_v30, %v13986_v25 }
 0x7d3   : > { %8843 = vmatprep.subr.bf16.mxu0 %v7667_v28  ;;  %v7787_v28 = vsel %vm528_vm4, %v7763_v61, %v13913_v44 }
 0x7d4   : > { %8844 = vmatpush1.bf16.msra.mxu0 %v7666_v46  ;;  %v13994_v63 = vpop.permute.xlu1 %8588  ;;  %v8554_v46 = vmul.bf16 %v13818_v35, %v11951_v9 }
 0x7d5   : > { %8845 = vmatprep.subr.bf16.mxu0 %v7779_v29  ;;  %v14002_v54 = vpop.permute.xlu0 %8208  ;;  %v8621_v57 = vsel %vm425_vm0, %v13854_v5, %v13994_v63  ;;  %v9841_v29 = vunpack.i.h.bf16 %v13766_v31  ;;  %v7917_v5 = vsel %vm1228_vm9, %v13878_v20, %v13882_v19  ;;  %v7593_v31 = vmul.bf16 %v13818_v35, %v15033_v59 }
 0x7d6   : > { %7758 = vrot.lane.b32.xlu0 %v13828_v22, %s9882_s15  ;;  %8612 = vrot.lane.b32.xlu1 %v8562_v48, %s9880_s13 }
 0x7d7   : > { %8882 = vmatprep.subr.bf16.mxu1 %v8621_v57  ;;  %v7786_v12 = vsel %vm528_vm4, %v9841_v29, %v7763_v61  ;;  %v15034_v57 = vld [vmem:[#allocation41_spill] sm:$0xff]  ;;  %v7916_v61 = vsel %vm1228_vm9, %v13792_v0, %v13878_v20  ;;  %v15035_v29 = vld [vmem:[#allocation71_spill] sm:$0xff]  ;;  %v7924_v0 = vsel %vm1228_vm9, %v13790_v6, %v13937_v10  ;;  %v8054_v6 = vsel %vm1593_vm10, %v13808_v38, %v13887_v11 }
 0x7d8   : > { %8846 = vmatpush1.bf16.msra.mxu0 %v7778_v51  ;;  %8883 = vmatpush1.bf16.msra.mxu1 %v8620_v17  ;;  %v14015_v30 = vpop.permute.xlu1 %7886  ;;  %v7594_v51 = vmul.bf16 %v13828_v22, %v15034_v57 }
 0x7d9   : > { %v14022_v48 = vpop.permute.xlu0 %8346  ;;  %8847 = vmatprep.subr.bf16.mxu0 %v7787_v28 }
 0x7da   : > { %7756 = vrot.lane.b32.xlu1 %v13818_v35, %s9882_s15  ;;  %8596 = vrot.lane.b32.xlu0 %v8554_v46, %s9880_s13  ;;  %v7925_v46 = vsel %vm1228_vm9, %v13937_v10, %v13950_v3 }
 0x7dc   : > { %8848 = vmatpush1.bf16.msra.mxu0 %v7786_v12  ;;  %v14028_v18 = vpop.permute.xlu1 %8024  ;;  %v7851_v12 = vmul.bf16 %v13818_v35, %v15035_v29 }
 0x7dd   : > { %v14037_v17 = vpop.permute.xlu0 %8450  ;;  %8849 = vmatprep.subr.bf16.mxu0 %v7917_v5  ;;  %v7852_v5 = vmul.bf16 %v13828_v22, %v11518_v45 }
 0x7de   : > { %7636 = vrot.lane.b32.xlu1 %v7593_v31, %s9887_s22  ;;  %7638 = vrot.lane.b32.xlu0 %v7594_v51, %s9887_s22  ;;  %v8055_v51 = vsel %vm1593_vm10, %v13887_v11, %v13893_v13  ;;  %v7602_v11 = vmul.bf16 %v13846_v60, %v15033_v59 }
 0x7e0   : > { %8850 = vmatpush1.bf16.msra.mxu0 %v7916_v61  ;;  %v14044_v28 = vpop.permute.xlu1 %7630  ;;  %v15036_v61 = vld [vmem:[#allocation72_spill] sm:$0xff] }
 0x7e1   : > { %v14053_v31 = vpop.permute.xlu0 %7750  ;;  %8851 = vmatprep.subr.bf16.mxu0 %v7925_v46  ;;  %v7989_v14 = vmul.bf16 %v13818_v35, %v15036_v61  ;;  %v7990_v46 = vmul.bf16 %v13828_v22, %v15037_v36 }
 0x7e2   : > { %7894 = vrot.lane.b32.xlu1 %v7851_v12, %s9888_s23  ;;  %7896 = vrot.lane.b32.xlu0 %v7852_v5, %s9888_s23  ;;  %v8063_v5 = vsel %vm1593_vm10, %v13945_v7, %v13960_v52 }
 0x7e4   : > { %8852 = vmatpush1.bf16.msra.mxu0 %v7924_v0  ;;  %v14060_v20 = vpop.permute.xlu1 %8194 }
 0x7e5   : > { %v14069_v12 = vpop.permute.xlu0 %7628  ;;  %8853 = vmatprep.subr.bf16.mxu0 %v8055_v51 }
 0x7e6   : > { %8032 = vrot.lane.b32.xlu1 %v7989_v14, %s9890_s25  ;;  %8034 = vrot.lane.b32.xlu0 %v7990_v46, %s9890_s25  ;;  %v8062_v14 = vsel %vm1593_vm10, %v13805_v23, %v13945_v7  ;;  %v8563_v46 = vmul.bf16 %v13846_v60, %v11951_v9  ;;  %v8166_v9 = vmul.bf16 %v13777_v41, %v14953_v2  ;;  %v15038_v23 = vld [vmem:[#allocation65_spill] sm:$0xff] }
 0x7e7   : > { %v8158_v59 = vmul.bf16 %v13818_v35, %v15038_v23  ;;  %v7860_v2 = vmul.bf16 %v13846_v60, %v15035_v29  ;;  %v7998_v29 = vmul.bf16 %v13846_v60, %v15036_v61 }
 0x7e8   : > { %8854 = vmatpush1.bf16.msra.mxu0 %v8054_v6  ;;  %v14076_v10 = vpop.permute.xlu1 %8332 }
 0x7e9   : > { %v8193_v0 = vpop.permute.xlu0 %8192  ;;  %8855 = vmatprep.subr.bf16.mxu0 %v8063_v5 }
 0x7ea   : > { %v14083_v51 = vsel %vm1523_vm7, %v8193_v0, %v14060_v20  ;;  %7774 = vrot.lane.b32.xlu1 %v13846_v60, %s9882_s15  ;;  %7776 = vrot.lane.b32.xlu0 %v13852_v40, %s9882_s15 }
 0x7ec   : > { %8856 = vmatpush1.bf16.msra.mxu0 %v8062_v14  ;;  %v14092_v38 = vpop.permute.xlu1 %8590 }
 0x7ed   : > { %v14098_v6 = vpop.permute.xlu0 %8330  ;;  %8857 = vmatprep.subr.bf16.mxu0 %v13588_v37 }
 0x7ee   : > { %v14104_v5 = vsel %vm1158_vm5, %v14098_v6, %v14076_v10  ;;  %7654 = vrot.lane.b32.xlu1 %v7602_v11, %s9887_s22  ;;  %8614 = vrot.lane.b32.xlu0 %v8563_v46, %s9880_s13  ;;  %v7603_v11 = vmul.bf16 %v13852_v40, %v15034_v57  ;;  %v8167_v57 = vmul.bf16 %v13846_v60, %v15038_v23  ;;  %v15042_v23 = vld [vmem:[#allocation10_spill] sm:$0xff] }
 0x7f0   : > { %8858 = vmatpush1.bf16.msra.mxu0 %v13584_v58  ;;  %v14109_v7 = vpop.permute.xlu1 %8468  ;;  %v8225_v58 = vsel %vm1523_vm7, %v13917_v24, %v8193_v0 }
 0x7f1   : > { %v14115_v37 = vpop.permute.xlu0 %7888  ;;  %8859 = vmatprep.subr.bf16.mxu0 %v13609_v16 }
 0x7f2   : > { %8216 = vrot.lane.b32.xlu1 %v8166_v9, %s9884_s21  ;;  %8200 = vrot.lane.b32.xlu0 %v8158_v59, %s9884_s21 }
 0x7f4   : > { %8860 = vmatpush1.bf16.msra.mxu0 %v13605_v43  ;;  %v14121_v14 = vpop.permute.xlu1 %7768  ;;  %v8224_v43 = vsel %vm1523_vm7, %v13897_v34, %v13917_v24  ;;  %v15041_v24 = vld [vmem:[#allocation11_spill] sm:$0xff] }
 0x7f5   : > { %v14129_v46 = vpop.permute.xlu0 %8026  ;;  %8861 = vmatprep.subr.bf16.mxu0 %v8225_v58  ;;  %v8159_v59 = vmul.bf16 %v13828_v22, %v15041_v24 }
 0x7f6   : > { %7912 = vrot.lane.b32.xlu1 %v7860_v2, %s9888_s23  ;;  %7656 = vrot.lane.b32.xlu0 %v7603_v11, %s9887_s22  ;;  %v8628_v2 = vsel %vm425_vm0, %v13933_v8, %v13976_v49  ;;  %v7660_v8 = vsel %vm811_vm8, %v13864_v32, %v14069_v12 }
 0x7f8   : > { %8862 = vmatpush1.bf16.msra.mxu0 %v8224_v43  ;;  %v14136_v16 = vpop.permute.xlu1 %8470  ;;  %v7661_v43 = vsel %vm811_vm8, %v14069_v12, %v14044_v28 }
 0x7f9   : > { %15039 = vst [vmem:[#allocation16_spill] sm:$0xff] %v14136_v16  ;;  %v14145_v0 = vsel %vm2839_vm11, %v14109_v7, %v14136_v16  ;;  %v7767_v9 = vpop.permute.xlu0 %7766 }
 0x7fa   : > { %15040 = vst [vmem:[#allocation51_spill] sm:$0xff] %v14145_v0  ;;  %8050 = vrot.lane.b32.xlu1 %v7998_v29, %s9890_s25  ;;  %8218 = vrot.lane.b32.xlu0 %v8167_v57, %s9884_s21  ;;  %v15043_v29 = vld [vmem:[#allocation67_spill] sm:$0xff]  ;;  %v15044_v0 = vld [vmem:[#allocation68_spill] sm:$0xff] }
 0x7fb   : > { %v8295_v57 = vmul.bf16 %v13748_v4, %v15043_v29 }
 0x7fc   : > { %v14149_v34 = vpop.permute.xlu1 %8606 }
 0x7fd   : > { %v14153_v58 = vpop.permute.xlu0 %7904  ;;  %v8629_v61 = vsel %vm425_vm0, %v13976_v49, %v14149_v34 }
 0x7fe   : > { %8202 = vrot.lane.b32.xlu1 %v8159_v59, %s9884_s21  ;;  %8204 = vrot.lane.b32.xlu0 %v15042_v23, %s9884_s21  ;;  %v8296_v59 = vmul.bf16 %v13818_v35, %v15044_v0 }
 0x7ff   : > { %8884 = vmatprep.subr.bf16.mxu1 %v8629_v61 }
 0x800   : > { %8885 = vmatpush1.bf16.msra.mxu1 %v8628_v2  ;;  %v7647_v11 = vpop.permute.xlu1 %7646  ;;  %v8304_v2 = vmul.bf16 %v13777_v41, %v15043_v29  ;;  %v7781_v29 = vsel %vm528_vm4, %v13970_v55, %v14053_v31 }
 0x801   : > { %8923 = vmatprep.subr.bf16.mxu1 %v7661_v43  ;;  %v14171_v16 = vpop.permute.xlu0 %7648  ;;  %v7861_v43 = vmul.bf16 %v13852_v40, %v11518_v45  ;;  %v7668_v32 = vsel %vm811_vm8, %v13986_v25, %v7647_v11  ;;  %v15045_v45 = vld [vmem:[#allocation73_spill] sm:$0xff]  ;;  %v8232_v25 = vsel %vm1523_vm7, %v13956_v21, %v14002_v54 }
 0x802   : > { %8336 = vrot.lane.b32.xlu1 %v8295_v57, %s9881_s14  ;;  %8338 = vrot.lane.b32.xlu0 %v8296_v59, %s9881_s14  ;;  %v7669_v61 = vsel %vm811_vm8, %v7647_v11, %v14171_v16  ;;  %v8297_v59 = vmul.bf16 %v13828_v22, %v15045_v45  ;;  %v7780_v11 = vsel %vm528_vm4, %v13835_v42, %v13970_v55 }
 0x803   : > { %9390 = vmatmul.mubr.msk.bf16.vlgmr.msra.gmra.mrb[48].mxu1 %vm528_vm4, %v13796_v47  ;;  %v7788_v42 = vsel %vm528_vm4, %v13913_v44, %v7767_v9  ;;  %v8362_v55 = vsel %vm1158_vm5, %v13907_v27, %v13927_v39  ;;  %v8370_v27 = vsel %vm1158_vm5, %v13966_v33, %v14022_v48 }
 0x804   : > { %8924 = vmatpush1.bf16.msra.mxu1 %v7660_v8  ;;  %v14180_v49 = vpop.permute.xlu1 %8042  ;;  %8955 = vmatprep.mubr.bf16.mxu1 %v13870_v15 }
 0x805   : > { %8925 = vmatprep.subr.bf16.mxu1 %v7669_v61  ;;  %v14189_v57 = vpop.permute.xlu0 %8044 }
 0x806   : > { %8354 = vrot.lane.b32.xlu1 %v8304_v2, %s9881_s14  ;;  %7914 = vrot.lane.b32.xlu0 %v7861_v43, %s9888_s23  ;;  %v7789_v43 = vsel %vm528_vm4, %v7767_v9, %v14121_v14 }
 0x808   : > { %8926 = vmatpush1.bf16.msra.mxu1 %v7668_v32  ;;  %v14195_v12 = vpop.permute.xlu1 %8210  ;;  %v7999_v32 = vmul.bf16 %v13852_v40, %v15037_v36  ;;  %v7919_v36 = vsel %vm1228_vm9, %v14015_v30, %v14115_v37 }
 0x809   : > { %8927 = vmatprep.subr.bf16.mxu1 %v7781_v29  ;;  %v14202_v8 = vpop.permute.xlu0 %8212  ;;  %v8233_v61 = vsel %vm1523_vm7, %v14002_v54, %v14195_v12  ;;  %v8305_v29 = vmul.bf16 %v13846_v60, %v15044_v0 }
 0x80a   : > { %8340 = vrot.lane.b32.xlu1 %v8297_v59, %s9881_s14  ;;  %8222 = vrot.lane.b32.xlu0 %v15042_v23, %s9884_s21  ;;  %v8363_v23 = vsel %vm1158_vm5, %v13927_v39, %v14098_v6  ;;  %v7918_v39 = vsel %vm1228_vm9, %v13882_v19, %v14015_v30  ;;  %v8483_v59 = vsel %vm2839_vm11, %v13848_v53, %v14037_v17  ;;  %v15046_v19 = vld [vmem:[#allocation74_spill] sm:$0xff] }
 0x80b   : > { %8863 = vmatprep.subr.bf16.mxu0 %v8233_v61  ;;  %v8168_v61 = vmul.bf16 %v13852_v40, %v15041_v24  ;;  %v7926_v30 = vsel %vm1228_vm9, %v13950_v3, %v14153_v58 }
 0x80c   : > { %8864 = vmatpush1.bf16.msra.mxu0 %v8232_v25  ;;  %8928 = vmatpush1.bf16.msra.mxu1 %v7780_v11  ;;  %v14216_v2 = vpop.permute.xlu1 %8348  ;;  %v8057_v25 = vsel %vm1593_vm10, %v14028_v18, %v14129_v46  ;;  %v8491_v11 = vsel %vm2839_vm11, %v13923_v50, %v14109_v7  ;;  %v8065_v7 = vsel %vm1593_vm10, %v14180_v49, %v14189_v57 }
 0x80d   : > { %8929 = vmatprep.subr.bf16.mxu1 %v7789_v43  ;;  %v14225_v21 = vpop.permute.xlu0 %8350  ;;  %8865 = vmatprep.subr.bf16.mxu0 %v8363_v23  ;;  %v8371_v6 = vsel %vm1158_vm5, %v14022_v48, %v14216_v2  ;;  %v8482_v48 = vsel %vm2839_vm11, %v13820_v26, %v13848_v53  ;;  %v8490_v26 = vsel %vm2839_vm11, %v13903_v56, %v13923_v50  ;;  %v15047_v50 = vld [vmem:[#allocation45_spill] sm:$0xff] }
 0x80e   : > { %8456 = vrot.lane.b32.xlu1 %v13748_v4, %s9895_s10  ;;  %8052 = vrot.lane.b32.xlu0 %v7999_v32, %s9890_s25  ;;  %v8056_v53 = vsel %vm1593_vm10, %v13893_v13, %v14028_v18  ;;  %v8064_v13 = vsel %vm1593_vm10, %v13960_v52, %v14180_v49  ;;  %v8555_v18 = vmul.bf16 %v13828_v22, %v15047_v50 }
 0x80f   : > { %v8622_v49 = vsel %vm425_vm0, %v13994_v63, %v14092_v38 }
 0x810   : > { %8866 = vmatpush1.bf16.msra.mxu0 %v8362_v55  ;;  %8930 = vmatpush1.bf16.msra.mxu1 %v7788_v42  ;;  %v14235_v54 = vpop.permute.xlu1 %7906  ;;  %v15049_v42 = vld [vmem:[#allocation64_spill] sm:$0xff] }
 0x811   : > { %8931 = vmatprep.subr.bf16.mxu1 %v7919_v36  ;;  %v14245_v44 = vpop.permute.xlu0 %8454  ;;  %8867 = vmatprep.subr.bf16.mxu0 %v8371_v6  ;;  %v7927_v9 = vsel %vm1228_vm9, %v14153_v58, %v14235_v54  ;;  %v8306_v58 = vmul.bf16 %v13852_v40, %v15045_v45  ;;  %v15048_v45 = vld [vmem:[#allocation77_spill] sm:$0xff]  ;;  %v15050_v36 = vld [vmem:[#allocation19_spill] sm:$0xff] }
 0x812   : > { %8474 = vrot.lane.b32.xlu1 %v13777_v41, %s9895_s10  ;;  %8356 = vrot.lane.b32.xlu0 %v8305_v29, %s9881_s14  ;;  %v15051_v29 = vld [vmem:[#allocation57_spill] sm:$0xff] }
 0x814   : > { %8868 = vmatpush1.bf16.msra.mxu0 %v8370_v27  ;;  %8932 = vmatpush1.bf16.msra.mxu1 %v7918_v39  ;;  %v14256_v0 = vpop.permute.xlu1 %8608 }
 0x815   : > { %8933 = vmatprep.subr.bf16.mxu1 %v7927_v9  ;;  %v14266_v33 = vpop.permute.xlu0 %7754  ;;  %8869 = vmatprep.subr.bf16.mxu0 %v8483_v59  ;;  %v15052_v9 = vld [vmem:[#allocation44_spill] sm:$0xff]  ;;  %v8813_v59 = vld [vmem:[%s14600_s7] sm:$0x7] }
 0x816   : > { %8220 = vrot.lane.b32.xlu1 %v8168_v61, %s9884_s21  ;;  %8342 = vrot.lane.b32.xlu0 %v15046_v19, %s9881_s14 }
 0x818   : > { %8870 = vmatpush1.bf16.msra.mxu0 %v8482_v48  ;;  %8934 = vmatpush1.bf16.msra.mxu1 %v7926_v30  ;;  %v14277_v24 = vpop.permute.xlu1 %7752 }
 0x819   : > { %8935 = vmatprep.subr.bf16.mxu1 %v8057_v25  ;;  %v14285_v43 = vpop.permute.xlu0 %8196  ;;  %8871 = vmatprep.subr.bf16.mxu0 %v8491_v11  ;;  %v8234_v11 = vsel %vm1523_vm7, %v14195_v12, %v14202_v8 }
 0x81a   : > { %8460 = vrot.lane.b32.xlu1 %v13828_v22, %s9895_s10  ;;  %8458 = vrot.lane.b32.xlu0 %v13818_v35, %s9895_s10  ;;  %v8227_v63 = vsel %vm1523_vm7, %v14060_v20, %v14285_v43 }
 0x81c   : > { %8872 = vmatpush1.bf16.msra.mxu0 %v8490_v26  ;;  %8936 = vmatpush1.bf16.msra.mxu1 %v8056_v53  ;;  %v14297_v3 = vpop.permute.xlu1 %7632 }
 0x81d   : > { %8937 = vmatprep.subr.bf16.mxu1 %v8065_v7  ;;  %v14304_v23 = vpop.permute.xlu0 %8334 }
 0x81e   : > { %8358 = vrot.lane.b32.xlu1 %v8306_v58, %s9881_s14  ;;  %8360 = vrot.lane.b32.xlu0 %v15046_v19, %s9881_s14  ;;  %v8365_v26 = vsel %vm1158_vm5, %v14076_v10, %v14304_v23 }
 0x81f   : > { %8874 = vmatmul.mubr.bf16.vlgmr.msra.gmra.mrb[48].mxu0 %v13857_v1 }
 0x820   : > { %8938 = vmatpush1.bf16.msra.mxu1 %v8064_v13  ;;  %v14313_v56 = vpop.permute.xlu1 %7890  ;;  %8996 = vmatprep.mubr.bf16.mxu0 %v14966_v62  ;;  %v8630_v13 = vsel %vm425_vm0, %v14149_v34, %v14256_v0  ;;  %v8372_v34 = vsel %vm1158_vm5, %v14216_v2, %v14225_v21 }
 0x821   : > { %8939 = vmatprep.subr.bf16.mxu1 %v15048_v45  ;;  %v14319_v32 = vpop.permute.xlu0 %8592 }
 0x822   : > { %8598 = vrot.lane.b32.xlu1 %v8555_v18, %s9880_s13  ;;  %8476 = vrot.lane.b32.xlu0 %v13846_v60, %s9895_s10  ;;  %v8623_v52 = vsel %vm425_vm0, %v14092_v38, %v14319_v32  ;;  %v8564_v38 = vmul.bf16 %v13852_v40, %v15047_v50 }
 0x823   : > { %8964 = vmatprep.subr.bf16.mxu0 %v8623_v52 }
 0x824   : > { %8940 = vmatpush1.bf16.msra.mxu1 %v15049_v42  ;;  %8965 = vmatpush1.bf16.msra.mxu0 %v8622_v49  ;;  %v14331_v55 = vpop.permute.xlu1 %8028 }
 0x825   : > { %8941 = vmatprep.subr.bf16.mxu1 %v15050_v36  ;;  %v14334_v6 = vpop.permute.xlu0 %7634  ;;  %v7783_v36 = vsel %vm528_vm4, %v14277_v24, %v14266_v33 }
 0x826   : > { %8478 = vrot.lane.b32.xlu1 %v13852_v40, %s9895_s10  ;;  %8462 = vrot.lane.b32.xlu0 %v14966_v62, %s9895_s10 }
 0x828   : > { %8942 = vmatpush1.bf16.msra.mxu1 %v15051_v29  ;;  %v14341_v27 = vpop.permute.xlu1 %8594 }
 0x829   : > { %8943 = vmatprep.subr.bf16.mxu1 %v8227_v63  ;;  %v14348_v39 = vpop.permute.xlu0 %7892 }
 0x82a   : > { %8616 = vrot.lane.b32.xlu1 %v8564_v38, %s9880_s13  ;;  %8600 = vrot.lane.b32.xlu0 %v15052_v9, %s9880_s13 }
 0x82c   : > { %8944 = vmatpush1.bf16.msra.mxu1 %v14083_v51  ;;  %v14357_v61 = vpop.permute.xlu1 %8198 }
 0x82d   : > { %v14359_v20 = vpop.permute.xlu0 %8030 }
 0x82e   : > { %8816 = vperm.xlu1 %9825, %v8813_v59   ;;  %8480 = vrot.lane.b32.xlu0 %v14966_v62, %s9895_s10 }
 0x830   : > { %v7771_v19 = vpop.permute.xlu1 %7770 }
 0x831   : > { %v14363_v30 = vpop.permute.xlu0 %8472  ;;  %v7790_v59 = vsel %vm528_vm4, %v14121_v14, %v7771_v19  ;;  %v7920_v14 = vsel %vm1228_vm9, %v14115_v37, %v14313_v56  ;;  %v8059_v37 = vsel %vm1593_vm10, %v14331_v55, %v14359_v20 }
 0x832   : > { %8618 = vrot.lane.b32.xlu0 %v15052_v9, %s9880_s13  ;;  %s9396_s13 = sshll.u32 %s15059_s28, 5 }
 0x833   : > { %s14581_s23 = scalar_lea.vmem %s14601_s8, %s9396_s13 }
 0x834   : > { %v14367_v48 = vpop.permute.xlu1 %8214 }
 0x835   : > { %v14369_v25 = vpop.permute.xlu0 %7772  ;;  %v8235_v51 = vsel %vm1523_vm7, %v14202_v8, %v14367_v48  ;;  %v7663_v8 = vsel %vm811_vm8, %v14297_v3, %v14334_v6 }
 0x836   : > { %8945 = vmatprep.subr.bf16.mxu1 %v8235_v51  ;;  %v7791_v38 = vsel %vm528_vm4, %v7771_v19, %v14369_v25  ;;  %v8624_v19 = vsel %vm425_vm0, %v14319_v32, %v14341_v27  ;;  %v8058_v32 = vsel %vm1593_vm10, %v14129_v46, %v14331_v55 }
 0x837   : > { %8946 = vmatpush1.bf16.msra.mxu1 %v8234_v11 }
 0x838   : > { %v14380_v53 = vpop.permute.xlu1 %8352  ;;  %8947 = vmatprep.subr.bf16.mxu1 %v8365_v26 }
 0x839   : > { %v14382_v7 = vpop.permute.xlu0 %8610  ;;  %v8373_v10 = vsel %vm1158_vm5, %v14225_v21, %v14380_v53  ;;  %v15054_v21 = vld [vmem:[#allocation16_spill] sm:$0xff] }
 0x83a   : > { %v8631_v58 = vsel %vm425_vm0, %v14256_v0, %v14382_v7  ;;  %v15053_v0 = vld [vmem:[#allocation12_spill] sm:$0xff] }
 0x83b   : > { %8966 = vmatprep.subr.bf16.mxu0 %v8631_v58  ;;  %8948 = vmatpush1.bf16.msra.mxu1 %v14104_v5  ;;  %v7662_v5 = vsel %vm811_vm8, %v14044_v28, %v14297_v3  ;;  %v8485_v18 = vsel %vm2839_vm11, %v15053_v0, %v14245_v44  ;;  %v8484_v28 = vsel %vm2839_vm11, %v14037_v17, %v15053_v0 }
 0x83c   : > { %8967 = vmatpush1.bf16.msra.mxu0 %v8630_v13  ;;  %v7651_v12 = vpop.permute.xlu1 %7650  ;;  %8949 = vmatprep.subr.bf16.mxu1 %v8373_v10  ;;  %v8493_v3 = vsel %vm2839_vm11, %v15054_v21, %v14363_v30  ;;  %v7782_v17 = vsel %vm528_vm4, %v14053_v31, %v14277_v24  ;;  %v7921_v31 = vsel %vm1228_vm9, %v14313_v56, %v14348_v39 }
 0x83d   : > { %v14397_v50 = vpop.permute.xlu0 %7652  ;;  %9005 = vmatprep.subr.bf16.mxu0 %v7663_v8  ;;  %v7670_v2 = vsel %vm811_vm8, %v14171_v16, %v7651_v12  ;;  %v15055_v16 = vld [vmem:[#allocation51_spill] sm:$0xff]  ;;  %v8228_v21 = vsel %vm1523_vm7, %v14285_v43, %v14357_v61 }
 0x83e   : > { %v7671_v52 = vsel %vm811_vm8, %v7651_v12, %v14397_v50 }
 0x83f   : > { %8950 = vmatpush1.bf16.msra.mxu1 %v8372_v34  ;;  %9391 = vmatmul.mubr.msk.bf16.vlgmr.msra.gmra.mrb[52].mxu0 %vm528_vm4, %v13796_v47 }
 0x840   : > { %9006 = vmatpush1.bf16.msra.mxu0 %v7662_v5  ;;  %v7909_v45 = vpop.permute.xlu1 %7908  ;;  %8951 = vmatprep.subr.bf16.mxu1 %v8485_v18  ;;  %v15056_v18 = vld [vmem:[#allocation20_spill] sm:$0xff] }
 0x841   : > { %v14412_v49 = vpop.permute.xlu0 %7910  ;;  %9007 = vmatprep.subr.bf16.mxu0 %v7671_v52  ;;  %9037 = vmatprep.mubr.bf16.mxu0 %v13870_v15  ;;  %v7928_v10 = vsel %vm1228_vm9, %v14235_v54, %v7909_v45 }
 0x842   : > { %v7929_v58 = vsel %vm1228_vm9, %v7909_v45, %v14412_v49 }
 0x843   : > { %8952 = vmatpush1.bf16.msra.mxu1 %v8484_v28 }
 0x844   : > { %9008 = vmatpush1.bf16.msra.mxu0 %v7670_v2  ;;  %v8047_v42 = vpop.permute.xlu1 %8046  ;;  %8953 = vmatprep.subr.bf16.mxu1 %v8493_v3 }
 0x845   : > { %v14426_v29 = vpop.permute.xlu0 %8048  ;;  %9009 = vmatprep.subr.bf16.mxu0 %v7783_v36  ;;  %v8066_v34 = vsel %vm1593_vm10, %v14189_v57, %v8047_v42  ;;  %v15057_v57 = vld [vmem:[#allocation79_spill] sm:$0xff] }
 0x846   : > { %v8067_v8 = vsel %vm1593_vm10, %v8047_v42, %v14426_v29 }
 0x847   : > { %8954 = vmatpush1.bf16.msra.mxu1 %v15055_v16 }
 0x848   : > { %9010 = vmatpush1.bf16.msra.mxu0 %v7782_v17  ;;  %v8613_v63 = vpop.permute.xlu1 %8612 }
 0x849   : > { %v14434_v9 = vpop.permute.xlu0 %7758  ;;  %9011 = vmatprep.subr.bf16.mxu0 %v7791_v38  ;;  %v8632_v52 = vsel %vm425_vm0, %v14382_v7, %v8613_v63 }
 0x84a   : > { %8956 = vmatmul.mubr.bf16.vlgmr.msra.gmra.mrb[52].mxu1 %v13857_v1 }
 0x84b   : > { %9078 = vmatprep.mubr.bf16.mxu1 %v14966_v62 }
 0x84c   : > { %9012 = vmatpush1.bf16.msra.mxu0 %v7790_v59  ;;  %v14440_v51 = vpop.permute.xlu1 %7756 }
 0x84d   : > { %v14445_v24 = vpop.permute.xlu0 %8596  ;;  %9013 = vmatprep.subr.bf16.mxu0 %v7921_v31 }
 0x84e   : > { %v8625_v11 = vsel %vm425_vm0, %v14341_v27, %v14445_v24 }
 0x84f   : > { %9046 = vmatprep.subr.bf16.mxu1 %v8625_v11 }
 0x850   : > { %9014 = vmatpush1.bf16.msra.mxu0 %v7920_v14  ;;  %9047 = vmatpush1.bf16.msra.mxu1 %v8624_v19  ;;  %v7637_v26 = vpop.permute.xlu1 %7636 }
 0x851   : > { %v7639_v13 = vpop.permute.xlu0 %7638  ;;  %9015 = vmatprep.subr.bf16.mxu0 %v7929_v58  ;;  %v7664_v7 = vsel %vm811_vm8, %v14334_v6, %v7637_v26  ;;  %v7785_v6 = vsel %vm528_vm4, %v14440_v51, %v14434_v9 }
 0x854   : > { %9016 = vmatpush1.bf16.msra.mxu0 %v7928_v10  ;;  %v14460_v12 = vpop.permute.xlu1 %7894 }
 0x855   : > { %v7897_v56 = vpop.permute.xlu0 %7896  ;;  %9017 = vmatprep.subr.bf16.mxu0 %v8059_v37  ;;  %v7922_v14 = vsel %vm1228_vm9, %v14348_v39, %v14460_v12 }
 0x856   : > { %v7923_v11 = vsel %vm1228_vm9, %v14460_v12, %v7897_v56 }
 0x858   : > { %9018 = vmatpush1.bf16.msra.mxu0 %v8058_v32  ;;  %v14468_v27 = vpop.permute.xlu1 %8032 }
 0x859   : > { %v14472_v54 = vpop.permute.xlu0 %8034  ;;  %9019 = vmatprep.subr.bf16.mxu0 %v8067_v8  ;;  %v8060_v39 = vsel %vm1593_vm10, %v14359_v20, %v14468_v27 }
 0x85c   : > { %9020 = vmatpush1.bf16.msra.mxu0 %v8066_v34  ;;  %v7775_v5 = vpop.permute.xlu1 %7774 }
 0x85d   : > { %v7777_v0 = vpop.permute.xlu0 %7776  ;;  %9021 = vmatprep.subr.bf16.mxu0 %v13748_v4  ;;  %v7665_v4 = vsel %vm811_vm8, %v7637_v26, %v7639_v13  ;;  %v7792_v59 = vsel %vm528_vm4, %v14369_v25, %v7775_v5  ;;  %v8061_v13 = vsel %vm1593_vm10, %v14468_v27, %v14472_v54 }
 0x85e   : > { %v7793_v38 = vsel %vm528_vm4, %v7775_v5, %v7777_v0 }
 0x860   : > { %9022 = vmatpush1.bf16.msra.mxu0 %v15056_v18  ;;  %v7655_v46 = vpop.permute.xlu1 %7654 }
 0x861   : > { %v14478_v55 = vpop.permute.xlu0 %8614  ;;  %9023 = vmatprep.subr.bf16.mxu0 %v13777_v41  ;;  %v7672_v17 = vsel %vm811_vm8, %v14397_v50, %v7655_v46 }
 0x862   : > { %v8633_v45 = vsel %vm425_vm0, %v8613_v63, %v14478_v55 }
 0x863   : > { %9048 = vmatprep.subr.bf16.mxu1 %v8633_v45 }
 0x864   : > { %9024 = vmatpush1.bf16.msra.mxu0 %v15057_v57  ;;  %9049 = vmatpush1.bf16.msra.mxu1 %v8632_v52  ;;  %v8217_v28 = vpop.permute.xlu1 %8216 }
 0x865   : > { %9087 = vmatprep.subr.bf16.mxu1 %v7665_v4  ;;  %v14487_v2 = vpop.permute.xlu0 %8200  ;;  %v8236_v50 = vsel %vm1523_vm7, %v14367_v48, %v8217_v28 }
 0x866   : > { %v8229_v41 = vsel %vm1523_vm7, %v14357_v61, %v14487_v2 }
 0x867   : > { %9025 = vmatprep.subr.bf16.mxu0 %v8229_v41  ;;  %9392 = vmatmul.mubr.msk.bf16.vlgmr.msra.gmra.mrb[56].mxu1 %vm528_vm4, %v13796_v47 }
 0x868   : > { %9026 = vmatpush1.bf16.msra.mxu0 %v8228_v21  ;;  %9088 = vmatpush1.bf16.msra.mxu1 %v7664_v7  ;;  %v7913_v3 = vpop.permute.xlu1 %7912 }
 0x869   : > { %v7657_v42 = vpop.permute.xlu0 %7656  ;;  %9119 = vmatprep.mubr.bf16.mxu1 %v13870_v15  ;;  %v7784_v15 = vsel %vm528_vm4, %v14266_v33, %v14440_v51  ;;  %v7930_v58 = vsel %vm1228_vm9, %v14412_v49, %v7913_v3 }
 0x86a   : > { %v7673_v36 = vsel %vm811_vm8, %v7655_v46, %v7657_v42 }
 0x86b   : > { %9089 = vmatprep.subr.bf16.mxu1 %v7673_v36 }
 0x86c   : > { %9090 = vmatpush1.bf16.msra.mxu1 %v7672_v17  ;;  %v8051_v43 = vpop.permute.xlu1 %8050 }
 0x86d   : > { %9091 = vmatprep.subr.bf16.mxu1 %v7785_v6  ;;  %v14506_v61 = vpop.permute.xlu0 %8218  ;;  %v8068_v49 = vsel %vm1593_vm10, %v14426_v29, %v8051_v43 }
 0x86e   : > { %v8237_v16 = vsel %vm1523_vm7, %v8217_v28, %v14506_v61 }
 0x86f   : > { %9027 = vmatprep.subr.bf16.mxu0 %v8237_v16 }
 0x870   : > { %9028 = vmatpush1.bf16.msra.mxu0 %v8236_v50  ;;  %9092 = vmatpush1.bf16.msra.mxu1 %v7784_v15  ;;  %v8203_v63 = vpop.permute.xlu1 %8202 }
 0x871   : > { %9093 = vmatprep.subr.bf16.mxu1 %v7793_v38  ;;  %v8205_v9 = vpop.permute.xlu0 %8204 }
 0x872   : > { %v8231_v5 = vsel %vm1523_vm7, %v8203_v63, %v8205_v9 }
 0x874   : > { %9094 = vmatpush1.bf16.msra.mxu1 %v7792_v59  ;;  %v8337_v31 = vpop.permute.xlu1 %8336  ;;  %v9169_v59 = vld [vmem:[%s9998_s12 + $0x4] sm:$0x77] }
 0x875   : > { %v8366_v33 = vsel %vm1158_vm5, %v14304_v23, %v8337_v31  ;;  %9095 = vmatprep.subr.bf16.mxu1 %v7923_v11  ;;  %v8339_v48 = vpop.permute.xlu0 %8338 }
 0x876   : > { %v8367_v51 = vsel %vm1158_vm5, %v8337_v31, %v8339_v48 }
 0x877   : > { %9029 = vmatprep.subr.bf16.mxu0 %v8367_v51 }
 0x878   : > { %9030 = vmatpush1.bf16.msra.mxu0 %v8366_v33  ;;  %9096 = vmatpush1.bf16.msra.mxu1 %v7922_v14  ;;  %v8355_v25 = vpop.permute.xlu1 %8354 }
 0x879   : > { %v7915_v19 = vpop.permute.xlu0 %7914  ;;  %v8374_v34 = vsel %vm1158_vm5, %v14380_v53, %v8355_v25  ;;  %v8230_v53 = vsel %vm1523_vm7, %v14487_v2, %v8203_v63 }
 0x87a   : > { %v7931_v26 = vsel %vm1228_vm9, %v7913_v3, %v7915_v19 }
 0x87b   : > { %9097 = vmatprep.subr.bf16.mxu1 %v7931_v26 }
 0x87c   : > { %9098 = vmatpush1.bf16.msra.mxu1 %v7930_v58  ;;  %v8341_v23 = vpop.permute.xlu1 %8340 }
 0x87d   : > { %9099 = vmatprep.subr.bf16.mxu1 %v8061_v13  ;;  %v8223_v10 = vpop.permute.xlu0 %8222 }
 0x880   : > { %9100 = vmatpush1.bf16.msra.mxu1 %v8060_v39  ;;  %v8457_v12 = vpop.permute.xlu1 %8456 }
 0x881   : > { %v8053_v37 = vpop.permute.xlu0 %8052  ;;  %v8486_v18 = vsel %vm2839_vm11, %v14245_v44, %v8457_v12  ;;  %v8368_v44 = vsel %vm1158_vm5, %v8339_v48, %v8341_v23 }
 0x882   : > { %v8069_v56 = vsel %vm1593_vm10, %v8051_v43, %v8053_v37 }
 0x883   : > { %9101 = vmatprep.subr.bf16.mxu1 %v8069_v56 }
 0x884   : > { %9102 = vmatpush1.bf16.msra.mxu1 %v8068_v49  ;;  %v8475_v32 = vpop.permute.xlu1 %8474 }
 0x885   : > { %9103 = vmatprep.subr.bf16.mxu1 %v13828_v22  ;;  %v8357_v8 = vpop.permute.xlu0 %8356  ;;  %v8494_v28 = vsel %vm2839_vm11, %v14363_v30, %v8475_v32 }
 0x886   : > { %v8375_v54 = vsel %vm1158_vm5, %v8355_v25, %v8357_v8 }
 0x887   : > { %9031 = vmatprep.subr.bf16.mxu0 %v8375_v54 }
 0x888   : > { %9032 = vmatpush1.bf16.msra.mxu0 %v8374_v34  ;;  %9104 = vmatpush1.bf16.msra.mxu1 %v13818_v35  ;;  %v8221_v20 = vpop.permute.xlu1 %8220 }
 0x889   : > { %9105 = vmatprep.subr.bf16.mxu1 %v13852_v40  ;;  %v8343_v27 = vpop.permute.xlu0 %8342  ;;  %v8239_v35 = vsel %vm1523_vm7, %v8221_v20, %v8223_v10  ;;  %v8238_v46 = vsel %vm1523_vm7, %v14506_v61, %v8221_v20 }
 0x88a   : > { %v8369_v45 = vsel %vm1158_vm5, %v8341_v23, %v8343_v27 }
 0x88c   : > { %9106 = vmatpush1.bf16.msra.mxu1 %v13846_v60  ;;  %v8461_v29 = vpop.permute.xlu1 %8460 }
 0x88d   : > { %9107 = vmatprep.subr.bf16.mxu1 %v8231_v5  ;;  %v8459_v22 = vpop.permute.xlu0 %8458 }
 0x88e   : > { %v8487_v0 = vsel %vm2839_vm11, %v8457_v12, %v8459_v22  ;;  %v8488_v36 = vsel %vm2839_vm11, %v8459_v22, %v8461_v29  ;;  %v9170_v12 = vld [vmem:[%s9998_s12 + $0xc] sm:$0x77] }
 0x88f   : > { %9033 = vmatprep.subr.bf16.mxu0 %v8487_v0 }
 0x890   : > { %9034 = vmatpush1.bf16.msra.mxu0 %v8486_v18  ;;  %9108 = vmatpush1.bf16.msra.mxu1 %v8230_v53  ;;  %v8359_v40 = vpop.permute.xlu1 %8358 }
 0x891   : > { %9109 = vmatprep.subr.bf16.mxu1 %v8239_v35  ;;  %v8361_v60 = vpop.permute.xlu0 %8360  ;;  %v8376_v21 = vsel %vm1158_vm5, %v8357_v8, %v8359_v40  ;;  %v9178_v8 = vcombine.high %v9170_v12, %v9170_v12 }
 0x892   : > { %v8377_v2 = vsel %vm1158_vm5, %v8359_v40, %v8361_v60  ;;  %v9171_v60 = vld [vmem:[%s9998_s12 + $0x14] sm:$0x77] }
 0x894   : > { %9110 = vmatpush1.bf16.msra.mxu1 %v8238_v46  ;;  %v8599_v4 = vpop.permute.xlu1 %8598 }
 0x895   : > { %9111 = vmatprep.subr.bf16.mxu1 %v8369_v45  ;;  %v8477_v52 = vpop.permute.xlu0 %8476  ;;  %v8626_v17 = vsel %vm425_vm0, %v14445_v24, %v8599_v4 }
 0x896   : > { %v8495_v57 = vsel %vm2839_vm11, %v8475_v32, %v8477_v52 }
 0x897   : > { %9035 = vmatprep.subr.bf16.mxu0 %v8495_v57  ;;  %v9179_v57 = vcombine.high %v9171_v60, %v9171_v60 }
 0x898   : > { %9036 = vmatpush1.bf16.msra.mxu0 %v8494_v28  ;;  %9112 = vmatpush1.bf16.msra.mxu1 %v8368_v44  ;;  %v8479_v30 = vpop.permute.xlu1 %8478 }
 0x899   : > { %9113 = vmatprep.subr.bf16.mxu1 %v8377_v2  ;;  %v8463_v41 = vpop.permute.xlu0 %8462  ;;  %v8496_v61 = vsel %vm2839_vm11, %v8477_v52, %v8479_v30 }
 0x89a   : > { %v8489_v7 = vsel %vm2839_vm11, %v8461_v29, %v8463_v41 }
 0x89b   : > { %9038 = vmatmul.mubr.bf16.vlgmr.msra.gmra.mrb[56].mxu0 %v13857_v1 }
 0x89c   : > { %9114 = vmatpush1.bf16.msra.mxu1 %v8376_v21  ;;  %9160 = vmatprep.mubr.bf16.mxu0 %v14966_v62  ;;  %v8617_v62 = vpop.permute.xlu1 %8616 }
 0x89d   : > { %9115 = vmatprep.subr.bf16.mxu1 %v8489_v7  ;;  %v8601_v3 = vpop.permute.xlu0 %8600  ;;  %v8634_v50 = vsel %vm425_vm0, %v14478_v55, %v8617_v62  ;;  %v9177_v55 = vcombine.high %v9169_v59, %v9169_v59 }
 0x89e   : > { %v8627_v42 = vsel %vm425_vm0, %v8599_v4, %v8601_v3 }
 0x89f   : > { %9128 = vmatprep.subr.bf16.mxu0 %v8627_v42  ;;  %v9172_v42 = vld [vmem:[%s9998_s12 + $0x1c] sm:$0x77] }
 0x8a0   : > { %9116 = vmatpush1.bf16.msra.mxu1 %v8488_v36  ;;  %9129 = vmatpush1.bf16.msra.mxu0 %v8626_v17 }
 0x8a1   : > { %v8481_v43 = vpop.permute.xlu0 %8480 }
 0x8a2   : > { %v8497_v6 = vsel %vm2839_vm11, %v8479_v30, %v8481_v43 }
 0x8a3   : > { %9117 = vmatprep.subr.bf16.mxu1 %v8497_v6 }
 0x8a4   : > { %9118 = vmatpush1.bf16.msra.mxu1 %v8496_v61 }
 0x8a5   : > { %v8619_v16 = vpop.permute.xlu0 %8618 }
 0x8a6   : > { %v8635_v15 = vsel %vm425_vm0, %v8617_v62, %v8619_v16  ;;  %v9180_v62 = vcombine.high %v9172_v42, %v9172_v42 }
 0x8a7   : > { %9120 = vmatmul.mubr.bf16.vlgmr.msra.gmra.mrb[60].mxu1 %v13857_v1  ;;  %9130 = vmatprep.subr.bf16.mxu0 %v8635_v15 }
 0x8a8   : > { %9131 = vmatpush1.bf16.msra.mxu0 %v8634_v50 }
 0x8ab   : > { %9393 = vmatmul.mubr.msk.bf16.vlgmr.msra.gmra.mrb[60].mxu0 %vm528_vm4, %v13796_v47 }
 0x8ad   : > { %v8817_v31 = vpop.permute.xlu1 %8816 }
 0x8d6   : > { %v8916_v24 = vpop.f32.mrb[48].mxu1 }
 0x8d7   : > { %v8918_v63 = vpop.f32.mrb[49].mxu1 }
 0x8d8   : > { %v8920_v38 = vpop.f32.mrb[50].mxu1 }
 0x8d9   : > { %v8921_v9 = vpop.f32.mrb[51].mxu1 }
 0x8f2   : > { %v8875_v11 = vpop.f32.mrb[48].mxu0 }
 0x8f3   : > { %v8876_v33 = vadd.f32 %v8875_v11, %v8817_v31  ;;  %v8877_v48 = vpop.f32.mrb[49].mxu0 }
 0x8f4   : > { %v8878_v51 = vadd.f32 %v8877_v48, %v8817_v31  ;;  %v8879_v14 = vpop.f32.mrb[50].mxu0 }
 0x8f5   : > { %v8917_v1 = vadd.f32 %v8916_v24, %v8876_v33  ;;  %v8880_v25 = vpop.f32.mrb[51].mxu0 }
 0x8f6   : > { %v8919_v19 = vadd.f32 %v8918_v63, %v8878_v51 }
 0x8f7   : > { %v9185_v26 = vadd.f32 %v9169_v59, %v8917_v1 }
 0x8f8   : > { %v9186_v58 = vadd.f32 %v9177_v55, %v8919_v19 }
 0x8fa   : > { %v9201_v47 = vcombine.low %v9185_v26, %v9186_v58 }
 0x8fc   : > { %9209 = vst [vmem:[%s14581_s23] sm:$0x77] %v9201_v47 }
 0x912   : > { %v8998_v23 = vpop.f32.mrb[52].mxu0 }
 0x913   : > { %v9000_v13 = vpop.f32.mrb[53].mxu0 }
 0x914   : > { %v9002_v10 = vpop.f32.mrb[54].mxu0 }
 0x915   : > { %v9003_v39 = vpop.f32.mrb[55].mxu0 }
 0x91d   : > { %v8957_v37 = vpop.f32.mrb[52].mxu1 }
 0x91e   : > { %v8958_v56 = vadd.f32 %v8957_v37, %v8817_v31  ;;  %v8959_v49 = vpop.f32.mrb[53].mxu1 }
 0x91f   : > { %v8960_v32 = vadd.f32 %v8959_v49, %v8817_v31  ;;  %v8961_v54 = vpop.f32.mrb[54].mxu1 }
 0x920   : > { %v8999_v34 = vadd.f32 %v8998_v23, %v8958_v56  ;;  %v8962_v20 = vpop.f32.mrb[55].mxu1 }
 0x921   : > { %v9001_v27 = vadd.f32 %v9000_v13, %v8960_v32 }
 0x922   : > { %v9187_v29 = vadd.f32 %v9170_v12, %v8999_v34 }
 0x923   : > { %v9188_v5 = vadd.f32 %v9178_v8, %v9001_v27 }
 0x925   : > { %v9202_v22 = vcombine.low %v9187_v29, %v9188_v5 }
 0x927   : > { %9210 = vst [vmem:[%s14581_s23 + $0x8] sm:$0x77] %v9202_v22 }
 0x93a   : > { %v9080_v0 = vpop.f32.mrb[56].mxu1 }
 0x93b   : > { %v9082_v53 = vpop.f32.mrb[57].mxu1 }
 0x93c   : > { %v9084_v18 = vpop.f32.mrb[58].mxu1 }
 0x93d   : > { %v9085_v35 = vpop.f32.mrb[59].mxu1 }
 0x96e   : > { %v9039_v40 = vpop.f32.mrb[56].mxu0 }
 0x96f   : > { %v9040_v46 = vadd.f32 %v9039_v40, %v8817_v31  ;;  %v9041_v45 = vpop.f32.mrb[57].mxu0 }
 0x970   : > { %v9042_v52 = vadd.f32 %v9041_v45, %v8817_v31  ;;  %v9043_v44 = vpop.f32.mrb[58].mxu0 }
 0x971   : > { %v9081_v28 = vadd.f32 %v9080_v0, %v9040_v46  ;;  %v9044_v4 = vpop.f32.mrb[59].mxu0 }
 0x972   : > { %v9083_v2 = vadd.f32 %v9082_v53, %v9042_v52 }
 0x973   : > { %v9189_v41 = vadd.f32 %v9171_v60, %v9081_v28 }
 0x974   : > { %v9190_v21 = vadd.f32 %v9179_v57, %v9083_v2 }
 0x976   : > { %v9203_v7 = vcombine.low %v9189_v41, %v9190_v21 }
 0x978   : > { %9211 = vst [vmem:[%s14581_s23 + $0x10] sm:$0x77] %v9203_v7 }
 0x97a   : > { %v9121_v3 = vpop.f32.mrb[60].mxu1 }
 0x97b   : > { %v9123_v30 = vpop.f32.mrb[61].mxu1  ;;  %v9122_v17 = vadd.f32 %v9121_v3, %v8817_v31 }
 0x97c   : > { %v9125_v36 = vpop.f32.mrb[62].mxu1  ;;  %v9124_v6 = vadd.f32 %v9123_v30, %v8817_v31 }
 0x97d   : > { %v9126_v43 = vpop.f32.mrb[63].mxu1 }
 0x97e   : > { %v9162_v61 = vpop.f32.mrb[60].mxu0 }
 0x97f   : > { %v9163_v16 = vadd.f32 %v9162_v61, %v9122_v17  ;;  %v9164_v15 = vpop.f32.mrb[61].mxu0 }
 0x980   : > { %v9165_v50 = vadd.f32 %v9164_v15, %v9124_v6  ;;  %v9166_v24 = vpop.f32.mrb[62].mxu0 }
 0x981   : > { %v9191_v63 = vadd.f32 %v9172_v42, %v9163_v16  ;;  %v9167_v38 = vpop.f32.mrb[63].mxu0 }
 0x982   : > { %v9192_v9 = vadd.f32 %v9180_v62, %v9165_v50 }
 0x984   : > { %v9204_v59 = vcombine.low %v9191_v63, %v9192_v9 }
 0x986   : > { %9212 = vst [vmem:[%s14581_s23 + $0x18] sm:$0x77] %v9204_v59 }
 0x987 PF: > { %s18_s27 = sadd.s32 1, %s9878_s27  }
 0x988   : > { %p15_p4 = scmp.ge.s32.totalorder %s18_s27, 4  }
 0x98a   :  { %17 = sbr.rel (!%p15_p4) target bundleno = 1 (0x1), region = 84 }

</bundles_post_ra>
